<compile_context>
chip_gen: v7x
topology: tpu7x:2x2x1
jax: 0.10.0
libtpu: 0.0.40
codegen_flags: <defaults>
</compile_context>

<pallas_src>
import math

import jax
import jax.numpy as jnp
from jax import lax
from jax.experimental import pallas as pl
from jax.experimental.pallas import tpu as pltpu

SELU_ALPHA = 1.6732632423543772848170429916717
SELU_SCALE = 1.0507009873554804934193349852946
_BN_EPS = 1e-5
_LN_EPS = 1e-5


def _selu(y):
    neg = SELU_ALPHA * (jnp.exp(jnp.minimum(y, 0.0)) - 1.0)
    return SELU_SCALE * jnp.where(y > 0, y, neg)


# ----------------------------------------------------------------------------
# Fused kernel: full Policy forward for one (flattened) batch.
# ----------------------------------------------------------------------------
def _policy_fused_kernel(p1_ref, obs_ref,
                         w1_ref, b1_ref, g1_ref, be1_ref,
                         w2_ref, b2_ref, g2_ref, be2_ref,
                         w3_ref,
                         wl1o_ref, wl1c_ref, bl1_ref, lng_ref, lnb_ref,
                         wl2_ref,
                         o_ref,
                         xp2_ref):
    f32, bf16 = jnp.float32, jnp.bfloat16

    B = obs_ref.shape[0]
    C1 = w1_ref.shape[1]                 # 128
    C2 = w2_ref.shape[1]                 # 256
    M1 = p1_ref.shape[0]                 # B*H*W
    H = W = int(math.isqrt(M1 // B))     # 8 (Policy hard-codes 1024 conv feats)
    Hp, Wp = H // 2, W // 2              # 4, 4 after 2x2 max-pool
    VW = Wp + 2                          # padded ("virtual") row width for conv2
    NV = Hp * VW                         # 24 virtual conv2 rows / sample (mult of 8)

    # ---- conv1 (3x3, pad 1): single K=9*Cin MXU pass over the im2col patch --
    h1 = jnp.dot(p1_ref[...], w1_ref[...],
                 preferred_element_type=f32) + b1_ref[...]           # (B*H*W, 128)

    # ---- BatchNorm1 (current-batch stats, biased var) + SELU ----------------
    n1 = float(M1)
    mu1 = jnp.sum(h1, axis=0, keepdims=True) / n1
    var1 = jnp.sum((h1 - mu1) ** 2, axis=0, keepdims=True) / n1
    a1 = _selu((h1 - mu1) * lax.rsqrt(var1 + _BN_EPS)
               * g1_ref[...] + be1_ref[...])                          # (B*H*W, 128)

    # ---- 2x2/s2 max-pool, written straight into the zero-padded, row-flat ---
    #      conv2 input buffer (VMEM scratch). Flat index = y*VW + x.
    xp2_ref[...] = jnp.zeros_like(xp2_ref)
    a1 = a1.reshape(B, Hp, 2, W, C1)            # tile-preserving split of rows
    mh = jnp.maximum(a1[:, :, 0], a1[:, :, 1])  # (B, Hp, W, C1), pooled over H
    for y in range(Hp):
        for x in range(Wp):
            v = jnp.maximum(mh[:, y, 2 * x, :], mh[:, y, 2 * x + 1, :])
            xp2_ref[:, (y + 1) * VW + (x + 1), :] = v.astype(bf16)

    # ---- conv2 (3x3, pad 1): ONE K=1152 MXU pass over "virtual rows" --------
    # Tap (ky,kx) of virtual output v is the contiguous slice [v+ky*VW+kx];
    # columns wp >= Wp of each virtual row are junk and are simply never used.
    taps2 = [xp2_ref[:, ky * VW + kx: ky * VW + kx + NV, :]
             for ky in range(3) for kx in range(3)]                   # (B, NV, 128)
    p2 = jnp.concatenate(taps2, axis=-1).reshape(B * NV, 9 * C1)      # (B*NV, 1152)
    h2 = jnp.dot(p2, w2_ref[...], preferred_element_type=f32) + b2_ref[...]
    h2 = h2.reshape(B, NV, C2)

    # ---- BatchNorm2: stats over the Wp *valid* columns of every row ---------
    n2 = float(B * Hp * Wp)
    valid = [h2[:, hp * VW: hp * VW + Wp, :] for hp in range(Hp)]
    mu2 = sum(jnp.sum(blk, axis=(0, 1), keepdims=True) for blk in valid) / n2
    var2 = sum(jnp.sum((blk - mu2) ** 2, axis=(0, 1), keepdims=True)
               for blk in valid) / n2
    a2 = _selu((h2 - mu2) * lax.rsqrt(var2 + _BN_EPS)
               * g2_ref[...] + be2_ref[...]).astype(bf16)             # (B, NV, 256)

    # ---- conv3 (2x2, stride 2, no bias): one K=1024 matmul per output pos ---
    feats = []
    for i in range(Hp // 2):
        for j in range(Wp // 2):
            xt = jnp.concatenate(
                [a2[:, (2 * i + dy) * VW + (2 * j + dx), :]
                 for dy in range(2) for dx in range(2)], axis=-1)     # (B, 1024)
            feats.append(jnp.dot(xt, w3_ref[...],
                                 preferred_element_type=f32))          # (B, 256)
    conv_feat = jnp.concatenate(feats, axis=-1)                        # (B, 1024)

    # ---- head: Linear -> LayerNorm -> ReLU -> Linear(no bias) -> log_softmax
    # (first Linear split into obs / conv weight blocks == concat + one Linear)
    z = (jnp.dot(obs_ref[...], wl1o_ref[...], preferred_element_type=f32)
         + jnp.dot(conv_feat, wl1c_ref[...], preferred_element_type=f32)
         + bl1_ref[...])                                               # (B, hidden)
    mu = jnp.mean(z, axis=-1, keepdims=True)
    var = jnp.mean((z - mu) ** 2, axis=-1, keepdims=True)
    zn = (z - mu) * lax.rsqrt(var + _LN_EPS) * lng_ref[...] + lnb_ref[...]
    hrelu = jnp.maximum(zn, 0.0)
    logits = jnp.dot(hrelu, wl2_ref[...], preferred_element_type=f32)  # (B, A)
    m = jnp.max(logits, axis=-1, keepdims=True)
    lse = m + jnp.log(jnp.sum(jnp.exp(logits - m), axis=-1, keepdims=True))
    o_ref[...] = logits - lse


# ----------------------------------------------------------------------------
# Wrapper
# ----------------------------------------------------------------------------
def _conv1_im2col(image_nchw):
    # (B, Cin, H, W) NCHW -> (B*H*W, 9*Cin) patches, K ordered (ky, kx, cin).
    B, Cin, H, W = image_nchw.shape
    xp = jnp.pad(image_nchw, ((0, 0), (0, 0), (1, 1), (1, 1)))
    taps = [xp[:, :, ky:ky + H, kx:kx + W]
            for ky in range(3) for kx in range(3)]          # 9 x (B, Cin, H, W)
    t = jnp.stack(taps, axis=1)                             # (B, 9, Cin, H, W)
    t = jnp.transpose(t, (0, 3, 4, 1, 2))                   # (B, H, W, 9, Cin)
    return t.reshape(B * H * W, 9 * Cin)


def _policy_pallas(flat_obs, image, params):
    B, Cin, H, W = image.shape
    assert H == 8 and W == 8, "Policy hard-codes +1024 conv features => 8x8 images"
    F = flat_obs.shape[-1]
    hidden = params["wl1_obs"].shape[-1]
    A = params["wl2"].shape[-1]
    Hp, Wp = H // 2, W // 2
    VW = Wp + 2
    NV = Hp * VW

    patches = _conv1_im2col(image.astype(jnp.float32)).astype(jnp.bfloat16)

    w1 = params["w1"].reshape(9 * Cin, 128).astype(jnp.bfloat16)
    w2 = params["w2"].reshape(9 * 128, 256).astype(jnp.bfloat16)
    w3 = params["w3"].reshape(4 * 256, 256).astype(jnp.bfloat16)

    args = (
        patches, flat_obs.astype(jnp.float32),
        w1, params["b1"].reshape(1, 128), params["g1"].reshape(1, 128),
        params["be1"].reshape(1, 128),
        w2, params["b2"].reshape(1, 256), params["g2"].reshape(1, 256),
        params["be2"].reshape(1, 256),
        w3,
        params["wl1_obs"], params["wl1_conv"],
        params["bl1"].reshape(1, hidden),
        params["ln_g"].reshape(1, hidden), params["ln_b"].reshape(1, hidden),
        params["wl2"],
    )

    flops = 2 * (B * H * W * (9 * Cin) * 128
                 + B * NV * (9 * 128) * 256
                 + 4 * B * 1024 * 256
                 + B * (F * hidden + 1024 * hidden + hidden * A))
    transc = B * H * W * 128 + B * NV * 256 + 2 * B * A
    nbytes = sum(int(a.size) * a.dtype.itemsize for a in args) + B * A * 4

    return pl.pallas_call(
        _policy_fused_kernel,
        out_shape=jax.ShapeDtypeStruct((B, A), jnp.float32),
        in_specs=[pl.BlockSpec(memory_space=pltpu.MemorySpace.VMEM)] * len(args),
        out_specs=pl.BlockSpec(memory_space=pltpu.MemorySpace.VMEM),
        scratch_shapes=[
            # padded, row-flattened pooled activations (extra rows stay zero so
            # the "virtual row" tap slices never read out of bounds)
            pltpu.VMEM((B, (Hp + 2) * VW + Wp, 128), jnp.bfloat16),
        ],
        cost_estimate=pl.CostEstimate(flops=int(flops),
                                      transcendentals=int(transc),
                                      bytes_accessed=int(nbytes)),
    )(*args)


def policy_forward(flat_obs, image, params):
    """Matches Policy.forward(flat_obs, image): supports (N,L,...) and (N,...)."""
    if image.ndim == 5:
        N, L = image.shape[:2]
        out = _policy_pallas(flat_obs.reshape(N * L, flat_obs.shape[-1]),
                             image.reshape((N * L,) + image.shape[2:]),
                             params)
        return out.reshape(N, L, out.shape[-1])
    return _policy_pallas(flat_obs, image, params)


# ----------------------------------------------------------------------------
# Deterministic parameter init + run
# ----------------------------------------------------------------------------
def init_params(key, in_channels, in_features, hidden_dim, actions_n):
    ks = jax.random.split(key, 16)

    def w(k, fan_in, shape):
        return jax.random.normal(k, shape, jnp.float32) / jnp.sqrt(float(fan_in))

    return {
        # VGG conv block (HWIO weight layout; reshaped to matmul form in wrapper)
        "w1": w(ks[0], 9 * in_channels, (3, 3, in_channels, 128)),
        "b1": 0.01 * jax.random.normal(ks[1], (128,), jnp.float32),
        "g1": 1.0 + 0.1 * jax.random.normal(ks[2], (128,), jnp.float32),
        "be1": 0.1 * jax.random.normal(ks[3], (128,), jnp.float32),
        "w2": w(ks[4], 9 * 128, (3, 3, 128, 256)),
        "b2": 0.01 * jax.random.normal(ks[5], (256,), jnp.float32),
        "g2": 1.0 + 0.1 * jax.random.normal(ks[6], (256,), jnp.float32),
        "be2": 0.1 * jax.random.normal(ks[7], (256,), jnp.float32),
        "w3": w(ks[8], 4 * 256, (2, 2, 256, 256)),          # bias=False
        # MLP head; wl1_conv rows are ordered (h_out, w_out, channel)
        "wl1_obs": w(ks[9], in_features + 1024, (in_features, hidden_dim)),
        "wl1_conv": w(ks[10], in_features + 1024, (1024, hidden_dim)),
        "bl1": 0.01 * jax.random.normal(ks[11], (hidden_dim,), jnp.float32),
        "ln_g": 1.0 + 0.1 * jax.random.normal(ks[12], (hidden_dim,), jnp.float32),
        "ln_b": 0.1 * jax.random.normal(ks[13], (hidden_dim,), jnp.float32),
        "wl2": w(ks[14], hidden_dim, (hidden_dim, actions_n)),  # bias=False
    }


if __name__ == "__main__":
    key = jax.random.PRNGKey(0)
    pkey, ikey, okey = jax.random.split(key, 3)

    in_channels, in_features, hidden_dim, actions_n = 4, 16, 32, 5
    H = W = 8          # 256*(H/4)*(W/4) must equal the hard-coded 1024
    N, L = 2, 3

    params = init_params(pkey, in_channels, in_features, hidden_dim, actions_n)
    fwd = jax.jit(policy_forward)

    # sequence path: 5-D image / 3-D flat_obs
    image5 = jax.random.normal(ikey, (N, L, in_channels, H, W), jnp.float32)
    obs3 = jax.random.normal(okey, (N, L, in_features), jnp.float32)
    logp5 = jax.block_until_ready(fwd(obs3, image5, params))
    assert logp5.shape == (N, L, actions_n), logp5.shape

    # single-step path: 4-D image / 2-D flat_obs
    logp4 = jax.block_until_ready(fwd(obs3[:, 0], image5[:, 0], params))
    assert logp4.shape == (N, actions_n), logp4.shape

    for lp in (logp5, logp4):
        assert bool(jnp.all(jnp.isfinite(lp)))
        probs = jnp.sum(jnp.exp(lp), axis=-1)          # log_softmax sanity check
        assert bool(jnp.all(jnp.abs(probs - 1.0) < 1e-3)), probs

    print("KERNEL_OK")
</pallas_src>

<mosaic_0001>
module attributes {stable_mosaic.version = 11 : i64} {
  func.func @_policy_fused_kernel(%arg0: memref<384x36xbf16, #tpu.memory_space<vmem>>, %arg1: memref<6x16xf32, #tpu.memory_space<vmem>>, %arg2: memref<36x128xbf16, #tpu.memory_space<vmem>>, %arg3: memref<1x128xf32, #tpu.memory_space<vmem>>, %arg4: memref<1x128xf32, #tpu.memory_space<vmem>>, %arg5: memref<1x128xf32, #tpu.memory_space<vmem>>, %arg6: memref<1152x256xbf16, #tpu.memory_space<vmem>>, %arg7: memref<1x256xf32, #tpu.memory_space<vmem>>, %arg8: memref<1x256xf32, #tpu.memory_space<vmem>>, %arg9: memref<1x256xf32, #tpu.memory_space<vmem>>, %arg10: memref<1024x256xbf16, #tpu.memory_space<vmem>>, %arg11: memref<16x32xf32, #tpu.memory_space<vmem>>, %arg12: memref<1024x32xf32, #tpu.memory_space<vmem>>, %arg13: memref<1x32xf32, #tpu.memory_space<vmem>>, %arg14: memref<1x32xf32, #tpu.memory_space<vmem>>, %arg15: memref<1x32xf32, #tpu.memory_space<vmem>>, %arg16: memref<32x5xf32, #tpu.memory_space<vmem>>, %arg17: memref<6x5xf32, #tpu.memory_space<vmem>>, %arg18: memref<6x40x128xbf16, #tpu.memory_space<vmem>>) attributes {dimension_semantics = [], scalar_prefetch = 0 : i64, scratch_operands = 1 : i64, tpu.core_type = #tpu.core_type<tc>} {
    %c0 = arith.constant 0 : index
    %c0_0 = arith.constant 0 : index
    %0 = vector.load %arg0[%c0, %c0_0] : memref<384x36xbf16, #tpu.memory_space<vmem>>, vector<384x36xbf16>
    %c0_1 = arith.constant 0 : index
    %c0_2 = arith.constant 0 : index
    %1 = vector.load %arg2[%c0_1, %c0_2] : memref<36x128xbf16, #tpu.memory_space<vmem>>, vector<36x128xbf16>
    %cst = arith.constant dense<0.000000e+00> : vector<384x128xf32>
    %2 = tpu.matmul %0, %1, %cst {dimension_numbers = #tpu.dot_dimension_numbers<[1], [0], [0], [1], [0, 0, 1, 1], [], []>} : vector<384x36xbf16>, vector<36x128xbf16>, vector<384x128xf32> -> vector<384x128xf32>
    %c0_3 = arith.constant 0 : index
    %c0_4 = arith.constant 0 : index
    %3 = vector.load %arg3[%c0_3, %c0_4] : memref<1x128xf32, #tpu.memory_space<vmem>>, vector<1x128xf32>
    %4 = vector.broadcast %3 : vector<1x128xf32> to vector<384x128xf32>
    %5 = arith.addf %2, %4 : vector<384x128xf32>
    %cst_5 = arith.constant dense<0.000000e+00> : vector<128xf32>
    %6 = vector.multi_reduction <add>, %5, %cst_5 [0] : vector<384x128xf32> to vector<128xf32>
    %7 = vector.shape_cast %6 : vector<128xf32> to vector<1x128xf32>
    %cst_6 = arith.constant 3.840000e+02 : f32
    %8 = vector.broadcast %cst_6 : f32 to vector<1x128xf32>
    %9 = arith.divf %7, %8 : vector<1x128xf32>
    %10 = vector.broadcast %9 : vector<1x128xf32> to vector<384x128xf32>
    %11 = arith.subf %5, %10 : vector<384x128xf32>
    %12 = arith.mulf %11, %11 : vector<384x128xf32>
    %cst_7 = arith.constant dense<0.000000e+00> : vector<128xf32>
    %13 = vector.multi_reduction <add>, %12, %cst_7 [0] : vector<384x128xf32> to vector<128xf32>
    %14 = vector.shape_cast %13 : vector<128xf32> to vector<1x128xf32>
    %cst_8 = arith.constant 3.840000e+02 : f32
    %15 = vector.broadcast %cst_8 : f32 to vector<1x128xf32>
    %16 = arith.divf %14, %15 : vector<1x128xf32>
    %17 = vector.broadcast %9 : vector<1x128xf32> to vector<384x128xf32>
    %18 = arith.subf %5, %17 : vector<384x128xf32>
    %cst_9 = arith.constant 9.99999974E-6 : f32
    %19 = vector.broadcast %cst_9 : f32 to vector<1x128xf32>
    %20 = arith.addf %16, %19 : vector<1x128xf32>
    %21 = math.rsqrt %20 : vector<1x128xf32>
    %22 = vector.broadcast %21 : vector<1x128xf32> to vector<384x128xf32>
    %23 = arith.mulf %18, %22 : vector<384x128xf32>
    %c0_10 = arith.constant 0 : index
    %c0_11 = arith.constant 0 : index
    %24 = vector.load %arg4[%c0_10, %c0_11] : memref<1x128xf32, #tpu.memory_space<vmem>>, vector<1x128xf32>
    %25 = vector.broadcast %24 : vector<1x128xf32> to vector<384x128xf32>
    %26 = arith.mulf %23, %25 : vector<384x128xf32>
    %c0_12 = arith.constant 0 : index
    %c0_13 = arith.constant 0 : index
    %27 = vector.load %arg5[%c0_12, %c0_13] : memref<1x128xf32, #tpu.memory_space<vmem>>, vector<1x128xf32>
    %28 = vector.broadcast %27 : vector<1x128xf32> to vector<384x128xf32>
    %29 = arith.addf %26, %28 : vector<384x128xf32>
    %cst_14 = arith.constant 0.000000e+00 : f32
    %30 = vector.broadcast %cst_14 : f32 to vector<384x128xf32>
    %31 = arith.minimumf %29, %30 : vector<384x128xf32>
    %32 = math.exp %31 : vector<384x128xf32>
    %cst_15 = arith.constant 1.000000e+00 : f32
    %33 = vector.broadcast %cst_15 : f32 to vector<384x128xf32>
    %34 = arith.subf %32, %33 : vector<384x128xf32>
    %cst_16 = arith.constant 1.67326319 : f32
    %35 = vector.broadcast %cst_16 : f32 to vector<384x128xf32>
    %36 = arith.mulf %35, %34 : vector<384x128xf32>
    %cst_17 = arith.constant 0.000000e+00 : f32
    %37 = vector.broadcast %cst_17 : f32 to vector<384x128xf32>
    %38 = arith.cmpf ogt, %29, %37 : vector<384x128xf32>
    %39 = arith.select %38, %29, %36 : vector<384x128xi1>, vector<384x128xf32>
    %cst_18 = arith.constant 1.05070102 : f32
    %40 = vector.broadcast %cst_18 : f32 to vector<384x128xf32>
    %41 = arith.mulf %40, %39 : vector<384x128xf32>
    %cst_19 = arith.constant 0.000000e+00 : bf16
    %42 = vector.broadcast %cst_19 : bf16 to vector<6x40x128xbf16>
    %c0_20 = arith.constant 0 : index
    %c0_21 = arith.constant 0 : index
    %c0_22 = arith.constant 0 : index
    %43 = vector.load %arg18[%c0_20, %c0_21, %c0_22] : memref<6x40x128xbf16, #tpu.memory_space<vmem>>, vector<6x40x128xbf16>
    tpu.vector_store %arg18[%c0_20, %c0_21, %c0_22], %42 {strides = array<i32>} : memref<6x40x128xbf16, #tpu.memory_space<vmem>>, vector<6x40x128xbf16>,
    %44 = vector.shape_cast %41 : vector<384x128xf32> to vector<6x4x2x8x128xf32>
    %45 = vector.extract_strided_slice %44 {offsets = [0, 0, 0, 0, 0], sizes = [6, 4, 1, 8, 128], strides = [1, 1, 1, 1, 1]} : vector<6x4x2x8x128xf32> to vector<6x4x1x8x128xf32>
    %46 = vector.shape_cast %45 : vector<6x4x1x8x128xf32> to vector<6x4x8x128xf32>
    %47 = vector.extract_strided_slice %44 {offsets = [0, 0, 1, 0, 0], sizes = [6, 4, 1, 8, 128], strides = [1, 1, 1, 1, 1]} : vector<6x4x2x8x128xf32> to vector<6x4x1x8x128xf32>
    %48 = vector.shape_cast %47 : vector<6x4x1x8x128xf32> to vector<6x4x8x128xf32>
    %49 = arith.maximumf %46, %48 : vector<6x4x8x128xf32>
    %50 = vector.extract_strided_slice %49 {offsets = [0, 0, 0, 0], sizes = [6, 1, 1, 128], strides = [1, 1, 1, 1]} : vector<6x4x8x128xf32> to vector<6x1x1x128xf32>
    %51 = vector.shape_cast %50 : vector<6x1x1x128xf32> to vector<6x128xf32>
    %52 = vector.extract_strided_slice %49 {offsets = [0, 0, 1, 0], sizes = [6, 1, 1, 128], strides = [1, 1, 1, 1]} : vector<6x4x8x128xf32> to vector<6x1x1x128xf32>
    %53 = vector.shape_cast %52 : vector<6x1x1x128xf32> to vector<6x128xf32>
    %54 = arith.maximumf %51, %53 : vector<6x128xf32>
    %55 = arith.truncf %54 : vector<6x128xf32> to vector<6x128xbf16>
    %c0_23 = arith.constant 0 : index
    %c7 = arith.constant 7 : index
    %c0_24 = arith.constant 0 : index
    %56 = vector.load %arg18[%c0_23, %c7, %c0_24] : memref<6x40x128xbf16, #tpu.memory_space<vmem>>, vector<6x1x128xbf16>
    %57 = vector.shape_cast %56 : vector<6x1x128xbf16> to vector<6x128xbf16>
    %58 = vector.shape_cast %55 : vector<6x128xbf16> to vector<6x1x128xbf16>
    tpu.vector_store %arg18[%c0_23, %c7, %c0_24], %58 {strides = array<i32>} : memref<6x40x128xbf16, #tpu.memory_space<vmem>>, vector<6x1x128xbf16>,
    %59 = vector.extract_strided_slice %49 {offsets = [0, 0, 2, 0], sizes = [6, 1, 1, 128], strides = [1, 1, 1, 1]} : vector<6x4x8x128xf32> to vector<6x1x1x128xf32>
    %60 = vector.shape_cast %59 : vector<6x1x1x128xf32> to vector<6x128xf32>
    %61 = vector.extract_strided_slice %49 {offsets = [0, 0, 3, 0], sizes = [6, 1, 1, 128], strides = [1, 1, 1, 1]} : vector<6x4x8x128xf32> to vector<6x1x1x128xf32>
    %62 = vector.shape_cast %61 : vector<6x1x1x128xf32> to vector<6x128xf32>
    %63 = arith.maximumf %60, %62 : vector<6x128xf32>
    %64 = arith.truncf %63 : vector<6x128xf32> to vector<6x128xbf16>
    %c0_25 = arith.constant 0 : index
    %c8 = arith.constant 8 : index
    %c0_26 = arith.constant 0 : index
    %65 = vector.load %arg18[%c0_25, %c8, %c0_26] : memref<6x40x128xbf16, #tpu.memory_space<vmem>>, vector<6x1x128xbf16>
    %66 = vector.shape_cast %65 : vector<6x1x128xbf16> to vector<6x128xbf16>
    %67 = vector.shape_cast %64 : vector<6x128xbf16> to vector<6x1x128xbf16>
    tpu.vector_store %arg18[%c0_25, %c8, %c0_26], %67 {strides = array<i32>} : memref<6x40x128xbf16, #tpu.memory_space<vmem>>, vector<6x1x128xbf16>,
    %68 = vector.extract_strided_slice %49 {offsets = [0, 0, 4, 0], sizes = [6, 1, 1, 128], strides = [1, 1, 1, 1]} : vector<6x4x8x128xf32> to vector<6x1x1x128xf32>
    %69 = vector.shape_cast %68 : vector<6x1x1x128xf32> to vector<6x128xf32>
    %70 = vector.extract_strided_slice %49 {offsets = [0, 0, 5, 0], sizes = [6, 1, 1, 128], strides = [1, 1, 1, 1]} : vector<6x4x8x128xf32> to vector<6x1x1x128xf32>
    %71 = vector.shape_cast %70 : vector<6x1x1x128xf32> to vector<6x128xf32>
    %72 = arith.maximumf %69, %71 : vector<6x128xf32>
    %73 = arith.truncf %72 : vector<6x128xf32> to vector<6x128xbf16>
    %c0_27 = arith.constant 0 : index
    %c9 = arith.constant 9 : index
    %c0_28 = arith.constant 0 : index
    %74 = vector.load %arg18[%c0_27, %c9, %c0_28] : memref<6x40x128xbf16, #tpu.memory_space<vmem>>, vector<6x1x128xbf16>
    %75 = vector.shape_cast %74 : vector<6x1x128xbf16> to vector<6x128xbf16>
    %76 = vector.shape_cast %73 : vector<6x128xbf16> to vector<6x1x128xbf16>
    tpu.vector_store %arg18[%c0_27, %c9, %c0_28], %76 {strides = array<i32>} : memref<6x40x128xbf16, #tpu.memory_space<vmem>>, vector<6x1x128xbf16>,
    %77 = vector.extract_strided_slice %49 {offsets = [0, 0, 6, 0], sizes = [6, 1, 1, 128], strides = [1, 1, 1, 1]} : vector<6x4x8x128xf32> to vector<6x1x1x128xf32>
    %78 = vector.shape_cast %77 : vector<6x1x1x128xf32> to vector<6x128xf32>
    %79 = vector.extract_strided_slice %49 {offsets = [0, 0, 7, 0], sizes = [6, 1, 1, 128], strides = [1, 1, 1, 1]} : vector<6x4x8x128xf32> to vector<6x1x1x128xf32>
    %80 = vector.shape_cast %79 : vector<6x1x1x128xf32> to vector<6x128xf32>
    %81 = arith.maximumf %78, %80 : vector<6x128xf32>
    %82 = arith.truncf %81 : vector<6x128xf32> to vector<6x128xbf16>
    %c0_29 = arith.constant 0 : index
    %c10 = arith.constant 10 : index
    %c0_30 = arith.constant 0 : index
    %83 = vector.load %arg18[%c0_29, %c10, %c0_30] : memref<6x40x128xbf16, #tpu.memory_space<vmem>>, vector<6x1x128xbf16>
    %84 = vector.shape_cast %83 : vector<6x1x128xbf16> to vector<6x128xbf16>
    %85 = vector.shape_cast %82 : vector<6x128xbf16> to vector<6x1x128xbf16>
    tpu.vector_store %arg18[%c0_29, %c10, %c0_30], %85 {strides = array<i32>} : memref<6x40x128xbf16, #tpu.memory_space<vmem>>, vector<6x1x128xbf16>,
    %86 = vector.extract_strided_slice %49 {offsets = [0, 1, 0, 0], sizes = [6, 1, 1, 128], strides = [1, 1, 1, 1]} : vector<6x4x8x128xf32> to vector<6x1x1x128xf32>
    %87 = vector.shape_cast %86 : vector<6x1x1x128xf32> to vector<6x128xf32>
    %88 = vector.extract_strided_slice %49 {offsets = [0, 1, 1, 0], sizes = [6, 1, 1, 128], strides = [1, 1, 1, 1]} : vector<6x4x8x128xf32> to vector<6x1x1x128xf32>
    %89 = vector.shape_cast %88 : vector<6x1x1x128xf32> to vector<6x128xf32>
    %90 = arith.maximumf %87, %89 : vector<6x128xf32>
    %91 = arith.truncf %90 : vector<6x128xf32> to vector<6x128xbf16>
    %c0_31 = arith.constant 0 : index
    %c13 = arith.constant 13 : index
    %c0_32 = arith.constant 0 : index
    %92 = vector.load %arg18[%c0_31, %c13, %c0_32] : memref<6x40x128xbf16, #tpu.memory_space<vmem>>, vector<6x1x128xbf16>
    %93 = vector.shape_cast %92 : vector<6x1x128xbf16> to vector<6x128xbf16>
    %94 = vector.shape_cast %91 : vector<6x128xbf16> to vector<6x1x128xbf16>
    tpu.vector_store %arg18[%c0_31, %c13, %c0_32], %94 {strides = array<i32>} : memref<6x40x128xbf16, #tpu.memory_space<vmem>>, vector<6x1x128xbf16>,
    %95 = vector.extract_strided_slice %49 {offsets = [0, 1, 2, 0], sizes = [6, 1, 1, 128], strides = [1, 1, 1, 1]} : vector<6x4x8x128xf32> to vector<6x1x1x128xf32>
    %96 = vector.shape_cast %95 : vector<6x1x1x128xf32> to vector<6x128xf32>
    %97 = vector.extract_strided_slice %49 {offsets = [0, 1, 3, 0], sizes = [6, 1, 1, 128], strides = [1, 1, 1, 1]} : vector<6x4x8x128xf32> to vector<6x1x1x128xf32>
    %98 = vector.shape_cast %97 : vector<6x1x1x128xf32> to vector<6x128xf32>
    %99 = arith.maximumf %96, %98 : vector<6x128xf32>
    %100 = arith.truncf %99 : vector<6x128xf32> to vector<6x128xbf16>
    %c0_33 = arith.constant 0 : index
    %c14 = arith.constant 14 : index
    %c0_34 = arith.constant 0 : index
    %101 = vector.load %arg18[%c0_33, %c14, %c0_34] : memref<6x40x128xbf16, #tpu.memory_space<vmem>>, vector<6x1x128xbf16>
    %102 = vector.shape_cast %101 : vector<6x1x128xbf16> to vector<6x128xbf16>
    %103 = vector.shape_cast %100 : vector<6x128xbf16> to vector<6x1x128xbf16>
    tpu.vector_store %arg18[%c0_33, %c14, %c0_34], %103 {strides = array<i32>} : memref<6x40x128xbf16, #tpu.memory_space<vmem>>, vector<6x1x128xbf16>,
    %104 = vector.extract_strided_slice %49 {offsets = [0, 1, 4, 0], sizes = [6, 1, 1, 128], strides = [1, 1, 1, 1]} : vector<6x4x8x128xf32> to vector<6x1x1x128xf32>
    %105 = vector.shape_cast %104 : vector<6x1x1x128xf32> to vector<6x128xf32>
    %106 = vector.extract_strided_slice %49 {offsets = [0, 1, 5, 0], sizes = [6, 1, 1, 128], strides = [1, 1, 1, 1]} : vector<6x4x8x128xf32> to vector<6x1x1x128xf32>
    %107 = vector.shape_cast %106 : vector<6x1x1x128xf32> to vector<6x128xf32>
    %108 = arith.maximumf %105, %107 : vector<6x128xf32>
    %109 = arith.truncf %108 : vector<6x128xf32> to vector<6x128xbf16>
    %c0_35 = arith.constant 0 : index
    %c15 = arith.constant 15 : index
    %c0_36 = arith.constant 0 : index
    %110 = vector.load %arg18[%c0_35, %c15, %c0_36] : memref<6x40x128xbf16, #tpu.memory_space<vmem>>, vector<6x1x128xbf16>
    %111 = vector.shape_cast %110 : vector<6x1x128xbf16> to vector<6x128xbf16>
    %112 = vector.shape_cast %109 : vector<6x128xbf16> to vector<6x1x128xbf16>
    tpu.vector_store %arg18[%c0_35, %c15, %c0_36], %112 {strides = array<i32>} : memref<6x40x128xbf16, #tpu.memory_space<vmem>>, vector<6x1x128xbf16>,
    %113 = vector.extract_strided_slice %49 {offsets = [0, 1, 6, 0], sizes = [6, 1, 1, 128], strides = [1, 1, 1, 1]} : vector<6x4x8x128xf32> to vector<6x1x1x128xf32>
    %114 = vector.shape_cast %113 : vector<6x1x1x128xf32> to vector<6x128xf32>
    %115 = vector.extract_strided_slice %49 {offsets = [0, 1, 7, 0], sizes = [6, 1, 1, 128], strides = [1, 1, 1, 1]} : vector<6x4x8x128xf32> to vector<6x1x1x128xf32>
    %116 = vector.shape_cast %115 : vector<6x1x1x128xf32> to vector<6x128xf32>
    %117 = arith.maximumf %114, %116 : vector<6x128xf32>
    %118 = arith.truncf %117 : vector<6x128xf32> to vector<6x128xbf16>
    %c0_37 = arith.constant 0 : index
    %c16 = arith.constant 16 : index
    %c0_38 = arith.constant 0 : index
    %119 = vector.load %arg18[%c0_37, %c16, %c0_38] : memref<6x40x128xbf16, #tpu.memory_space<vmem>>, vector<6x1x128xbf16>
    %120 = vector.shape_cast %119 : vector<6x1x128xbf16> to vector<6x128xbf16>
    %121 = vector.shape_cast %118 : vector<6x128xbf16> to vector<6x1x128xbf16>
    tpu.vector_store %arg18[%c0_37, %c16, %c0_38], %121 {strides = array<i32>} : memref<6x40x128xbf16, #tpu.memory_space<vmem>>, vector<6x1x128xbf16>,
    %122 = vector.extract_strided_slice %49 {offsets = [0, 2, 0, 0], sizes = [6, 1, 1, 128], strides = [1, 1, 1, 1]} : vector<6x4x8x128xf32> to vector<6x1x1x128xf32>
    %123 = vector.shape_cast %122 : vector<6x1x1x128xf32> to vector<6x128xf32>
    %124 = vector.extract_strided_slice %49 {offsets = [0, 2, 1, 0], sizes = [6, 1, 1, 128], strides = [1, 1, 1, 1]} : vector<6x4x8x128xf32> to vector<6x1x1x128xf32>
    %125 = vector.shape_cast %124 : vector<6x1x1x128xf32> to vector<6x128xf32>
    %126 = arith.maximumf %123, %125 : vector<6x128xf32>
    %127 = arith.truncf %126 : vector<6x128xf32> to vector<6x128xbf16>
    %c0_39 = arith.constant 0 : index
    %c19 = arith.constant 19 : index
    %c0_40 = arith.constant 0 : index
    %128 = vector.load %arg18[%c0_39, %c19, %c0_40] : memref<6x40x128xbf16, #tpu.memory_space<vmem>>, vector<6x1x128xbf16>
    %129 = vector.shape_cast %128 : vector<6x1x128xbf16> to vector<6x128xbf16>
    %130 = vector.shape_cast %127 : vector<6x128xbf16> to vector<6x1x128xbf16>
    tpu.vector_store %arg18[%c0_39, %c19, %c0_40], %130 {strides = array<i32>} : memref<6x40x128xbf16, #tpu.memory_space<vmem>>, vector<6x1x128xbf16>,
    %131 = vector.extract_strided_slice %49 {offsets = [0, 2, 2, 0], sizes = [6, 1, 1, 128], strides = [1, 1, 1, 1]} : vector<6x4x8x128xf32> to vector<6x1x1x128xf32>
    %132 = vector.shape_cast %131 : vector<6x1x1x128xf32> to vector<6x128xf32>
    %133 = vector.extract_strided_slice %49 {offsets = [0, 2, 3, 0], sizes = [6, 1, 1, 128], strides = [1, 1, 1, 1]} : vector<6x4x8x128xf32> to vector<6x1x1x128xf32>
    %134 = vector.shape_cast %133 : vector<6x1x1x128xf32> to vector<6x128xf32>
    %135 = arith.maximumf %132, %134 : vector<6x128xf32>
    %136 = arith.truncf %135 : vector<6x128xf32> to vector<6x128xbf16>
    %c0_41 = arith.constant 0 : index
    %c20 = arith.constant 20 : index
    %c0_42 = arith.constant 0 : index
    %137 = vector.load %arg18[%c0_41, %c20, %c0_42] : memref<6x40x128xbf16, #tpu.memory_space<vmem>>, vector<6x1x128xbf16>
    %138 = vector.shape_cast %137 : vector<6x1x128xbf16> to vector<6x128xbf16>
    %139 = vector.shape_cast %136 : vector<6x128xbf16> to vector<6x1x128xbf16>
    tpu.vector_store %arg18[%c0_41, %c20, %c0_42], %139 {strides = array<i32>} : memref<6x40x128xbf16, #tpu.memory_space<vmem>>, vector<6x1x128xbf16>,
    %140 = vector.extract_strided_slice %49 {offsets = [0, 2, 4, 0], sizes = [6, 1, 1, 128], strides = [1, 1, 1, 1]} : vector<6x4x8x128xf32> to vector<6x1x1x128xf32>
    %141 = vector.shape_cast %140 : vector<6x1x1x128xf32> to vector<6x128xf32>
    %142 = vector.extract_strided_slice %49 {offsets = [0, 2, 5, 0], sizes = [6, 1, 1, 128], strides = [1, 1, 1, 1]} : vector<6x4x8x128xf32> to vector<6x1x1x128xf32>
    %143 = vector.shape_cast %142 : vector<6x1x1x128xf32> to vector<6x128xf32>
    %144 = arith.maximumf %141, %143 : vector<6x128xf32>
    %145 = arith.truncf %144 : vector<6x128xf32> to vector<6x128xbf16>
    %c0_43 = arith.constant 0 : index
    %c21 = arith.constant 21 : index
    %c0_44 = arith.constant 0 : index
    %146 = vector.load %arg18[%c0_43, %c21, %c0_44] : memref<6x40x128xbf16, #tpu.memory_space<vmem>>, vector<6x1x128xbf16>
    %147 = vector.shape_cast %146 : vector<6x1x128xbf16> to vector<6x128xbf16>
    %148 = vector.shape_cast %145 : vector<6x128xbf16> to vector<6x1x128xbf16>
    tpu.vector_store %arg18[%c0_43, %c21, %c0_44], %148 {strides = array<i32>} : memref<6x40x128xbf16, #tpu.memory_space<vmem>>, vector<6x1x128xbf16>,
    %149 = vector.extract_strided_slice %49 {offsets = [0, 2, 6, 0], sizes = [6, 1, 1, 128], strides = [1, 1, 1, 1]} : vector<6x4x8x128xf32> to vector<6x1x1x128xf32>
    %150 = vector.shape_cast %149 : vector<6x1x1x128xf32> to vector<6x128xf32>
    %151 = vector.extract_strided_slice %49 {offsets = [0, 2, 7, 0], sizes = [6, 1, 1, 128], strides = [1, 1, 1, 1]} : vector<6x4x8x128xf32> to vector<6x1x1x128xf32>
    %152 = vector.shape_cast %151 : vector<6x1x1x128xf32> to vector<6x128xf32>
    %153 = arith.maximumf %150, %152 : vector<6x128xf32>
    %154 = arith.truncf %153 : vector<6x128xf32> to vector<6x128xbf16>
    %c0_45 = arith.constant 0 : index
    %c22 = arith.constant 22 : index
    %c0_46 = arith.constant 0 : index
    %155 = vector.load %arg18[%c0_45, %c22, %c0_46] : memref<6x40x128xbf16, #tpu.memory_space<vmem>>, vector<6x1x128xbf16>
    %156 = vector.shape_cast %155 : vector<6x1x128xbf16> to vector<6x128xbf16>
    %157 = vector.shape_cast %154 : vector<6x128xbf16> to vector<6x1x128xbf16>
    tpu.vector_store %arg18[%c0_45, %c22, %c0_46], %157 {strides = array<i32>} : memref<6x40x128xbf16, #tpu.memory_space<vmem>>, vector<6x1x128xbf16>,
    %158 = vector.extract_strided_slice %49 {offsets = [0, 3, 0, 0], sizes = [6, 1, 1, 128], strides = [1, 1, 1, 1]} : vector<6x4x8x128xf32> to vector<6x1x1x128xf32>
    %159 = vector.shape_cast %158 : vector<6x1x1x128xf32> to vector<6x128xf32>
    %160 = vector.extract_strided_slice %49 {offsets = [0, 3, 1, 0], sizes = [6, 1, 1, 128], strides = [1, 1, 1, 1]} : vector<6x4x8x128xf32> to vector<6x1x1x128xf32>
    %161 = vector.shape_cast %160 : vector<6x1x1x128xf32> to vector<6x128xf32>
    %162 = arith.maximumf %159, %161 : vector<6x128xf32>
    %163 = arith.truncf %162 : vector<6x128xf32> to vector<6x128xbf16>
    %c0_47 = arith.constant 0 : index
    %c25 = arith.constant 25 : index
    %c0_48 = arith.constant 0 : index
    %164 = vector.load %arg18[%c0_47, %c25, %c0_48] : memref<6x40x128xbf16, #tpu.memory_space<vmem>>, vector<6x1x128xbf16>
    %165 = vector.shape_cast %164 : vector<6x1x128xbf16> to vector<6x128xbf16>
    %166 = vector.shape_cast %163 : vector<6x128xbf16> to vector<6x1x128xbf16>
    tpu.vector_store %arg18[%c0_47, %c25, %c0_48], %166 {strides = array<i32>} : memref<6x40x128xbf16, #tpu.memory_space<vmem>>, vector<6x1x128xbf16>,
    %167 = vector.extract_strided_slice %49 {offsets = [0, 3, 2, 0], sizes = [6, 1, 1, 128], strides = [1, 1, 1, 1]} : vector<6x4x8x128xf32> to vector<6x1x1x128xf32>
    %168 = vector.shape_cast %167 : vector<6x1x1x128xf32> to vector<6x128xf32>
    %169 = vector.extract_strided_slice %49 {offsets = [0, 3, 3, 0], sizes = [6, 1, 1, 128], strides = [1, 1, 1, 1]} : vector<6x4x8x128xf32> to vector<6x1x1x128xf32>
    %170 = vector.shape_cast %169 : vector<6x1x1x128xf32> to vector<6x128xf32>
    %171 = arith.maximumf %168, %170 : vector<6x128xf32>
    %172 = arith.truncf %171 : vector<6x128xf32> to vector<6x128xbf16>
    %c0_49 = arith.constant 0 : index
    %c26 = arith.constant 26 : index
    %c0_50 = arith.constant 0 : index
    %173 = vector.load %arg18[%c0_49, %c26, %c0_50] : memref<6x40x128xbf16, #tpu.memory_space<vmem>>, vector<6x1x128xbf16>
    %174 = vector.shape_cast %173 : vector<6x1x128xbf16> to vector<6x128xbf16>
    %175 = vector.shape_cast %172 : vector<6x128xbf16> to vector<6x1x128xbf16>
    tpu.vector_store %arg18[%c0_49, %c26, %c0_50], %175 {strides = array<i32>} : memref<6x40x128xbf16, #tpu.memory_space<vmem>>, vector<6x1x128xbf16>,
    %176 = vector.extract_strided_slice %49 {offsets = [0, 3, 4, 0], sizes = [6, 1, 1, 128], strides = [1, 1, 1, 1]} : vector<6x4x8x128xf32> to vector<6x1x1x128xf32>
    %177 = vector.shape_cast %176 : vector<6x1x1x128xf32> to vector<6x128xf32>
    %178 = vector.extract_strided_slice %49 {offsets = [0, 3, 5, 0], sizes = [6, 1, 1, 128], strides = [1, 1, 1, 1]} : vector<6x4x8x128xf32> to vector<6x1x1x128xf32>
    %179 = vector.shape_cast %178 : vector<6x1x1x128xf32> to vector<6x128xf32>
    %180 = arith.maximumf %177, %179 : vector<6x128xf32>
    %181 = arith.truncf %180 : vector<6x128xf32> to vector<6x128xbf16>
    %c0_51 = arith.constant 0 : index
    %c27 = arith.constant 27 : index
    %c0_52 = arith.constant 0 : index
    %182 = vector.load %arg18[%c0_51, %c27, %c0_52] : memref<6x40x128xbf16, #tpu.memory_space<vmem>>, vector<6x1x128xbf16>
    %183 = vector.shape_cast %182 : vector<6x1x128xbf16> to vector<6x128xbf16>
    %184 = vector.shape_cast %181 : vector<6x128xbf16> to vector<6x1x128xbf16>
    tpu.vector_store %arg18[%c0_51, %c27, %c0_52], %184 {strides = array<i32>} : memref<6x40x128xbf16, #tpu.memory_space<vmem>>, vector<6x1x128xbf16>,
    %185 = vector.extract_strided_slice %49 {offsets = [0, 3, 6, 0], sizes = [6, 1, 1, 128], strides = [1, 1, 1, 1]} : vector<6x4x8x128xf32> to vector<6x1x1x128xf32>
    %186 = vector.shape_cast %185 : vector<6x1x1x128xf32> to vector<6x128xf32>
    %187 = vector.extract_strided_slice %49 {offsets = [0, 3, 7, 0], sizes = [6, 1, 1, 128], strides = [1, 1, 1, 1]} : vector<6x4x8x128xf32> to vector<6x1x1x128xf32>
    %188 = vector.shape_cast %187 : vector<6x1x1x128xf32> to vector<6x128xf32>
    %189 = arith.maximumf %186, %188 : vector<6x128xf32>
    %190 = arith.truncf %189 : vector<6x128xf32> to vector<6x128xbf16>
    %c0_53 = arith.constant 0 : index
    %c28 = arith.constant 28 : index
    %c0_54 = arith.constant 0 : index
    %191 = vector.load %arg18[%c0_53, %c28, %c0_54] : memref<6x40x128xbf16, #tpu.memory_space<vmem>>, vector<6x1x128xbf16>
    %192 = vector.shape_cast %191 : vector<6x1x128xbf16> to vector<6x128xbf16>
    %193 = vector.shape_cast %190 : vector<6x128xbf16> to vector<6x1x128xbf16>
    tpu.vector_store %arg18[%c0_53, %c28, %c0_54], %193 {strides = array<i32>} : memref<6x40x128xbf16, #tpu.memory_space<vmem>>, vector<6x1x128xbf16>,
    %c0_55 = arith.constant 0 : index
    %c0_56 = arith.constant 0 : index
    %c0_57 = arith.constant 0 : index
    %194 = vector.load %arg18[%c0_55, %c0_56, %c0_57] : memref<6x40x128xbf16, #tpu.memory_space<vmem>>, vector<6x24x128xbf16>
    %c0_58 = arith.constant 0 : index
    %c1 = arith.constant 1 : index
    %c0_59 = arith.constant 0 : index
    %195 = vector.load %arg18[%c0_58, %c1, %c0_59] : memref<6x40x128xbf16, #tpu.memory_space<vmem>>, vector<6x24x128xbf16>
    %c0_60 = arith.constant 0 : index
    %c2 = arith.constant 2 : index
    %c0_61 = arith.constant 0 : index
    %196 = vector.load %arg18[%c0_60, %c2, %c0_61] : memref<6x40x128xbf16, #tpu.memory_space<vmem>>, vector<6x24x128xbf16>
    %c0_62 = arith.constant 0 : index
    %c6 = arith.constant 6 : index
    %c0_63 = arith.constant 0 : index
    %197 = vector.load %arg18[%c0_62, %c6, %c0_63] : memref<6x40x128xbf16, #tpu.memory_space<vmem>>, vector<6x24x128xbf16>
    %c0_64 = arith.constant 0 : index
    %c7_65 = arith.constant 7 : index
    %c0_66 = arith.constant 0 : index
    %198 = vector.load %arg18[%c0_64, %c7_65, %c0_66] : memref<6x40x128xbf16, #tpu.memory_space<vmem>>, vector<6x24x128xbf16>
    %c0_67 = arith.constant 0 : index
    %c8_68 = arith.constant 8 : index
    %c0_69 = arith.constant 0 : index
    %199 = vector.load %arg18[%c0_67, %c8_68, %c0_69] : memref<6x40x128xbf16, #tpu.memory_space<vmem>>, vector<6x24x128xbf16>
    %c0_70 = arith.constant 0 : index
    %c12 = arith.constant 12 : index
    %c0_71 = arith.constant 0 : index
    %200 = vector.load %arg18[%c0_70, %c12, %c0_71] : memref<6x40x128xbf16, #tpu.memory_space<vmem>>, vector<6x24x128xbf16>
    %c0_72 = arith.constant 0 : index
    %c13_73 = arith.constant 13 : index
    %c0_74 = arith.constant 0 : index
    %201 = vector.load %arg18[%c0_72, %c13_73, %c0_74] : memref<6x40x128xbf16, #tpu.memory_space<vmem>>, vector<6x24x128xbf16>
    %c0_75 = arith.constant 0 : index
    %c14_76 = arith.constant 14 : index
    %c0_77 = arith.constant 0 : index
    %202 = vector.load %arg18[%c0_75, %c14_76, %c0_77] : memref<6x40x128xbf16, #tpu.memory_space<vmem>>, vector<6x24x128xbf16>
    %203 = tpu.concatenate %194, %195, %196, %197, %198, %199, %200, %201, %202 in 2 : vector<6x24x128xbf16>, vector<6x24x128xbf16>, vector<6x24x128xbf16>, vector<6x24x128xbf16>, vector<6x24x128xbf16>, vector<6x24x128xbf16>, vector<6x24x128xbf16>, vector<6x24x128xbf16>, vector<6x24x128xbf16> -> vector<6x24x1152xbf16>
    %204 = vector.shape_cast %203 : vector<6x24x1152xbf16> to vector<144x1152xbf16>
    %c0_78 = arith.constant 0 : index
    %c0_79 = arith.constant 0 : index
    %205 = vector.load %arg6[%c0_78, %c0_79] : memref<1152x256xbf16, #tpu.memory_space<vmem>>, vector<1152x256xbf16>
    %cst_80 = arith.constant dense<0.000000e+00> : vector<144x256xf32>
    %206 = tpu.matmul %204, %205, %cst_80 {dimension_numbers = #tpu.dot_dimension_numbers<[1], [0], [0], [1], [0, 0, 1, 1], [], []>} : vector<144x1152xbf16>, vector<1152x256xbf16>, vector<144x256xf32> -> vector<144x256xf32>
    %c0_81 = arith.constant 0 : index
    %c0_82 = arith.constant 0 : index
    %207 = vector.load %arg7[%c0_81, %c0_82] : memref<1x256xf32, #tpu.memory_space<vmem>>, vector<1x256xf32>
    %208 = vector.broadcast %207 : vector<1x256xf32> to vector<144x256xf32>
    %209 = arith.addf %206, %208 : vector<144x256xf32>
    %210 = vector.shape_cast %209 : vector<144x256xf32> to vector<6x24x256xf32>
    %211 = vector.extract_strided_slice %210 {offsets = [0, 0, 0], sizes = [6, 4, 256], strides = [1, 1, 1]} : vector<6x24x256xf32> to vector<6x4x256xf32>
    %212 = vector.extract_strided_slice %210 {offsets = [0, 6, 0], sizes = [6, 4, 256], strides = [1, 1, 1]} : vector<6x24x256xf32> to vector<6x4x256xf32>
    %213 = vector.extract_strided_slice %210 {offsets = [0, 12, 0], sizes = [6, 4, 256], strides = [1, 1, 1]} : vector<6x24x256xf32> to vector<6x4x256xf32>
    %214 = vector.extract_strided_slice %210 {offsets = [0, 18, 0], sizes = [6, 4, 256], strides = [1, 1, 1]} : vector<6x24x256xf32> to vector<6x4x256xf32>
    %cst_83 = arith.constant dense<0.000000e+00> : vector<256xf32>
    %215 = vector.multi_reduction <add>, %211, %cst_83 [0, 1] : vector<6x4x256xf32> to vector<256xf32>
    %216 = vector.shape_cast %215 : vector<256xf32> to vector<1x1x256xf32>
    %cst_84 = arith.constant 0.000000e+00 : f32
    %217 = vector.broadcast %cst_84 : f32 to vector<1x1x256xf32>
    %218 = arith.addf %217, %216 : vector<1x1x256xf32>
    %cst_85 = arith.constant dense<0.000000e+00> : vector<256xf32>
    %219 = vector.multi_reduction <add>, %212, %cst_85 [0, 1] : vector<6x4x256xf32> to vector<256xf32>
    %220 = vector.shape_cast %219 : vector<256xf32> to vector<1x1x256xf32>
    %221 = arith.addf %218, %220 : vector<1x1x256xf32>
    %cst_86 = arith.constant dense<0.000000e+00> : vector<256xf32>
    %222 = vector.multi_reduction <add>, %213, %cst_86 [0, 1] : vector<6x4x256xf32> to vector<256xf32>
    %223 = vector.shape_cast %222 : vector<256xf32> to vector<1x1x256xf32>
    %224 = arith.addf %221, %223 : vector<1x1x256xf32>
    %cst_87 = arith.constant dense<0.000000e+00> : vector<256xf32>
    %225 = vector.multi_reduction <add>, %214, %cst_87 [0, 1] : vector<6x4x256xf32> to vector<256xf32>
    %226 = vector.shape_cast %225 : vector<256xf32> to vector<1x1x256xf32>
    %227 = arith.addf %224, %226 : vector<1x1x256xf32>
    %cst_88 = arith.constant 9.600000e+01 : f32
    %228 = vector.broadcast %cst_88 : f32 to vector<1x1x256xf32>
    %229 = arith.divf %227, %228 : vector<1x1x256xf32>
    %230 = vector.broadcast %229 : vector<1x1x256xf32> to vector<6x4x256xf32>
    %231 = arith.subf %211, %230 : vector<6x4x256xf32>
    %232 = arith.mulf %231, %231 : vector<6x4x256xf32>
    %cst_89 = arith.constant dense<0.000000e+00> : vector<256xf32>
    %233 = vector.multi_reduction <add>, %232, %cst_89 [0, 1] : vector<6x4x256xf32> to vector<256xf32>
    %234 = vector.shape_cast %233 : vector<256xf32> to vector<1x1x256xf32>
    %cst_90 = arith.constant 0.000000e+00 : f32
    %235 = vector.broadcast %cst_90 : f32 to vector<1x1x256xf32>
    %236 = arith.addf %235, %234 : vector<1x1x256xf32>
    %237 = vector.broadcast %229 : vector<1x1x256xf32> to vector<6x4x256xf32>
    %238 = arith.subf %212, %237 : vector<6x4x256xf32>
    %239 = arith.mulf %238, %238 : vector<6x4x256xf32>
    %cst_91 = arith.constant dense<0.000000e+00> : vector<256xf32>
    %240 = vector.multi_reduction <add>, %239, %cst_91 [0, 1] : vector<6x4x256xf32> to vector<256xf32>
    %241 = vector.shape_cast %240 : vector<256xf32> to vector<1x1x256xf32>
    %242 = arith.addf %236, %241 : vector<1x1x256xf32>
    %243 = vector.broadcast %229 : vector<1x1x256xf32> to vector<6x4x256xf32>
    %244 = arith.subf %213, %243 : vector<6x4x256xf32>
    %245 = arith.mulf %244, %244 : vector<6x4x256xf32>
    %cst_92 = arith.constant dense<0.000000e+00> : vector<256xf32>
    %246 = vector.multi_reduction <add>, %245, %cst_92 [0, 1] : vector<6x4x256xf32> to vector<256xf32>
    %247 = vector.shape_cast %246 : vector<256xf32> to vector<1x1x256xf32>
    %248 = arith.addf %242, %247 : vector<1x1x256xf32>
    %249 = vector.broadcast %229 : vector<1x1x256xf32> to vector<6x4x256xf32>
    %250 = arith.subf %214, %249 : vector<6x4x256xf32>
    %251 = arith.mulf %250, %250 : vector<6x4x256xf32>
    %cst_93 = arith.constant dense<0.000000e+00> : vector<256xf32>
    %252 = vector.multi_reduction <add>, %251, %cst_93 [0, 1] : vector<6x4x256xf32> to vector<256xf32>
    %253 = vector.shape_cast %252 : vector<256xf32> to vector<1x1x256xf32>
    %254 = arith.addf %248, %253 : vector<1x1x256xf32>
    %cst_94 = arith.constant 9.600000e+01 : f32
    %255 = vector.broadcast %cst_94 : f32 to vector<1x1x256xf32>
    %256 = arith.divf %254, %255 : vector<1x1x256xf32>
    %257 = vector.broadcast %229 : vector<1x1x256xf32> to vector<6x24x256xf32>
    %258 = arith.subf %210, %257 : vector<6x24x256xf32>
    %cst_95 = arith.constant 9.99999974E-6 : f32
    %259 = vector.broadcast %cst_95 : f32 to vector<1x1x256xf32>
    %260 = arith.addf %256, %259 : vector<1x1x256xf32>
    %261 = math.rsqrt %260 : vector<1x1x256xf32>
    %262 = vector.broadcast %261 : vector<1x1x256xf32> to vector<6x24x256xf32>
    %263 = arith.mulf %258, %262 : vector<6x24x256xf32>
    %c0_96 = arith.constant 0 : index
    %c0_97 = arith.constant 0 : index
    %264 = vector.load %arg8[%c0_96, %c0_97] : memref<1x256xf32, #tpu.memory_space<vmem>>, vector<1x256xf32>
    %265 = vector.shape_cast %264 : vector<1x256xf32> to vector<1x1x256xf32>
    %266 = vector.broadcast %265 : vector<1x1x256xf32> to vector<6x24x256xf32>
    %267 = arith.mulf %263, %266 : vector<6x24x256xf32>
    %c0_98 = arith.constant 0 : index
    %c0_99 = arith.constant 0 : index
    %268 = vector.load %arg9[%c0_98, %c0_99] : memref<1x256xf32, #tpu.memory_space<vmem>>, vector<1x256xf32>
    %269 = vector.shape_cast %268 : vector<1x256xf32> to vector<1x1x256xf32>
    %270 = vector.broadcast %269 : vector<1x1x256xf32> to vector<6x24x256xf32>
    %271 = arith.addf %267, %270 : vector<6x24x256xf32>
    %cst_100 = arith.constant 0.000000e+00 : f32
    %272 = vector.broadcast %cst_100 : f32 to vector<6x24x256xf32>
    %273 = arith.minimumf %271, %272 : vector<6x24x256xf32>
    %274 = math.exp %273 : vector<6x24x256xf32>
    %cst_101 = arith.constant 1.000000e+00 : f32
    %275 = vector.broadcast %cst_101 : f32 to vector<6x24x256xf32>
    %276 = arith.subf %274, %275 : vector<6x24x256xf32>
    %cst_102 = arith.constant 1.67326319 : f32
    %277 = vector.broadcast %cst_102 : f32 to vector<6x24x256xf32>
    %278 = arith.mulf %277, %276 : vector<6x24x256xf32>
    %cst_103 = arith.constant 0.000000e+00 : f32
    %279 = vector.broadcast %cst_103 : f32 to vector<6x24x256xf32>
    %280 = arith.cmpf ogt, %271, %279 : vector<6x24x256xf32>
    %281 = arith.select %280, %271, %278 : vector<6x24x256xi1>, vector<6x24x256xf32>
    %cst_104 = arith.constant 1.05070102 : f32
    %282 = vector.broadcast %cst_104 : f32 to vector<6x24x256xf32>
    %283 = arith.mulf %282, %281 : vector<6x24x256xf32>
    %284 = arith.truncf %283 : vector<6x24x256xf32> to vector<6x24x256xbf16>
    %285 = vector.extract_strided_slice %284 {offsets = [0, 0, 0], sizes = [6, 1, 256], strides = [1, 1, 1]} : vector<6x24x256xbf16> to vector<6x1x256xbf16>
    %286 = vector.shape_cast %285 : vector<6x1x256xbf16> to vector<6x256xbf16>
    %287 = vector.extract_strided_slice %284 {offsets = [0, 1, 0], sizes = [6, 1, 256], strides = [1, 1, 1]} : vector<6x24x256xbf16> to vector<6x1x256xbf16>
    %288 = vector.shape_cast %287 : vector<6x1x256xbf16> to vector<6x256xbf16>
    %289 = vector.extract_strided_slice %284 {offsets = [0, 6, 0], sizes = [6, 1, 256], strides = [1, 1, 1]} : vector<6x24x256xbf16> to vector<6x1x256xbf16>
    %290 = vector.shape_cast %289 : vector<6x1x256xbf16> to vector<6x256xbf16>
    %291 = vector.extract_strided_slice %284 {offsets = [0, 7, 0], sizes = [6, 1, 256], strides = [1, 1, 1]} : vector<6x24x256xbf16> to vector<6x1x256xbf16>
    %292 = vector.shape_cast %291 : vector<6x1x256xbf16> to vector<6x256xbf16>
    %293 = tpu.concatenate %286, %288, %290, %292 in 1 : vector<6x256xbf16>, vector<6x256xbf16>, vector<6x256xbf16>, vector<6x256xbf16> -> vector<6x1024xbf16>
    %c0_105 = arith.constant 0 : index
    %c0_106 = arith.constant 0 : index
    %294 = vector.load %arg10[%c0_105, %c0_106] : memref<1024x256xbf16, #tpu.memory_space<vmem>>, vector<1024x256xbf16>
    %cst_107 = arith.constant dense<0.000000e+00> : vector<6x256xf32>
    %295 = tpu.matmul %293, %294, %cst_107 {dimension_numbers = #tpu.dot_dimension_numbers<[1], [0], [0], [1], [0, 0, 1, 1], [], []>} : vector<6x1024xbf16>, vector<1024x256xbf16>, vector<6x256xf32> -> vector<6x256xf32>
    %296 = vector.extract_strided_slice %284 {offsets = [0, 2, 0], sizes = [6, 1, 256], strides = [1, 1, 1]} : vector<6x24x256xbf16> to vector<6x1x256xbf16>
    %297 = vector.shape_cast %296 : vector<6x1x256xbf16> to vector<6x256xbf16>
    %298 = vector.extract_strided_slice %284 {offsets = [0, 3, 0], sizes = [6, 1, 256], strides = [1, 1, 1]} : vector<6x24x256xbf16> to vector<6x1x256xbf16>
    %299 = vector.shape_cast %298 : vector<6x1x256xbf16> to vector<6x256xbf16>
    %300 = vector.extract_strided_slice %284 {offsets = [0, 8, 0], sizes = [6, 1, 256], strides = [1, 1, 1]} : vector<6x24x256xbf16> to vector<6x1x256xbf16>
    %301 = vector.shape_cast %300 : vector<6x1x256xbf16> to vector<6x256xbf16>
    %302 = vector.extract_strided_slice %284 {offsets = [0, 9, 0], sizes = [6, 1, 256], strides = [1, 1, 1]} : vector<6x24x256xbf16> to vector<6x1x256xbf16>
    %303 = vector.shape_cast %302 : vector<6x1x256xbf16> to vector<6x256xbf16>
    %304 = tpu.concatenate %297, %299, %301, %303 in 1 : vector<6x256xbf16>, vector<6x256xbf16>, vector<6x256xbf16>, vector<6x256xbf16> -> vector<6x1024xbf16>
    %c0_108 = arith.constant 0 : index
    %c0_109 = arith.constant 0 : index
    %305 = vector.load %arg10[%c0_108, %c0_109] : memref<1024x256xbf16, #tpu.memory_space<vmem>>, vector<1024x256xbf16>
    %cst_110 = arith.constant dense<0.000000e+00> : vector<6x256xf32>
    %306 = tpu.matmul %304, %305, %cst_110 {dimension_numbers = #tpu.dot_dimension_numbers<[1], [0], [0], [1], [0, 0, 1, 1], [], []>} : vector<6x1024xbf16>, vector<1024x256xbf16>, vector<6x256xf32> -> vector<6x256xf32>
    %307 = vector.extract_strided_slice %284 {offsets = [0, 12, 0], sizes = [6, 1, 256], strides = [1, 1, 1]} : vector<6x24x256xbf16> to vector<6x1x256xbf16>
    %308 = vector.shape_cast %307 : vector<6x1x256xbf16> to vector<6x256xbf16>
    %309 = vector.extract_strided_slice %284 {offsets = [0, 13, 0], sizes = [6, 1, 256], strides = [1, 1, 1]} : vector<6x24x256xbf16> to vector<6x1x256xbf16>
    %310 = vector.shape_cast %309 : vector<6x1x256xbf16> to vector<6x256xbf16>
    %311 = vector.extract_strided_slice %284 {offsets = [0, 18, 0], sizes = [6, 1, 256], strides = [1, 1, 1]} : vector<6x24x256xbf16> to vector<6x1x256xbf16>
    %312 = vector.shape_cast %311 : vector<6x1x256xbf16> to vector<6x256xbf16>
    %313 = vector.extract_strided_slice %284 {offsets = [0, 19, 0], sizes = [6, 1, 256], strides = [1, 1, 1]} : vector<6x24x256xbf16> to vector<6x1x256xbf16>
    %314 = vector.shape_cast %313 : vector<6x1x256xbf16> to vector<6x256xbf16>
    %315 = tpu.concatenate %308, %310, %312, %314 in 1 : vector<6x256xbf16>, vector<6x256xbf16>, vector<6x256xbf16>, vector<6x256xbf16> -> vector<6x1024xbf16>
    %c0_111 = arith.constant 0 : index
    %c0_112 = arith.constant 0 : index
    %316 = vector.load %arg10[%c0_111, %c0_112] : memref<1024x256xbf16, #tpu.memory_space<vmem>>, vector<1024x256xbf16>
    %cst_113 = arith.constant dense<0.000000e+00> : vector<6x256xf32>
    %317 = tpu.matmul %315, %316, %cst_113 {dimension_numbers = #tpu.dot_dimension_numbers<[1], [0], [0], [1], [0, 0, 1, 1], [], []>} : vector<6x1024xbf16>, vector<1024x256xbf16>, vector<6x256xf32> -> vector<6x256xf32>
    %318 = vector.extract_strided_slice %284 {offsets = [0, 14, 0], sizes = [6, 1, 256], strides = [1, 1, 1]} : vector<6x24x256xbf16> to vector<6x1x256xbf16>
    %319 = vector.shape_cast %318 : vector<6x1x256xbf16> to vector<6x256xbf16>
    %320 = vector.extract_strided_slice %284 {offsets = [0, 15, 0], sizes = [6, 1, 256], strides = [1, 1, 1]} : vector<6x24x256xbf16> to vector<6x1x256xbf16>
    %321 = vector.shape_cast %320 : vector<6x1x256xbf16> to vector<6x256xbf16>
    %322 = vector.extract_strided_slice %284 {offsets = [0, 20, 0], sizes = [6, 1, 256], strides = [1, 1, 1]} : vector<6x24x256xbf16> to vector<6x1x256xbf16>
    %323 = vector.shape_cast %322 : vector<6x1x256xbf16> to vector<6x256xbf16>
    %324 = vector.extract_strided_slice %284 {offsets = [0, 21, 0], sizes = [6, 1, 256], strides = [1, 1, 1]} : vector<6x24x256xbf16> to vector<6x1x256xbf16>
    %325 = vector.shape_cast %324 : vector<6x1x256xbf16> to vector<6x256xbf16>
    %326 = tpu.concatenate %319, %321, %323, %325 in 1 : vector<6x256xbf16>, vector<6x256xbf16>, vector<6x256xbf16>, vector<6x256xbf16> -> vector<6x1024xbf16>
    %c0_114 = arith.constant 0 : index
    %c0_115 = arith.constant 0 : index
    %327 = vector.load %arg10[%c0_114, %c0_115] : memref<1024x256xbf16, #tpu.memory_space<vmem>>, vector<1024x256xbf16>
    %cst_116 = arith.constant dense<0.000000e+00> : vector<6x256xf32>
    %328 = tpu.matmul %326, %327, %cst_116 {dimension_numbers = #tpu.dot_dimension_numbers<[1], [0], [0], [1], [0, 0, 1, 1], [], []>} : vector<6x1024xbf16>, vector<1024x256xbf16>, vector<6x256xf32> -> vector<6x256xf32>
    %329 = tpu.concatenate %295, %306, %317, %328 in 1 : vector<6x256xf32>, vector<6x256xf32>, vector<6x256xf32>, vector<6x256xf32> -> vector<6x1024xf32>
    %c0_117 = arith.constant 0 : index
    %c0_118 = arith.constant 0 : index
    %330 = vector.load %arg1[%c0_117, %c0_118] : memref<6x16xf32, #tpu.memory_space<vmem>>, vector<6x16xf32>
    %c0_119 = arith.constant 0 : index
    %c0_120 = arith.constant 0 : index
    %331 = vector.load %arg11[%c0_119, %c0_120] : memref<16x32xf32, #tpu.memory_space<vmem>>, vector<16x32xf32>
    %cst_121 = arith.constant dense<0.000000e+00> : vector<6x32xf32>
    %332 = tpu.matmul %330, %331, %cst_121 {dimension_numbers = #tpu.dot_dimension_numbers<[1], [0], [0], [1], [0, 0, 1, 1], [], []>} : vector<6x16xf32>, vector<16x32xf32>, vector<6x32xf32> -> vector<6x32xf32>
    %c0_122 = arith.constant 0 : index
    %c0_123 = arith.constant 0 : index
    %333 = vector.load %arg12[%c0_122, %c0_123] : memref<1024x32xf32, #tpu.memory_space<vmem>>, vector<1024x32xf32>
    %cst_124 = arith.constant dense<0.000000e+00> : vector<6x32xf32>
    %334 = tpu.matmul %329, %333, %cst_124 {dimension_numbers = #tpu.dot_dimension_numbers<[1], [0], [0], [1], [0, 0, 1, 1], [], []>} : vector<6x1024xf32>, vector<1024x32xf32>, vector<6x32xf32> -> vector<6x32xf32>
    %335 = arith.addf %332, %334 : vector<6x32xf32>
    %c0_125 = arith.constant 0 : index
    %c0_126 = arith.constant 0 : index
    %336 = vector.load %arg13[%c0_125, %c0_126] : memref<1x32xf32, #tpu.memory_space<vmem>>, vector<1x32xf32>
    %337 = vector.broadcast %336 : vector<1x32xf32> to vector<6x32xf32>
    %338 = arith.addf %335, %337 : vector<6x32xf32>
    %cst_127 = arith.constant dense<0.000000e+00> : vector<6xf32>
    %339 = vector.multi_reduction <add>, %338, %cst_127 [1] : vector<6x32xf32> to vector<6xf32>
    %340 = vector.shape_cast %339 : vector<6xf32> to vector<6x1xf32>
    %cst_128 = arith.constant 3.200000e+01 : f32
    %341 = vector.broadcast %cst_128 : f32 to vector<6x1xf32>
    %342 = arith.divf %340, %341 : vector<6x1xf32>
    %343 = vector.broadcast %342 : vector<6x1xf32> to vector<6x32xf32>
    %344 = arith.subf %338, %343 : vector<6x32xf32>
    %345 = arith.mulf %344, %344 : vector<6x32xf32>
    %cst_129 = arith.constant dense<0.000000e+00> : vector<6xf32>
    %346 = vector.multi_reduction <add>, %345, %cst_129 [1] : vector<6x32xf32> to vector<6xf32>
    %347 = vector.shape_cast %346 : vector<6xf32> to vector<6x1xf32>
    %cst_130 = arith.constant 3.200000e+01 : f32
    %348 = vector.broadcast %cst_130 : f32 to vector<6x1xf32>
    %349 = arith.divf %347, %348 : vector<6x1xf32>
    %350 = vector.broadcast %342 : vector<6x1xf32> to vector<6x32xf32>
    %351 = arith.subf %338, %350 : vector<6x32xf32>
    %cst_131 = arith.constant 9.99999974E-6 : f32
    %352 = vector.broadcast %cst_131 : f32 to vector<6x1xf32>
    %353 = arith.addf %349, %352 : vector<6x1xf32>
    %354 = math.rsqrt %353 : vector<6x1xf32>
    %355 = vector.broadcast %354 : vector<6x1xf32> to vector<6x32xf32>
    %356 = arith.mulf %351, %355 : vector<6x32xf32>
    %c0_132 = arith.constant 0 : index
    %c0_133 = arith.constant 0 : index
    %357 = vector.load %arg14[%c0_132, %c0_133] : memref<1x32xf32, #tpu.memory_space<vmem>>, vector<1x32xf32>
    %358 = vector.broadcast %357 : vector<1x32xf32> to vector<6x32xf32>
    %359 = arith.mulf %356, %358 : vector<6x32xf32>
    %c0_134 = arith.constant 0 : index
    %c0_135 = arith.constant 0 : index
    %360 = vector.load %arg15[%c0_134, %c0_135] : memref<1x32xf32, #tpu.memory_space<vmem>>, vector<1x32xf32>
    %361 = vector.broadcast %360 : vector<1x32xf32> to vector<6x32xf32>
    %362 = arith.addf %359, %361 : vector<6x32xf32>
    %cst_136 = arith.constant 0.000000e+00 : f32
    %363 = vector.broadcast %cst_136 : f32 to vector<6x32xf32>
    %364 = arith.maximumf %362, %363 : vector<6x32xf32>
    %c0_137 = arith.constant 0 : index
    %c0_138 = arith.constant 0 : index
    %365 = vector.load %arg16[%c0_137, %c0_138] : memref<32x5xf32, #tpu.memory_space<vmem>>, vector<32x5xf32>
    %cst_139 = arith.constant dense<0.000000e+00> : vector<6x5xf32>
    %366 = tpu.matmul %364, %365, %cst_139 {dimension_numbers = #tpu.dot_dimension_numbers<[1], [0], [0], [1], [0, 0, 1, 1], [], []>} : vector<6x32xf32>, vector<32x5xf32>, vector<6x5xf32> -> vector<6x5xf32>
    %cst_140 = arith.constant dense<0xFF800000> : vector<6xf32>
    %367 = vector.multi_reduction <maximumf>, %366, %cst_140 [1] : vector<6x5xf32> to vector<6xf32>
    %368 = vector.shape_cast %367 : vector<6xf32> to vector<6x1xf32>
    %369 = vector.broadcast %368 : vector<6x1xf32> to vector<6x5xf32>
    %370 = arith.subf %366, %369 : vector<6x5xf32>
    %371 = math.exp %370 : vector<6x5xf32>
    %cst_141 = arith.constant dense<0.000000e+00> : vector<6xf32>
    %372 = vector.multi_reduction <add>, %371, %cst_141 [1] : vector<6x5xf32> to vector<6xf32>
    %373 = vector.shape_cast %372 : vector<6xf32> to vector<6x1xf32>
    %374 = math.log %373 : vector<6x1xf32>
    %375 = arith.addf %368, %374 : vector<6x1xf32>
    %376 = vector.broadcast %375 : vector<6x1xf32> to vector<6x5xf32>
    %377 = arith.subf %366, %376 : vector<6x5xf32>
    %c0_142 = arith.constant 0 : index
    %c0_143 = arith.constant 0 : index
    %378 = vector.load %arg17[%c0_142, %c0_143] : memref<6x5xf32, #tpu.memory_space<vmem>>, vector<6x5xf32>
    tpu.vector_store %arg17[%c0_142, %c0_143], %377 {strides = array<i32>} : memref<6x5xf32, #tpu.memory_space<vmem>>, vector<6x5xf32>,
    return
  }
}

</mosaic_0001>

<bundles_post_ra>
// kernel: policy_forward.1
= control target key start
LH: loop header
LB: loop body
LE: loop exit
PB: predicated region body
PF: predicated region fallthrough
CT: control target
= control target key end

     0   :  { %vm252_vm0 = vcmask 293888   ;;  %vm16958_vm1 = vcmask 1041408   ;;  %v16883_v28 = vmov 0   ;;  %vm16960_vm4 = vcmask 1043459   ;;  %s16863_s2 = inlined_call_operand.vmem [shape: bf16[36,128], index: 2, kind: input, shape index: {}]   ;;  %s16864_s0 = inlined_call_operand.vmem [shape: bf16[384,36], index: 0, kind: input, shape index: {}]   ;;  %s16865_s3 = inlined_call_operand.vmem [shape: f32[1,128], index: 3, kind: input, shape index: {}]   ;;  %s16866_s6 = inlined_call_operand.vmem [shape: bf16[1152,256], index: 6, kind: input, shape index: {}]   ;;  %s16867_s4 = inlined_call_operand.vmem [shape: f32[1,128], index: 4, kind: input, shape index: {}]   ;;  %s16868_s5 = inlined_call_operand.vmem [shape: f32[1,128], index: 5, kind: input, shape index: {}]   ;;  %s16869_s7 = inlined_call_operand.vmem [shape: f32[1,256], index: 7, kind: input, shape index: {}]   ;;  %s16870_s10 = inlined_call_operand.vmem [shape: bf16[1024,256], index: 10, kind: input, shape index: {}]   ;;  %s16871_s8 = inlined_call_operand.vmem [shape: f32[1,256], index: 8, kind: input, shape index: {}]   ;;  %s16872_s9 = inlined_call_operand.vmem [shape: f32[1,256], index: 9, kind: input, shape index: {}]   ;;  %s16873_s12 = inlined_call_operand.vmem [shape: f32[1024,32], index: 12, kind: input, shape index: {}]   ;;  %s16874_s11 = inlined_call_operand.vmem [shape: f32[16,32], index: 11, kind: input, shape index: {}]   ;;  %s16875_s1 = inlined_call_operand.vmem [shape: f32[6,16], index: 1, kind: input, shape index: {}]   ;;  %s16876_s13 = inlined_call_operand.vmem [shape: f32[1,32], index: 13, kind: input, shape index: {}]   ;;  %s16877_s16 = inlined_call_operand.vmem [shape: f32[32,5], index: 16, kind: input, shape index: {}]   ;;  %s16878_s14 = inlined_call_operand.vmem [shape: f32[1,32], index: 14, kind: input, shape index: {}]   ;;  %s16879_s15 = inlined_call_operand.vmem [shape: f32[1,32], index: 15, kind: input, shape index: {}]   ;;  %s16880_s17 = inlined_call_operand.vmem [shape: f32[6,5], index: 17, kind: output, shape index: {}]  }
   0x1   :  { %17134 = sst [smem:[#allocation92_spill]] %s16863_s2  ;;  %1304 = vst [vmem:[#allocation2 + $0x4] sm:$0xf] %v16883_v28  ;;  %1305 = vst [vmem:[#allocation2 + $0x8] sm:$0xf] %v16883_v28  ;;  %vm16957_vm6 = vcmask 1042434  }
   0x2   :  { %17135 = sst [smem:[#allocation93_spill]] %s16864_s0  ;;  %s17136_s26 = sld [smem:[#allocation92_spill]]  ;;  %1303 = vst [vmem:[#allocation2] sm:$0xf] %v16883_v28  ;;  %1306 = vst [vmem:[#allocation2 + $0xc] sm:$0xf] %v16883_v28 }
   0x3   :  { %s17137_s19 = sld [smem:[#allocation93_spill]]  ;;  %1307 = vst [vmem:[#allocation2 + $0x10] sm:$0xf] %v16883_v28  ;;  %1308 = vst [vmem:[#allocation2 + $0x14] sm:$0xf] %v16883_v28  ;;  %vm16959_vm9 = vcmask 1041409  }
   0x4   :  { %1309 = vst [vmem:[#allocation2 + $0x18] sm:$0xf] %v16883_v28  ;;  %1310 = vst [vmem:[#allocation2 + $0x1c] sm:$0xf] %v16883_v28  ;;  %v10431_v30 = vld [vmem:[%s16865_s3] ss:$0 sm:$0xff] }
   0x5   :  { %1311 = vst [vmem:[#allocation2 + $0x20] sm:$0xf] %v16883_v28  ;;  %1312 = vst [vmem:[#allocation2 + $0x24] sm:$0xf] %v16883_v28  ;;  %vm1683_vm5 = vsmask.f32 3328 }
   0x6   :  { %1313 = vst [vmem:[#allocation2 + $0x28] sm:$0xf] %v16883_v28  ;;  %1314 = vst [vmem:[#allocation2 + $0x2c] sm:$0xf] %v16883_v28  ;;  %vm1879_vm7 = vsmask.f32 2304 }
   0x7   :  { %1315 = vst [vmem:[#allocation2 + $0x30] sm:$0xf] %v16883_v28  ;;  %1316 = vst [vmem:[#allocation2 + $0x34] sm:$0xf] %v16883_v28  ;;  %vm1847_vm8 = vsmask.f32 7942 }
   0x8   :  { %v9378_v0 = vld [vmem:[%s17136_s26] sm:$0xff]   ;;  %v9379_v1 = vld [vmem:[%s17136_s26 + $0x8] sm:$0xff]   ;;  %v9380_v2 = vld [vmem:[%s17136_s26 + $0x10] ss:$0 sps:$4 sm:$0x33]  }
   0x9   :  { %8929 = vmatprep.subr.bf16.mxu0 %v9378_v0  ;;  %v9381_v3 = vld [vmem:[%s17137_s19] sm:$0xff]   ;;  %9138 = vmatprep.subr.bf16.mxu1 %v9378_v0  ;;  %v327_v4 = vsel %vm16958_vm1, %v9380_v2, 0  ;;  %v9382_v5 = vld [vmem:[%s17137_s19 + $0x8] sm:$0xff]   ;;  %v9383_v6 = vld [vmem:[%s17137_s19 + $0x10] sm:$0xff]   ;;  %1317 = vst [vmem:[#allocation2 + $0x38] sm:$0xf] %v16883_v28 }
   0xa   :  { %8930 = vmatpush3.bf16.msra.mxu0 %v9378_v0  ;;  %9141 = vmatpush3.bf16.msra.mxu1 %v9378_v0  ;;  %v9384_v7 = vld [vmem:[%s17137_s19 + $0x18] sm:$0xff]   ;;  %v9385_v8 = vld [vmem:[%s17137_s19 + $0x20] sm:$0xff]   ;;  %v9398_v10 = vld [vmem:[%s17137_s19 + $0x88] sm:$0xff]   ;;  %1318 = vst [vmem:[#allocation2 + $0x3c] sm:$0xf] %v16883_v28 }
   0xb   :  { %8931 = vmatprep.subr.bf16.mxu0 %v9379_v1  ;;  %8935 = vmatprep.mubr.msk.bf16.mxu0 %vm252_vm0, %v9381_v3  ;;  %v9397_v9 = vld [vmem:[%s17137_s19 + $0x80] sm:$0xff]   ;;  %v9399_v11 = vld [vmem:[%s17137_s19 + $0x90] sm:$0xff]   ;;  %v9386_v12 = vld [vmem:[%s17137_s19 + $0x28] sm:$0xff]   ;;  %1319 = vst [vmem:[#allocation2 + $0x40] sm:$0xf] %v16883_v28 }
   0xc   :  { %9139 = vmatprep.subr.bf16.mxu1 %v9379_v1  ;;  %8967 = vmatprep.mubr.msk.bf16.mxu1 %vm252_vm0, %v9397_v9  ;;  %v9400_v13 = vld [vmem:[%s17137_s19 + $0x98] sm:$0xff]   ;;  %v9387_v14 = vld [vmem:[%s17137_s19 + $0x30] sm:$0xff]   ;;  %v9401_v15 = vld [vmem:[%s17137_s19 + $0xa0] sm:$0xff]   ;;  %1320 = vst [vmem:[#allocation2 + $0x44] sm:$0xf] %v16883_v28 }
   0xd   :  { %v9388_v16 = vld [vmem:[%s17137_s19 + $0x38] sm:$0xff]   ;;  %v9402_v17 = vld [vmem:[%s17137_s19 + $0xa8] sm:$0xff]   ;;  %v9389_v18 = vld [vmem:[%s17137_s19 + $0x40] sm:$0xff]   ;;  %1321 = vst [vmem:[#allocation2 + $0x48] sm:$0xf] %v16883_v28 }
   0xe   :  { %8932 = vmatpush3.bf16.msra.mxu0 %v9379_v1  ;;  %9142 = vmatpush3.bf16.msra.mxu1 %v9379_v1  ;;  %v9403_v19 = vld [vmem:[%s17137_s19 + $0xb0] sm:$0xff]   ;;  %v9390_v20 = vld [vmem:[%s17137_s19 + $0x48] sm:$0xff]   ;;  %v9404_v21 = vld [vmem:[%s17137_s19 + $0xb8] sm:$0xff]   ;;  %1322 = vst [vmem:[#allocation2 + $0x4c] sm:$0xf] %v16883_v28 }
   0xf   :  { %9372 = vmatprep.subr.msk.bf16.mxu0 %vm16958_vm1, %v9380_v2  ;;  %9373 = vmatprep.subr.msk.bf16.mxu1 %vm16958_vm1, %v9380_v2  ;;  %v9391_v22 = vld [vmem:[%s17137_s19 + $0x50] sm:$0xff]   ;;  %v9392_v23 = vld [vmem:[%s17137_s19 + $0x58] sm:$0xff]   ;;  %v9393_v24 = vld [vmem:[%s17137_s19 + $0x60] sm:$0xff]   ;;  %1323 = vst [vmem:[#allocation2 + $0x50] sm:$0xf] %v16883_v28 }
  0x10   :  { %v9394_v25 = vld [vmem:[%s17137_s19 + $0x68] sm:$0xff]   ;;  %v9395_v26 = vld [vmem:[%s17137_s19 + $0x70] sm:$0xff]   ;;  %v9396_v27 = vld [vmem:[%s17137_s19 + $0x78] sm:$0xff]   ;;  %1324 = vst [vmem:[#allocation2 + $0x54] sm:$0xf] %v16883_v28 }
  0x11   :  { %1325 = vst [vmem:[#allocation2 + $0x58] sm:$0xf] %v16883_v28  ;;  %1326 = vst [vmem:[#allocation2 + $0x5c] sm:$0xf] %v16883_v28  ;;  %vm1651_vm13 = vsmask.f32 7946 }
  0x12   :  { %8934 = vmatpush3.bf16.msra.mxu0 %v327_v4  ;;  %9143 = vmatpush3.bf16.msra.mxu1 %v327_v4  ;;  %1327 = vst [vmem:[#allocation2 + $0x60] sm:$0xf] %v16883_v28  ;;  %1328 = vst [vmem:[#allocation2 + $0x64] sm:$0xf] %v16883_v28 }
  0x13   :  { %1329 = vst [vmem:[#allocation2 + $0x68] sm:$0xf] %v16883_v28  ;;  %1330 = vst [vmem:[#allocation2 + $0x6c] sm:$0xf] %v16883_v28 }
  0x14   :  { %1331 = vst [vmem:[#allocation2 + $0x70] sm:$0xf] %v16883_v28  ;;  %1332 = vst [vmem:[#allocation2 + $0x74] sm:$0xf] %v16883_v28 }
  0x15   :  { %8936 = vmatmul.mubr.msk.bf16.vlgmr.msra.gmra.mrb[0].mxu0 %vm252_vm0, %v9382_v5  ;;  %8968 = vmatmul.mubr.msk.bf16.vlgmr.msra.gmra.mrb[0].mxu1 %vm252_vm0, %v9398_v10  ;;  %vm11197_vm10 = vmand %vm16960_vm4, %vm1683_vm5 }
  0x16   :  { %8939 = vmatprep.mubr.msk.bf16.mxu0 %vm252_vm0, %v9383_v6  ;;  %8971 = vmatprep.mubr.msk.bf16.mxu1 %vm252_vm0, %v9399_v11  ;;  %vm11231_vm11 = vmand %vm16957_vm6, %vm1879_vm7 }
  0x17   :  { %vm11259_vm12 = vmand %vm16959_vm9, %vm1847_vm8 }
  0x18   :  { %vm11340_vm14 = vmand %vm16957_vm6, %vm1651_vm13 }
  0x1d   :  { %8940 = vmatmul.mubr.msk.bf16.gmra.mrb[4].mxu0 %vm252_vm0, %v9384_v7  ;;  %8972 = vmatmul.mubr.msk.bf16.gmra.mrb[4].mxu1 %vm252_vm0, %v9400_v13 }
  0x1e   :  { %8943 = vmatprep.mubr.msk.bf16.mxu0 %vm252_vm0, %v9385_v8  ;;  %8975 = vmatprep.mubr.msk.bf16.mxu1 %vm252_vm0, %v9401_v15 }
  0x25   :  { %8944 = vmatmul.mubr.msk.bf16.gmra.mrb[8].mxu0 %vm252_vm0, %v9386_v12  ;;  %8976 = vmatmul.mubr.msk.bf16.gmra.mrb[8].mxu1 %vm252_vm0, %v9402_v17 }
  0x26   :  { %8947 = vmatprep.mubr.msk.bf16.mxu0 %vm252_vm0, %v9387_v14  ;;  %8979 = vmatprep.mubr.msk.bf16.mxu1 %vm252_vm0, %v9403_v19 }
  0x2d   :  { %8948 = vmatmul.mubr.msk.bf16.gmra.mrb[12].mxu0 %vm252_vm0, %v9388_v16  ;;  %8980 = vmatmul.mubr.msk.bf16.gmra.mrb[12].mxu1 %vm252_vm0, %v9404_v21 }
  0x2e   :  { %8951 = vmatprep.mubr.msk.bf16.mxu0 %vm252_vm0, %v9389_v18 }
  0x35   :  { %8952 = vmatmul.mubr.msk.bf16.gmra.mrb[16].mxu0 %vm252_vm0, %v9390_v20 }
  0x36   :  { %8955 = vmatprep.mubr.msk.bf16.mxu0 %vm252_vm0, %v9391_v22 }
  0x3d   :  { %8956 = vmatmul.mubr.msk.bf16.gmra.mrb[20].mxu0 %vm252_vm0, %v9392_v23 }
  0x3e   :  { %8959 = vmatprep.mubr.msk.bf16.mxu0 %vm252_vm0, %v9393_v24 }
  0x45   :  { %8960 = vmatmul.mubr.msk.bf16.gmra.mrb[24].mxu0 %vm252_vm0, %v9394_v25 }
  0x46   :  { %8963 = vmatprep.mubr.msk.bf16.mxu0 %vm252_vm0, %v9395_v26 }
  0x4d   :  { %8964 = vmatmul.mubr.msk.bf16.gmra.mrb[28].mxu0 %vm252_vm0, %v9396_v27 }
  0xe8   :  { %v8937_v29 = vpop.f32.mrb[0].mxu0  ;;  %v8969_v41 = vpop.f32.mrb[0].mxu1 }
  0xe9   :  { %v363_v31 = vpop.f32.mrb[1].mxu0  ;;  %v10440_v36 = vadd.f32 %v8937_v29, %v10431_v30  ;;  %v10449_v43 = vadd.f32 %v8969_v41, %v10431_v30  ;;  %v10451_v44 = vpop.f32.mrb[1].mxu1 }
  0xea   :  { %v8938_v32 = vpop.f32.mrb[2].mxu0  ;;  %v10434_v34 = vadd.f32 %v10431_v30, %v363_v31  ;;  %v8970_v48 = vpop.f32.mrb[2].mxu1 }
  0xeb   :  { %v366_v33 = vpop.f32.mrb[3].mxu0  ;;  %v10445_v38 = vadd.f32 %v8938_v32, %v10431_v30  ;;  %v10458_v50 = vadd.f32 %v8970_v48, %v10431_v30  ;;  %v494_v51 = vpop.f32.mrb[3].mxu1 }
  0xec   :  { %v10437_v35 = vadd.f32 %v10431_v30, %v366_v33  ;;  %v10465_v54 = vadd.f32 %v10431_v30, %v494_v51 }
  0xee   :  { %v554_v37 = vadd.f32 %v10437_v35, %v10434_v34 }
  0xf0   :  { %v555_v39 = vadd.f32 %v554_v37, %v10440_v36  ;;  %v8941_v40 = vpop.f32.mrb[4].mxu0  ;;  %v8973_v60 = vpop.f32.mrb[4].mxu1 }
  0xf1   :  { %v379_v42 = vpop.f32.mrb[5].mxu0  ;;  %v10468_v55 = vadd.f32 %v8941_v40, %v10431_v30  ;;  %v10476_v62 = vadd.f32 %v8973_v60, %v10431_v30  ;;  %v507_v63 = vpop.f32.mrb[5].mxu1 }
  0xf2   :  { %v10454_v45 = vadd.f32 %v10431_v30, %v379_v42  ;;  %v556_v46 = vadd.f32 %v555_v39, %v10445_v38  ;;  %v8942_v47 = vpop.f32.mrb[6].mxu0  ;;  %v10483_v3 = vadd.f32 %v10431_v30, %v507_v63  ;;  %v8974_v4 = vpop.f32.mrb[6].mxu1 }
  0xf3   :  { %v382_v49 = vpop.f32.mrb[7].mxu0  ;;  %v10472_v57 = vadd.f32 %v8942_v47, %v10431_v30  ;;  %v10486_v6 = vadd.f32 %v8974_v4, %v10431_v30  ;;  %v510_v7 = vpop.f32.mrb[7].mxu1 }
  0xf4   :  { %v557_v52 = vadd.f32 %v556_v46, %v10454_v45  ;;  %v10462_v53 = vadd.f32 %v10431_v30, %v382_v49  ;;  %v10493_v10 = vadd.f32 %v10431_v30, %v510_v7 }
  0xf6   :  { %v558_v56 = vadd.f32 %v557_v52, %v10462_v53 }
  0xf8   :  { %v559_v58 = vadd.f32 %v558_v56, %v10468_v55  ;;  %v8945_v59 = vpop.f32.mrb[8].mxu0  ;;  %v8977_v16 = vpop.f32.mrb[8].mxu1 }
  0xf9   :  { %v395_v61 = vpop.f32.mrb[9].mxu0  ;;  %v10496_v11 = vadd.f32 %v8945_v59, %v10431_v30  ;;  %v10504_v18 = vadd.f32 %v8977_v16, %v10431_v30  ;;  %v523_v19 = vpop.f32.mrb[9].mxu1 }
  0xfa   :  { %v10479_v0 = vadd.f32 %v10431_v30, %v395_v61  ;;  %v560_v1 = vadd.f32 %v559_v58, %v10472_v57  ;;  %v8946_v2 = vpop.f32.mrb[10].mxu0  ;;  %v10511_v23 = vadd.f32 %v10431_v30, %v523_v19  ;;  %v8978_v24 = vpop.f32.mrb[10].mxu1 }
  0xfb   :  { %v398_v5 = vpop.f32.mrb[11].mxu0  ;;  %v10500_v13 = vadd.f32 %v8946_v2, %v10431_v30  ;;  %v10514_v26 = vadd.f32 %v8978_v24, %v10431_v30  ;;  %v526_v27 = vpop.f32.mrb[11].mxu1 }
  0xfc   :  { %v561_v8 = vadd.f32 %v560_v1, %v10479_v0  ;;  %v10490_v9 = vadd.f32 %v10431_v30, %v398_v5  ;;  %v10521_v32 = vadd.f32 %v10431_v30, %v526_v27 }
  0xfe   :  { %v562_v12 = vadd.f32 %v561_v8, %v10490_v9 }
 0x100   :  { %v563_v14 = vadd.f32 %v562_v12, %v10496_v11  ;;  %v8949_v15 = vpop.f32.mrb[12].mxu0  ;;  %v8981_v42 = vpop.f32.mrb[12].mxu1 }
 0x101   :  { %v411_v17 = vpop.f32.mrb[13].mxu0  ;;  %v10524_v33 = vadd.f32 %v8949_v15, %v10431_v30  ;;  %v10532_v47 = vadd.f32 %v8981_v42, %v10431_v30  ;;  %v539_v48 = vpop.f32.mrb[13].mxu1 }
 0x102   :  { %v10507_v20 = vadd.f32 %v10431_v30, %v411_v17  ;;  %v564_v21 = vadd.f32 %v563_v14, %v10500_v13  ;;  %v8950_v22 = vpop.f32.mrb[14].mxu0  ;;  %v10539_v56 = vadd.f32 %v10431_v30, %v539_v48  ;;  %v8982_v58 = vpop.f32.mrb[14].mxu1 }
 0x103   :  { %v414_v25 = vpop.f32.mrb[15].mxu0  ;;  %v10528_v39 = vadd.f32 %v8950_v22, %v10431_v30  ;;  %v10542_v60 = vadd.f32 %v8982_v58, %v10431_v30  ;;  %v542_v61 = vpop.f32.mrb[15].mxu1 }
 0x104   :  { %v565_v29 = vadd.f32 %v564_v21, %v10507_v20  ;;  %v10518_v31 = vadd.f32 %v10431_v30, %v414_v25  ;;  %v10549_v2 = vadd.f32 %v10431_v30, %v542_v61 }
 0x106   :  { %v566_v37 = vadd.f32 %v565_v29, %v10518_v31 }
 0x108   :  { %v567_v40 = vadd.f32 %v566_v37, %v10524_v33  ;;  %v8953_v41 = vpop.f32.mrb[16].mxu0 }
 0x109   :  { %v427_v46 = vpop.f32.mrb[17].mxu0  ;;  %v10552_v4 = vadd.f32 %v8953_v41, %v10431_v30 }
 0x10a   :  { %v10535_v49 = vadd.f32 %v10431_v30, %v427_v46  ;;  %v568_v51 = vadd.f32 %v567_v40, %v10528_v39  ;;  %v8954_v52 = vpop.f32.mrb[18].mxu0 }
 0x10b   :  { %v430_v59 = vpop.f32.mrb[19].mxu0  ;;  %v10556_v7 = vadd.f32 %v8954_v52, %v10431_v30 }
 0x10c   :  { %v569_v63 = vadd.f32 %v568_v51, %v10535_v49  ;;  %v10546_v1 = vadd.f32 %v10431_v30, %v430_v59 }
 0x10e   :  { %v570_v5 = vadd.f32 %v569_v63, %v10546_v1 }
 0x110   :  { %v571_v8 = vadd.f32 %v570_v5, %v10552_v4  ;;  %v8957_v12 = vpop.f32.mrb[20].mxu0 }
 0x111   :  { %v443_v14 = vpop.f32.mrb[21].mxu0  ;;  %v10568_v24 = vadd.f32 %v8957_v12, %v10431_v30 }
 0x112   :  { %v10560_v15 = vadd.f32 %v10431_v30, %v443_v14  ;;  %v572_v16 = vadd.f32 %v571_v8, %v10556_v7  ;;  %v8958_v17 = vpop.f32.mrb[22].mxu0 }
 0x113   :  { %v446_v19 = vpop.f32.mrb[23].mxu0  ;;  %v10572_v27 = vadd.f32 %v8958_v17, %v10431_v30 }
 0x114   :  { %v573_v21 = vadd.f32 %v572_v16, %v10560_v15  ;;  %v10565_v22 = vadd.f32 %v10431_v30, %v446_v19 }
 0x116   :  { %v574_v25 = vadd.f32 %v573_v21, %v10565_v22 }
 0x118   :  { %v575_v29 = vadd.f32 %v574_v25, %v10568_v24  ;;  %v8961_v37 = vpop.f32.mrb[24].mxu0 }
 0x119   :  { %v459_v40 = vpop.f32.mrb[25].mxu0  ;;  %v468_v58 = vadd.f32 %v8961_v37, %v10431_v30 }
 0x11a   :  { %v10576_v41 = vadd.f32 %v10431_v30, %v459_v40  ;;  %v576_v42 = vadd.f32 %v575_v29, %v10572_v27  ;;  %v8962_v46 = vpop.f32.mrb[26].mxu0 }
 0x11b   :  { %v462_v48 = vpop.f32.mrb[27].mxu0  ;;  %v471_v61 = vadd.f32 %v8962_v46, %v10431_v30 }
 0x11c   :  { %v577_v51 = vadd.f32 %v576_v42, %v10576_v41  ;;  %v10581_v52 = vadd.f32 %v10431_v30, %v462_v48  ;;  %v492_v42 = vadd.f32 %v10431_v30, %v10451_v44 }
 0x11e   :  { %v578_v59 = vadd.f32 %v577_v51, %v10581_v52 }
 0x120   :  { %v579_v63 = vadd.f32 %v578_v59, %v468_v58  ;;  %v8965_v5 = vpop.f32.mrb[28].mxu0 }
 0x121   :  { %v475_v8 = vpop.f32.mrb[29].mxu0  ;;  %v484_v25 = vadd.f32 %v8965_v5, %v10431_v30 }
 0x122   :  { %v476_v12 = vadd.f32 %v10431_v30, %v475_v8  ;;  %v580_v14 = vadd.f32 %v579_v63, %v471_v61  ;;  %v8966_v16 = vpop.f32.mrb[30].mxu0 }
 0x123   :  { %v478_v17 = vpop.f32.mrb[31].mxu0  ;;  %v487_v37 = vadd.f32 %v8966_v16, %v10431_v30 }
 0x124   :  { %v581_v19 = vadd.f32 %v580_v14, %v476_v12  ;;  %v479_v21 = vadd.f32 %v10431_v30, %v478_v17 }
 0x126   :  { %v582_v29 = vadd.f32 %v581_v19, %v479_v21 }
 0x128   :  { %v583_v40 = vadd.f32 %v582_v29, %v484_v25 }
 0x12a   :  { %v584_v46 = vadd.f32 %v583_v40, %v487_v37 }
 0x12c   :  { %v585_v48 = vadd.f32 %v584_v46, %v492_v42 }
 0x12e   :  { %v586_v51 = vadd.f32 %v585_v48, %v10465_v54 }
 0x130   :  { %v587_v59 = vadd.f32 %v586_v51, %v10449_v43 }
 0x132   :  { %v588_v63 = vadd.f32 %v587_v59, %v10458_v50 }
 0x134   :  { %v589_v8 = vadd.f32 %v588_v63, %v10483_v3 }
 0x136   :  { %v590_v14 = vadd.f32 %v589_v8, %v10493_v10 }
 0x138   :  { %v591_v5 = vadd.f32 %v590_v14, %v10476_v62 }
 0x13a   :  { %v592_v16 = vadd.f32 %v591_v5, %v10486_v6 }
 0x13c   :  { %v593_v17 = vadd.f32 %v592_v16, %v10511_v23 }
 0x13e   :  { %v594_v30 = vadd.f32 %v593_v17, %v10521_v32 }
 0x140   :  { %v595_v44 = vadd.f32 %v594_v30, %v10504_v18 }
 0x142   :  { %v596_v19 = vadd.f32 %v595_v44, %v10514_v26 }
 0x144   :  { %v597_v29 = vadd.f32 %v596_v19, %v10539_v56 }
 0x146   :  { %v598_v40 = vadd.f32 %v597_v29, %v10549_v2 }
 0x148   :  { %v599_v46 = vadd.f32 %v598_v40, %v10532_v47 }
 0x14a   :  { %v600_v48 = vadd.f32 %v599_v46, %v10542_v60 }
 0x14c   :  { %v601_v51 = vrot.slane %v600_v48, 4 }
 0x14e   :  { %v602_v59 = vadd.f32 %v601_v51, %v600_v48 }
 0x150   :  { %v603_v63 = vrot.slane %v602_v59, 2 }
 0x152   :  { %v604_v8 = vadd.f32 %v603_v63, %v602_v59 }
 0x154   :  { %v605_v14 = vrot.slane %v604_v8, 1 }
 0x156   :  { %v606_v5 = vadd.f32 %v605_v14, %v604_v8 }
 0x158   :  { %v10607_v16 = vmul.f32 0.0026041667, %v606_v5 }
 0x15a   :  { %v10610_v17 = vsub.f32 %v468_v58, %v10607_v16  ;;  %v10613_v30 = vsub.f32 %v471_v61, %v10607_v16  ;;  %v10616_v44 = vsub.f32 %v476_v12, %v10607_v16  ;;  %v10619_v19 = vsub.f32 %v479_v21, %v10607_v16 }
 0x15b   :  { %v10622_v29 = vsub.f32 %v484_v25, %v10607_v16  ;;  %v10625_v40 = vsub.f32 %v487_v37, %v10607_v16  ;;  %v10628_v46 = vsub.f32 %v492_v42, %v10607_v16  ;;  %v10632_v58 = vsub.f32 %v10465_v54, %v10607_v16 }
 0x15c   :  { %v10636_v61 = vsub.f32 %v10449_v43, %v10607_v16  ;;  %v10640_v12 = vsub.f32 %v10458_v50, %v10607_v16  ;;  %v10644_v21 = vsub.f32 %v10483_v3, %v10607_v16  ;;  %v10648_v25 = vsub.f32 %v10493_v10, %v10607_v16 }
 0x15d   :  { %v10652_v54 = vsub.f32 %v10476_v62, %v10607_v16  ;;  %v10656_v43 = vsub.f32 %v10486_v6, %v10607_v16  ;;  %v10660_v50 = vsub.f32 %v10511_v23, %v10607_v16  ;;  %v10664_v3 = vsub.f32 %v10521_v32, %v10607_v16 }
 0x15e   :  { %v10668_v10 = vsub.f32 %v10504_v18, %v10607_v16  ;;  %v10672_v62 = vsub.f32 %v10514_v26, %v10607_v16  ;;  %v10676_v6 = vsub.f32 %v10539_v56, %v10607_v16  ;;  %v10680_v23 = vsub.f32 %v10549_v2, %v10607_v16 }
 0x15f   :  { %v10684_v32 = vsub.f32 %v10532_v47, %v10607_v16  ;;  %v10688_v18 = vsub.f32 %v10542_v60, %v10607_v16  ;;  %v10692_v26 = vsub.f32 %v10434_v34, %v10607_v16  ;;  %v10696_v56 = vsub.f32 %v10437_v35, %v10607_v16 }
 0x160   :  { %17138 = vst [vmem:[#allocation3_spill] sm:$0xff] %v10668_v10  ;;  %17139 = vst [vmem:[#allocation4_spill] sm:$0xff] %v10672_v62  ;;  %v10700_v2 = vsub.f32 %v10440_v36, %v10607_v16  ;;  %v10708_v60 = vsub.f32 %v10445_v38, %v10607_v16  ;;  %v10712_v34 = vsub.f32 %v10454_v45, %v10607_v16 }
 0x161   :  { %v657_v47 = vmul.f32 %v10692_v26, %v10692_v26  ;;  %v658_v37 = vmul.f32 %v10696_v56, %v10696_v56  ;;  %v10718_v36 = vsub.f32 %v10462_v53, %v10607_v16  ;;  %v10724_v38 = vsub.f32 %v10468_v55, %v10607_v16 }
 0x162   :  { %v659_v35 = vmul.f32 %v10700_v2, %v10700_v2  ;;  %v660_v48 = vmul.f32 %v10708_v60, %v10708_v60  ;;  %v661_v45 = vmul.f32 %v10712_v34, %v10712_v34  ;;  %v10730_v63 = vsub.f32 %v10472_v57, %v10607_v16 }
 0x163   :  { %v705_v42 = vadd.f32 %v658_v37, %v657_v47  ;;  %v662_v53 = vmul.f32 %v10718_v36, %v10718_v36  ;;  %v10736_v14 = vsub.f32 %v10479_v0, %v10607_v16  ;;  %v663_v55 = vmul.f32 %v10724_v38, %v10724_v38 }
 0x164   :  { %v10742_v47 = vsub.f32 %v10490_v9, %v10607_v16  ;;  %v664_v57 = vmul.f32 %v10730_v63, %v10730_v63 }
 0x165   :  { %v706_v51 = vadd.f32 %v705_v42, %v659_v35  ;;  %v10748_v35 = vsub.f32 %v10496_v11, %v10607_v16  ;;  %v665_v0 = vmul.f32 %v10736_v14, %v10736_v14 }
 0x166   :  { %v666_v9 = vmul.f32 %v10742_v47, %v10742_v47 }
 0x167   :  { %v707_v59 = vadd.f32 %v706_v51, %v660_v48  ;;  %v10754_v48 = vsub.f32 %v10500_v13, %v10607_v16  ;;  %v667_v11 = vmul.f32 %v10748_v35, %v10748_v35 }
 0x169   :  { %v708_v8 = vadd.f32 %v707_v59, %v661_v45  ;;  %v10760_v45 = vsub.f32 %v10507_v20, %v10607_v16  ;;  %v668_v13 = vmul.f32 %v10754_v48, %v10754_v48 }
 0x16b   :  { %v709_v5 = vadd.f32 %v708_v8, %v662_v53  ;;  %v10766_v53 = vsub.f32 %v10518_v31, %v10607_v16  ;;  %v669_v20 = vmul.f32 %v10760_v45, %v10760_v45 }
 0x16d   :  { %v710_v37 = vadd.f32 %v709_v5, %v663_v55  ;;  %v10772_v55 = vsub.f32 %v10524_v33, %v10607_v16  ;;  %v670_v31 = vmul.f32 %v10766_v53, %v10766_v53 }
 0x16f   :  { %v711_v42 = vadd.f32 %v710_v37, %v664_v57  ;;  %v10778_v57 = vsub.f32 %v10528_v39, %v10607_v16  ;;  %v671_v33 = vmul.f32 %v10772_v55, %v10772_v55 }
 0x171   :  { %v712_v51 = vadd.f32 %v711_v42, %v665_v0  ;;  %v10784_v0 = vsub.f32 %v10535_v49, %v10607_v16  ;;  %v672_v39 = vmul.f32 %v10778_v57, %v10778_v57 }
 0x173   :  { %v713_v59 = vadd.f32 %v712_v51, %v666_v9  ;;  %v10790_v9 = vsub.f32 %v10546_v1, %v10607_v16  ;;  %v673_v49 = vmul.f32 %v10784_v0, %v10784_v0 }
 0x175   :  { %v714_v8 = vadd.f32 %v713_v59, %v667_v11  ;;  %v10796_v11 = vsub.f32 %v10552_v4, %v10607_v16  ;;  %v674_v1 = vmul.f32 %v10790_v9, %v10790_v9 }
 0x177   :  { %v715_v5 = vadd.f32 %v714_v8, %v668_v13  ;;  %v10802_v13 = vsub.f32 %v10556_v7, %v10607_v16  ;;  %v675_v4 = vmul.f32 %v10796_v11, %v10796_v11 }
 0x179   :  { %v716_v37 = vadd.f32 %v715_v5, %v669_v20  ;;  %v10808_v20 = vsub.f32 %v10560_v15, %v10607_v16  ;;  %v676_v7 = vmul.f32 %v10802_v13, %v10802_v13 }
 0x17b   :  { %v717_v42 = vadd.f32 %v716_v37, %v670_v31  ;;  %v10814_v31 = vsub.f32 %v10565_v22, %v10607_v16  ;;  %v677_v15 = vmul.f32 %v10808_v20, %v10808_v20 }
 0x17d   :  { %v718_v51 = vadd.f32 %v717_v42, %v671_v33  ;;  %v10820_v33 = vsub.f32 %v10568_v24, %v10607_v16  ;;  %v678_v22 = vmul.f32 %v10814_v31, %v10814_v31 }
 0x17f   :  { %v719_v59 = vadd.f32 %v718_v51, %v672_v39  ;;  %v10826_v39 = vsub.f32 %v10572_v27, %v10607_v16  ;;  %v679_v24 = vmul.f32 %v10820_v33, %v10820_v33 }
 0x181   :  { %v720_v8 = vadd.f32 %v719_v59, %v673_v49  ;;  %v10832_v49 = vsub.f32 %v10576_v41, %v10607_v16  ;;  %v680_v27 = vmul.f32 %v10826_v39, %v10826_v39 }
 0x183   :  { %v721_v5 = vadd.f32 %v720_v8, %v674_v1  ;;  %v10838_v1 = vsub.f32 %v10581_v52, %v10607_v16  ;;  %v684_v52 = vmul.f32 %v10613_v30, %v10613_v30 }
 0x185   :  { %v722_v37 = vadd.f32 %v721_v5, %v675_v4  ;;  %v681_v4 = vmul.f32 %v10832_v49, %v10832_v49  ;;  %v682_v41 = vmul.f32 %v10838_v1, %v10838_v1 }
 0x187   :  { %v723_v42 = vadd.f32 %v722_v37, %v676_v7  ;;  %v683_v37 = vmul.f32 %v10610_v17, %v10610_v17 }
 0x189   :  { %v724_v51 = vadd.f32 %v723_v42, %v677_v15  ;;  %v685_v42 = vmul.f32 %v10616_v44, %v10616_v44 }
 0x18b   :  { %v725_v59 = vadd.f32 %v724_v51, %v678_v22  ;;  %v686_v51 = vmul.f32 %v10619_v19, %v10619_v19 }
 0x18d   :  { %v726_v8 = vadd.f32 %v725_v59, %v679_v24  ;;  %v687_v59 = vmul.f32 %v10622_v29, %v10622_v29 }
 0x18f   :  { %v727_v5 = vadd.f32 %v726_v8, %v680_v27  ;;  %v688_v8 = vmul.f32 %v10625_v40, %v10625_v40 }
 0x191   :  { %v728_v7 = vadd.f32 %v727_v5, %v681_v4  ;;  %v689_v5 = vmul.f32 %v10628_v46, %v10628_v46 }
 0x193   :  { %v729_v15 = vadd.f32 %v728_v7, %v682_v41  ;;  %v690_v7 = vmul.f32 %v10632_v58, %v10632_v58 }
 0x195   :  { %v730_v16 = vadd.f32 %v729_v15, %v683_v37  ;;  %v691_v15 = vmul.f32 %v10636_v61, %v10636_v61 }
 0x197   :  { %v731_v22 = vadd.f32 %v730_v16, %v684_v52  ;;  %v692_v16 = vmul.f32 %v10640_v12, %v10640_v12 }
 0x199   :  { %v732_v24 = vadd.f32 %v731_v22, %v685_v42  ;;  %v693_v22 = vmul.f32 %v10644_v21, %v10644_v21 }
 0x19b   :  { %v733_v27 = vadd.f32 %v732_v24, %v686_v51  ;;  %v694_v24 = vmul.f32 %v10648_v25, %v10648_v25 }
 0x19d   :  { %v734_v4 = vadd.f32 %v733_v27, %v687_v59  ;;  %v695_v27 = vmul.f32 %v10652_v54, %v10652_v54 }
 0x19f   :  { %v735_v41 = vadd.f32 %v734_v4, %v688_v8  ;;  %v696_v4 = vmul.f32 %v10656_v43, %v10656_v43 }
 0x1a1   :  { %v736_v37 = vadd.f32 %v735_v41, %v689_v5  ;;  %v697_v41 = vmul.f32 %v10660_v50, %v10660_v50 }
 0x1a3   :  { %v737_v52 = vadd.f32 %v736_v37, %v690_v7  ;;  %v698_v37 = vmul.f32 %v10664_v3, %v10664_v3 }
 0x1a5   :  { %v738_v42 = vadd.f32 %v737_v52, %v691_v15  ;;  %v699_v52 = vmul.f32 %v10668_v10, %v10668_v10 }
 0x1a7   :  { %v739_v51 = vadd.f32 %v738_v42, %v692_v16  ;;  %v700_v42 = vmul.f32 %v10672_v62, %v10672_v62 }
 0x1a9   :  { %v740_v59 = vadd.f32 %v739_v51, %v693_v22  ;;  %v701_v51 = vmul.f32 %v10676_v6, %v10676_v6 }
 0x1ab   :  { %v741_v8 = vadd.f32 %v740_v59, %v694_v24  ;;  %v702_v59 = vmul.f32 %v10680_v23, %v10680_v23 }
 0x1ad   :  { %v742_v5 = vadd.f32 %v741_v8, %v695_v27  ;;  %v703_v8 = vmul.f32 %v10684_v32, %v10684_v32 }
 0x1af   :  { %v743_v7 = vadd.f32 %v742_v5, %v696_v4  ;;  %v704_v5 = vmul.f32 %v10688_v18, %v10688_v18 }
 0x1b1   :  { %v744_v15 = vadd.f32 %v743_v7, %v697_v41 }
 0x1b3   :  { %v745_v16 = vadd.f32 %v744_v15, %v698_v37 }
 0x1b5   :  { %v746_v22 = vadd.f32 %v745_v16, %v699_v52 }
 0x1b7   :  { %v747_v24 = vadd.f32 %v746_v22, %v700_v42 }
 0x1b9   :  { %v748_v27 = vadd.f32 %v747_v24, %v701_v51  ;;  %v10893_v51 = vld [vmem:[%s16867_s4] ss:$0 sm:$0xff] }
 0x1bb   :  { %v749_v4 = vadd.f32 %v748_v27, %v702_v59  ;;  %v10900_v27 = vld [vmem:[%s16868_s5] ss:$0 sm:$0xff] }
 0x1bd   :  { %v750_v41 = vadd.f32 %v749_v4, %v703_v8 }
 0x1bf   :  { %v751_v7 = vadd.f32 %v750_v41, %v704_v5 }
 0x1c1   :  { %v752_v37 = vrot.slane %v751_v7, 4 }
 0x1c3   :  { %v753_v15 = vadd.f32 %v752_v37, %v751_v7 }
 0x1c5   :  { %v754_v52 = vrot.slane %v753_v15, 2 }
 0x1c7   :  { %v755_v16 = vadd.f32 %v754_v52, %v753_v15 }
 0x1c9   :  { %v756_v28 = vrot.slane %v755_v16, 1 }
 0x1cb   :  { %v757_v62 = vadd.f32 %v756_v28, %v755_v16 }
 0x1cd   :  { %v758_v42 = vmul.f32 0.0026041667, %v757_v62 }
 0x1cf   :  { %v759_v22 = vadd.f32 1e-05, %v758_v42 }
 0x1d1   :  { %9885 = vrsqrt.f32 %v759_v22 }
 0x1db   :  { %v9886_v10 = vpop.eup %9885 }
 0x1dc   :  { %v805_v24 = vmul.f32 %v9886_v10, %v10676_v6  ;;  %v806_v59 = vmul.f32 %v9886_v10, %v10680_v23  ;;  %v761_v28 = vmul.f32 %v9886_v10, %v10692_v26  ;;  %v762_v62 = vmul.f32 %v9886_v10, %v10696_v56 }
 0x1dd   :  { %v763_v8 = vmul.f32 %v9886_v10, %v10700_v2  ;;  %v764_v4 = vmul.f32 %v9886_v10, %v10708_v60  ;;  %v765_v6 = vmul.f32 %v9886_v10, %v10712_v34  ;;  %v766_v23 = vmul.f32 %v9886_v10, %v10718_v36 }
 0x1de   :  { %v860_v5 = vmul.f32 %v10893_v51, %v805_v24  ;;  %v861_v41 = vmul.f32 %v10893_v51, %v806_v59  ;;  %v767_v7 = vmul.f32 %v9886_v10, %v10724_v38  ;;  %v768_v37 = vmul.f32 %v9886_v10, %v10730_v63 }
 0x1df   :  { %v769_v26 = vmul.f32 %v9886_v10, %v10736_v14  ;;  %v770_v56 = vmul.f32 %v9886_v10, %v10742_v47  ;;  %v771_v15 = vmul.f32 %v9886_v10, %v10748_v35  ;;  %v772_v34 = vmul.f32 %v9886_v10, %v10754_v48 }
 0x1e0   :  { %v10915_v2 = vadd.f32 %v10900_v27, %v860_v5  ;;  %v10918_v60 = vadd.f32 %v10900_v27, %v861_v41  ;;  %v773_v36 = vmul.f32 %v9886_v10, %v10760_v45  ;;  %v774_v38 = vmul.f32 %v9886_v10, %v10766_v53 }
 0x1e1   :  { %v775_v63 = vmul.f32 %v9886_v10, %v10772_v55  ;;  %v776_v14 = vmul.f32 %v9886_v10, %v10778_v57  ;;  %v777_v16 = vmul.f32 %v9886_v10, %v10784_v0  ;;  %v778_v42 = vmul.f32 %v9886_v10, %v10790_v9 }
 0x1e2   :  { %v963_v47 = vmin.f32 %v10915_v2, 0.0  ;;  %v964_v52 = vmin.f32 %v10918_v60, 0.0  ;;  %v779_v35 = vmul.f32 %v9886_v10, %v10796_v11  ;;  %v780_v48 = vmul.f32 %v9886_v10, %v10802_v13 }
 0x1e3   :  { %v781_v45 = vmul.f32 %v9886_v10, %v10808_v20  ;;  %v782_v53 = vmul.f32 %v9886_v10, %v10814_v31  ;;  %v783_v57 = vmul.f32 %v9886_v10, %v10820_v33  ;;  %v784_v24 = vmul.f32 %v9886_v10, %v10826_v39 }
 0x1e4   :  { %v1055_v22 = vmul.f32 1.442695, %v963_v47  ;;  %v1057_v55 = vmul.f32 1.442695, %v964_v52  ;;  %v785_v59 = vmul.f32 %v9886_v10, %v10832_v49  ;;  %v786_v0 = vmul.f32 %v9886_v10, %v10838_v1 }
 0x1e5   :  { %v787_v9 = vmul.f32 %v9886_v10, %v10610_v17  ;;  %v788_v11 = vmul.f32 %v9886_v10, %v10613_v30  ;;  %v789_v13 = vmul.f32 %v9886_v10, %v10616_v44  ;;  %v790_v20 = vmul.f32 %v9886_v10, %v10619_v19 }
 0x1e6   :  { %9887 = vpow2.f32 %v1055_v22  ;;  %v791_v31 = vmul.f32 %v9886_v10, %v10622_v29  ;;  %v792_v33 = vmul.f32 %v9886_v10, %v10625_v40  ;;  %v793_v39 = vmul.f32 %v9886_v10, %v10628_v46  ;;  %v17140_v46 = vld [vmem:[#allocation3_spill] sm:$0xff] }
 0x1e7   :  { %9889 = vpow2.f32 %v1057_v55  ;;  %v794_v49 = vmul.f32 %v9886_v10, %v10632_v58  ;;  %v795_v1 = vmul.f32 %v9886_v10, %v10636_v61  ;;  %v796_v17 = vmul.f32 %v9886_v10, %v10640_v12  ;;  %v17141_v58 = vld [vmem:[#allocation4_spill] sm:$0xff] }
 0x1e8   :  { %v797_v30 = vmul.f32 %v9886_v10, %v10644_v21  ;;  %v798_v5 = vmul.f32 %v9886_v10, %v10648_v25  ;;  %v799_v44 = vmul.f32 %v9886_v10, %v10652_v54  ;;  %v800_v19 = vmul.f32 %v9886_v10, %v10656_v43 }
 0x1e9   :  { %v801_v29 = vmul.f32 %v9886_v10, %v10660_v50  ;;  %v10954_v40 = vmul.f32 %v9886_v10, %v10664_v3  ;;  %v10957_v41 = vmul.f32 %v9886_v10, %v17140_v46  ;;  %v10960_v61 = vmul.f32 %v9886_v10, %v17141_v58 }
 0x1ea   :  { %v10963_v12 = vmul.f32 %v9886_v10, %v10684_v32  ;;  %v10966_v21 = vmul.f32 %v9886_v10, %v10688_v18  ;;  %v10969_v25 = vmul.f32 %v10893_v51, %v761_v28  ;;  %v10972_v54 = vmul.f32 %v10893_v51, %v762_v62 }
 0x1eb   :  { %v10975_v43 = vmul.f32 %v10893_v51, %v763_v8  ;;  %v10978_v50 = vmul.f32 %v10893_v51, %v764_v4  ;;  %vm1203_vm2 = vcmp.gt.f32.partialorder %v10915_v2, 0.0  ;;  %v10982_v3 = vmul.f32 %v10893_v51, %v765_v6 }
 0x1ec   :  { %v10985_v10 = vmul.f32 %v10893_v51, %v766_v23  ;;  %v10988_v32 = vmul.f32 %v10893_v51, %v767_v7  ;;  %v10991_v18 = vmul.f32 %v10893_v51, %v768_v37  ;;  %vm1204_vm3 = vcmp.gt.f32.partialorder %v10918_v60, 0.0 }
 0x1ed   :  { %v10995_v28 = vmul.f32 %v10893_v51, %v769_v26  ;;  %v10998_v62 = vmul.f32 %v10893_v51, %v770_v56  ;;  %v11001_v8 = vmul.f32 %v10893_v51, %v771_v15  ;;  %v11004_v4 = vmul.f32 %v10893_v51, %v772_v34 }
 0x1ee   :  { %v11007_v6 = vmul.f32 %v10893_v51, %v773_v36  ;;  %v11010_v23 = vmul.f32 %v10893_v51, %v774_v38  ;;  %v11013_v7 = vmul.f32 %v10893_v51, %v775_v63  ;;  %v11016_v37 = vmul.f32 %v10893_v51, %v776_v14 }
 0x1ef   :  { %v11019_v26 = vmul.f32 %v10893_v51, %v777_v16  ;;  %v11022_v56 = vmul.f32 %v10893_v51, %v778_v42  ;;  %v11025_v15 = vmul.f32 %v10893_v51, %v779_v35  ;;  %v11028_v34 = vmul.f32 %v10893_v51, %v780_v48 }
 0x1f0   :  { %v9888_v36 = vpop.eup %9887  ;;  %v11031_v38 = vmul.f32 %v10893_v51, %v781_v45  ;;  %v11034_v63 = vmul.f32 %v10893_v51, %v782_v53  ;;  %v11037_v14 = vmul.f32 %v10893_v51, %v783_v57  ;;  %v11040_v47 = vmul.f32 %v10893_v51, %v784_v24 }
 0x1f1   :  { %v9890_v52 = vpop.eup %9889  ;;  %v8260_v16 = vadd.f32 -1.0, %v9888_v36  ;;  %v11043_v42 = vmul.f32 %v10893_v51, %v785_v59  ;;  %v11046_v35 = vmul.f32 %v10893_v51, %v786_v0  ;;  %v11049_v48 = vmul.f32 %v10893_v51, %v787_v9 }
 0x1f2   :  { %v8261_v45 = vadd.f32 -1.0, %v9890_v52  ;;  %v11052_v53 = vmul.f32 %v10893_v51, %v788_v11  ;;  %v11055_v22 = vmul.f32 %v10893_v51, %v789_v13  ;;  %v11058_v55 = vmul.f32 %v10893_v51, %v790_v20 }
 0x1f3   :  { %v1155_v57 = vmul.f32 1.6732632, %v8260_v16  ;;  %v11061_v24 = vmul.f32 %v10893_v51, %v791_v31  ;;  %v11064_v59 = vmul.f32 %v10893_v51, %v792_v33  ;;  %v11067_v0 = vmul.f32 %v10893_v51, %v793_v39 }
 0x1f4   :  { %v1156_v9 = vmul.f32 1.6732632, %v8261_v45  ;;  %v11070_v11 = vmul.f32 %v10893_v51, %v794_v49  ;;  %v11073_v13 = vmul.f32 %v10893_v51, %v795_v1  ;;  %v11076_v20 = vmul.f32 %v10893_v51, %v796_v17 }
 0x1f5   :  { %v1251_v31 = vsel %vm1203_vm2, %v10915_v2, %v1155_v57  ;;  %v11082_v33 = vmul.f32 %v10893_v51, %v797_v30  ;;  %v11085_v39 = vmul.f32 %v10893_v51, %v798_v5  ;;  %v11088_v49 = vmul.f32 %v10893_v51, %v799_v44 }
 0x1f6   :  { %v1252_v1 = vsel %vm1204_vm3, %v10918_v60, %v1156_v9  ;;  %v1299_v17 = vmul.f32 1.050701, %v1251_v31  ;;  %v11094_v46 = vmul.f32 %v10893_v51, %v800_v19  ;;  %v11097_v58 = vmul.f32 %v10893_v51, %v801_v29 }
 0x1f7   :  { %v1300_v2 = vmul.f32 1.050701, %v1252_v1  ;;  %v11101_v30 = vmul.f32 %v10893_v51, %v10954_v40  ;;  %v11105_v5 = vmul.f32 %v10893_v51, %v10957_v41  ;;  %v11109_v60 = vmul.f32 %v10893_v51, %v10960_v61 }
 0x1f8   :  { %v11113_v44 = vmul.f32 %v10893_v51, %v10963_v12  ;;  %v11117_v19 = vmul.f32 %v10893_v51, %v10966_v21  ;;  %v11121_v29 = vadd.f32 %v10900_v27, %v10969_v25  ;;  %v11125_v40 = vadd.f32 %v10900_v27, %v10972_v54 }
 0x1f9   :  { %v1355_v41 = vmax.f32 %v1299_v17, %v1300_v2  ;;  %v11129_v61 = vadd.f32 %v10900_v27, %v10975_v43  ;;  %v11133_v12 = vadd.f32 %v10900_v27, %v10978_v50  ;;  %v11137_v51 = vadd.f32 %v10900_v27, %v10982_v3 }
 0x1fa   :  { %v11141_v21 = vadd.f32 %v10900_v27, %v10985_v10  ;;  %v11145_v25 = vadd.f32 %v10900_v27, %v10988_v32  ;;  %v11149_v54 = vadd.f32 %v10900_v27, %v10991_v18  ;;  %v11153_v43 = vadd.f32 %v10900_v27, %v10995_v28 }
 0x1fb   :  { %v1780_v50 = vrot.slane %v1355_v41, 1  ;;  %v11157_v3 = vadd.f32 %v10900_v27, %v10998_v62  ;;  %v11161_v10 = vadd.f32 %v10900_v27, %v11001_v8  ;;  %v11165_v32 = vadd.f32 %v10900_v27, %v11004_v4 }
 0x1fc   :  { %17142 = vst [vmem:[#allocation3_spill] sm:$0xff] %v11141_v21  ;;  %17143 = vst [vmem:[#allocation4_spill] sm:$0xff] %v11145_v25  ;;  %v11169_v18 = vadd.f32 %v10900_v27, %v11007_v6  ;;  %v11173_v28 = vadd.f32 %v10900_v27, %v11010_v23  ;;  %v11177_v62 = vadd.f32 %v10900_v27, %v11013_v7  ;;  %v17153_v7 = vmov 0 }
 0x1fd   :  { %17144 = vst [vmem:[#allocation5_spill] sm:$0xff] %v11149_v54  ;;  %17145 = vst [vmem:[#allocation6_spill] sm:$0xff] %v11153_v43  ;;  %v11181_v8 = vadd.f32 %v10900_v27, %v11016_v37  ;;  %v1792_v36 = vmax.f32 %v1355_v41, %v1780_v50  ;;  %v11185_v4 = vadd.f32 %v10900_v27, %v11019_v26  ;;  %v17154_v7 = vsel %vm11197_vm10, 4294967295, %v17153_v7  ;;  %v1938_v37 = vld [vmem:[#allocation2 + $0x6c] sm:$0x8] }
 0x1fe   :  { %17146 = vst [vmem:[#allocation7_spill] sm:$0xff] %v11157_v3  ;;  %17147 = vst [vmem:[#allocation8_spill] sm:$0xff] %v11161_v10  ;;  %v11189_v6 = vadd.f32 %v10900_v27, %v11022_v56  ;;  %v11193_v23 = vadd.f32 %v10900_v27, %v11025_v15  ;;  %v11203_v52 = vadd.f32 %v10900_v27, %v11028_v34  ;;  %vm1159_vm15 = vcmp.gt.f32.partialorder %v11121_v29, 0.0 }
 0x1ff   :  { %17148 = vst [vmem:[#allocation9_spill] sm:$0xff] %v11165_v32  ;;  %17149 = vst [vmem:[#allocation10_spill] sm:$0xff] %v11169_v18  ;;  %v11207_v26 = vadd.f32 %v10900_v27, %v11031_v38  ;;  %v11211_v56 = vadd.f32 %v10900_v27, %v11034_v63  ;;  %v11215_v15 = vadd.f32 %v10900_v27, %v11037_v14  ;;  %v17158_v63 = vmov 0  ;;  %v1896_v14 = vld [vmem:[#allocation2 + $0x6c] sm:$0x4] }
 0x200   :  { %17150 = vst [vmem:[#allocation11_spill] sm:$0xff] %v11173_v28  ;;  %17151 = vst [vmem:[#allocation12_spill] sm:$0xff] %v11177_v62  ;;  %v1798_v16 = vpack.c.bf16 %v1792_v36, %v1792_v36  ;;  %v11219_v45 = vadd.f32 %v10900_v27, %v11040_v47  ;;  %v11223_v34 = vadd.f32 %v10900_v27, %v11043_v42  ;;  %v17159_v63 = vsel %vm11231_vm11, 4294967295, %v17158_v63 }
 0x201   :  { %17152 = vst [vmem:[#allocation13_spill] sm:$0xff] %v11181_v8  ;;  %17155 = vst [vmem:[#allocation14_spill] sm:$0xff] %v17154_v7  ;;  %v11227_v38 = vadd.f32 %v10900_v27, %v11046_v35  ;;  %v11237_v57 = vadd.f32 %v10900_v27, %v11049_v48  ;;  %v11241_v47 = vadd.f32 %v10900_v27, %v11052_v53  ;;  %v17164_v53 = vmov 0 }
 0x202   :  { %17156 = vst [vmem:[#allocation15_spill] sm:$0xff] %v11215_v15  ;;  %17157 = vst [vmem:[#allocation16_spill] sm:$0xff] %v11223_v34  ;;  %v11245_v42 = vadd.f32 %v10900_v27, %v11055_v22  ;;  %v11249_v35 = vadd.f32 %v10900_v27, %v11058_v55  ;;  %v1838_v9 = vshll.u32 %v1798_v16, 16  ;;  %v1872_v31 = vrot.slane %v1798_v16, 7  ;;  %v1864_v22 = vld [vmem:[#allocation2 + $0x6c] sm:$0x2] }
 0x203   :  { %17160 = vst [vmem:[#allocation17_spill] sm:$0xff] %v17159_v63  ;;  %v1939_v1 = vsel %vm11197_vm10, %v1798_v16, %v1938_v37  ;;  %v11255_v48 = vadd.f32 %v10900_v27, %v11061_v24  ;;  %v17165_v53 = vsel %vm11259_vm12, 4294967295, %v17164_v53  ;;  %v11265_v55 = vadd.f32 %v10900_v27, %v11064_v59 }
 0x204   :  { %17161 = vst [vmem:[#allocation18_spill] sm:$0xff] %v11245_v42  ;;  %17162 = vst [vmem:[#allocation19_spill] sm:$0xff] %v11249_v35  ;;  %v11269_v17 = vadd.f32 %v10900_v27, %v11067_v0  ;;  %v11273_v24 = vadd.f32 %v10900_v27, %v11070_v11  ;;  %v11277_v2 = vadd.f32 %v10900_v27, %v11073_v13  ;;  %v1840_v41 = vrot.slane %v1838_v9, 7 }
 0x205   :  { %17163 = vst [vmem:[#allocation20_spill] sm:$0xff] %v11255_v48  ;;  %17166 = vst [vmem:[#allocation21_spill] sm:$0xff] %v17165_v53  ;;  %v1897_v50 = vsel %vm11231_vm11, %v1872_v31, %v1896_v14  ;;  %v11283_v59 = vadd.f32 %v10900_v27, %v11076_v20  ;;  %v11287_v0 = vadd.f32 %v10900_v27, %v11082_v33  ;;  %v9407_v33 = vld [vmem:[%s16866_s6 + $0x4] ss:$8 sps:$4 sm:$0xff]   ;;  %v919_v31 = vmin.f32 %v11121_v29, 0.0 }
 0x206   :  { %1940 = vst [vmem:[#allocation2 + $0x6c] sm:$0x8] %v1939_v1  ;;  %17167 = vst [vmem:[#allocation22_spill] sm:$0xff] %v11265_v55  ;;  %v11291_v11 = vadd.f32 %v10900_v27, %v11085_v39  ;;  %v11295_v13 = vadd.f32 %v10900_v27, %v11088_v49  ;;  %v11299_v36 = vadd.f32 %v10900_v27, %v11094_v46  ;;  %3963 = vmatprep.subr.bf16.mxu1 %v9407_v33  ;;  %v9411_v1 = vld [vmem:[%s16866_s6 + $0x20] ss:$8 sps:$4 sm:$0xff]  }
 0x207   :  { %17168 = vst [vmem:[#allocation23_spill] sm:$0xff] %v11269_v17  ;;  %17169 = vst [vmem:[#allocation24_spill] sm:$0xff] %v11273_v24  ;;  %v11303_v20 = vadd.f32 %v10900_v27, %v11097_v58  ;;  %v1865_v39 = vsel %vm11259_vm12, %v1840_v41, %v1864_v22  ;;  %v11312_v37 = vadd.f32 %v10900_v27, %v11101_v30  ;;  %v9405_v58 = vld [vmem:[%s16866_s6] ss:$8 sps:$4 sm:$0xff]   ;;  %v920_v22 = vmin.f32 %v11125_v40, 0.0 }
 0x208   :  { %17170 = vst [vmem:[#allocation25_spill] sm:$0xff] %v11277_v2  ;;  %17171 = vst [vmem:[#allocation26_spill] sm:$0xff] %v11283_v59  ;;  %v11316_v49 = vadd.f32 %v10900_v27, %v11105_v5  ;;  %v11320_v46 = vadd.f32 %v10900_v27, %v11109_v60  ;;  %v11327_v16 = vadd.f32 %v10900_v27, %v11113_v44  ;;  %3964 = vmatpush1.bf16.msra.mxu1 %v9405_v58  ;;  %v9410_v5 = vld [vmem:[%s16866_s6 + $0x14] ss:$8 sps:$4 sm:$0xff]   ;;  %v9408_v60 = vld [vmem:[%s16866_s6 + $0x10] ss:$8 sps:$4 sm:$0xff]  }
 0x209   :  { %17172 = vst [vmem:[#allocation27_spill] sm:$0xff] %v11287_v0  ;;  %1898 = vst [vmem:[#allocation2 + $0x6c] sm:$0x4] %v1897_v50  ;;  %v11331_v30 = vadd.f32 %v10900_v27, %v11117_v19  ;;  %3965 = vmatprep.subr.bf16.mxu1 %v9410_v5  ;;  %v17182_v44 = vmov 0  ;;  %v9413_v19 = vld [vmem:[%s16866_s6 + $0x24] ss:$8 sps:$4 sm:$0xff]  }
 0x20a   :  { %17173 = vst [vmem:[#allocation28_spill] sm:$0xff] %v11291_v11  ;;  %17174 = vst [vmem:[#allocation29_spill] sm:$0xff] %v11295_v13  ;;  %v17183_v44 = vsel %vm11340_vm14, 4294967295, %v17182_v44  ;;  %v921_v41 = vmin.f32 %v11129_v61, 0.0  ;;  %v922_v50 = vmin.f32 %v11133_v12, 0.0  ;;  %v923_v33 = vmin.f32 %v11137_v51, 0.0 }
 0x20b   :  { %17175 = vst [vmem:[#allocation30_spill] sm:$0xff] %v11299_v36  ;;  %17176 = vst [vmem:[#allocation31_spill] sm:$0xff] %v11303_v20  ;;  %v926_v58 = vmin.f32 %v11149_v54, 0.0  ;;  %v927_v5 = vmin.f32 %v11153_v43, 0.0  ;;  %v931_v63 = vmin.f32 %v11169_v18, 0.0  ;;  %v932_v53 = vmin.f32 %v11173_v28, 0.0 }
 0x20c   :  { %17177 = vst [vmem:[#allocation32_spill] sm:$0xff] %v11312_v37  ;;  %17178 = vst [vmem:[#allocation33_spill] sm:$0xff] %v11316_v49  ;;  %3966 = vmatpush1.bf16.msra.mxu1 %v9408_v60  ;;  %v928_v60 = vmin.f32 %v11157_v3, 0.0  ;;  %v933_v7 = vmin.f32 %v11177_v62, 0.0  ;;  %v967_v3 = vmul.f32 1.442695, %v919_v31 }
 0x20d   :  { %17179 = vst [vmem:[#allocation34_spill] sm:$0xff] %v11320_v46  ;;  %1866 = vst [vmem:[#allocation2 + $0x6c] sm:$0x2] %v1865_v39  ;;  %3967 = vmatprep.subr.bf16.mxu1 %v9413_v19  ;;  %v925_v39 = vmin.f32 %v11145_v25, 0.0  ;;  %v9416_v19 = vld [vmem:[%s16866_s6 + $0x34] ss:$8 sps:$4 sm:$0xff]  }
 0x20e   :  { %17180 = vst [vmem:[#allocation35_spill] sm:$0xff] %v11327_v16  ;;  %17181 = vst [vmem:[#allocation36_spill] sm:$0xff] %v11331_v30  ;;  %v969_v43 = vmul.f32 1.442695, %v920_v22  ;;  %v938_v54 = vmin.f32 %v11203_v52, 0.0  ;;  %v939_v28 = vmin.f32 %v11207_v26, 0.0  ;;  %9891 = vpow2.f32 %v967_v3 }
 0x20f   :  { %17184 = vst [vmem:[#allocation37_spill] sm:$0xff] %v17183_v44  ;;  %v934_v44 = vmin.f32 %v11181_v8, 0.0  ;;  %v971_v62 = vmul.f32 1.442695, %v921_v41  ;;  %v973_v25 = vmul.f32 1.442695, %v922_v50 }
 0x210   :  { %v1920_v14 = vld [vmem:[#allocation2 + $0x6c] sm:$0x4]  ;;  %3968 = vmatpush1.bf16.msra.mxu1 %v9411_v1  ;;  %v940_v1 = vmin.f32 %v11211_v56, 0.0  ;;  %v941_v8 = vmin.f32 %v11215_v15, 0.0  ;;  %v943_v18 = vmin.f32 %v11223_v34, 0.0  ;;  %9893 = vpow2.f32 %v969_v43 }
 0x211   :  { %v1921_v27 = vsel %vm11340_vm14, %v1838_v9, %v1920_v14  ;;  %v924_v9 = vmin.f32 %v11141_v21, 0.0  ;;  %v929_v14 = vmin.f32 %v11161_v10, 0.0  ;;  %v9414_v10 = vld [vmem:[%s16866_s6 + $0x30] ss:$8 sps:$4 sm:$0xff]   ;;  %3969 = vmatprep.subr.bf16.mxu1 %v9416_v19  ;;  %v975_v21 = vmul.f32 1.442695, %v923_v33 }
 0x212   :  { %1922 = vst [vmem:[#allocation2 + $0x6c] sm:$0x4] %v1921_v27  ;;  %v930_v27 = vmin.f32 %v11165_v32, 0.0  ;;  %v942_v32 = vmin.f32 %v11219_v45, 0.0  ;;  %9895 = vpow2.f32 %v971_v62  ;;  %v979_v41 = vmul.f32 1.442695, %v925_v39 }
 0x213   :  { %v977_v31 = vmul.f32 1.442695, %v924_v9  ;;  %9897 = vpow2.f32 %v973_v25  ;;  %v981_v15 = vmul.f32 1.442695, %v926_v58  ;;  %v948_v3 = vmin.f32 %v11249_v35, 0.0 }
 0x214   :  { %3970 = vmatpush1.bf16.msra.mxu1 %v9414_v10  ;;  %v946_v10 = vmin.f32 %v11241_v47, 0.0  ;;  %v949_v33 = vmin.f32 %v11255_v48, 0.0  ;;  %9899 = vpow2.f32 %v975_v21  ;;  %v983_v34 = vmul.f32 1.442695, %v927_v5 }
 0x215   :  { %v950_v43 = vmin.f32 %v11265_v55, 0.0  ;;  %v951_v9 = vmin.f32 %v11269_v17, 0.0  ;;  %9901 = vpow2.f32 %v977_v31  ;;  %v985_v19 = vmul.f32 1.442695, %v928_v60 }
 0x216   :  { %9903 = vpow2.f32 %v979_v41  ;;  %v987_v50 = vmul.f32 1.442695, %v929_v14  ;;  %v989_v22 = vmul.f32 1.442695, %v930_v27  ;;  %v991_v17 = vmul.f32 1.442695, %v931_v63 }
 0x217   :  { %9905 = vpow2.f32 %v981_v15  ;;  %v993_v39 = vmul.f32 1.442695, %v932_v53  ;;  %v995_v15 = vmul.f32 1.442695, %v933_v7  ;;  %v997_v63 = vmul.f32 1.442695, %v934_v44 }
 0x218   :  { %9907 = vpow2.f32 %v983_v34  ;;  %v11399_v41 = vpop.eup %9891  ;;  %v17186_v58 = vmin.f32 %v11189_v6, 0.0  ;;  %v17187_v5 = vmin.f32 %v11193_v23, 0.0  ;;  %v1005_v34 = vmul.f32 1.442695, %v938_v54 }
 0x219   :  { %9909 = vpow2.f32 %v985_v19  ;;  %v17185_v19 = vmin.f32 %v11185_v4, 0.0  ;;  %v1009_v21 = vmul.f32 1.442695, %v940_v1  ;;  %v1011_v53 = vmul.f32 1.442695, %v941_v8 }
 0x21a   :  { %9911 = vpow2.f32 %v987_v50  ;;  %v11403_v27 = vpop.eup %9893  ;;  %v1001_v50 = vmul.f32 1.442695, %v17186_v58  ;;  %v1003_v31 = vmul.f32 1.442695, %v17187_v5  ;;  %v1013_v58 = vmul.f32 1.442695, %v942_v32 }
 0x21b   :  { %9913 = vpow2.f32 %v989_v22  ;;  %v999_v14 = vmul.f32 1.442695, %v17185_v19  ;;  %v1007_v22 = vmul.f32 1.442695, %v939_v28  ;;  %v1015_v25 = vmul.f32 1.442695, %v943_v18 }
 0x21c   :  { %v11407_v60 = vpop.eup %9895  ;;  %9915 = vpow2.f32 %v991_v17  ;;  %v9417_v17 = vld [vmem:[%s16866_s6 + $0x40] ss:$8 sps:$4 sm:$0xff]   ;;  %v17188_v28 = vmin.f32 %v11227_v38, 0.0  ;;  %v17189_v8 = vmin.f32 %v11237_v57, 0.0  ;;  %v17190_v32 = vmin.f32 %v11245_v42, 0.0 }
 0x21d   :  { %v11414_v7 = vpop.eup %9897  ;;  %9917 = vpow2.f32 %v993_v39  ;;  %v9419_v39 = vld [vmem:[%s16866_s6 + $0x44] ss:$8 sps:$4 sm:$0xff]   ;;  %v11440_v55 = vmul.f32 1.442695, %v949_v33  ;;  %v17192_v33 = vmin.f32 %v11277_v2, 0.0  ;;  %v17196_v2 = vmin.f32 %v11295_v13, 0.0 }
 0x21e   :  { %v11418_v44 = vpop.eup %9899  ;;  %9919 = vpow2.f32 %v995_v15  ;;  %v1017_v1 = vmul.f32 1.442695, %v17188_v28  ;;  %v1019_v5 = vmul.f32 1.442695, %v17189_v8  ;;  %v1021_v15 = vmul.f32 1.442695, %v946_v10  ;;  %3971 = vmatprep.subr.bf16.mxu1 %v9419_v39 }
 0x21f   :  { %v11423_v19 = vpop.eup %9901  ;;  %9921 = vpow2.f32 %v997_v63  ;;  %v1023_v18 = vmul.f32 1.442695, %v17190_v32  ;;  %v11438_v63 = vmul.f32 1.442695, %v948_v3  ;;  %v11444_v28 = vmul.f32 1.442695, %v951_v9  ;;  %3972 = vmatpush1.bf16.msra.mxu1 %v9417_v17 }
 0x220   :  { %v11428_v54 = vpop.eup %9903  ;;  %9923 = vpow2.f32 %v999_v14  ;;  %v11442_v14 = vmul.f32 1.442695, %v950_v43  ;;  %v9420_v10 = vld [vmem:[%s16866_s6 + $0x50] ss:$8 sps:$4 sm:$0xff]   ;;  %v17191_v8 = vmin.f32 %v11273_v24, 0.0  ;;  %v8217_v13 = vadd.f32 -1.0, %v11403_v27 }
 0x221   :  { %v11434_v62 = vpop.eup %9905  ;;  %9925 = vpow2.f32 %v1001_v50  ;;  %v11455_v39 = vmul.f32 1.442695, %v17192_v33  ;;  %v9422_v43 = vld [vmem:[%s16866_s6 + $0x54] ss:$8 sps:$4 sm:$0xff]   ;;  %v11474_v35 = vmul.f32 1.442695, %v17196_v2 }
 0x222   :  { %v9908_v48 = vpop.eup %9907  ;;  %9927 = vpow2.f32 %v1003_v31  ;;  %v11451_v3 = vmul.f32 1.442695, %v17191_v8  ;;  %v17193_v31 = vmin.f32 %v11283_v59, 0.0  ;;  %v17195_v8 = vmin.f32 %v11291_v11, 0.0  ;;  %3973 = vmatprep.subr.bf16.mxu1 %v9422_v43  ;;  %v9423_v2 = vld [vmem:[%s16866_s6 + $0x60] ss:$8 sps:$4 sm:$0xff]  }
 0x223   :  { %v9910_v50 = vpop.eup %9909  ;;  %9929 = vpow2.f32 %v1005_v34  ;;  %v17194_v34 = vmin.f32 %v11287_v0, 0.0  ;;  %3974 = vmatpush1.bf16.msra.mxu1 %v9420_v10  ;;  %v17199_v43 = vmin.f32 %v11312_v37, 0.0  ;;  %v17202_v27 = vmin.f32 %v11327_v16, 0.0 }
 0x224   :  { %v9912_v9 = vpop.eup %9911  ;;  %9931 = vpow2.f32 %v1007_v22  ;;  %v11462_v17 = vmul.f32 1.442695, %v17193_v31  ;;  %v11470_v24 = vmul.f32 1.442695, %v17195_v8  ;;  %v17197_v22 = vmin.f32 %v11299_v36, 0.0 }
 0x225   :  { %v11466_v32 = vmul.f32 1.442695, %v17194_v34  ;;  %v9914_v33 = vpop.eup %9913  ;;  %9933 = vpow2.f32 %v1009_v21  ;;  %v9425_v31 = vld [vmem:[%s16866_s6 + $0x64] ss:$8 sps:$4 sm:$0xff]   ;;  %v17198_v8 = vmin.f32 %v11303_v20, 0.0  ;;  %v8216_v21 = vadd.f32 -1.0, %v11399_v41 }
 0x226   :  { %v11478_v42 = vmul.f32 1.442695, %v17197_v22  ;;  %v9916_v34 = vpop.eup %9915  ;;  %9935 = vpow2.f32 %v1011_v53  ;;  %v11493_v36 = vmul.f32 1.442695, %v17199_v43  ;;  %3975 = vmatprep.subr.bf16.mxu1 %v9425_v31  ;;  %v9428_v53 = vld [vmem:[%s16866_s6 + $0x74] ss:$8 sps:$4 sm:$0xff]  }
 0x227   :  { %v11485_v11 = vmul.f32 1.442695, %v17198_v8  ;;  %v9918_v22 = vpop.eup %9917  ;;  %9937 = vpow2.f32 %v1013_v58  ;;  %v17200_v41 = vmin.f32 %v11316_v49, 0.0  ;;  %v17201_v20 = vmin.f32 %v11320_v46, 0.0  ;;  %3976 = vmatpush1.bf16.msra.mxu1 %v9423_v2 }
 0x228   :  { %v9920_v8 = vpop.eup %9919  ;;  %9939 = vpow2.f32 %v1015_v25  ;;  %v8218_v43 = vadd.f32 -1.0, %v11407_v60  ;;  %v11510_v31 = vmul.f32 1.442695, %v17202_v27  ;;  %v17203_v0 = vmin.f32 %v11331_v30, 0.0  ;;  %v9426_v60 = vld [vmem:[%s16866_s6 + $0x70] ss:$8 sps:$4 sm:$0xff]   ;;  %3977 = vmatprep.subr.bf16.mxu1 %v9428_v53 }
 0x229   :  { %v11501_v10 = vmul.f32 1.442695, %v17200_v41  ;;  %v11505_v58 = vmul.f32 1.442695, %v17201_v20  ;;  %v9922_v37 = vpop.eup %9921  ;;  %9941 = vpow2.f32 %v1017_v1  ;;  %v8219_v25 = vadd.f32 -1.0, %v11414_v7 }
 0x22a   :  { %v11514_v59 = vmul.f32 1.442695, %v17203_v0  ;;  %v9924_v41 = vpop.eup %9923  ;;  %9943 = vpow2.f32 %v1019_v5  ;;  %v8220_v46 = vadd.f32 -1.0, %v11418_v44  ;;  %v11518_v20 = vmul.f32 1.6732632, %v8216_v21 }
 0x22b   :  { %v9926_v1 = vpop.eup %9925  ;;  %9945 = vpow2.f32 %v1021_v15  ;;  %v8221_v27 = vadd.f32 -1.0, %v11423_v19  ;;  %v11524_v30 = vmul.f32 1.6732632, %v8217_v13  ;;  %v9431_v0 = vld [vmem:[%s16866_s6 + $0x84] ss:$8 sps:$4 sm:$0xff]   ;;  %v8222_v44 = vadd.f32 -1.0, %v11428_v54  ;;  %3978 = vmatpush1.bf16.msra.mxu1 %v9426_v60 }
 0x22c   :  { %v9928_v7 = vpop.eup %9927  ;;  %9947 = vpow2.f32 %v1023_v18  ;;  %v8223_v5 = vadd.f32 -1.0, %v11434_v62  ;;  %v11531_v21 = vmul.f32 1.6732632, %v8218_v43  ;;  %v8224_v15 = vadd.f32 -1.0, %v9908_v48  ;;  %v9429_v62 = vld [vmem:[%s16866_s6 + $0x80] ss:$8 sps:$4 sm:$0xff]   ;;  %3979 = vmatprep.subr.bf16.mxu1 %v9431_v0 }
 0x22d   :  { %v9930_v2 = vpop.eup %9929  ;;  %9949 = vpow2.f32 %v11438_v63  ;;  %v8225_v19 = vadd.f32 -1.0, %v9910_v50  ;;  %v11534_v13 = vmul.f32 1.6732632, %v8219_v25  ;;  %v8226_v16 = vadd.f32 -1.0, %v9912_v9  ;;  %v9434_v48 = vld [vmem:[%s16866_s6 + $0x94] ss:$8 sps:$4 sm:$0xff]  }
 0x22e   :  { %v9932_v53 = vpop.eup %9931  ;;  %9951 = vpow2.f32 %v11440_v55  ;;  %v11537_v49 = vmul.f32 1.6732632, %v8220_v46  ;;  %v8227_v18 = vadd.f32 -1.0, %v9914_v33  ;;  %v11543_v63 = vmul.f32 1.6732632, %v8221_v27 }
 0x22f   :  { %v9934_v54 = vpop.eup %9933  ;;  %9953 = vpow2.f32 %v11442_v14  ;;  %v8228_v46 = vadd.f32 -1.0, %v9916_v34  ;;  %v11549_v50 = vmul.f32 1.6732632, %v8222_v44  ;;  %v11551_v9 = vmul.f32 1.6732632, %v8223_v5  ;;  %3980 = vmatpush1.bf16.msra.mxu1 %v9429_v62 }
 0x230   :  { %v9936_v55 = vpop.eup %9935  ;;  %9955 = vpow2.f32 %v11444_v28  ;;  %v8229_v14 = vadd.f32 -1.0, %v9918_v22  ;;  %v11554_v33 = vmul.f32 1.6732632, %v8224_v15  ;;  %v11556_v25 = vmul.f32 1.6732632, %v8225_v19  ;;  %3981 = vmatprep.subr.bf16.mxu1 %v9434_v48 }
 0x231   :  { %v9938_v43 = vpop.eup %9937  ;;  %9957 = vpow2.f32 %v11451_v3  ;;  %v8230_v27 = vadd.f32 -1.0, %v9920_v8  ;;  %v11559_v0 = vmul.f32 1.6732632, %v8226_v16  ;;  %v9432_v28 = vld [vmem:[%s16866_s6 + $0x90] ss:$8 sps:$4 sm:$0xff]   ;;  %v8231_v3 = vadd.f32 -1.0, %v9922_v37 }
 0x232   :  { %v9940_v60 = vpop.eup %9939  ;;  %9959 = vpow2.f32 %v11455_v39  ;;  %v11565_v22 = vmul.f32 1.6732632, %v8227_v18  ;;  %v9437_v44 = vld [vmem:[%s16866_s6 + $0xa4] ss:$8 sps:$4 sm:$0xff]   ;;  %v8232_v16 = vadd.f32 -1.0, %v9924_v41  ;;  %v8233_v8 = vadd.f32 -1.0, %v9926_v1 }
 0x233   :  { %v9942_v34 = vpop.eup %9941  ;;  %9961 = vpow2.f32 %v11462_v17  ;;  %v11571_v5 = vmul.f32 1.6732632, %v8228_v46  ;;  %v8234_v19 = vadd.f32 -1.0, %v9928_v7  ;;  %v8235_v17 = vadd.f32 -1.0, %v9930_v2  ;;  %3982 = vmatpush1.bf16.msra.mxu1 %v9432_v28  ;;  %v9440_v7 = vld [vmem:[%s16866_s6 + $0xb4] ss:$8 sps:$4 sm:$0xff]  }
 0x234   :  { %v9944_v39 = vpop.eup %9943  ;;  %9963 = vpow2.f32 %v11466_v32  ;;  %v11574_v37 = vmul.f32 1.6732632, %v8229_v14  ;;  %v8236_v18 = vadd.f32 -1.0, %v9932_v53  ;;  %v11577_v48 = vmul.f32 1.6732632, %v8230_v27  ;;  %3983 = vmatprep.subr.bf16.mxu1 %v9437_v44 }
 0x235   :  { %v9946_v15 = vpop.eup %9945  ;;  %9965 = vpow2.f32 %v11470_v24  ;;  %v9435_v32 = vld [vmem:[%s16866_s6 + $0xa0] ss:$8 sps:$4 sm:$0xff]   ;;  %v8237_v1 = vadd.f32 -1.0, %v9934_v54  ;;  %v11583_v24 = vmul.f32 1.6732632, %v8231_v3  ;;  %v8238_v2 = vadd.f32 -1.0, %v9936_v55 }
 0x236   :  { %v9948_v62 = vpop.eup %9947  ;;  %9967 = vpow2.f32 %v11474_v35  ;;  %v11589_v53 = vmul.f32 1.6732632, %v8232_v16  ;;  %v11591_v46 = vmul.f32 1.6732632, %v8233_v8  ;;  %v11594_v54 = vmul.f32 1.6732632, %v8234_v19 }
 0x237   :  { %v9950_v41 = vpop.eup %9949  ;;  %9969 = vpow2.f32 %v11478_v42  ;;  %17204 = vst [vmem:[#allocation38_spill] sm:$0xff] %v11583_v24  ;;  %v8239_v42 = vadd.f32 -1.0, %v9938_v43  ;;  %v11596_v27 = vmul.f32 1.6732632, %v8235_v17  ;;  %v8240_v3 = vadd.f32 -1.0, %v9940_v60  ;;  %3984 = vmatpush1.bf16.msra.mxu1 %v9435_v32 }
 0x238   :  { %v9952_v35 = vpop.eup %9951  ;;  %9971 = vpow2.f32 %v11485_v11  ;;  %v8241_v44 = vadd.f32 -1.0, %v9942_v34  ;;  %v11599_v24 = vmul.f32 1.6732632, %v8236_v18  ;;  %v9438_v11 = vld [vmem:[%s16866_s6 + $0xb0] ss:$8 sps:$4 sm:$0xff]   ;;  %v8243_v43 = vadd.f32 -1.0, %v9946_v15  ;;  %3985 = vmatprep.subr.bf16.mxu1 %v9440_v7 }
 0x239   :  { %v9954_v14 = vpop.eup %9953  ;;  %9973 = vpow2.f32 %v11493_v36  ;;  %v8242_v36 = vadd.f32 -1.0, %v9944_v39  ;;  %v11605_v16 = vmul.f32 1.6732632, %v8237_v1  ;;  %v8244_v34 = vadd.f32 -1.0, %v9948_v62 }
 0x23a   :  { %v9956_v28 = vpop.eup %9955  ;;  %9975 = vpow2.f32 %v11501_v10  ;;  %17205 = vst [vmem:[#allocation39_spill] sm:$0xff] %v11599_v24  ;;  %v9443_v10 = vld [vmem:[%s16866_s6 + $0xc4] ss:$8 sps:$4 sm:$0xff]   ;;  %v8245_v8 = vadd.f32 -1.0, %v9950_v41  ;;  %v11611_v19 = vmul.f32 1.6732632, %v8238_v2 }
 0x23b   :  { %v9958_v55 = vpop.eup %9957  ;;  %9977 = vpow2.f32 %v11505_v58  ;;  %17206 = vst [vmem:[#allocation40_spill] sm:$0xff] %v11605_v16  ;;  %v9441_v58 = vld [vmem:[%s16866_s6 + $0xc0] ss:$8 sps:$4 sm:$0xff]   ;;  %v8246_v15 = vadd.f32 -1.0, %v9952_v35  ;;  %v8247_v17 = vadd.f32 -1.0, %v9954_v14  ;;  %v8248_v32 = vadd.f32 -1.0, %v9956_v28  ;;  %3986 = vmatpush1.bf16.msra.mxu1 %v9438_v11 }
 0x23c   :  { %v9960_v60 = vpop.eup %9959  ;;  %9979 = vpow2.f32 %v11510_v31  ;;  %17207 = vst [vmem:[#allocation41_spill] sm:$0xff] %v11611_v19  ;;  %v11617_v18 = vmul.f32 1.6732632, %v8239_v42  ;;  %v9446_v31 = vld [vmem:[%s16866_s6 + $0xd4] ss:$8 sps:$4 sm:$0xff]   ;;  %v8249_v41 = vadd.f32 -1.0, %v9958_v55  ;;  %3987 = vmatprep.subr.bf16.mxu1 %v9443_v10 }
 0x23d   :  { %v9962_v39 = vpop.eup %9961  ;;  %9981 = vpow2.f32 %v11514_v59  ;;  %v11623_v1 = vmul.f32 1.6732632, %v8240_v3  ;;  %v11625_v7 = vmul.f32 1.6732632, %v8241_v44  ;;  %vm1160_vm0 = vcmp.gt.f32.partialorder %v11125_v40, 0.0  ;;  %v17215_v11 = vld [vmem:[#allocation3_spill] sm:$0xff] }
 0x23e   :  { %17208 = vst [vmem:[#allocation42_spill] sm:$0xff] %v11617_v18  ;;  %v9964_v62 = vpop.eup %9963  ;;  %vm1161_vm2 = vcmp.gt.f32.partialorder %v11129_v61, 0.0  ;;  %v8250_v35 = vadd.f32 -1.0, %v9960_v60  ;;  %v8251_v2 = vadd.f32 -1.0, %v9962_v39  ;;  %v11629_v14 = vmul.f32 1.6732632, %v8242_v36 }
 0x23f   :  { %17209 = vst [vmem:[#allocation43_spill] sm:$0xff] %v11623_v1  ;;  %17210 = vst [vmem:[#allocation44_spill] sm:$0xff] %v11625_v7  ;;  %v9966_v59 = vpop.eup %9965  ;;  %v11631_v42 = vmul.f32 1.6732632, %v8243_v43  ;;  %vm1162_vm3 = vcmp.gt.f32.partialorder %v11133_v12, 0.0  ;;  %vm1163_vm5 = vcmp.gt.f32.partialorder %v11137_v51, 0.0  ;;  %3988 = vmatpush1.bf16.msra.mxu1 %v9441_v58 }
 0x240   :  { %17211 = vst [vmem:[#allocation45_spill] sm:$0xff] %v11629_v14  ;;  %v9968_v28 = vpop.eup %9967  ;;  %v8252_v3 = vadd.f32 -1.0, %v9964_v62  ;;  %v8253_v44 = vadd.f32 -1.0, %v9966_v59  ;;  %v11635_v55 = vmul.f32 1.6732632, %v8244_v34  ;;  %v17216_v60 = vld [vmem:[#allocation4_spill] sm:$0xff]  ;;  %3989 = vmatprep.subr.bf16.mxu1 %v9446_v31 }
 0x241   :  { %17212 = vst [vmem:[#allocation46_spill] sm:$0xff] %v11631_v42  ;;  %v11637_v7 = vmul.f32 1.6732632, %v8245_v8  ;;  %v17217_v36 = vld [vmem:[#allocation5_spill] sm:$0xff]  ;;  %v9444_v43 = vld [vmem:[%s16866_s6 + $0xd0] ss:$8 sps:$4 sm:$0xff]   ;;  %v9970_v39 = vpop.eup %9969 }
 0x242   :  { %17213 = vst [vmem:[#allocation47_spill] sm:$0xff] %v11635_v55  ;;  %v8254_v42 = vadd.f32 -1.0, %v9968_v28  ;;  %v11645_v10 = vmul.f32 1.6732632, %v8246_v15  ;;  %v11647_v62 = vmul.f32 1.6732632, %v8247_v17  ;;  %v9972_v55 = vpop.eup %9971 }
 0x243   :  { %17214 = vst [vmem:[#allocation48_spill] sm:$0xff] %v11637_v7  ;;  %v17220_v34 = vld [vmem:[#allocation6_spill] sm:$0xff]  ;;  %v17221_v8 = vld [vmem:[#allocation7_spill] sm:$0xff]  ;;  %v17222_v59 = vld [vmem:[#allocation8_spill] sm:$0xff]  ;;  %v8255_v14 = vadd.f32 -1.0, %v9970_v39  ;;  %v8256_v19 = vadd.f32 -1.0, %v9972_v55  ;;  %3990 = vmatpush1.bf16.msra.mxu1 %v9444_v43 }
 0x244   :  { %17218 = vst [vmem:[#allocation3_spill] sm:$0xff] %v11645_v10  ;;  %17219 = vst [vmem:[#allocation4_spill] sm:$0xff] %v11647_v62  ;;  %v9449_v7 = vld [vmem:[%s16866_s6 + $0xe4] ss:$8 sps:$4 sm:$0xff]   ;;  %v11655_v1 = vmul.f32 1.6732632, %v8248_v32  ;;  %v9974_v10 = vpop.eup %9973 }
 0x245   :  { %v11657_v18 = vmul.f32 1.6732632, %v8249_v41  ;;  %v17225_v15 = vld [vmem:[#allocation9_spill] sm:$0xff]  ;;  %v17226_v17 = vld [vmem:[#allocation10_spill] sm:$0xff]  ;;  %v17227_v28 = vld [vmem:[#allocation11_spill] sm:$0xff]  ;;  %v9976_v32 = vpop.eup %9975  ;;  %v8257_v41 = vadd.f32 -1.0, %v9974_v10  ;;  %3991 = vmatprep.subr.bf16.mxu1 %v9449_v7 }
 0x246   :  { %17223 = vst [vmem:[#allocation5_spill] sm:$0xff] %v11655_v1  ;;  %v17228_v62 = vld [vmem:[#allocation12_spill] sm:$0xff]  ;;  %v11663_v16 = vmul.f32 1.6732632, %v8250_v35  ;;  %v11665_v24 = vmul.f32 1.6732632, %v8251_v2  ;;  %v9978_v55 = vpop.eup %9977 }
 0x247   :  { %17224 = vst [vmem:[#allocation6_spill] sm:$0xff] %v11657_v18  ;;  %v17231_v39 = vld [vmem:[#allocation13_spill] sm:$0xff]  ;;  %v11671_v18 = vmul.f32 1.6732632, %v8252_v3  ;;  %v11673_v58 = vmul.f32 1.6732632, %v8253_v44  ;;  %v9980_v10 = vpop.eup %9979 }
 0x248   :  { %17229 = vst [vmem:[#allocation7_spill] sm:$0xff] %v11663_v16  ;;  %17230 = vst [vmem:[#allocation8_spill] sm:$0xff] %v11665_v24  ;;  %v17234_v35 = vld [vmem:[#allocation15_spill] sm:$0xff]  ;;  %v9447_v2 = vld [vmem:[%s16866_s6 + $0xe0] ss:$8 sps:$4 sm:$0xff]   ;;  %v8258_v31 = vadd.f32 -1.0, %v9976_v32 }
 0x249   :  { %17232 = vst [vmem:[#allocation9_spill] sm:$0xff] %v11671_v18  ;;  %17233 = vst [vmem:[#allocation10_spill] sm:$0xff] %v11673_v58  ;;  %v11682_v24 = vmul.f32 1.6732632, %v8254_v42  ;;  %v11684_v3 = vmul.f32 1.6732632, %v8255_v14  ;;  %3992 = vmatpush1.bf16.msra.mxu1 %v9447_v2 }
 0x24a   :  { %v17237_v44 = vld [vmem:[#allocation16_spill] sm:$0xff]  ;;  %vm1184_vm6 = vcmp.gt.f32.partialorder %v11227_v38, 0.0  ;;  %v8259_v58 = vadd.f32 -1.0, %v9978_v55  ;;  %v11690_v18 = vmul.f32 1.6732632, %v8256_v19  ;;  %v17240_v42 = vld [vmem:[#allocation18_spill] sm:$0xff]  ;;  %v9982_v55 = vpop.eup %9981 }
 0x24b   :  { %17235 = vst [vmem:[#allocation11_spill] sm:$0xff] %v11682_v24  ;;  %17236 = vst [vmem:[#allocation12_spill] sm:$0xff] %v11684_v3  ;;  %vm1183_vm1 = vcmp.gt.f32.partialorder %v17237_v44, 0.0  ;;  %v11692_v16 = vmul.f32 1.6732632, %v8257_v41  ;;  %v17241_v14 = vld [vmem:[#allocation19_spill] sm:$0xff]  ;;  %v11702_v3 = vsel %vm1159_vm15, %v11121_v29, %v11518_v20  ;;  %v11720_v29 = vsel %vm1161_vm2, %v11129_v61, %v11531_v21 }
 0x24c   :  { %17238 = vst [vmem:[#allocation13_spill] sm:$0xff] %v11690_v18  ;;  %v17242_v32 = vld [vmem:[#allocation20_spill] sm:$0xff]  ;;  %17243 = vst [vmem:[#allocation16_spill] sm:$0xff] %v11702_v3  ;;  %v8262_v19 = vadd.f32 -1.0, %v9980_v10  ;;  %v11704_v18 = vmul.f32 1.6732632, %v8258_v31  ;;  %v1210_v61 = vsel %vm1162_vm3, %v11133_v12, %v11534_v13 }
 0x24d   :  { %17239 = vst [vmem:[#allocation15_spill] sm:$0xff] %v11692_v16  ;;  %vm1189_vm4 = vcmp.gt.f32.partialorder %v17242_v32, 0.0  ;;  %v17245_v41 = vld [vmem:[#allocation22_spill] sm:$0xff]  ;;  %v17246_v16 = vld [vmem:[#allocation23_spill] sm:$0xff]  ;;  %v17247_v24 = vld [vmem:[#allocation24_spill] sm:$0xff]  ;;  %v11714_v32 = vsel %vm1160_vm0, %v11125_v40, %v11524_v30  ;;  %v8263_v43 = vadd.f32 -1.0, %v9982_v55  ;;  %v1211_v30 = vsel %vm1163_vm5, %v11137_v51, %v11537_v49 }
 0x24e   :  { %17244 = vst [vmem:[#allocation18_spill] sm:$0xff] %v11704_v18  ;;  %vm1190_vm13 = vcmp.gt.f32.partialorder %v17245_v41, 0.0  ;;  %vm1191_vm9 = vcmp.gt.f32.partialorder %v17246_v16, 0.0  ;;  %v17248_v1 = vld [vmem:[#allocation25_spill] sm:$0xff]  ;;  %17249 = vst [vmem:[#allocation19_spill] sm:$0xff] %v11714_v32  ;;  %v17251_v10 = vld [vmem:[#allocation26_spill] sm:$0xff] }
 0x24f   :  { %17250 = vst [vmem:[#allocation22_spill] sm:$0xff] %v11720_v29  ;;  %v9452_v20 = vld [vmem:[%s16866_s6 + $0xf4] ss:$8 sps:$4 sm:$0xff]   ;;  %v1154_v31 = vmul.f32 1.6732632, %v8259_v58  ;;  %v17253_v18 = vld [vmem:[#allocation28_spill] sm:$0xff] }
 0x250   :  { %v17252_v3 = vld [vmem:[#allocation27_spill] sm:$0xff]  ;;  %v17254_v40 = vld [vmem:[#allocation29_spill] sm:$0xff]  ;;  %v1157_v21 = vmul.f32 1.6732632, %v8262_v19  ;;  %v17255_v7 = vld [vmem:[#allocation30_spill] sm:$0xff]  ;;  %vm17259_vm7 = vcmp.gt.f32.partialorder %v17215_v11, 0.0  ;;  %3993 = vmatprep.subr.bf16.mxu1 %v9452_v20 }
 0x251   :  { %vm1198_vm2 = vcmp.gt.f32.partialorder %v17255_v7, 0.0  ;;  %v17256_v58 = vld [vmem:[#allocation31_spill] sm:$0xff]  ;;  %v17257_v55 = vld [vmem:[#allocation32_spill] sm:$0xff]  ;;  %v17258_v29 = vld [vmem:[#allocation33_spill] sm:$0xff]  ;;  %v1212_v32 = vsel %vm17259_vm7, %v17215_v11, %v11543_v63  ;;  %vm17260_vm3 = vcmp.gt.f32.partialorder %v17216_v60, 0.0  ;;  %vm17261_vm5 = vcmp.gt.f32.partialorder %v17217_v36, 0.0 }
 0x252   :  { %v1213_v12 = vsel %vm17260_vm3, %v17216_v60, %v11549_v50  ;;  %v1214_v51 = vsel %vm17261_vm5, %v17217_v36, %v11551_v9  ;;  %v1158_v49 = vmul.f32 1.6732632, %v8263_v43  ;;  %v17262_v13 = vld [vmem:[#allocation34_spill] sm:$0xff]  ;;  %v17263_v19 = vld [vmem:[#allocation35_spill] sm:$0xff]  ;;  %vm17264_vm15 = vcmp.gt.f32.partialorder %v17220_v34, 0.0  ;;  %v17267_v60 = vld [vmem:[#allocation36_spill] sm:$0xff] }
 0x253   :  { %vm1202_vm8 = vcmp.gt.f32.partialorder %v17262_v13, 0.0  ;;  %v1215_v63 = vsel %vm17264_vm15, %v17220_v34, %v11554_v33  ;;  %vm17265_vm7 = vcmp.gt.f32.partialorder %v17221_v8, 0.0  ;;  %vm17266_vm3 = vcmp.gt.f32.partialorder %v17222_v59, 0.0  ;;  %v9450_v11 = vld [vmem:[%s16866_s6 + $0xf0] ss:$8 sps:$4 sm:$0xff]   ;;  %v17297_v43 = vld [vmem:[#allocation20_spill] sm:$0xff] }
 0x254   :  { %v1216_v50 = vsel %vm17265_vm7, %v17221_v8, %v11556_v25  ;;  %v1217_v9 = vsel %vm17266_vm3, %v17222_v59, %v11559_v0  ;;  %vm17268_vm15 = vcmp.gt.f32.partialorder %v17225_v15, 0.0  ;;  %vm17269_vm7 = vcmp.gt.f32.partialorder %v17226_v17, 0.0  ;;  %v17272_v34 = vld [vmem:[#allocation38_spill] sm:$0xff]  ;;  %v17278_v59 = vld [vmem:[#allocation39_spill] sm:$0xff]  ;;  %3994 = vmatpush1.bf16.msra.mxu1 %v9450_v11  ;;  %v17298_v11 = vld [vmem:[#allocation4_spill] sm:$0xff] }
 0x255   :  { %v1218_v33 = vsel %vm17268_vm15, %v17225_v15, %v11565_v22  ;;  %v1219_v25 = vsel %vm17269_vm7, %v17226_v17, %v11571_v5  ;;  %vm17270_vm3 = vcmp.gt.f32.partialorder %v17227_v28, 0.0  ;;  %vm17271_vm0 = vcmp.gt.f32.partialorder %v17228_v62, 0.0  ;;  %v9457_v22 = vld [vmem:[%s16866_s6 + $0x104] ss:$8 sps:$4 sm:$0xff]   ;;  %v17296_v20 = vld [vmem:[#allocation3_spill] sm:$0xff] }
 0x256   :  { %v1220_v0 = vsel %vm17270_vm3, %v17227_v28, %v11574_v37  ;;  %v1221_v36 = vsel %vm17271_vm0, %v17228_v62, %v11577_v48  ;;  %vm17273_vm15 = vcmp.gt.f32.partialorder %v17231_v39, 0.0  ;;  %vm17274_vm7 = vcmp.gt.f32.partialorder %v11185_v4, 0.0  ;;  %v17287_v15 = vld [vmem:[#allocation44_spill] sm:$0xff]  ;;  %v17288_v17 = vld [vmem:[#allocation45_spill] sm:$0xff]  ;;  %4086 = vmatprep.subr.bf16.mxu1 %v9457_v22 }
 0x257   :  { %v1222_v5 = vsel %vm17273_vm15, %v17231_v39, %v17272_v34  ;;  %v1223_v37 = vsel %vm17274_vm7, %v11185_v4, %v11589_v53  ;;  %vm17275_vm3 = vcmp.gt.f32.partialorder %v11189_v6, 0.0  ;;  %vm17276_vm0 = vcmp.gt.f32.partialorder %v11193_v23, 0.0  ;;  %v17280_v53 = vld [vmem:[#allocation40_spill] sm:$0xff]  ;;  %v17290_v39 = vld [vmem:[#allocation46_spill] sm:$0xff]  ;;  %v17299_v34 = vld [vmem:[#allocation5_spill] sm:$0xff] }
 0x258   :  { %v1224_v48 = vsel %vm17275_vm3, %v11189_v6, %v11591_v46  ;;  %v1225_v62 = vsel %vm17276_vm0, %v11193_v23, %v11594_v54  ;;  %vm17277_vm5 = vcmp.gt.f32.partialorder %v11203_v52, 0.0  ;;  %vm17279_vm15 = vcmp.gt.f32.partialorder %v11207_v26, 0.0  ;;  %v17282_v46 = vld [vmem:[#allocation41_spill] sm:$0xff]  ;;  %v17284_v54 = vld [vmem:[#allocation42_spill] sm:$0xff] }
 0x259   :  { %v1226_v8 = vsel %vm17277_vm5, %v11203_v52, %v11596_v27  ;;  %v1227_v4 = vsel %vm17279_vm15, %v11207_v26, %v17278_v59  ;;  %vm17281_vm7 = vcmp.gt.f32.partialorder %v11211_v56, 0.0  ;;  %vm17283_vm3 = vcmp.gt.f32.partialorder %v17234_v35, 0.0  ;;  %v17286_v27 = vld [vmem:[#allocation43_spill] sm:$0xff]  ;;  %v17300_v59 = vld [vmem:[#allocation6_spill] sm:$0xff] }
 0x25a   :  { %v1228_v6 = vsel %vm17281_vm7, %v11211_v56, %v17280_v53  ;;  %v1229_v23 = vsel %vm17283_vm3, %v17234_v35, %v17282_v46  ;;  %vm17285_vm0 = vcmp.gt.f32.partialorder %v11219_v45, 0.0  ;;  %v1231_v26 = vsel %vm1183_vm1, %v17237_v44, %v17286_v27  ;;  %v17292_v35 = vld [vmem:[#allocation47_spill] sm:$0xff]  ;;  %v17294_v44 = vld [vmem:[#allocation48_spill] sm:$0xff]  ;;  %v17308_v27 = vld [vmem:[#allocation10_spill] sm:$0xff] }
 0x25b   :  { %v1230_v52 = vsel %vm17285_vm0, %v11219_v45, %v17284_v54  ;;  %v1232_v56 = vsel %vm1184_vm6, %v11227_v38, %v17287_v15  ;;  %vm17289_vm5 = vcmp.gt.f32.partialorder %v11237_v57, 0.0  ;;  %vm17291_vm15 = vcmp.gt.f32.partialorder %v11241_v47, 0.0  ;;  %v17302_v53 = vld [vmem:[#allocation7_spill] sm:$0xff]  ;;  %v17304_v46 = vld [vmem:[#allocation8_spill] sm:$0xff]  ;;  %v17306_v54 = vld [vmem:[#allocation9_spill] sm:$0xff] }
 0x25c   :  { %v1233_v28 = vsel %vm17289_vm5, %v11237_v57, %v17288_v17  ;;  %v1234_v45 = vsel %vm17291_vm15, %v11241_v47, %v17290_v39  ;;  %vm17293_vm1 = vcmp.gt.f32.partialorder %v17240_v42, 0.0  ;;  %vm17295_vm6 = vcmp.gt.f32.partialorder %v17241_v14, 0.0  ;;  %v17310_v15 = vld [vmem:[#allocation11_spill] sm:$0xff]  ;;  %v17312_v17 = vld [vmem:[#allocation12_spill] sm:$0xff]  ;;  %v17313_v39 = vld [vmem:[#allocation13_spill] sm:$0xff] }
 0x25d   :  { %v1235_v2 = vsel %vm17293_vm1, %v17240_v42, %v17292_v35  ;;  %v1236_v38 = vsel %vm17295_vm6, %v17241_v14, %v17294_v44  ;;  %v1237_v57 = vsel %vm1189_vm4, %v17297_v43, %v17296_v20  ;;  %v1238_v47 = vsel %vm1190_vm13, %v17245_v41, %v17298_v11  ;;  %v17315_v35 = vld [vmem:[#allocation15_spill] sm:$0xff]  ;;  %v17317_v44 = vld [vmem:[#allocation18_spill] sm:$0xff]  ;;  %v17320_v43 = vld [vmem:[#allocation16_spill] sm:$0xff] }
 0x25e   :  { %v1239_v42 = vsel %vm1191_vm9, %v17246_v16, %v17299_v34  ;;  %vm17301_vm7 = vcmp.gt.f32.partialorder %v17247_v24, 0.0  ;;  %vm17303_vm4 = vcmp.gt.f32.partialorder %v17248_v1, 0.0  ;;  %vm17305_vm3 = vcmp.gt.f32.partialorder %v17251_v10, 0.0  ;;  %v17321_v11 = vld [vmem:[#allocation19_spill] sm:$0xff] }
 0x25f   :  { %v1240_v14 = vsel %vm17301_vm7, %v17247_v24, %v17300_v59  ;;  %v1241_v22 = vsel %vm17303_vm4, %v17248_v1, %v17302_v53  ;;  %v1242_v41 = vsel %vm17305_vm3, %v17251_v10, %v17304_v46  ;;  %vm17307_vm13 = vcmp.gt.f32.partialorder %v17252_v3, 0.0  ;;  %v17323_v59 = vld [vmem:[#allocation22_spill] sm:$0xff] }
 0x260   :  { %v1243_v16 = vsel %vm17307_vm13, %v17252_v3, %v17306_v54  ;;  %vm17309_vm9 = vcmp.gt.f32.partialorder %v17253_v18, 0.0  ;;  %vm17311_vm0 = vcmp.gt.f32.partialorder %v17254_v40, 0.0  ;;  %v1246_v10 = vsel %vm1198_vm2, %v17255_v7, %v17312_v17 }
 0x261   :  { %v1244_v24 = vsel %vm17309_vm9, %v17253_v18, %v17308_v27  ;;  %v1245_v1 = vsel %vm17311_vm0, %v17254_v40, %v17310_v15  ;;  %vm17314_vm5 = vcmp.gt.f32.partialorder %v17256_v58, 0.0  ;;  %vm17316_vm15 = vcmp.gt.f32.partialorder %v17257_v55, 0.0 }
 0x262   :  { %v1247_v3 = vsel %vm17314_vm5, %v17256_v58, %v17313_v39  ;;  %v1248_v18 = vsel %vm17316_vm15, %v17257_v55, %v17315_v35  ;;  %vm17318_vm1 = vcmp.gt.f32.partialorder %v17258_v29, 0.0  ;;  %v1250_v20 = vsel %vm1202_vm8, %v17262_v13, %v1154_v31 }
 0x263   :  { %v1249_v40 = vsel %vm17318_vm1, %v17258_v29, %v17317_v44  ;;  %vm17319_vm2 = vcmp.gt.f32.partialorder %v17263_v19, 0.0  ;;  %v1255_v58 = vmul.f32 1.050701, %v17320_v43  ;;  %v1256_v34 = vmul.f32 1.050701, %v17321_v11 }
 0x264   :  { %v1253_v7 = vsel %vm17319_vm2, %v17263_v19, %v1157_v21  ;;  %vm17322_vm6 = vcmp.gt.f32.partialorder %v17267_v60, 0.0  ;;  %v1257_v53 = vmul.f32 1.050701, %v17323_v59  ;;  %v1258_v46 = vmul.f32 1.050701, %v1210_v61 }
 0x265   :  { %v1254_v55 = vsel %vm17322_vm6, %v17267_v60, %v1158_v49  ;;  %v1259_v29 = vmul.f32 1.050701, %v1211_v30  ;;  %v1260_v54 = vmul.f32 1.050701, %v1212_v32  ;;  %v1261_v27 = vmul.f32 1.050701, %v1213_v12 }
 0x266   :  { %v1262_v15 = vmul.f32 1.050701, %v1214_v51  ;;  %v11914_v31 = vmax.f32 %v1255_v58, %v1256_v34  ;;  %v1263_v13 = vmul.f32 1.050701, %v1215_v63  ;;  %v1264_v17 = vmul.f32 1.050701, %v1216_v50 }
 0x267   :  { %v1265_v21 = vmul.f32 1.050701, %v1217_v9  ;;  %v11916_v19 = vmax.f32 %v1257_v53, %v1258_v46  ;;  %v1266_v39 = vmul.f32 1.050701, %v1218_v33  ;;  %v1267_v35 = vmul.f32 1.050701, %v1219_v25 }
 0x268   :  { %v1268_v44 = vmul.f32 1.050701, %v1220_v0  ;;  %v11918_v43 = vmax.f32 %v1259_v29, %v1260_v54  ;;  %v1269_v49 = vmul.f32 1.050701, %v1221_v36  ;;  %v1270_v60 = vmul.f32 1.050701, %v1222_v5 }
 0x269   :  { %v1271_v11 = vmul.f32 1.050701, %v1223_v37  ;;  %v11920_v61 = vmax.f32 %v1261_v27, %v1262_v15  ;;  %v1272_v32 = vmul.f32 1.050701, %v1224_v48  ;;  %v1273_v30 = vmul.f32 1.050701, %v1225_v62 }
 0x26a   :  { %v1274_v12 = vmul.f32 1.050701, %v1226_v8  ;;  %v1337_v51 = vmax.f32 %v1263_v13, %v1264_v17  ;;  %v1275_v58 = vmul.f32 1.050701, %v1227_v4  ;;  %v1276_v63 = vmul.f32 1.050701, %v1228_v6 }
 0x26b   :  { %v1277_v50 = vmul.f32 1.050701, %v1229_v23  ;;  %v11922_v9 = vmax.f32 %v1265_v21, %v1266_v39  ;;  %v1278_v34 = vmul.f32 1.050701, %v1230_v52  ;;  %v1279_v33 = vmul.f32 1.050701, %v1231_v26 }
 0x26c   :  { %v1280_v25 = vmul.f32 1.050701, %v1232_v56  ;;  %v11924_v0 = vmax.f32 %v1267_v35, %v1268_v44  ;;  %v1281_v59 = vmul.f32 1.050701, %v1233_v28  ;;  %v1282_v36 = vmul.f32 1.050701, %v1234_v45 }
 0x26d   :  { %v1283_v5 = vmul.f32 1.050701, %v1235_v2  ;;  %v11926_v37 = vmax.f32 %v1269_v49, %v1270_v60  ;;  %v1284_v53 = vmul.f32 1.050701, %v1236_v38  ;;  %v1285_v48 = vmul.f32 1.050701, %v1237_v57 }
 0x26e   :  { %v1286_v62 = vmul.f32 1.050701, %v1238_v47  ;;  %v1341_v8 = vmax.f32 %v1271_v11, %v1272_v32  ;;  %v1287_v46 = vmul.f32 1.050701, %v1239_v42  ;;  %v1288_v4 = vmul.f32 1.050701, %v1240_v14 }
 0x26f   :  { %v1289_v6 = vmul.f32 1.050701, %v1241_v22  ;;  %v11928_v23 = vmax.f32 %v1273_v30, %v1274_v12  ;;  %v1290_v29 = vmul.f32 1.050701, %v1242_v41  ;;  %v1291_v52 = vmul.f32 1.050701, %v1243_v16 }
 0x270   :  { %v1292_v26 = vmul.f32 1.050701, %v1244_v24  ;;  %v11930_v56 = vmax.f32 %v1275_v58, %v1276_v63  ;;  %v1293_v54 = vmul.f32 1.050701, %v1245_v1  ;;  %v1294_v28 = vmul.f32 1.050701, %v1246_v10 }
 0x271   :  { %v1295_v45 = vmul.f32 1.050701, %v1247_v3  ;;  %v11932_v2 = vmax.f32 %v1277_v50, %v1278_v34  ;;  %vm1436_vm8 = vsmask.f32 7950  ;;  %v1296_v38 = vmul.f32 1.050701, %v1248_v18 }
 0x272   :  { %v1297_v57 = vmul.f32 1.050701, %v1249_v40  ;;  %v1298_v47 = vmul.f32 1.050701, %v1250_v20  ;;  %v1345_v27 = vmax.f32 %v1279_v33, %v1280_v25  ;;  %v1301_v42 = vmul.f32 1.050701, %v1253_v7 }
 0x273   :  { %v1302_v14 = vmul.f32 1.050701, %v1254_v55  ;;  %v11934_v22 = vmax.f32 %v1281_v59, %v1282_v36  ;;  %v11936_v15 = vmax.f32 %v1283_v5, %v1284_v53  ;;  %vm1474_vm7 = vcmask 1040384   ;;  %v1438_v25 = vld [vmem:[#allocation2] sm:$0x8] }
 0x274   :  { %vm1475_vm4 = vsmask.f32 256  ;;  %v11938_v41 = vmax.f32 %v1285_v48, %v1286_v62  ;;  %v1349_v16 = vmax.f32 %v1287_v46, %v1288_v4  ;;  %v11940_v24 = vmax.f32 %v1289_v6, %v1290_v29  ;;  %v1447_v48 = vld [vmem:[#allocation2 + $0x3c] sm:$0x8]  ;;  %v1477_v29 = vld [vmem:[#allocation2 + $0x4] sm:$0x1] }
 0x275   :  { %v11942_v1 = vmax.f32 %v1291_v52, %v1292_v26  ;;  %v11944_v10 = vmax.f32 %v1293_v54, %v1294_v28  ;;  %v1353_v3 = vmax.f32 %v1295_v45, %v1296_v38  ;;  %v11946_v18 = vmax.f32 %v1297_v57, %v1298_v47  ;;  %v1480_v52 = vld [vmem:[#allocation2 + $0x18] sm:$0x1]  ;;  %v1483_v26 = vld [vmem:[#allocation2 + $0x2c] sm:$0x1]  ;;  %v1450_v54 = vld [vmem:[#allocation2 + $0x50] sm:$0x8] }
 0x276   :  { %v11948_v40 = vmax.f32 %v1301_v42, %v1302_v14  ;;  %v1363_v20 = vrot.slane %v11914_v31, 1  ;;  %v1364_v7 = vrot.slane %v1337_v51, 1  ;;  %v1365_v55 = vrot.slane %v1341_v8, 1  ;;  %v1453_v47 = vld [vmem:[#allocation2 + $0x64] sm:$0x8]  ;;  %vm11986_vm5 = vmand %vm1474_vm7, %vm1475_vm4 }
 0x277   :  { %v1366_v13 = vrot.slane %v1345_v27, 1  ;;  %v1367_v17 = vrot.slane %v1349_v16, 1  ;;  %v1368_v21 = vrot.slane %v1353_v3, 1  ;;  %v1578_v39 = vrot.slane %v11916_v19, 1  ;;  %v1858_v6 = vld [vmem:[#allocation2 + $0x44] sm:$0x2] }
 0x278   :  { %v1579_v35 = vrot.slane %v11922_v9, 1  ;;  %v1375_v44 = vmax.f32 %v11914_v31, %v1363_v20  ;;  %v1376_v49 = vmax.f32 %v1337_v51, %v1364_v7  ;;  %v1377_v60 = vmax.f32 %v1341_v8, %v1365_v55  ;;  %v1441_v31 = vld [vmem:[#allocation2 + $0x14] sm:$0x8]  ;;  %v1444_v51 = vld [vmem:[#allocation2 + $0x28] sm:$0x8] }
 0x279   :  { %v1378_v11 = vmax.f32 %v1345_v27, %v1366_v13  ;;  %v1379_v32 = vmax.f32 %v1349_v16, %v1367_v17  ;;  %v1380_v30 = vmax.f32 %v1353_v3, %v1368_v21  ;;  %v1580_v12 = vrot.slane %v11928_v23, 1  ;;  %v1486_v20 = vld [vmem:[#allocation2 + $0x40] sm:$0x1]  ;;  %v1489_v21 = vld [vmem:[#allocation2 + $0x54] sm:$0x1] }
 0x27a   :  { %v1581_v58 = vrot.slane %v11934_v22, 1  ;;  %v11956_v63 = vpack.c.bf16 %v1375_v44, %v1375_v44  ;;  %v11958_v50 = vpack.c.bf16 %v1376_v49, %v1376_v49  ;;  %v11960_v34 = vpack.c.bf16 %v1377_v60, %v1377_v60  ;;  %v1492_v44 = vld [vmem:[#allocation2 + $0x68] sm:$0x1] }
 0x27b   :  { %v11962_v33 = vpack.c.bf16 %v1378_v11, %v1378_v11  ;;  %vm1552_vm3 = vsmask.f32 1280  ;;  %v11964_v59 = vpack.c.bf16 %v1379_v32, %v1379_v32  ;;  %v11966_v36 = vpack.c.bf16 %v1380_v30, %v1380_v30 }
 0x27c   :  { %v1582_v5 = vrot.slane %v11940_v24, 1  ;;  %v1406_v62 = vshll.u32 %v11956_v63, 16  ;;  %v1410_v8 = vshll.u32 %v11958_v50, 16  ;;  %v1414_v46 = vshll.u32 %v11960_v34, 16 }
 0x27d   :  { %v1418_v4 = vshll.u32 %v11962_v33, 16  ;;  %vm17324_vm13 = vcmask 1043459   ;;  %v1422_v28 = vshll.u32 %v11964_v59, 16  ;;  %v1426_v45 = vshll.u32 %v11966_v36, 16 }
 0x27e   :  { %vm11976_vm9 = vmand %vm17324_vm13, %vm1436_vm8  ;;  %v8270_v38 = vrot.slane %v11956_v63, 9  ;;  %v8271_v57 = vrot.slane %v11958_v50, 9  ;;  %vm1513_vm0 = vsmask.f32 7938  ;;  %v1408_v27 = vrot.slane %v1406_v62, 5 }
 0x27f   :  { %v1412_v42 = vrot.slane %v1410_v8, 5  ;;  %v1416_v14 = vrot.slane %v1414_v46, 5  ;;  %v1420_v16 = vrot.slane %v1418_v4, 5  ;;  %v1424_v7 = vrot.slane %v1422_v28, 5  ;;  %vm12056_vm2 = vmand %vm1474_vm7, %vm1513_vm0 }
 0x280   :  { %v1428_v55 = vrot.slane %v1426_v45, 5  ;;  %v8272_v13 = vrot.slane %v11960_v34, 9  ;;  %v8273_v17 = vrot.slane %v11962_v33, 9  ;;  %v1439_v49 = vsel %vm11976_vm9, %v1408_v27, %v1438_v25  ;;  %v1554_v27 = vld [vmem:[#allocation2 + $0x4] sm:$0x2] }
 0x281   :  { %v1442_v60 = vsel %vm11976_vm9, %v1412_v42, %v1441_v31  ;;  %v1445_v11 = vsel %vm11976_vm9, %v1416_v14, %v1444_v51  ;;  %v1448_v32 = vsel %vm11976_vm9, %v1420_v16, %v1447_v48  ;;  %1440 = vst [vmem:[#allocation2] sm:$0x8] %v1439_v49  ;;  %v1451_v30 = vsel %vm11976_vm9, %v1424_v7, %v1450_v54  ;;  %v1557_v42 = vld [vmem:[#allocation2 + $0x18] sm:$0x2]  ;;  %v1560_v14 = vld [vmem:[#allocation2 + $0x2c] sm:$0x2] }
 0x282   :  { %1443 = vst [vmem:[#allocation2 + $0x14] sm:$0x8] %v1442_v60  ;;  %1446 = vst [vmem:[#allocation2 + $0x28] sm:$0x8] %v1445_v11  ;;  %v1454_v53 = vsel %vm11976_vm9, %v1428_v55, %v1453_v47  ;;  %v8274_v25 = vrot.slane %v11964_v59, 9  ;;  %v8275_v31 = vrot.slane %v11966_v36, 9  ;;  %v1478_v51 = vsel %vm11986_vm5, %v8270_v38, %v1477_v29 }
 0x283   :  { %1449 = vst [vmem:[#allocation2 + $0x3c] sm:$0x8] %v1448_v32  ;;  %1452 = vst [vmem:[#allocation2 + $0x50] sm:$0x8] %v1451_v30  ;;  %v1481_v48 = vsel %vm11986_vm5, %v8271_v57, %v1480_v52  ;;  %v1484_v54 = vsel %vm11986_vm5, %v8272_v13, %v1483_v26  ;;  %v1487_v47 = vsel %vm11986_vm5, %v8273_v17, %v1486_v20  ;;  %v1563_v16 = vld [vmem:[#allocation2 + $0x40] sm:$0x2] }
 0x284   :  { %1455 = vst [vmem:[#allocation2 + $0x64] sm:$0x8] %v1454_v53  ;;  %1479 = vst [vmem:[#allocation2 + $0x4] sm:$0x1] %v1478_v51  ;;  %v1490_v53 = vsel %vm11986_vm5, %v8274_v25, %v1489_v21  ;;  %v1493_v29 = vsel %vm11986_vm5, %v8275_v31, %v1492_v44  ;;  %v8276_v38 = vrot.slane %v1406_v62, 10  ;;  %v8277_v52 = vrot.slane %v1410_v8, 10 }
 0x285   :  { %1482 = vst [vmem:[#allocation2 + $0x18] sm:$0x1] %v1481_v48  ;;  %1485 = vst [vmem:[#allocation2 + $0x2c] sm:$0x1] %v1484_v54  ;;  %v1566_v57 = vld [vmem:[#allocation2 + $0x54] sm:$0x2] }
 0x286   :  { %1488 = vst [vmem:[#allocation2 + $0x40] sm:$0x1] %v1487_v47  ;;  %1491 = vst [vmem:[#allocation2 + $0x54] sm:$0x1] %v1490_v53  ;;  %v8278_v26 = vrot.slane %v1414_v46, 10  ;;  %v8279_v7 = vrot.slane %v1418_v4, 10 }
 0x287   :  { %1494 = vst [vmem:[#allocation2 + $0x68] sm:$0x1] %v1493_v29  ;;  %v8280_v20 = vrot.slane %v1422_v28, 10  ;;  %v8281_v55 = vrot.slane %v1426_v45, 10  ;;  %v1569_v13 = vld [vmem:[#allocation2 + $0x68] sm:$0x2]  ;;  %v1594_v28 = vmax.f32 %v11940_v24, %v1582_v5 }
 0x288   :  { %v8282_v17 = vrot.slane %v11956_v63, 10  ;;  %v8283_v49 = vrot.slane %v11958_v50, 10  ;;  %v8284_v60 = vrot.slane %v11960_v34, 10  ;;  %v8285_v21 = vrot.slane %v11962_v33, 10  ;;  %v1653_v51 = vld [vmem:[#allocation2 + $0x4] sm:$0x4] }
 0x289   :  { %vm17329_vm15 = vcmask 1041409   ;;  %v8286_v8 = vrot.slane %v11964_v59, 10  ;;  %v8287_v46 = vrot.slane %v11966_v36, 10  ;;  %v1590_v63 = vmax.f32 %v11916_v19, %v1578_v39  ;;  %v1656_v48 = vld [vmem:[#allocation2 + $0x18] sm:$0x4] }
 0x28a   :  { %vm12024_vm1 = vmand %vm17329_vm15, %vm1552_vm3  ;;  %v1591_v50 = vmax.f32 %v11922_v9, %v1579_v35  ;;  %v1592_v39 = vmax.f32 %v11928_v23, %v1580_v12  ;;  %v1593_v35 = vmax.f32 %v11934_v22, %v1581_v58  ;;  %v17334_v45 = vrot.slane %v11946_v18, 1  ;;  %v1659_v54 = vld [vmem:[#allocation2 + $0x2c] sm:$0x4]  ;;  %v1662_v29 = vld [vmem:[#allocation2 + $0x40] sm:$0x4] }
 0x28b   :  { %v1555_v34 = vsel %vm12024_vm1, %v8282_v17, %v1554_v27  ;;  %v1558_v33 = vsel %vm12024_vm1, %v8283_v49, %v1557_v42  ;;  %v1561_v4 = vsel %vm12024_vm1, %v8284_v60, %v1560_v14  ;;  %v1564_v59 = vsel %vm12024_vm1, %v8285_v21, %v1563_v16  ;;  %v1515_v22 = vld [vmem:[#allocation2 + $0x4] sm:$0x1]  ;;  %v1665_v17 = vld [vmem:[#allocation2 + $0x54] sm:$0x4] }
 0x28c   :  { %1556 = vst [vmem:[#allocation2 + $0x4] sm:$0x2] %v1555_v34  ;;  %1559 = vst [vmem:[#allocation2 + $0x18] sm:$0x2] %v1558_v33  ;;  %v1567_v19 = vsel %vm12024_vm1, %v8286_v8, %v1566_v57  ;;  %v1570_v9 = vsel %vm12024_vm1, %v8287_v46, %v1569_v13  ;;  %v1595_v23 = vmax.f32 %v11946_v18, %v17334_v45  ;;  %v1518_v58 = vld [vmem:[#allocation2 + $0x18] sm:$0x1] }
 0x28d   :  { %1562 = vst [vmem:[#allocation2 + $0x2c] sm:$0x2] %v1561_v4  ;;  %1565 = vst [vmem:[#allocation2 + $0x40] sm:$0x2] %v1564_v59  ;;  %v12066_v12 = vpack.c.bf16 %v1590_v63, %v1590_v63  ;;  %v12068_v44 = vpack.c.bf16 %v1591_v50, %v1591_v50  ;;  %v1521_v11 = vld [vmem:[#allocation2 + $0x2c] sm:$0x1]  ;;  %v12070_v32 = vpack.c.bf16 %v1592_v39, %v1592_v39 }
 0x28e   :  { %1568 = vst [vmem:[#allocation2 + $0x54] sm:$0x2] %v1567_v19  ;;  %1571 = vst [vmem:[#allocation2 + $0x68] sm:$0x2] %v1570_v9  ;;  %v12072_v30 = vpack.c.bf16 %v1593_v35, %v1593_v35  ;;  %v1516_v25 = vsel %vm12056_vm2, %v8276_v38, %v1515_v22  ;;  %v1519_v24 = vsel %vm12056_vm2, %v8277_v52, %v1518_v58  ;;  %v1524_v5 = vld [vmem:[#allocation2 + $0x40] sm:$0x1] }
 0x28f   :  { %v1522_v18 = vsel %vm12056_vm2, %v8278_v26, %v1521_v11  ;;  %v1527_v31 = vld [vmem:[#allocation2 + $0x54] sm:$0x1]  ;;  %v1530_v27 = vld [vmem:[#allocation2 + $0x68] sm:$0x1]  ;;  %v12080_v42 = vpack.c.bf16 %v1594_v28, %v1594_v28  ;;  %1517 = vst [vmem:[#allocation2 + $0x4] sm:$0x1] %v1516_v25  ;;  %v1525_v47 = vsel %vm12056_vm2, %v8279_v7, %v1524_v5  ;;  %v12088_v53 = vpack.c.bf16 %v1595_v23, %v1595_v23 }
 0x290   :  { %1520 = vst [vmem:[#allocation2 + $0x18] sm:$0x1] %v1519_v24  ;;  %1523 = vst [vmem:[#allocation2 + $0x2c] sm:$0x1] %v1522_v18  ;;  %v1528_v14 = vsel %vm12056_vm2, %v8280_v20, %v1527_v31  ;;  %v1531_v16 = vsel %vm12056_vm2, %v8281_v55, %v1530_v27  ;;  %v1621_v38 = vshll.u32 %v12066_v12, 16  ;;  %v1625_v52 = vshll.u32 %v12068_v44, 16 }
 0x291   :  { %1526 = vst [vmem:[#allocation2 + $0x40] sm:$0x1] %v1525_v47  ;;  %1529 = vst [vmem:[#allocation2 + $0x54] sm:$0x1] %v1528_v14  ;;  %v1629_v57 = vshll.u32 %v12070_v32, 16  ;;  %v1633_v26 = vshll.u32 %v12072_v30, 16 }
 0x292   :  { %1532 = vst [vmem:[#allocation2 + $0x68] sm:$0x1] %v1531_v16  ;;  %v1685_v7 = vld [vmem:[#allocation2 + $0x4] sm:$0x8]  ;;  %v1688_v13 = vld [vmem:[#allocation2 + $0x18] sm:$0x8] }
 0x293   :  { %v1691_v20 = vld [vmem:[#allocation2 + $0x2c] sm:$0x8]  ;;  %v1637_v55 = vshll.u32 %v12080_v42, 16  ;;  %v1641_v49 = vshll.u32 %v12088_v53, 16  ;;  %v1671_v60 = vrot.slane %v12066_v12, 6  ;;  %v1672_v21 = vrot.slane %v12068_v44, 6 }
 0x294   :  { %v1668_v8 = vld [vmem:[#allocation2 + $0x68] sm:$0x4]  ;;  %v1623_v46 = vrot.slane %v1621_v38, 6  ;;  %v1627_v63 = vrot.slane %v1625_v52, 6  ;;  %v1631_v50 = vrot.slane %v1629_v57, 6  ;;  %v1635_v34 = vrot.slane %v1633_v26, 6 }
 0x295   :  { %v1694_v33 = vld [vmem:[#allocation2 + $0x40] sm:$0x8]  ;;  %v1639_v4 = vrot.slane %v1637_v55, 6  ;;  %v1643_v59 = vrot.slane %v1641_v49, 6  ;;  %v1673_v19 = vrot.slane %v12070_v32, 6  ;;  %v1674_v9 = vrot.slane %v12072_v30, 6 }
 0x296   :  { %v1697_v39 = vld [vmem:[#allocation2 + $0x54] sm:$0x8]  ;;  %v1700_v35 = vld [vmem:[#allocation2 + $0x68] sm:$0x8]  ;;  %v1654_v45 = vsel %vm11340_vm14, %v1623_v46, %v1653_v51  ;;  %v1657_v23 = vsel %vm11340_vm14, %v1627_v63, %v1656_v48  ;;  %v1660_v22 = vsel %vm11340_vm14, %v1631_v50, %v1659_v54  ;;  %v1663_v58 = vsel %vm11340_vm14, %v1635_v34, %v1662_v29  ;;  %v1751_v5 = vld [vmem:[#allocation2 + $0x8] sm:$0x1] }
 0x297   :  { %1655 = vst [vmem:[#allocation2 + $0x4] sm:$0x4] %v1654_v45  ;;  %1658 = vst [vmem:[#allocation2 + $0x18] sm:$0x4] %v1657_v23  ;;  %v1666_v11 = vsel %vm11340_vm14, %v1639_v4, %v1665_v17  ;;  %v1669_v25 = vsel %vm11340_vm14, %v1643_v59, %v1668_v8  ;;  %v1675_v24 = vrot.slane %v12080_v42, 6  ;;  %v1676_v18 = vrot.slane %v12088_v53, 6 }
 0x298   :  { %1661 = vst [vmem:[#allocation2 + $0x2c] sm:$0x4] %v1660_v22  ;;  %1664 = vst [vmem:[#allocation2 + $0x40] sm:$0x4] %v1663_v58  ;;  %v1754_v31 = vld [vmem:[#allocation2 + $0x1c] sm:$0x1]  ;;  %v1686_v51 = vsel %vm11197_vm10, %v1671_v60, %v1685_v7  ;;  %v1689_v48 = vsel %vm11197_vm10, %v1672_v21, %v1688_v13  ;;  %v1692_v54 = vsel %vm11197_vm10, %v1673_v19, %v1691_v20 }
 0x299   :  { %1667 = vst [vmem:[#allocation2 + $0x54] sm:$0x4] %v1666_v11  ;;  %1670 = vst [vmem:[#allocation2 + $0x68] sm:$0x4] %v1669_v25  ;;  %v1695_v47 = vsel %vm11197_vm10, %v1674_v9, %v1694_v33  ;;  %v1757_v14 = vld [vmem:[#allocation2 + $0x30] sm:$0x1]  ;;  %v1698_v29 = vsel %vm11197_vm10, %v1675_v24, %v1697_v39  ;;  %v1701_v7 = vsel %vm11197_vm10, %v1676_v18, %v1700_v35 }
 0x29a   :  { %v1760_v16 = vld [vmem:[#allocation2 + $0x44] sm:$0x1]  ;;  %1687 = vst [vmem:[#allocation2 + $0x4] sm:$0x8] %v1686_v51  ;;  %1690 = vst [vmem:[#allocation2 + $0x18] sm:$0x8] %v1689_v48 }
 0x29b   :  { %1693 = vst [vmem:[#allocation2 + $0x2c] sm:$0x8] %v1692_v54  ;;  %1696 = vst [vmem:[#allocation2 + $0x40] sm:$0x8] %v1695_v47  ;;  %v1703_v17 = vrot.slane %v1621_v38, 7  ;;  %v1704_v13 = vrot.slane %v1625_v52, 7 }
 0x29c   :  { %v1763_v60 = vld [vmem:[#allocation2 + $0x58] sm:$0x1]  ;;  %1699 = vst [vmem:[#allocation2 + $0x54] sm:$0x8] %v1698_v29  ;;  %1702 = vst [vmem:[#allocation2 + $0x68] sm:$0x8] %v1701_v7 }
 0x29d   :  { %v1705_v20 = vrot.slane %v1629_v57, 7  ;;  %v1706_v21 = vrot.slane %v1633_v26, 7  ;;  %v1707_v8 = vrot.slane %v1637_v55, 7  ;;  %v1708_v46 = vrot.slane %v1641_v49, 7  ;;  %v1766_v63 = vld [vmem:[#allocation2 + $0x6c] sm:$0x1] }
 0x29e   :  { %v8294_v50 = vrot.slane %v12066_v12, 11  ;;  %v8295_v34 = vrot.slane %v12068_v44, 11  ;;  %v8296_v33 = vrot.slane %v12070_v32, 11  ;;  %v8297_v4 = vrot.slane %v12072_v30, 11  ;;  %v1923_v49 = vld [vmem:[#allocation2 + $0x8] sm:$0x8] }
 0x29f   :  { %v8298_v59 = vrot.slane %v12080_v42, 11  ;;  %v8299_v38 = vrot.slane %v12088_v53, 11  ;;  %v1775_v52 = vrot.slane %v11918_v43, 1  ;;  %v1776_v57 = vrot.slane %v11924_v0, 1  ;;  %v1849_v48 = vld [vmem:[#allocation2 + $0x8] sm:$0x2] }
 0x2a0   :  { %v1752_v26 = vsel %vm11986_vm5, %v8294_v50, %v1751_v5  ;;  %v1755_v12 = vsel %vm11986_vm5, %v8295_v34, %v1754_v31  ;;  %v1758_v44 = vsel %vm11986_vm5, %v8296_v33, %v1757_v14  ;;  %v1761_v32 = vsel %vm11986_vm5, %v8297_v4, %v1760_v16  ;;  %v1881_v54 = vld [vmem:[#allocation2 + $0x8] sm:$0x4]  ;;  %v1884_v47 = vld [vmem:[#allocation2 + $0x1c] sm:$0x4]  ;;  %v1852_v7 = vld [vmem:[#allocation2 + $0x1c] sm:$0x2] }
 0x2a1   :  { %1753 = vst [vmem:[#allocation2 + $0x8] sm:$0x1] %v1752_v26  ;;  %1756 = vst [vmem:[#allocation2 + $0x1c] sm:$0x1] %v1755_v12  ;;  %v1764_v30 = vsel %vm11986_vm5, %v8298_v59, %v1763_v60  ;;  %v1767_v42 = vsel %vm11986_vm5, %v8299_v38, %v1766_v63  ;;  %v1777_v53 = vrot.slane %v11930_v56, 1  ;;  %v1778_v55 = vrot.slane %v11936_v15, 1 }
 0x2a2   :  { %1759 = vst [vmem:[#allocation2 + $0x30] sm:$0x1] %v1758_v44  ;;  %1762 = vst [vmem:[#allocation2 + $0x44] sm:$0x1] %v1761_v32  ;;  %v1779_v19 = vrot.slane %v11942_v1, 1  ;;  %v1787_v9 = vmax.f32 %v11918_v43, %v1775_v52  ;;  %v1788_v39 = vmax.f32 %v11924_v0, %v1776_v57  ;;  %v1947_v35 = vrot.slane %v11920_v61, 1 }
 0x2a3   :  { %1765 = vst [vmem:[#allocation2 + $0x58] sm:$0x1] %v1764_v30  ;;  %1768 = vst [vmem:[#allocation2 + $0x6c] sm:$0x1] %v1767_v42  ;;  %v1715_v45 = vld [vmem:[#allocation2 + $0x4] sm:$0x8]  ;;  %v1789_v3 = vmax.f32 %v11930_v56, %v1777_v53  ;;  %v1790_v58 = vmax.f32 %v11936_v15, %v1778_v55 }
 0x2a4   :  { %v1718_v23 = vld [vmem:[#allocation2 + $0x18] sm:$0x8]  ;;  %v1721_v22 = vld [vmem:[#allocation2 + $0x2c] sm:$0x8]  ;;  %v1716_v11 = vsel %vm11976_vm9, %v1703_v17, %v1715_v45  ;;  %v1724_v24 = vld [vmem:[#allocation2 + $0x40] sm:$0x8]  ;;  %v1791_v5 = vmax.f32 %v11942_v1, %v1779_v19  ;;  %v12167_v51 = vpack.c.bf16 %v1787_v9, %v1787_v9  ;;  %v12169_v1 = vpack.c.bf16 %v1788_v39, %v1788_v39 }
 0x2a5   :  { %v1719_v25 = vsel %vm11976_vm9, %v1704_v13, %v1718_v23  ;;  %v1722_v43 = vsel %vm11976_vm9, %v1705_v20, %v1721_v22  ;;  %v1727_v0 = vld [vmem:[#allocation2 + $0x54] sm:$0x8]  ;;  %v1730_v18 = vld [vmem:[#allocation2 + $0x68] sm:$0x8]  ;;  %1717 = vst [vmem:[#allocation2 + $0x4] sm:$0x8] %v1716_v11  ;;  %v1725_v56 = vsel %vm11976_vm9, %v1706_v21, %v1724_v24  ;;  %v12171_v14 = vpack.c.bf16 %v1789_v3, %v1789_v3 }
 0x2a6   :  { %1720 = vst [vmem:[#allocation2 + $0x18] sm:$0x8] %v1719_v25  ;;  %1723 = vst [vmem:[#allocation2 + $0x2c] sm:$0x8] %v1722_v43  ;;  %v1728_v15 = vsel %vm11976_vm9, %v1707_v8, %v1727_v0  ;;  %v1731_v31 = vsel %vm11976_vm9, %v1708_v46, %v1730_v18  ;;  %v12173_v16 = vpack.c.bf16 %v1790_v58, %v1790_v58  ;;  %v1855_v17 = vld [vmem:[#allocation2 + $0x30] sm:$0x2] }
 0x2a7   :  { %1726 = vst [vmem:[#allocation2 + $0x40] sm:$0x8] %v1725_v56  ;;  %1729 = vst [vmem:[#allocation2 + $0x54] sm:$0x8] %v1728_v15  ;;  %v12175_v29 = vpack.c.bf16 %v1791_v5, %v1791_v5  ;;  %v1818_v13 = vshll.u32 %v12167_v51, 16  ;;  %v1867_v60 = vrot.slane %v12167_v51, 7  ;;  %v1924_v20 = vsel %vm11197_vm10, %v12167_v51, %v1923_v49 }
 0x2a8   :  { %1732 = vst [vmem:[#allocation2 + $0x68] sm:$0x8] %v1731_v31  ;;  %v1948_v21 = vrot.slane %v11926_v37, 1  ;;  %v1926_v8 = vld [vmem:[#allocation2 + $0x1c] sm:$0x8]  ;;  %v1822_v50 = vshll.u32 %v12169_v1, 16 }
 0x2a9   :  { %v1887_v46 = vld [vmem:[#allocation2 + $0x30] sm:$0x4]  ;;  %v1890_v63 = vld [vmem:[#allocation2 + $0x44] sm:$0x4]  ;;  %v1826_v34 = vshll.u32 %v12171_v14, 16  ;;  %v1830_v33 = vshll.u32 %v12173_v16, 16  ;;  %v1882_v23 = vsel %vm11231_vm11, %v1867_v60, %v1881_v54  ;;  %v1927_v18 = vsel %vm11197_vm10, %v12169_v1, %v1926_v8 }
 0x2aa   :  { %v1834_v4 = vshll.u32 %v12175_v29, 16  ;;  %1925 = vst [vmem:[#allocation2 + $0x8] sm:$0x8] %v1924_v20  ;;  %v1929_v59 = vld [vmem:[#allocation2 + $0x30] sm:$0x8]  ;;  %v1820_v52 = vrot.slane %v1818_v13, 7  ;;  %v1960_v60 = vmax.f32 %v11926_v37, %v1948_v21 }
 0x2ab   :  { %v1861_v38 = vld [vmem:[#allocation2 + $0x58] sm:$0x2]  ;;  %v1868_v57 = vrot.slane %v12169_v1, 7  ;;  %v1869_v26 = vrot.slane %v12171_v14, 7  ;;  %v1870_v12 = vrot.slane %v12173_v16, 7  ;;  %v1824_v32 = vrot.slane %v1822_v50, 7 }
 0x2ac   :  { %v1893_v44 = vld [vmem:[#allocation2 + $0x58] sm:$0x4]  ;;  %v1828_v30 = vrot.slane %v1826_v34, 7  ;;  %v1832_v42 = vrot.slane %v1830_v33, 7  ;;  %v1836_v53 = vrot.slane %v1834_v4, 7  ;;  %v1850_v9 = vsel %vm11259_vm12, %v1820_v52, %v1849_v48 }
 0x2ad   :  { %v1932_v55 = vld [vmem:[#allocation2 + $0x44] sm:$0x8]  ;;  %v1935_v49 = vld [vmem:[#allocation2 + $0x58] sm:$0x8]  ;;  %v1871_v39 = vrot.slane %v12175_v29, 7  ;;  %v1885_v22 = vsel %vm11231_vm11, %v1868_v57, %v1884_v47  ;;  %v1853_v3 = vsel %vm11259_vm12, %v1824_v32, %v1852_v7  ;;  %v1888_v43 = vsel %vm11231_vm11, %v1869_v26, %v1887_v46 }
 0x2ae   :  { %1851 = vst [vmem:[#allocation2 + $0x8] sm:$0x2] %v1850_v9  ;;  %v1856_v58 = vsel %vm11259_vm12, %v1828_v30, %v1855_v17  ;;  %v1859_v11 = vsel %vm11259_vm12, %v1832_v42, %v1858_v6  ;;  %v1862_v25 = vsel %vm11259_vm12, %v1836_v53, %v1861_v38  ;;  %1883 = vst [vmem:[#allocation2 + $0x8] sm:$0x4] %v1882_v23  ;;  %v12224_v5 = vld [vmem:[#allocation2 + $0x4] sm:$0xf] }
 0x2af   :  { %1886 = vst [vmem:[#allocation2 + $0x1c] sm:$0x4] %v1885_v22  ;;  %1854 = vst [vmem:[#allocation2 + $0x1c] sm:$0x2] %v1853_v3  ;;  %v1891_v24 = vsel %vm11231_vm11, %v1870_v12, %v1890_v63  ;;  %v1894_v0 = vsel %vm11231_vm11, %v1871_v39, %v1893_v44  ;;  %v1930_v56 = vsel %vm11197_vm10, %v12171_v14, %v1929_v59  ;;  %v1949_v48 = vrot.slane %v11932_v2, 1 }
 0x2b0   :  { %1857 = vst [vmem:[#allocation2 + $0x30] sm:$0x2] %v1856_v58  ;;  %1860 = vst [vmem:[#allocation2 + $0x44] sm:$0x2] %v1859_v11  ;;  %v1933_v15 = vsel %vm11197_vm10, %v12173_v16, %v1932_v55  ;;  %v1936_v31 = vsel %vm11197_vm10, %v12175_v29, %v1935_v49  ;;  %v1950_v54 = vrot.slane %v11938_v41, 1  ;;  %v1951_v47 = vrot.slane %v11944_v10, 1 }
 0x2b1   :  { %1863 = vst [vmem:[#allocation2 + $0x58] sm:$0x2] %v1862_v25  ;;  %1889 = vst [vmem:[#allocation2 + $0x30] sm:$0x4] %v1888_v43  ;;  %v1952_v7 = vrot.slane %v11948_v40, 1  ;;  %v1959_v17 = vmax.f32 %v11920_v61, %v1947_v35  ;;  %v1961_v27 = vmax.f32 %v11932_v2, %v1949_v48  ;;  %v12252_v37 = vpack.c.bf16 %v1960_v60, %v1960_v60 }
 0x2b2   :  { %1892 = vst [vmem:[#allocation2 + $0x44] sm:$0x4] %v1891_v24  ;;  %1895 = vst [vmem:[#allocation2 + $0x58] sm:$0x4] %v1894_v0  ;;  %v2121_v6 = vld [vmem:[#allocation2] sm:$0xf]  ;;  %v1962_v59 = vmax.f32 %v11938_v41, %v1950_v54  ;;  %v1963_v38 = vmax.f32 %v11944_v10, %v1951_v47 }
 0x2b3   :  { %1928 = vst [vmem:[#allocation2 + $0x1c] sm:$0x8] %v1927_v18  ;;  %1931 = vst [vmem:[#allocation2 + $0x30] sm:$0x8] %v1930_v56  ;;  %v12245_v20 = vcombine.low %v2121_v6, %v12224_v5  ;;  %v2013_v8 = vld [vmem:[#allocation2 + $0xc] sm:$0x1]  ;;  %v1964_v52 = vmax.f32 %v11948_v40, %v1952_v7  ;;  %v12250_v57 = vpack.c.bf16 %v1959_v17, %v1959_v17 }
 0x2b4   :  { %1934 = vst [vmem:[#allocation2 + $0x44] sm:$0x8] %v1933_v15  ;;  %1937 = vst [vmem:[#allocation2 + $0x58] sm:$0x8] %v1936_v31  ;;  %v2031_v46 = vld [vmem:[#allocation2 + $0xc] sm:$0x2]  ;;  %v12254_v2 = vpack.c.bf16 %v1961_v27, %v1961_v27  ;;  %v12257_v41 = vpack.c.bf16 %v1962_v59, %v1962_v59  ;;  %v12259_v10 = vpack.c.bf16 %v1963_v38, %v1963_v38 }
 0x2b5   :  { %v2034_v63 = vld [vmem:[#allocation2 + $0x20] sm:$0x2]  ;;  %v2016_v61 = vld [vmem:[#allocation2 + $0x20] sm:$0x1]  ;;  %v2019_v35 = vld [vmem:[#allocation2 + $0x34] sm:$0x1]  ;;  %v12261_v40 = vpack.c.bf16 %v1964_v52, %v1964_v52 }
 0x2b6   :  { %v2037_v26 = vld [vmem:[#allocation2 + $0x34] sm:$0x2]  ;;  %v2269_v21 = vshll.u32 %v12245_v20, 16  ;;  %v2022_v12 = vld [vmem:[#allocation2 + $0x48] sm:$0x1]  ;;  %v1990_v42 = vshll.u32 %v12250_v57, 16  ;;  %v2035_v1 = vsel %vm12024_vm1, %v12252_v37, %v2034_v63 }
 0x2b7   :  { %v2040_v44 = vld [vmem:[#allocation2 + $0x48] sm:$0x2]  ;;  %v1905_v32 = vld [vmem:[#allocation2 + $0x8] sm:$0x4]  ;;  %v1908_v30 = vld [vmem:[#allocation2 + $0x1c] sm:$0x4] }
 0x2b8   :  { %v2043_v53 = vld [vmem:[#allocation2 + $0x5c] sm:$0x2]  ;;  %v2046_v55 = vld [vmem:[#allocation2 + $0x70] sm:$0x2]  ;;  %v1906_v49 = vsel %vm11340_vm14, %v1818_v13, %v1905_v32  ;;  %v1909_v9 = vsel %vm11340_vm14, %v1822_v50, %v1908_v30  ;;  %v1993_v39 = vshll.u32 %v12252_v37, 16  ;;  %v1996_v23 = vshll.u32 %v12254_v2, 16 }
 0x2b9   :  { %1907 = vst [vmem:[#allocation2 + $0x8] sm:$0x4] %v1906_v49  ;;  %1910 = vst [vmem:[#allocation2 + $0x1c] sm:$0x4] %v1909_v9  ;;  %v1911_v22 = vld [vmem:[#allocation2 + $0x30] sm:$0x4]  ;;  %v2014_v51 = vsel %vm12056_vm2, %v1990_v42, %v2013_v8  ;;  %v2032_v13 = vsel %vm12024_vm1, %v12250_v57, %v2031_v46  ;;  %v2038_v50 = vsel %vm12024_vm1, %v12254_v2, %v2037_v26 }
 0x2ba   :  { %v1914_v3 = vld [vmem:[#allocation2 + $0x44] sm:$0x4]  ;;  %v1917_v58 = vld [vmem:[#allocation2 + $0x58] sm:$0x4]  ;;  %v2025_v11 = vld [vmem:[#allocation2 + $0x5c] sm:$0x1]  ;;  %v1912_v43 = vsel %vm11340_vm14, %v1826_v34, %v1911_v22  ;;  %v2017_v34 = vsel %vm12056_vm2, %v1993_v39, %v2016_v61  ;;  %v2020_v28 = vsel %vm12056_vm2, %v1996_v23, %v2019_v35  ;;  %v2041_v31 = vsel %vm12024_vm1, %v12257_v41, %v2040_v44 }
 0x2bb   :  { %v2028_v25 = vld [vmem:[#allocation2 + $0x70] sm:$0x1]  ;;  %v1915_v24 = vsel %vm11340_vm14, %v1830_v33, %v1914_v3  ;;  %v1918_v0 = vsel %vm11340_vm14, %v1834_v4, %v1917_v58  ;;  %v1999_v18 = vshll.u32 %v12257_v41, 16  ;;  %2015 = vst [vmem:[#allocation2 + $0xc] sm:$0x1] %v2014_v51  ;;  %v2002_v14 = vshll.u32 %v12259_v10, 16 }
 0x2bc   :  { %2033 = vst [vmem:[#allocation2 + $0xc] sm:$0x2] %v2032_v13  ;;  %2036 = vst [vmem:[#allocation2 + $0x20] sm:$0x2] %v2035_v1  ;;  %v2005_v16 = vshll.u32 %v12261_v40, 16  ;;  %v2044_v48 = vsel %vm12024_vm1, %v12259_v10, %v2043_v53  ;;  %v2047_v54 = vsel %vm12024_vm1, %v12261_v40, %v2046_v55  ;;  %v2267_v6 = vshrl.u32 %v12245_v20, 16 }
 0x2bd   :  { %2039 = vst [vmem:[#allocation2 + $0x34] sm:$0x2] %v2038_v50  ;;  %1913 = vst [vmem:[#allocation2 + $0x30] sm:$0x4] %v1912_v43  ;;  %v2103_v29 = vld [vmem:[#allocation2 + $0xc] sm:$0x4]  ;;  %v2023_v15 = vsel %vm12056_vm2, %v1999_v18, %v2022_v12  ;;  %v2026_v7 = vsel %vm12056_vm2, %v2002_v14, %v2025_v11 }
 0x2be   :  { %1916 = vst [vmem:[#allocation2 + $0x44] sm:$0x4] %v1915_v24  ;;  %1919 = vst [vmem:[#allocation2 + $0x58] sm:$0x4] %v1918_v0  ;;  %v2106_v33 = vld [vmem:[#allocation2 + $0x20] sm:$0x4]  ;;  %v2029_v17 = vsel %vm12056_vm2, %v2005_v16, %v2028_v25 }
 0x2bf   :  { %v2109_v4 = vld [vmem:[#allocation2 + $0x34] sm:$0x4]  ;;  %v2112_v56 = vld [vmem:[#allocation2 + $0x48] sm:$0x4]  ;;  %2018 = vst [vmem:[#allocation2 + $0x20] sm:$0x1] %v2017_v34 }
 0x2c0   :  { %2021 = vst [vmem:[#allocation2 + $0x34] sm:$0x1] %v2020_v28  ;;  %v2115_v47 = vld [vmem:[#allocation2 + $0x5c] sm:$0x4]  ;;  %2024 = vst [vmem:[#allocation2 + $0x48] sm:$0x1] %v2023_v15 }
 0x2c1   :  { %2042 = vst [vmem:[#allocation2 + $0x48] sm:$0x2] %v2041_v31  ;;  %2045 = vst [vmem:[#allocation2 + $0x5c] sm:$0x2] %v2044_v48  ;;  %v12320_v60 = vld [vmem:[#allocation2 + $0x18] sm:$0xf] }
 0x2c2   :  { %2048 = vst [vmem:[#allocation2 + $0x70] sm:$0x2] %v2047_v54  ;;  %v2118_v27 = vld [vmem:[#allocation2 + $0x70] sm:$0x4]  ;;  %2027 = vst [vmem:[#allocation2 + $0x5c] sm:$0x1] %v2026_v7 }
 0x2c3   :  { %2030 = vst [vmem:[#allocation2 + $0x70] sm:$0x1] %v2029_v17  ;;  %v8312_v62 = vrot.slane %v1990_v42, 9  ;;  %v8313_v8 = vrot.slane %v1993_v39, 9  ;;  %v8314_v46 = vrot.slane %v1996_v23, 9  ;;  %v8315_v63 = vrot.slane %v1999_v18, 9 }
 0x2c4   :  { %vm2265_vm10 = vsmask.f32 7424  ;;  %v12322_v59 = vld [vmem:[#allocation2 + $0x14] sm:$0xf]  ;;  %v8318_v36 = vrot.slane %v12250_v57, 9  ;;  %v8319_v38 = vrot.slane %v12252_v37, 9 }
 0x2c5   :  { %v8320_v52 = vrot.slane %v12254_v2, 9  ;;  %v8321_v61 = vrot.slane %v12257_v41, 9  ;;  %v12328_v35 = vld [vmem:[#allocation2 + $0x2c] sm:$0xf]  ;;  %v8322_v26 = vrot.slane %v12259_v10, 9  ;;  %v8323_v12 = vrot.slane %v12261_v40, 9 }
 0x2c6   :  { %v12332_v44 = vld [vmem:[#allocation2 + $0x8] sm:$0xf]  ;;  %v2271_v32 = vrot.slane %v2269_v21, 1  ;;  %v12338_v57 = vcombine.low %v12322_v59, %v12320_v60  ;;  %v2067_v37 = vld [vmem:[#allocation2 + $0xc] sm:$0x2]  ;;  %v2104_v41 = vsel %vm11231_vm11, %v8318_v36, %v2103_v29  ;;  %v2107_v10 = vsel %vm11231_vm11, %v8319_v38, %v2106_v33 }
 0x2c7   :  { %17339 = vst [vmem:[#allocation23_spill] sm:$0xff] %v12332_v44  ;;  %v2070_v30 = vld [vmem:[#allocation2 + $0x20] sm:$0x2]  ;;  %v2073_v2 = vld [vmem:[#allocation2 + $0x34] sm:$0x2]  ;;  %v2110_v40 = vsel %vm11231_vm11, %v8320_v52, %v2109_v4  ;;  %v2113_v42 = vsel %vm11231_vm11, %v8321_v61, %v2112_v56  ;;  %v2068_v21 = vsel %vm11259_vm12, %v8312_v62, %v2067_v37  ;;  %v2116_v49 = vsel %vm11231_vm11, %v8322_v26, %v2115_v47 }
 0x2c8   :  { %v2071_v53 = vsel %vm11259_vm12, %v8313_v8, %v2070_v30  ;;  %v2074_v55 = vsel %vm11259_vm12, %v8314_v46, %v2073_v2  ;;  %2105 = vst [vmem:[#allocation2 + $0xc] sm:$0x4] %v2104_v41  ;;  %2108 = vst [vmem:[#allocation2 + $0x20] sm:$0x4] %v2107_v10  ;;  %v2139_v9 = vld [vmem:[#allocation2 + $0xc] sm:$0x1]  ;;  %v2119_v58 = vsel %vm11231_vm11, %v8323_v12, %v2118_v27 }
 0x2c9   :  { %2111 = vst [vmem:[#allocation2 + $0x34] sm:$0x4] %v2110_v40  ;;  %2114 = vst [vmem:[#allocation2 + $0x48] sm:$0x4] %v2113_v42  ;;  %v12356_v39 = vld [vmem:[#allocation2 + $0x1c] sm:$0xf]  ;;  %v12361_v51 = vcombine.low %v12332_v44, %v2139_v9  ;;  %v2272_v43 = vor.u32 %v2271_v32, %v2267_v6  ;;  %v8385_v32 = vcombine.low %v12332_v44, %v12322_v59 }
 0x2ca   :  { %v2127_v23 = vld [vmem:[#allocation2 + $0x28] sm:$0xf]  ;;  %v8316_v22 = vrot.slane %v2002_v14, 9  ;;  %v8317_v3 = vrot.slane %v2005_v16, 9  ;;  %2069 = vst [vmem:[#allocation2 + $0xc] sm:$0x2] %v2068_v21  ;;  %v8394_v37 = vcombine.low %v12320_v60, %v12356_v39 }
 0x2cb   :  { %2072 = vst [vmem:[#allocation2 + $0x20] sm:$0x2] %v2071_v53  ;;  %2075 = vst [vmem:[#allocation2 + $0x34] sm:$0x2] %v2074_v55  ;;  %v2140_v13 = vld [vmem:[#allocation2 + $0x20] sm:$0x1]  ;;  %v12369_v0 = vcombine.low %v2127_v23, %v12328_v35 }
 0x2cc   :  { %2117 = vst [vmem:[#allocation2 + $0x5c] sm:$0x4] %v2116_v49  ;;  %v12363_v1 = vld [vmem:[#allocation2 + $0x30] sm:$0xf]  ;;  %v2076_v50 = vld [vmem:[#allocation2 + $0x48] sm:$0x2]  ;;  %v12366_v24 = vcombine.low %v12356_v39, %v2140_v13 }
 0x2cd   :  { %v2079_v11 = vld [vmem:[#allocation2 + $0x5c] sm:$0x2]  ;;  %v2082_v25 = vld [vmem:[#allocation2 + $0x70] sm:$0x2]  ;;  %2120 = vst [vmem:[#allocation2 + $0x70] sm:$0x4] %v2119_v58  ;;  %v2077_v45 = vsel %vm11259_vm12, %v8315_v63, %v2076_v50 }
 0x2ce   :  { %v2080_v18 = vsel %vm11259_vm12, %v8316_v22, %v2079_v11  ;;  %v2083_v14 = vsel %vm11259_vm12, %v8317_v3, %v2082_v25  ;;  %v2274_v16 = vshll.u32 %v12361_v51, 16  ;;  %v12378_v34 = vld [vmem:[#allocation2 + $0x3c] sm:$0xf]  ;;  %v12380_v28 = vld [vmem:[#allocation2 + $0x40] sm:$0xf]  ;;  %v2278_v33 = vshrl.u32 %v12361_v51, 16 }
 0x2cf   :  { %v12382_v29 = vld [vmem:[#allocation2 + $0x44] sm:$0xf]  ;;  %2078 = vst [vmem:[#allocation2 + $0x48] sm:$0x2] %v2077_v45  ;;  %2081 = vst [vmem:[#allocation2 + $0x5c] sm:$0x2] %v2080_v18  ;;  %v8330_v62 = vcombine.low %v12378_v34, %v12380_v28 }
 0x2d0   :  { %2084 = vst [vmem:[#allocation2 + $0x70] sm:$0x2] %v2083_v14  ;;  %v2282_v4 = vshrl.u32 %v12338_v57, 16  ;;  %v2284_v56 = vshll.u32 %v12338_v57, 16  ;;  %v2289_v19 = vshll.u32 %v12366_v24, 16  ;;  %v2276_v31 = vrot.slane %v2274_v16, 1 }
 0x2d1   :  { %v2141_v15 = vld [vmem:[#allocation2 + $0x34] sm:$0x1]  ;;  %v2293_v48 = vshrl.u32 %v12366_v24, 16  ;;  %v2299_v47 = vshll.u32 %v12369_v0, 16  ;;  %v2142_v7 = vld [vmem:[#allocation2 + $0x48] sm:$0x1] }
 0x2d2   :  { %v12390_v54 = vcombine.low %v12363_v1, %v2141_v15  ;;  %v9455_v17 = vld [vmem:[%s16866_s6 + $0x100] ss:$8 sps:$4 sm:$0xff]   ;;  %v2286_v6 = vrot.slane %v2284_v56, 1  ;;  %v2291_v27 = vrot.slane %v2289_v19, 1  ;;  %v12399_v8 = vcombine.low %v12382_v29, %v2142_v7  ;;  %v9462_v36 = vld [vmem:[%s16866_s6 + $0x114] ss:$8 sps:$4 sm:$0xff]  }
 0x2d3   :  { %v2277_v46 = vsel %vm2265_vm10, %v2272_v43, %v2276_v31  ;;  %v2280_v63 = vor.u32 %v2278_v33, %v2276_v31  ;;  %v9460_v61 = vld [vmem:[%s16866_s6 + $0x110] ss:$8 sps:$4 sm:$0xff]   ;;  %v12409_v12 = vld [vmem:[#allocation2 + $0x6c] sm:$0xf]  ;;  %v2314_v30 = vshll.u32 %v8330_v62, 16  ;;  %v2297_v59 = vshrl.u32 %v12369_v0, 16 }
 0x2d4   :  { %v2304_v38 = vshll.u32 %v12390_v54, 16  ;;  %3995 = vmatprep.mubr.bf16.mxu1 %v2277_v46  ;;  %v2287_v52 = vor.u32 %v2286_v6, %v2282_v4  ;;  %v2295_v26 = vor.u32 %v2293_v48, %v2291_v27  ;;  %v9466_v57 = vld [vmem:[%s16866_s6 + $0x124] ss:$8 sps:$4 sm:$0xff]   ;;  %v2319_v2 = vshll.u32 %v12399_v8, 16  ;;  %v2133_v41 = vld [vmem:[#allocation2 + $0x50] sm:$0xf] }
 0x2d5   :  { %3996 = vmatmul.mubr.bf16.vlgmr.msra.gmra.mrb[16].mxu1 %v12245_v20  ;;  %v12420_v10 = vld [vmem:[#allocation2 + $0x54] sm:$0xf]  ;;  %v12422_v40 = vld [vmem:[#allocation2 + $0x68] sm:$0xf]  ;;  %v2301_v42 = vrot.slane %v2299_v47, 1  ;;  %v2312_v21 = vshrl.u32 %v8330_v62, 16 }
 0x2d6   :  { %17340 = vst [vmem:[#allocation24_spill] sm:$0xff] %v12420_v10  ;;  %4087 = vmatpush1.bf16.msra.mxu1 %v9455_v17  ;;  %v2292_v20 = vsel %vm2265_vm10, %v2287_v52, %v2291_v27  ;;  %v12426_v53 = vld [vmem:[#allocation2 + $0x58] sm:$0xf]  ;;  %v2840_v9 = vunpack.c.l.b16 %v2295_v26  ;;  %v2306_v23 = vrot.slane %v2304_v38, 1  ;;  %v2143_v22 = vld [vmem:[#allocation2 + $0x5c] sm:$0x1]  ;;  %v12432_v11 = vcombine.low %v2133_v41, %v12420_v10 }
 0x2d7   :  { %v8386_v55 = vcombine.low %v2280_v63, %v2292_v20  ;;  %4088 = vmatprep.subr.bf16.mxu1 %v9462_v36  ;;  %v2833_v49 = vunpack.c.h.b16 %v2292_v20  ;;  %v12428_v3 = vld [vmem:[#allocation2 + $0x64] sm:$0xf]  ;;  %v2316_v58 = vrot.slane %v2314_v30, 1  ;;  %v2321_v13 = vrot.slane %v2319_v2, 1  ;;  %v2144_v25 = vld [vmem:[#allocation2 + $0x70] sm:$0x1] }
 0x2d8   :  { %v2323_v50 = vshrl.u32 %v12399_v8, 16  ;;  %v2308_v43 = vshrl.u32 %v12390_v54, 16  ;;  %v12436_v45 = vcombine.low %v12426_v53, %v2143_v22  ;;  %v8334_v18 = vcombine.low %v12428_v3, %v12422_v40  ;;  %v9464_v16 = vld [vmem:[%s16866_s6 + $0x120] ss:$8 sps:$4 sm:$0xff]   ;;  %v9469_v31 = vld [vmem:[%s16866_s6 + $0x134] ss:$8 sps:$4 sm:$0xff]  }
 0x2d9   :  { %4005 = vmatprep.mubr.bf16.mxu1 %v8386_v55  ;;  %v12441_v14 = vcombine.low %v12409_v12, %v2144_v25  ;;  %v2302_v33 = vor.u32 %v2301_v42, %v2297_v59  ;;  %v2317_v4 = vor.u32 %v2316_v58, %v2312_v21  ;;  %v2329_v19 = vshll.u32 %v12432_v11, 16  ;;  %v9467_v52 = vld [vmem:[%s16866_s6 + $0x130] ss:$8 sps:$4 sm:$0xff]   ;;  %v9475_v26 = vld [vmem:[%s16866_s6 + $0x144] ss:$8 sps:$4 sm:$0xff]  }
 0x2da   :  { %4089 = vmatpush1.bf16.msra.mxu1 %v9460_v61  ;;  %v2325_v56 = vor.u32 %v2323_v50, %v2321_v13  ;;  %v3105_v15 = vpack.c.b16 %v2840_v9, %v2833_v49  ;;  %v12450_v48 = vor.u32 %v2308_v43, %v2306_v23  ;;  %v2334_v47 = vshll.u32 %v12436_v45, 16  ;;  %v2151_v59 = vld [vmem:[#allocation2] sm:$0x8]  ;;  %v2152_v42 = vld [vmem:[#allocation2 + $0xc] sm:$0x7] }
 0x2db   :  { %4090 = vmatprep.subr.bf16.mxu1 %v9466_v57  ;;  %v2344_v7 = vshll.u32 %v8334_v18, 16  ;;  %v12454_v17 = vsel %vm2265_vm10, %v2317_v4, %v2321_v13  ;;  %v2327_v6 = vshrl.u32 %v12432_v11, 16  ;;  %v2331_v27 = vrot.slane %v2329_v19, 1  ;;  %v9473_v22 = vld [vmem:[%s16866_s6 + $0x140] ss:$8 sps:$4 sm:$0xff]  }
 0x2dc   :  { %v2349_v62 = vshll.u32 %v12441_v14, 16  ;;  %v2875_v46 = vunpack.c.h.b16 %v12454_v17  ;;  %v2882_v63 = vunpack.c.l.b16 %v2325_v56  ;;  %v2336_v36 = vrot.slane %v2334_v47, 1  ;;  %v9478_v58 = vld [vmem:[%s16866_s6 + $0x154] ss:$8 sps:$4 sm:$0xff]  }
 0x2dd   :  { %4006 = vmatmul.mubr.bf16.gmra.mrb[20].mxu1 %v8385_v32  ;;  %v2346_v38 = vrot.slane %v2344_v7, 1  ;;  %v2307_v61 = vsel %vm2265_vm10, %v2302_v33, %v2306_v23  ;;  %v8396_v32 = vcombine.low %v12363_v1, %v12378_v34  ;;  %v2332_v57 = vor.u32 %v2331_v27, %v2327_v6  ;;  %v2145_v23 = vld [vmem:[#allocation2] sm:$0xe]  ;;  %v2146_v4 = vld [vmem:[#allocation2 + $0x14] sm:$0xe] }
 0x2de   :  { %4015 = vmatprep.mubr.bf16.mxu1 %v3105_v15  ;;  %4091 = vmatpush1.bf16.msra.mxu1 %v9464_v16  ;;  %v8397_v30 = vcombine.low %v12450_v48, %v12454_v17  ;;  %v2338_v41 = vshrl.u32 %v12436_v45, 16  ;;  %v2342_v20 = vshrl.u32 %v8334_v18, 16  ;;  %v12473_v21 = vrot.slane %v2349_v62, 1  ;;  %v2153_v18 = vld [vmem:[#allocation2 + $0x14] sm:$0x8] }
 0x2df   :  { %4092 = vmatprep.subr.bf16.mxu1 %v9469_v31  ;;  %v2353_v55 = vshrl.u32 %v12441_v14, 16  ;;  %v12477_v49 = vcombine.low %v2151_v59, %v12224_v5  ;;  %v8343_v9 = vcombine.low %v12332_v44, %v2152_v42  ;;  %v12486_v13 = vpack.c.b16 %v2882_v63, %v2875_v46  ;;  %v2154_v31 = vld [vmem:[#allocation2 + $0x20] sm:$0x7]  ;;  %v2155_v46 = vld [vmem:[#allocation2 + $0x28] sm:$0x8] }
 0x2e0   :  { %v12488_v50 = vor.u32 %v2338_v41, %v2336_v36  ;;  %v12490_v25 = vor.u32 %v2346_v38, %v2342_v20  ;;  %v8336_v43 = vcombine.low %v2145_v23, %v12224_v5  ;;  %v12494_v16 = vsel %vm2265_vm10, %v2332_v57, %v2336_v36  ;;  %v2147_v41 = vld [vmem:[#allocation2 + $0x28] sm:$0xe]  ;;  %v2157_v20 = vld [vmem:[#allocation2 + $0x3c] sm:$0x8]  ;;  %v9483_v59 = vld [vmem:[%s16866_s6 + $0x164] ss:$8 sps:$4 sm:$0xff]  }
 0x2e1   :  { %vm2429_vm11 = vcmask 1044480   ;;  %v2430_v33 = vrot.slane %v12477_v49, 3  ;;  %vm2374_vm12 = vcmask 1046528   ;;  %v12497_v56 = vrot.slane %v8343_v9, 3 }
 0x2e2   :  { %4093 = vmatpush1.bf16.msra.mxu1 %v9467_v52  ;;  %v2375_v19 = vrot.slane %v8336_v43, 1  ;;  %v2376_v15 = vrot.slane %v12361_v51, 1  ;;  %v12501_v47 = vcombine.low %v2153_v18, %v12320_v60  ;;  %v12504_v7 = vor.u32 %v2353_v55, %v12473_v21  ;;  %v9476_v51 = vld [vmem:[%s16866_s6 + $0x150] ss:$8 sps:$4 sm:$0xff]   ;;  %v2156_v52 = vld [vmem:[#allocation2 + $0x34] sm:$0x7] }
 0x2e3   :  { %4094 = vmatprep.subr.bf16.mxu1 %v9475_v26  ;;  %v8345_v6 = vcombine.low %v12356_v39, %v2154_v31  ;;  %v8337_v27 = vcombine.low %v2146_v4, %v12320_v60  ;;  %v2379_v62 = vrot.slane %v12366_v24, 1  ;;  %v12517_v63 = vsel %vm2429_vm11, %v2430_v33, %v12497_v56  ;;  %v9481_v18 = vld [vmem:[%s16866_s6 + $0x160] ss:$8 sps:$4 sm:$0xff]  }
 0x2e4   :  { %v12520_v36 = vsel %vm2374_vm12, %v2375_v19, %v2376_v15  ;;  %v2433_v38 = vrot.slane %v12501_v47, 3  ;;  %v12524_v24 = vcombine.low %v2155_v46, %v12328_v35  ;;  %v8347_v57 = vcombine.low %v12363_v1, %v2156_v52  ;;  %v2158_v31 = vld [vmem:[#allocation2 + $0x48] sm:$0x7] }
 0x2e5   :  { %4016 = vmatmul.mubr.bf16.gmra.mrb[24].mxu1 %v8394_v37  ;;  %v2434_v60 = vrot.slane %v8345_v6, 3  ;;  %v2378_v37 = vrot.slane %v8337_v27, 1  ;;  %v2841_v26 = vunpack.c.l.b16 %v2379_v62  ;;  %v8338_v55 = vcombine.low %v2147_v41, %v12328_v35  ;;  %v9486_v6 = vld [vmem:[%s16866_s6 + $0x174] ss:$8 sps:$4 sm:$0xff]  }
 0x2e6   :  { %4025 = vmatprep.mubr.bf16.mxu1 %v2307_v61  ;;  %4095 = vmatpush1.bf16.msra.mxu1 %v9473_v22  ;;  %v2436_v42 = vrot.slane %v12524_v24, 3  ;;  %v2382_v9 = vrot.slane %v12390_v54, 1  ;;  %v12534_v61 = vcombine.low %v2157_v20, %v12380_v28  ;;  %v8349_v46 = vcombine.low %v12382_v29, %v2158_v31  ;;  %v2160_v41 = vld [vmem:[#allocation2 + $0x5c] sm:$0x7] }
 0x2e7   :  { %4096 = vmatprep.subr.bf16.mxu1 %v9478_v58  ;;  %v12537_v23 = vsel %vm2429_vm11, %v2433_v38, %v2434_v60  ;;  %v2380_v22 = vsel %vm2374_vm12, %v2378_v37, %v2379_v62  ;;  %v2842_v43 = vunpack.c.l.b16 %v2434_v60  ;;  %v12540_v58 = vrot.slane %v8347_v57, 3  ;;  %v2159_v57 = vld [vmem:[#allocation2 + $0x50] sm:$0x8] }
 0x2e8   :  { %v12547_v4 = vcombine.low %v2376_v15, %v2380_v22  ;;  %v2835_v54 = vunpack.c.h.b16 %v12537_v23  ;;  %v2834_v19 = vunpack.c.h.b16 %v2380_v22  ;;  %v2381_v62 = vrot.slane %v8338_v55, 1  ;;  %v2148_v15 = vld [vmem:[#allocation2 + $0x3c] sm:$0xe] }
 0x2e9   :  { %v12555_v27 = vsel %vm2429_vm11, %v2436_v42, %v12540_v58  ;;  %v2439_v38 = vrot.slane %v12534_v61, 3  ;;  %v2385_v37 = vrot.slane %v12399_v8, 1  ;;  %v2440_v42 = vrot.slane %v8349_v46, 3 }
 0x2ea   :  { %4097 = vmatpush1.bf16.msra.mxu1 %v9476_v51  ;;  %v12559_v52 = vpack.c.b16 %v2842_v43, %v2835_v54  ;;  %v12561_v60 = vpack.c.b16 %v2841_v26, %v2834_v19  ;;  %v8339_v51 = vcombine.low %v2148_v15, %v12380_v28  ;;  %v12566_v20 = vsel %vm2374_vm12, %v2381_v62, %v2382_v9  ;;  %v9484_v19 = vld [vmem:[%s16866_s6 + $0x170] ss:$8 sps:$4 sm:$0xff]  }
 0x2eb   :  { %4098 = vmatprep.subr.bf16.mxu1 %v9483_v59  ;;  %v12569_v55 = vcombine.low %v2159_v57, %v12420_v10  ;;  %v8351_v22 = vcombine.low %v12426_v53, %v2160_v41  ;;  %v2149_v59 = vld [vmem:[#allocation2 + $0x50] sm:$0xe]  ;;  %v2883_v43 = vunpack.c.l.b16 %v2385_v37  ;;  %v2388_v8 = vrot.slane %v12436_v45, 1  ;;  %v9490_v45 = vld [vmem:[%s16866_s6 + $0x184] ss:$8 sps:$4 sm:$0xff]  }
 0x2ec   :  { %v2384_v26 = vrot.slane %v8339_v51, 1  ;;  %v8340_v54 = vcombine.low %v2149_v59, %v12420_v10  ;;  %v12582_v31 = vsel %vm2429_vm11, %v2439_v38, %v2440_v42  ;;  %v2884_v62 = vunpack.c.l.b16 %v2440_v42  ;;  %v2161_v38 = vld [vmem:[#allocation2 + $0x64] sm:$0x8] }
 0x2ed   :  { %4026 = vmatmul.mubr.bf16.gmra.mrb[28].mxu1 %v12369_v0  ;;  %v2442_v0 = vrot.slane %v12569_v55, 3  ;;  %v12585_v46 = vrot.slane %v8351_v22, 3  ;;  %v12601_v41 = vcombine.low %v2161_v38, %v12422_v40  ;;  %v2150_v42 = vld [vmem:[#allocation2 + $0x64] sm:$0xe]  ;;  %vm2466_vm14 = vsmask.f32 4352 }
 0x2ee   :  { %4035 = vmatprep.mubr.bf16.mxu1 %v8397_v30  ;;  %4099 = vmatpush1.bf16.msra.mxu1 %v9481_v18  ;;  %v2386_v17 = vsel %vm2374_vm12, %v2384_v26, %v2385_v37  ;;  %v2877_v30 = vunpack.c.h.b16 %v12582_v31  ;;  %v2387_v18 = vrot.slane %v8340_v54, 1  ;;  %v9488_v26 = vld [vmem:[%s16866_s6 + $0x180] ss:$8 sps:$4 sm:$0xff]   ;;  %v2485_v34 = vshrl.u32 %v12501_v47, 16 }
 0x2ef   :  { %4100 = vmatprep.subr.bf16.mxu1 %v9486_v6  ;;  %v12594_v15 = vcombine.low %v2382_v9, %v2386_v17  ;;  %v2876_v51 = vunpack.c.h.b16 %v2386_v17  ;;  %v12598_v57 = vsel %vm2429_vm11, %v2442_v0, %v12585_v46  ;;  %v2162_v6 = vld [vmem:[#allocation2 + $0x70] sm:$0x7]  ;;  %v8341_v9 = vcombine.low %v2150_v42, %v12422_v40 }
 0x2f0   :  { %v12603_v22 = vpack.c.b16 %v2884_v62, %v2877_v30  ;;  %v12606_v37 = vsel %vm2374_vm12, %v2387_v18, %v2388_v8  ;;  %v8353_v59 = vcombine.low %v12409_v12, %v2162_v6  ;;  %v2445_v0 = vrot.slane %v12601_v41, 3  ;;  %v12619_v30 = vld [vmem:[#allocation2 + $0xc] sm:$0xf]  ;;  %v2164_v62 = vld [vmem:[#allocation2 + $0x20] sm:$0xf] }
 0x2f1   :  { %v12613_v54 = vpack.c.b16 %v2883_v43, %v2876_v51  ;;  %v2391_v17 = vrot.slane %v12441_v14, 1  ;;  %17341 = vst [vmem:[#allocation25_spill] sm:$0xff] %v12619_v30  ;;  %v12627_v18 = vsel %vm2265_vm10, %v12490_v25, %v12473_v21  ;;  %v2390_v38 = vrot.slane %v8341_v9, 1  ;;  %v9492_v9 = vld [vmem:[%s16866_s6 + $0x190] ss:$8 sps:$4 sm:$0xff]  }
 0x2f2   :  { %4101 = vmatpush1.bf16.msra.mxu1 %v9484_v19  ;;  %v9494_v19 = vld [vmem:[%s16866_s6 + $0x194] ss:$8 sps:$4 sm:$0xff]   ;;  %v2446_v43 = vrot.slane %v8353_v59, 3  ;;  %v8354_v14 = vcombine.low %v12332_v44, %v12619_v30  ;;  %v2468_v6 = vshrl.u32 %v12477_v49, 16  ;;  %v12657_v2 = vcombine.low %v12356_v39, %v2164_v62 }
 0x2f3   :  { %4102 = vmatprep.subr.bf16.mxu1 %v9490_v45  ;;  %v2925_v51 = vunpack.c.l.b16 %v2391_v17  ;;  %v2471_v45 = vshll.u32 %v12477_v49, 16  ;;  %v2392_v21 = vsel %vm2374_vm12, %v2390_v38, %v2391_v17  ;;  %v9499_v49 = vld [vmem:[%s16866_s6 + $0x1a4] ss:$8 sps:$4 sm:$0xff]   ;;  %v2488_v44 = vshll.u32 %v12501_v47, 16  ;;  %v9504_v47 = vld [vmem:[%s16866_s6 + $0x1b4] ss:$8 sps:$4 sm:$0xff]  }
 0x2f4   :  { %v12637_v42 = vsel %vm2429_vm11, %v2445_v0, %v2446_v43  ;;  %v2926_v25 = vunpack.c.l.b16 %v2446_v43  ;;  %v2476_v59 = vshrl.u32 %v8354_v14, 16  ;;  %v2918_v17 = vunpack.c.h.b16 %v2392_v21 }
 0x2f5   :  { %4036 = vmatmul.mubr.bf16.gmra.mrb[32].mxu1 %v8396_v32  ;;  %v12649_v32 = vcombine.low %v2388_v8, %v2392_v21  ;;  %v2919_v0 = vunpack.c.h.b16 %v12637_v42  ;;  %v2470_v43 = vrot.slane %v2468_v6, 3  ;;  %v2479_v38 = vshll.u32 %v8354_v14, 16  ;;  %v12663_v6 = vld [vmem:[#allocation2 + $0x34] sm:$0xf]  ;;  %v9497_v14 = vld [vmem:[%s16866_s6 + $0x1a0] ss:$8 sps:$4 sm:$0xff]  }
 0x2f6   :  { %4045 = vmatprep.mubr.bf16.mxu1 %v12486_v13  ;;  %4103 = vmatpush1.bf16.msra.mxu1 %v9488_v26  ;;  %v2473_v13 = vrot.slane %v2471_v45, 4  ;;  %v2478_v26 = vrot.slane %v2476_v59, 3  ;;  %v12654_v33 = vpack.c.b16 %v2925_v51, %v2918_v17  ;;  %v2487_v51 = vrot.slane %v2485_v34, 3 }
 0x2f7   :  { %4104 = vmatprep.subr.bf16.mxu1 %v9494_v19  ;;  %v12652_v48 = vpack.c.b16 %v2926_v25, %v2919_v0  ;;  %v2481_v30 = vrot.slane %v2479_v38, 4  ;;  %v2493_v39 = vshrl.u32 %v12657_v2, 16  ;;  %v2496_v62 = vshll.u32 %v12657_v2, 16  ;;  %v2168_v19 = vld [vmem:[#allocation2 + $0x70] sm:$0xf] }
 0x2f8   :  { %v2474_v8 = vor.u32 %v2473_v13, %v2470_v43  ;;  %v8356_v45 = vcombine.low %v12363_v1, %v12663_v6  ;;  %v2490_v25 = vrot.slane %v2488_v44, 4  ;;  %v2502_v59 = vshrl.u32 %v12524_v24, 16 }
 0x2f9   :  { %v12675_v21 = vor.u32 %v2481_v30, %v2478_v26  ;;  %v2495_v34 = vrot.slane %v2493_v39, 3  ;;  %v2498_v0 = vrot.slane %v2496_v62, 4  ;;  %v17342_v13 = vcombine.low %v12380_v28, %v12382_v29 }
 0x2fa   :  { %4105 = vmatpush1.bf16.msra.mxu1 %v9492_v9  ;;  %v2505_v9 = vshll.u32 %v12524_v24, 16  ;;  %v2510_v17 = vshrl.u32 %v8356_v45, 16  ;;  %v2513_v43 = vshll.u32 %v8356_v45, 16  ;;  %v2491_v38 = vor.u32 %v2490_v25, %v2487_v51  ;;  %v9502_v24 = vld [vmem:[%s16866_s6 + $0x1b0] ss:$8 sps:$4 sm:$0xff]  }
 0x2fb   :  { %4106 = vmatprep.subr.bf16.mxu1 %v9499_v49  ;;  %v12684_v49 = vsel %vm2466_vm14, %v2474_v8, %v12675_v21  ;;  %v2504_v30 = vrot.slane %v2502_v59, 3  ;;  %v8408_v44 = vcombine.low %v12488_v50, %v12627_v18  ;;  %v2499_v39 = vor.u32 %v2498_v0, %v2495_v34  ;;  %v2166_v45 = vld [vmem:[#allocation2 + $0x48] sm:$0xf]  ;;  %v9507_v8 = vld [vmem:[%s16866_s6 + $0x1c4] ss:$8 sps:$4 sm:$0xff]  }
 0x2fc   :  { %v2507_v26 = vrot.slane %v2505_v9, 4  ;;  %v2512_v28 = vrot.slane %v2510_v17, 3  ;;  %v2515_v62 = vrot.slane %v2513_v43, 4  ;;  %v2522_v50 = vshll.u32 %v12534_v61, 16  ;;  %v12710_v43 = vld [vmem:[#allocation2 + $0x5c] sm:$0xf] }
 0x2fd   :  { %4046 = vmatmul.mubr.bf16.gmra.mrb[36].mxu1 %v17342_v13  ;;  %v12701_v25 = vsel %vm2466_vm14, %v2491_v38, %v2499_v39  ;;  %v2843_v59 = vunpack.c.l.b16 %v2499_v39  ;;  %17343 = vst [vmem:[#allocation26_spill] sm:$0xff] %v12710_v43  ;;  %v12733_v10 = vcombine.low %v12409_v12, %v2168_v19  ;;  %v2553_v19 = vshrl.u32 %v12601_v41, 16 }
 0x2fe   :  { %4055 = vmatprep.mubr.bf16.mxu1 %v12494_v16  ;;  %4107 = vmatpush1.bf16.msra.mxu1 %v9497_v14  ;;  %v2508_v51 = vor.u32 %v2507_v26, %v2504_v30  ;;  %v12696_v16 = vcombine.low %v12382_v29, %v2166_v45  ;;  %v2519_v14 = vshrl.u32 %v12534_v61, 16  ;;  %v12703_v9 = vor.u32 %v2515_v62, %v2512_v28  ;;  %v9505_v61 = vld [vmem:[%s16866_s6 + $0x1c0] ss:$8 sps:$4 sm:$0xff]  }
 0x2ff   :  { %4108 = vmatprep.subr.bf16.mxu1 %v9504_v47  ;;  %v2836_v0 = vunpack.c.h.b16 %v12701_v25  ;;  %v2524_v17 = vrot.slane %v2522_v50, 4  ;;  %v8358_v26 = vcombine.low %v12426_v53, %v12710_v43  ;;  %v2536_v62 = vshrl.u32 %v12569_v55, 16 }
 0x300   :  { %v2521_v29 = vrot.slane %v2519_v14, 3  ;;  %v12717_v13 = vsel %vm2466_vm14, %v2508_v51, %v12703_v9  ;;  %v2527_v38 = vshrl.u32 %v12696_v16, 16  ;;  %v2530_v30 = vshll.u32 %v12696_v16, 16 }
 0x301   :  { %v12726_v39 = vpack.c.b16 %v2843_v59, %v2836_v0  ;;  %v2539_v45 = vshll.u32 %v12569_v55, 16  ;;  %v2544_v50 = vshrl.u32 %v8358_v26, 16  ;;  %v2547_v47 = vshll.u32 %v8358_v26, 16  ;;  %v9509_v55 = vld [vmem:[%s16866_s6 + $0x1d0] ss:$8 sps:$4 sm:$0xff]  }
 0x302   :  { %4109 = vmatpush1.bf16.msra.mxu1 %v9502_v24  ;;  %v9511_v24 = vld [vmem:[%s16866_s6 + $0x1d4] ss:$8 sps:$4 sm:$0xff]   ;;  %v2525_v28 = vor.u32 %v2524_v17, %v2521_v29  ;;  %v2529_v51 = vrot.slane %v2527_v38, 3  ;;  %v2532_v14 = vrot.slane %v2530_v30, 4  ;;  %v2538_v34 = vrot.slane %v2536_v62, 3 }
 0x303   :  { %4110 = vmatprep.subr.bf16.mxu1 %v9507_v8  ;;  %v2917_v8 = vunpack.c.h.b16 %v12627_v18  ;;  %v2541_v43 = vrot.slane %v2539_v45, 4  ;;  %v2924_v59 = vunpack.c.l.b16 %v12504_v7  ;;  %v2546_v29 = vrot.slane %v2544_v50, 3 }
 0x304   :  { %v2533_v0 = vor.u32 %v2532_v14, %v2529_v51  ;;  %v2549_v17 = vrot.slane %v2547_v47, 4  ;;  %v2564_v47 = vshll.u32 %v12733_v10, 16  ;;  %v8407_v51 = vcombine.low %v12426_v53, %v12428_v3  ;;  %v9520_v14 = vld [vmem:[%s16866_s6 + $0x1f4] ss:$8 sps:$4 sm:$0xff]  }
 0x305   :  { %4056 = vmatmul.mubr.bf16.gmra.mrb[40].mxu1 %v12432_v11  ;;  %v9514_v11 = vld [vmem:[%s16866_s6 + $0x1e4] ss:$8 sps:$4 sm:$0xff]   ;;  %v2542_v18 = vor.u32 %v2541_v43, %v2538_v34  ;;  %v2555_v34 = vrot.slane %v2553_v19, 3  ;;  %vm2666_vm6 = vsmask.f32 5376  ;;  %vm2629_vm8 = vcmask 1045504  }
 0x306   :  { %4065 = vmatprep.mubr.bf16.mxu1 %v8408_v44  ;;  %4111 = vmatpush1.bf16.msra.mxu1 %v9505_v61  ;;  %v2556_v44 = vshll.u32 %v12601_v41, 16  ;;  %v2561_v61 = vshrl.u32 %v12733_v10, 16  ;;  %v12746_v7 = vsel %vm2466_vm14, %v2525_v28, %v2533_v0  ;;  %v2885_v38 = vunpack.c.l.b16 %v2533_v0  ;;  %v9512_v41 = vld [vmem:[%s16866_s6 + $0x1e0] ss:$8 sps:$4 sm:$0xff]  }
 0x307   :  { %4112 = vmatprep.subr.bf16.mxu1 %v9511_v24  ;;  %v12748_v30 = vor.u32 %v2549_v17, %v2546_v29  ;;  %v2878_v24 = vunpack.c.h.b16 %v12746_v7  ;;  %v2566_v45 = vrot.slane %v2564_v47, 4  ;;  %v3155_v0 = vpack.c.b16 %v2924_v59, %v2917_v8  ;;  %v9518_v17 = vld [vmem:[%s16866_s6 + $0x1f0] ss:$8 sps:$4 sm:$0xff]  }
 0x308   :  { %v2558_v43 = vrot.slane %v2556_v44, 4  ;;  %v2563_v62 = vrot.slane %v2561_v61, 3  ;;  %v8416_v44 = vcombine.low %v12422_v40, %v12409_v12  ;;  %v9521_v61 = vld [vmem:[%s16866_s6 + $0x200] ss:$8 sps:$4 sm:$0xff]   ;;  %v17345_v47 = vcombine.low %v12497_v56, %v12537_v23  ;;  %v9527_v12 = vld [vmem:[%s16866_s6 + $0x210] ss:$8 sps:$4 sm:$0xff]  }
 0x309   :  { %v12759_v28 = vsel %vm2466_vm14, %v2542_v18, %v12748_v30  ;;  %v12766_v50 = vpack.c.b16 %v2885_v38, %v2878_v24  ;;  %v9529_v38 = vld [vmem:[%s16866_s6 + $0x214] ss:$8 sps:$4 sm:$0xff]   ;;  %v9533_v40 = vld [vmem:[%s16866_s6 + $0x224] ss:$8 sps:$4 sm:$0xff]   ;;  %v2193_v23 = vld [vmem:[#allocation2 + $0x10] sm:$0x7] }
 0x30a   :  { %4113 = vmatpush1.bf16.msra.mxu1 %v9509_v55  ;;  %v2559_v55 = vor.u32 %v2558_v43, %v2555_v34  ;;  %v2567_v29 = vor.u32 %v2566_v45, %v2563_v62  ;;  %v9536_v56 = vld [vmem:[%s16866_s6 + $0x234] ss:$8 sps:$4 sm:$0xff]   ;;  %v12810_v24 = vld [vmem:[#allocation2 + $0x20] sm:$0xf]  ;;  %v2194_v34 = vld [vmem:[#allocation2 + $0x24] sm:$0x7] }
 0x30b   :  { %4114 = vmatprep.subr.bf16.mxu1 %v9514_v11  ;;  %v9523_v11 = vld [vmem:[%s16866_s6 + $0x204] ss:$8 sps:$4 sm:$0xff]   ;;  %17347 = vst [vmem:[#allocation29_spill] sm:$0xff] %v12810_v24  ;;  %v9534_v43 = vld [vmem:[%s16866_s6 + $0x230] ss:$8 sps:$4 sm:$0xff]   ;;  %vm17380_vm4 = vcmask 1041408  }
 0x30c   :  { %v12772_v18 = vsel %vm2466_vm14, %v2559_v55, %v2567_v29  ;;  %v2927_v3 = vunpack.c.l.b16 %v2567_v29  ;;  %v2199_v62 = vld [vmem:[#allocation2 + $0x4] sm:$0x8]  ;;  %v12828_v55 = vcombine.low %v12810_v24, %v2194_v34  ;;  %v2197_v29 = vld [vmem:[#allocation2 + $0x60] sm:$0x7]  ;;  %vm17381_vm3 = vmmov %vm17380_vm4  ;;  %vm4578_vm13 = vcmask 1043456  }
 0x30d   :  { %4066 = vmatmul.mubr.bf16.gmra.mrb[44].mxu1 %v8407_v51  ;;  %v2920_v59 = vunpack.c.h.b16 %v12772_v18  ;;  %v9541_v45 = vld [vmem:[%s16866_s6 + $0x244] ss:$8 sps:$4 sm:$0xff]   ;;  %v2195_v51 = vld [vmem:[#allocation2 + $0x38] sm:$0x7]  ;;  %vm17384_vm9 = vmmov %vm17381_vm3 }
 0x30e   :  { %4075 = vmatprep.mubr.bf16.mxu1 %v3155_v0  ;;  %4115 = vmatpush1.bf16.msra.mxu1 %v9512_v41  ;;  %v12816_v41 = vld [vmem:[#allocation2 + $0x8] sm:$0xf]  ;;  %v12830_v0 = vld [vmem:[#allocation2 + $0x34] sm:$0xf]  ;;  %vm17385_vm0 = vmmov %vm17381_vm3 }
 0x30f   :  { %4116 = vmatprep.subr.bf16.mxu1 %v9520_v14  ;;  %v12780_v19 = vpack.c.b16 %v2927_v3, %v2920_v59  ;;  %v2196_v14 = vld [vmem:[#allocation2 + $0x4c] sm:$0x7]  ;;  %17348 = vst [vmem:[#allocation30_spill] sm:$0xff] %v12830_v0  ;;  %v2201_v3 = vld [vmem:[#allocation2 + $0x2c] sm:$0x8]  ;;  %vm17386_vm5 = vmmov %vm17385_vm0 }
 0x310   :  { %v12834_v59 = vld [vmem:[#allocation2 + $0x30] sm:$0xf]  ;;  %vm17387_vm15 = vmmov %vm17385_vm0 }
 0x311   :  { %17344 = vst [vmem:[#allocation27_spill] sm:$0xff] %v12780_v19  ;;  %17349 = vst [vmem:[#allocation31_spill] sm:$0xff] %v12834_v59  ;;  %v8380_v26 = vcombine.low %v2201_v3, %v12834_v59  ;;  %v12875_v3 = vld [vmem:[#allocation2 + $0x6c] sm:$0xf] }
 0x312   :  { %4117 = vmatpush1.bf16.msra.mxu1 %v9518_v17  ;;  %v2200_v17 = vld [vmem:[#allocation2 + $0x18] sm:$0x8]  ;;  %vm17390_vm1 = vmmov %vm17385_vm0 }
 0x313   :  { %4209 = vmatprep.subr.bf16.mxu1 %v9523_v11  ;;  %v12832_v11 = vld [vmem:[#allocation2 + $0x1c] sm:$0xf]  ;;  %vm17391_vm2 = vmmov %vm17385_vm0 }
 0x314   :  { %v8379_v8 = vcombine.low %v2200_v17, %v12832_v11  ;;  %vm17392_vm10 = vmmov %vm17385_vm0 }
 0x315   :  { %4076 = vmatmul.mubr.bf16.gmra.mrb[48].mxu1 %v8416_v44  ;;  %v12836_v44 = vld [vmem:[#allocation2 + $0x48] sm:$0xf]  ;;  %vm17396_vm12 = vmmov %vm17385_vm0 }
 0x316   :  { %4118 = vmatprep.mubr.bf16.mxu1 %v12517_v63  ;;  %v9531_v63 = vld [vmem:[%s16866_s6 + $0x220] ss:$8 sps:$4 sm:$0xff]   ;;  %17350 = vst [vmem:[#allocation32_spill] sm:$0xff] %v12836_v44  ;;  %v12851_v34 = vcombine.low %v12836_v44, %v2196_v14  ;;  %v2790_v59 = vrot.slane %v8379_v8, 3  ;;  %vm17398_vm14 = vmmov %vm17385_vm0 }
 0x31d   :  { %4119 = vmatmul.mubr.bf16.vlgmr.msra.gmra.mrb[16].mxu1 %v12520_v36  ;;  %v12807_v36 = vld [vmem:[#allocation2 + $0xc] sm:$0xf] }
 0x31e   :  { %4210 = vmatpush1.bf16.msra.mxu1 %v9521_v61  ;;  %4128 = vmatprep.mubr.bf16.mxu1 %v17345_v47  ;;  %17346 = vst [vmem:[#allocation28_spill] sm:$0xff] %v12807_v36  ;;  %v8378_v61 = vcombine.low %v2199_v62, %v12816_v41  ;;  %v12841_v47 = vld [vmem:[#allocation2 + $0x5c] sm:$0xf]  ;;  %v2198_v62 = vld [vmem:[#allocation2 + $0x74] sm:$0x7] }
 0x31f   :  { %4211 = vmatprep.subr.bf16.mxu1 %v9529_v38  ;;  %v12839_v38 = vld [vmem:[#allocation2 + $0x44] sm:$0xf]  ;;  %17352 = vst [vmem:[#allocation34_spill] sm:$0xff] %v12841_v47  ;;  %v12865_v14 = vcombine.low %v12841_v47, %v2197_v29  ;;  %v2793_v47 = vrot.slane %v8380_v26, 3  ;;  %v9548_v26 = vld [vmem:[%s16866_s6 + $0x260] ss:$8 sps:$4 sm:$0xff]  }
 0x320   :  { %17351 = vst [vmem:[#allocation33_spill] sm:$0xff] %v12839_v38 }
 0x322   :  { %4212 = vmatpush1.bf16.msra.mxu1 %v9527_v12  ;;  %v2202_v12 = vld [vmem:[#allocation2 + $0x40] sm:$0x8] }
 0x323   :  { %4213 = vmatprep.subr.bf16.mxu1 %v9533_v40  ;;  %v9544_v40 = vld [vmem:[%s16866_s6 + $0x254] ss:$8 sps:$4 sm:$0xff]   ;;  %v8381_v17 = vcombine.low %v2202_v12, %v12839_v38  ;;  %v2204_v12 = vld [vmem:[#allocation2 + $0x68] sm:$0x8] }
 0x325   :  { %4129 = vmatmul.mubr.bf16.gmra.mrb[20].mxu1 %v12547_v4  ;;  %v12822_v4 = vcombine.low %v12807_v36, %v2193_v23 }
 0x326   :  { %4138 = vmatprep.mubr.bf16.mxu1 %v12559_v52  ;;  %4214 = vmatpush1.bf16.msra.mxu1 %v9531_v63  ;;  %v9539_v52 = vld [vmem:[%s16866_s6 + $0x240] ss:$8 sps:$4 sm:$0xff]   ;;  %v12847_v63 = vcombine.low %v12830_v0, %v2195_v51  ;;  %v9542_v51 = vld [vmem:[%s16866_s6 + $0x250] ss:$8 sps:$4 sm:$0xff]   ;;  %v2203_v0 = vld [vmem:[#allocation2 + $0x54] sm:$0x8] }
 0x327   :  { %4215 = vmatprep.subr.bf16.mxu1 %v9536_v56  ;;  %v2787_v56 = vrot.slane %v8378_v61, 3  ;;  %v2788_v23 = vrot.slane %v12822_v4, 3  ;;  %v12862_v61 = vld [vmem:[#allocation2 + $0x58] sm:$0xf] }
 0x328   :  { %v8382_v24 = vcombine.low %v2203_v0, %v12862_v61  ;;  %v9553_v0 = vld [vmem:[%s16866_s6 + $0x274] ss:$8 sps:$4 sm:$0xff]  }
 0x329   :  { %v12868_v44 = vsel %vm2429_vm11, %v2787_v56, %v2788_v23  ;;  %v2794_v56 = vrot.slane %v12847_v63, 3 }
 0x32a   :  { %4216 = vmatpush1.bf16.msra.mxu1 %v9534_v43  ;;  %v12853_v43 = vld [vmem:[#allocation2 + $0x70] sm:$0xf]  ;;  %17353 = vst [vmem:[#allocation35_spill] sm:$0xff] %v12868_v44  ;;  %v2796_v44 = vrot.slane %v8381_v17, 3  ;;  %v8383_v17 = vcombine.low %v2204_v12, %v12875_v3  ;;  %v9557_v12 = vld [vmem:[%s16866_s6 + $0x284] ss:$8 sps:$4 sm:$0xff]  }
 0x32b   :  { %4217 = vmatprep.subr.bf16.mxu1 %v9541_v45  ;;  %v2791_v45 = vrot.slane %v12828_v55, 3  ;;  %v12878_v29 = vcombine.low %v12853_v43, %v2198_v62  ;;  %v12887_v8 = vsel %vm2429_vm11, %v2793_v47, %v2794_v56 }
 0x32c   :  { %17354 = vst [vmem:[#allocation36_spill] sm:$0xff] %v12887_v8 }
 0x32d   :  { %4139 = vmatmul.mubr.bf16.gmra.mrb[24].mxu1 %v12561_v60  ;;  %v9550_v60 = vld [vmem:[%s16866_s6 + $0x264] ss:$8 sps:$4 sm:$0xff]   ;;  %v2792_v38 = vsel %vm2429_vm11, %v2790_v59, %v2791_v45 }
 0x32e   :  { %4148 = vmatprep.mubr.bf16.mxu1 %v12555_v27  ;;  %4218 = vmatpush1.bf16.msra.mxu1 %v9539_v52  ;;  %v2846_v27 = vunpack.c.l.b16 %v2791_v45  ;;  %v2797_v52 = vrot.slane %v12851_v34, 3  ;;  %v12884_v36 = vcombine.low %v2788_v23, %v2792_v38  ;;  %v2839_v19 = vunpack.c.h.b16 %v2792_v38 }
 0x32f   :  { %4219 = vmatprep.subr.bf16.mxu1 %v9544_v40  ;;  %v2800_v40 = vrot.slane %v12865_v14, 3  ;;  %v2799_v45 = vrot.slane %v8382_v24, 3 }
 0x330   :  { %v2798_v59 = vsel %vm2429_vm11, %v2796_v44, %v2797_v52  ;;  %v2888_v62 = vunpack.c.l.b16 %v2797_v52  ;;  %v12898_v38 = vpack.c.b16 %v2846_v27, %v2839_v19  ;;  %v2802_v44 = vrot.slane %v8383_v17, 3  ;;  %v9551_v19 = vld [vmem:[%s16866_s6 + $0x270] ss:$8 sps:$4 sm:$0xff]   ;;  %v9572_v17 = vld [vmem:[%s16866_s6 + $0x2c0] ss:$8 sps:$4 sm:$0xff]  }
 0x331   :  { %v12900_v47 = vcombine.low %v2794_v56, %v2798_v59  ;;  %v2881_v23 = vunpack.c.h.b16 %v2798_v59  ;;  %v12904_v8 = vsel %vm2429_vm11, %v2799_v45, %v2800_v40  ;;  %v9574_v45 = vld [vmem:[%s16866_s6 + $0x2c4] ss:$8 sps:$4 sm:$0xff]  }
 0x332   :  { %4220 = vmatpush1.bf16.msra.mxu1 %v9542_v51  ;;  %v2803_v51 = vrot.slane %v12878_v29, 3 }
 0x333   :  { %4221 = vmatprep.subr.bf16.mxu1 %v9550_v60  ;;  %v12907_v24 = vpack.c.b16 %v2888_v62, %v2881_v23  ;;  %v17355_v60 = vcombine.low %v12540_v58, %v12582_v31  ;;  %v9555_v58 = vld [vmem:[%s16866_s6 + $0x280] ss:$8 sps:$4 sm:$0xff]   ;;  %v9560_v31 = vld [vmem:[%s16866_s6 + $0x294] ss:$8 sps:$4 sm:$0xff]   ;;  %v9581_v23 = vld [vmem:[%s16866_s6 + $0x2e4] ss:$8 sps:$4 sm:$0xff]  }
 0x334   :  { %v2804_v56 = vsel %vm2429_vm11, %v2802_v44, %v2803_v51  ;;  %v2930_v52 = vunpack.c.l.b16 %v2803_v51  ;;  %v9563_v62 = vld [vmem:[%s16866_s6 + $0x2a0] ss:$8 sps:$4 sm:$0xff]   ;;  %v17357_v44 = vld [vmem:[#allocation23_spill] sm:$0xff]  ;;  %vm17393_vm11 = vmmov %vm17385_vm0 }
 0x335   :  { %4149 = vmatmul.mubr.bf16.gmra.mrb[28].mxu1 %v12566_v20  ;;  %v12919_v27 = vcombine.low %v2800_v40, %v2804_v56  ;;  %v2923_v20 = vunpack.c.h.b16 %v2804_v56  ;;  %v9558_v40 = vld [vmem:[%s16866_s6 + $0x290] ss:$8 sps:$4 sm:$0xff]   ;;  %v9579_v51 = vld [vmem:[%s16866_s6 + $0x2e0] ss:$8 sps:$4 sm:$0xff]  }
 0x336   :  { %4158 = vmatprep.mubr.bf16.mxu1 %v17355_v60  ;;  %4222 = vmatpush1.bf16.msra.mxu1 %v9548_v26  ;;  %v9565_v26 = vld [vmem:[%s16866_s6 + $0x2a4] ss:$8 sps:$4 sm:$0xff]   ;;  %v17358_v60 = vcombine.low %v12224_v5, %v17357_v44  ;;  %v9591_v5 = vld [vmem:[%s16866_s6 + $0x310] ss:$8 sps:$4 sm:$0xff]  }
 0x337   :  { %4223 = vmatprep.subr.bf16.mxu1 %v9553_v0  ;;  %v12921_v59 = vpack.c.b16 %v2930_v52, %v2923_v20  ;;  %v9576_v0 = vld [vmem:[%s16866_s6 + $0x2d0] ss:$8 sps:$4 sm:$0xff]   ;;  %v17359_v56 = vld [vmem:[#allocation25_spill] sm:$0xff]  ;;  %v17360_v52 = vcombine.low %v12675_v21, %v12701_v25  ;;  %v17361_v21 = vcombine.low %v12328_v35, %v12363_v1  ;;  %v9615_v35 = vld [vmem:[%s16866_s6 + $0x374] ss:$8 sps:$4 sm:$0xff]  }
 0x338   :  { %v9595_v20 = vld [vmem:[%s16866_s6 + $0x320] ss:$8 sps:$4 sm:$0xff]   ;;  %v9605_v25 = vld [vmem:[%s16866_s6 + $0x350] ss:$8 sps:$4 sm:$0xff]  }
 0x339   :  { %v10066_v1 = vld [vmem:[#allocation2 + $0x40] sm:$0xf] }
 0x33a   :  { %4224 = vmatpush1.bf16.msra.mxu1 %v9551_v19  ;;  %v10065_v19 = vld [vmem:[#allocation2 + $0x18] sm:$0xf] }
 0x33b   :  { %4225 = vmatprep.subr.bf16.mxu1 %v9557_v12  ;;  %v8390_v12 = vcombine.low %v17359_v56, %v10065_v19 }
 0x33d   :  { %4159 = vmatmul.mubr.bf16.gmra.mrb[32].mxu1 %v12594_v15  ;;  %v9571_v15 = vld [vmem:[%s16866_s6 + $0x2b4] ss:$8 sps:$4 sm:$0xff]  }
 0x33e   :  { %4168 = vmatprep.mubr.bf16.mxu1 %v12603_v22  ;;  %4226 = vmatpush1.bf16.msra.mxu1 %v9555_v58  ;;  %v9569_v22 = vld [vmem:[%s16866_s6 + $0x2b0] ss:$8 sps:$4 sm:$0xff]  }
 0x33f   :  { %4227 = vmatprep.subr.bf16.mxu1 %v9560_v31  ;;  %v9598_v58 = vld [vmem:[%s16866_s6 + $0x330] ss:$8 sps:$4 sm:$0xff]   ;;  %v9604_v31 = vld [vmem:[%s16866_s6 + $0x344] ss:$8 sps:$4 sm:$0xff]  }
 0x342   :  { %4228 = vmatpush1.bf16.msra.mxu1 %v9558_v40  ;;  %v9602_v40 = vld [vmem:[%s16866_s6 + $0x340] ss:$8 sps:$4 sm:$0xff]  }
 0x343   :  { %4229 = vmatprep.subr.bf16.mxu1 %v9565_v26  ;;  %v9612_v26 = vld [vmem:[%s16866_s6 + $0x364] ss:$8 sps:$4 sm:$0xff]  }
 0x345   :  { %4169 = vmatmul.mubr.bf16.gmra.mrb[36].mxu1 %v12613_v54  ;;  %v17356_v54 = vcombine.low %v12585_v46, %v12637_v42  ;;  %v9585_v46 = vld [vmem:[%s16866_s6 + $0x2f4] ss:$8 sps:$4 sm:$0xff]   ;;  %v9588_v42 = vld [vmem:[%s16866_s6 + $0x304] ss:$8 sps:$4 sm:$0xff]  }
 0x346   :  { %4178 = vmatprep.mubr.bf16.mxu1 %v12598_v57  ;;  %4230 = vmatpush1.bf16.msra.mxu1 %v9563_v62  ;;  %v9578_v57 = vld [vmem:[%s16866_s6 + $0x2d4] ss:$8 sps:$4 sm:$0xff]   ;;  %v9610_v62 = vld [vmem:[%s16866_s6 + $0x360] ss:$8 sps:$4 sm:$0xff]  }
 0x347   :  { %4231 = vmatprep.subr.bf16.mxu1 %v9571_v15  ;;  %v9613_v15 = vld [vmem:[%s16866_s6 + $0x370] ss:$8 sps:$4 sm:$0xff]  }
 0x34a   :  { %4232 = vmatpush1.bf16.msra.mxu1 %v9569_v22  ;;  %v9619_v22 = vld [vmem:[%s16866_s6 + $0x384] ss:$8 sps:$4 sm:$0xff]  }
 0x34b   :  { %4233 = vmatprep.subr.bf16.mxu1 %v9574_v45  ;;  %v9617_v45 = vld [vmem:[%s16866_s6 + $0x380] ss:$8 sps:$4 sm:$0xff]  }
 0x34d   :  { %4179 = vmatmul.mubr.bf16.gmra.mrb[40].mxu1 %v12606_v37  ;;  %v9583_v37 = vld [vmem:[%s16866_s6 + $0x2f0] ss:$8 sps:$4 sm:$0xff]  }
 0x34e   :  { %4188 = vmatprep.mubr.bf16.mxu1 %v17356_v54  ;;  %4234 = vmatpush1.bf16.msra.mxu1 %v9572_v17  ;;  %v9620_v17 = vld [vmem:[%s16866_s6 + $0x390] ss:$8 sps:$4 sm:$0xff]   ;;  %v9624_v54 = vld [vmem:[%s16866_s6 + $0x3a0] ss:$8 sps:$4 sm:$0xff]  }
 0x34f   :  { %4235 = vmatprep.subr.bf16.mxu1 %v9578_v57  ;;  %v9626_v57 = vld [vmem:[%s16866_s6 + $0x3a4] ss:$8 sps:$4 sm:$0xff]  }
 0x352   :  { %4236 = vmatpush1.bf16.msra.mxu1 %v9576_v0  ;;  %v9629_v0 = vld [vmem:[%s16866_s6 + $0x3b0] ss:$8 sps:$4 sm:$0xff]  }
 0x353   :  { %4237 = vmatprep.subr.bf16.mxu1 %v9581_v23  ;;  %v9634_v23 = vld [vmem:[%s16866_s6 + $0x3c4] ss:$8 sps:$4 sm:$0xff]  }
 0x355   :  { %4189 = vmatmul.mubr.bf16.gmra.mrb[44].mxu1 %v12649_v32  ;;  %v9593_v32 = vld [vmem:[%s16866_s6 + $0x314] ss:$8 sps:$4 sm:$0xff]  }
 0x356   :  { %4198 = vmatprep.mubr.bf16.mxu1 %v12652_v48  ;;  %4238 = vmatpush1.bf16.msra.mxu1 %v9579_v51  ;;  %v9586_v48 = vld [vmem:[%s16866_s6 + $0x300] ss:$8 sps:$4 sm:$0xff]  }
 0x357   :  { %4239 = vmatprep.subr.bf16.mxu1 %v9585_v46  ;;  %v9632_v51 = vld [vmem:[%s16866_s6 + $0x3c0] ss:$8 sps:$4 sm:$0xff]  }
 0x358   :  { %v10067_v46 = vld [vmem:[#allocation2 + $0x68] sm:$0xf] }
 0x35a   :  { %4240 = vmatpush1.bf16.msra.mxu1 %v9583_v37  ;;  %v17365_v37 = vld [vmem:[#allocation26_spill] sm:$0xff] }
 0x35b   :  { %4332 = vmatprep.subr.bf16.mxu1 %v9588_v42  ;;  %v8412_v42 = vcombine.low %v17365_v37, %v10067_v46  ;;  %v17370_v46 = vld [vmem:[#allocation31_spill] sm:$0xff] }
 0x35d   :  { %4199 = vmatmul.mubr.bf16.gmra.mrb[48].mxu1 %v12654_v33  ;;  %v9597_v33 = vld [vmem:[%s16866_s6 + $0x324] ss:$8 sps:$4 sm:$0xff]  }
 0x35e   :  { %4241 = vmatprep.mubr.bf16.mxu1 %v17358_v60  ;;  %v9636_v60 = vld [vmem:[%s16866_s6 + $0x3d0] ss:$8 sps:$4 sm:$0xff]  }
 0x365   :  { %4242 = vmatmul.mubr.bf16.vlgmr.msra.gmra.mrb[16].mxu1 %v12684_v49  ;;  %v9600_v49 = vld [vmem:[%s16866_s6 + $0x334] ss:$8 sps:$4 sm:$0xff]  }
 0x366   :  { %4333 = vmatpush1.bf16.msra.mxu1 %v9586_v48  ;;  %4251 = vmatprep.mubr.bf16.mxu1 %v8390_v12  ;;  %v2173_v48 = vld [vmem:[#allocation2 + $0x18] sm:$0xc] }
 0x367   :  { %4334 = vmatprep.subr.bf16.mxu1 %v9593_v32  ;;  %v9641_v32 = vld [vmem:[%s16866_s6 + $0x3e4] ss:$8 sps:$4 sm:$0xff]   ;;  %v8362_v12 = vcombine.low %v2173_v48, %v12832_v11 }
 0x368   :  { %v9661_v48 = vld [vmem:[%s16866_s6 + $0x424] ss:$8 sps:$4 sm:$0xff]  }
 0x36a   :  { %4335 = vmatpush1.bf16.msra.mxu1 %v9591_v5  ;;  %v2679_v5 = vshll.u32 %v12822_v4, 16 }
 0x36b   :  { %4336 = vmatprep.subr.bf16.mxu1 %v9597_v33  ;;  %v9646_v33 = vld [vmem:[%s16866_s6 + $0x3f4] ss:$8 sps:$4 sm:$0xff]  }
 0x36d   :  { %4252 = vmatmul.mubr.bf16.gmra.mrb[20].mxu1 %v17360_v52  ;;  %v2685_v52 = vshrl.u32 %v8362_v12, 16 }
 0x36e   :  { %4261 = vmatprep.mubr.bf16.mxu1 %v12657_v2  ;;  %4337 = vmatpush1.bf16.msra.mxu1 %v9595_v20  ;;  %v9607_v2 = vld [vmem:[%s16866_s6 + $0x354] ss:$8 sps:$4 sm:$0xff]   ;;  %v17366_v20 = vcombine.low %v12748_v30, %v12772_v18  ;;  %v2693_v30 = vshrl.u32 %v12828_v55, 16  ;;  %v2696_v18 = vshll.u32 %v12828_v55, 16  ;;  %v2176_v55 = vld [vmem:[#allocation2 + $0x24] sm:$0x3] }
 0x36f   :  { %4338 = vmatprep.subr.bf16.mxu1 %v9600_v49 }
 0x372   :  { %4339 = vmatpush1.bf16.msra.mxu1 %v9598_v58  ;;  %v2688_v58 = vshll.u32 %v8362_v12, 16 }
 0x373   :  { %4340 = vmatprep.subr.bf16.mxu1 %v9604_v31  ;;  %v9644_v31 = vld [vmem:[%s16866_s6 + $0x3f0] ss:$8 sps:$4 sm:$0xff]  }
 0x375   :  { %4262 = vmatmul.mubr.bf16.gmra.mrb[24].mxu1 %v12726_v39  ;;  %v8401_v39 = vcombine.low %v12663_v6, %v10066_v1  ;;  %v9622_v6 = vld [vmem:[%s16866_s6 + $0x394] ss:$8 sps:$4 sm:$0xff]   ;;  %v2698_v1 = vrot.slane %v2696_v18, 3 }
 0x376   :  { %4271 = vmatprep.mubr.bf16.mxu1 %v17361_v21  ;;  %4341 = vmatpush1.bf16.msra.mxu1 %v9602_v40  ;;  %v2681_v40 = vrot.slane %v2679_v5, 3 }
 0x377   :  { %4342 = vmatprep.subr.bf16.mxu1 %v9607_v2  ;;  %v9649_v2 = vld [vmem:[%s16866_s6 + $0x404] ss:$8 sps:$4 sm:$0xff]  }
 0x37a   :  { %4343 = vmatpush1.bf16.msra.mxu1 %v9605_v25  ;;  %v2687_v25 = vrot.slane %v2685_v52, 2  ;;  %v9667_v52 = vld [vmem:[%s16866_s6 + $0x434] ss:$8 sps:$4 sm:$0xff]  }
 0x37b   :  { %4344 = vmatprep.subr.bf16.mxu1 %v9612_v26  ;;  %v2690_v26 = vrot.slane %v2688_v58, 3 }
 0x37d   :  { %4272 = vmatmul.mubr.bf16.gmra.mrb[28].mxu1 %v12717_v13  ;;  %v17362_v13 = vcombine.low %v12703_v9, %v12746_v7  ;;  %v17363_v9 = vld [vmem:[#allocation24_spill] sm:$0xff] }
 0x37e   :  { %4281 = vmatprep.mubr.bf16.mxu1 %v8401_v39  ;;  %4345 = vmatpush1.bf16.msra.mxu1 %v9610_v62  ;;  %v17364_v7 = vcombine.low %v17363_v9, %v12426_v53  ;;  %v9638_v53 = vld [vmem:[%s16866_s6 + $0x3d4] ss:$8 sps:$4 sm:$0xff]   ;;  %v2172_v62 = vld [vmem:[#allocation2 + $0x10] sm:$0x3]  ;;  %v17369_v9 = vld [vmem:[#allocation29_spill] sm:$0xff] }
 0x37f   :  { %4346 = vmatprep.subr.bf16.mxu1 %v9615_v35  ;;  %v2695_v35 = vrot.slane %v2693_v30, 2  ;;  %v17367_v39 = vld [vmem:[#allocation27_spill] sm:$0xff] }
 0x382   :  { %4347 = vmatpush1.bf16.msra.mxu1 %v9613_v15 }
 0x383   :  { %4348 = vmatprep.subr.bf16.mxu1 %v9619_v22  ;;  %v2691_v22 = vor.u32 %v2690_v26, %v2687_v25  ;;  %v2727_v25 = vshrl.u32 %v12851_v34, 16  ;;  %v2730_v26 = vshll.u32 %v12851_v34, 16  ;;  %v9676_v34 = vld [vmem:[%s16866_s6 + $0x454] ss:$8 sps:$4 sm:$0xff]  }
 0x385   :  { %4282 = vmatmul.mubr.bf16.gmra.mrb[32].mxu1 %v17362_v13  ;;  %v2699_v13 = vor.u32 %v2698_v1, %v2695_v35 }
 0x386   :  { %4291 = vmatprep.mubr.bf16.mxu1 %v12696_v16  ;;  %4349 = vmatpush1.bf16.msra.mxu1 %v9617_v45  ;;  %v9631_v16 = vld [vmem:[%s16866_s6 + $0x3b4] ss:$8 sps:$4 sm:$0xff]   ;;  %v17368_v45 = vld [vmem:[#allocation28_spill] sm:$0xff] }
 0x387   :  { %4350 = vmatprep.subr.bf16.mxu1 %v9622_v6  ;;  %v8361_v6 = vcombine.low %v17368_v45, %v2172_v62  ;;  %v2845_v5 = vunpack.c.l.b16 %v2699_v13 }
 0x38a   :  { %4351 = vmatpush1.bf16.msra.mxu1 %v9620_v17 }
 0x38b   :  { %4352 = vmatprep.subr.bf16.mxu1 %v9626_v57  ;;  %v2700_v57 = vsel %vm2666_vm6, %v2691_v22, %v2699_v13  ;;  %v2729_v13 = vrot.slane %v2727_v25, 2 }
 0x38d   :  { %4292 = vmatmul.mubr.bf16.gmra.mrb[36].mxu1 %v12766_v50  ;;  %v2169_v50 = vld [vmem:[#allocation2 + $0x4] sm:$0xc] }
 0x38e   :  { %4301 = vmatprep.mubr.bf16.mxu1 %v17364_v7  ;;  %4353 = vmatpush1.bf16.msra.mxu1 %v9624_v54  ;;  %v8360_v44 = vcombine.low %v2169_v50, %v12816_v41  ;;  %v2676_v41 = vshrl.u32 %v12822_v4, 16  ;;  %v9647_v54 = vld [vmem:[%s16866_s6 + $0x400] ss:$8 sps:$4 sm:$0xff]   ;;  %v8363_v7 = vcombine.low %v17369_v9, %v2176_v55  ;;  %v2732_v55 = vrot.slane %v2730_v26, 3  ;;  %v9674_v9 = vld [vmem:[%s16866_s6 + $0x450] ss:$8 sps:$4 sm:$0xff]  }
 0x38f   :  { %4354 = vmatprep.subr.bf16.mxu1 %v9631_v16  ;;  %v2631_v16 = vrot.slane %v8361_v6, 2  ;;  %v2180_v6 = vld [vmem:[#allocation2 + $0x38] sm:$0x3]  ;;  %v2761_v26 = vshrl.u32 %v12878_v29, 16 }
 0x390   :  { %v2668_v19 = vshrl.u32 %v8360_v44, 16  ;;  %v2671_v56 = vshll.u32 %v8360_v44, 16  ;;  %v2678_v4 = vrot.slane %v2676_v41, 2  ;;  %v2630_v17 = vrot.slane %v8360_v44, 2  ;;  %v9654_v44 = vld [vmem:[%s16866_s6 + $0x410] ss:$8 sps:$4 sm:$0xff]  }
 0x392   :  { %4355 = vmatpush1.bf16.msra.mxu1 %v9629_v0  ;;  %v2670_v49 = vrot.slane %v2668_v19, 2  ;;  %v2673_v11 = vrot.slane %v2671_v56, 3  ;;  %v2177_v0 = vld [vmem:[#allocation2 + $0x2c] sm:$0xc]  ;;  %v2838_v19 = vunpack.c.h.b16 %v2700_v57 }
 0x393   :  { %4356 = vmatprep.subr.bf16.mxu1 %v9634_v23  ;;  %v9656_v23 = vld [vmem:[%s16866_s6 + $0x414] ss:$8 sps:$4 sm:$0xff]   ;;  %v13126_v37 = vcombine.low %v2177_v0, %v17370_v46  ;;  %v2184_v0 = vld [vmem:[#allocation2 + $0x4c] sm:$0x3]  ;;  %v17373_v46 = vld [vmem:[#allocation32_spill] sm:$0xff] }
 0x394   :  { %v2674_v21 = vor.u32 %v2673_v11, %v2670_v49  ;;  %v2710_v49 = vshrl.u32 %v12847_v63, 16  ;;  %v2713_v11 = vshll.u32 %v12847_v63, 16  ;;  %v3110_v58 = vpack.c.b16 %v2845_v5, %v2838_v19  ;;  %v9665_v63 = vld [vmem:[%s16866_s6 + $0x430] ss:$8 sps:$4 sm:$0xff]  }
 0x395   :  { %4302 = vmatmul.mubr.bf16.gmra.mrb[40].mxu1 %v12759_v28  ;;  %v9639_v28 = vld [vmem:[%s16866_s6 + $0x3e0] ss:$8 sps:$4 sm:$0xff]   ;;  %v2702_v56 = vshrl.u32 %v13126_v37, 16  ;;  %v9684_v5 = vld [vmem:[%s16866_s6 + $0x470] ss:$8 sps:$4 sm:$0xff]  }
 0x396   :  { %4311 = vmatprep.mubr.bf16.mxu1 %v8412_v42  ;;  %4357 = vmatpush1.bf16.msra.mxu1 %v9632_v51  ;;  %v2632_v51 = vsel %vm2629_vm8, %v2630_v17, %v2631_v16  ;;  %v2634_v42 = vrot.slane %v8363_v7, 2  ;;  %v2712_v18 = vrot.slane %v2710_v49, 2  ;;  %v2733_v7 = vor.u32 %v2732_v55, %v2729_v13  ;;  %v17374_v55 = vld [vmem:[#allocation34_spill] sm:$0xff] }
 0x397   :  { %4358 = vmatprep.subr.bf16.mxu1 %v9638_v53  ;;  %v2633_v53 = vrot.slane %v8362_v12, 2  ;;  %v2705_v12 = vshll.u32 %v13126_v37, 16 }
 0x398   :  { %v2844_v62 = vunpack.c.l.b16 %v2634_v42 }
 0x39a   :  { %4359 = vmatpush1.bf16.msra.mxu1 %v9636_v60  ;;  %v2181_v60 = vld [vmem:[#allocation2 + $0x40] sm:$0xc] }
 0x39b   :  { %4360 = vmatprep.subr.bf16.mxu1 %v9641_v32  ;;  %v2635_v32 = vsel %vm2629_vm8, %v2633_v53, %v2634_v42  ;;  %v8367_v42 = vcombine.low %v17373_v46, %v2184_v0 }
 0x39c   :  { %v2837_v30 = vunpack.c.h.b16 %v2635_v32 }
 0x39d   :  { %4312 = vmatmul.mubr.bf16.gmra.mrb[44].mxu1 %v17366_v20  ;;  %v8391_v20 = vcombine.low %v2631_v16, %v2635_v32 }
 0x39e   :  { %4321 = vmatprep.mubr.bf16.mxu1 %v12733_v10  ;;  %4361 = vmatpush1.bf16.msra.mxu1 %v9639_v28  ;;  %v2682_v10 = vor.u32 %v2681_v40, %v2678_v4  ;;  %v17371_v28 = vld [vmem:[#allocation33_spill] sm:$0xff]  ;;  %v2707_v4 = vrot.slane %v2705_v12, 3  ;;  %v3109_v22 = vpack.c.b16 %v2844_v62, %v2837_v30  ;;  %v2640_v12 = vrot.slane %v8367_v42, 2 }
 0x39f   :  { %4362 = vmatprep.subr.bf16.mxu1 %v9646_v33  ;;  %v13138_v41 = vcombine.low %v2181_v60, %v17371_v28  ;;  %v9659_v33 = vld [vmem:[%s16866_s6 + $0x420] ss:$8 sps:$4 sm:$0xff]  }
 0x3a0   :  { %v2683_v15 = vsel %vm2666_vm6, %v2674_v21, %v2682_v10  ;;  %v8392_v50 = vcombine.low %v2682_v10, %v2700_v57  ;;  %v2715_v21 = vrot.slane %v2713_v11, 3  ;;  %v9671_v10 = vld [vmem:[%s16866_s6 + $0x444] ss:$8 sps:$4 sm:$0xff]   ;;  %v9680_v60 = vld [vmem:[%s16866_s6 + $0x460] ss:$8 sps:$4 sm:$0xff]  }
 0x3a1   :  { %v2719_v40 = vshrl.u32 %v13138_v41, 16  ;;  %v2189_v28 = vld [vmem:[#allocation2 + $0x68] sm:$0xc] }
 0x3a2   :  { %4363 = vmatpush1.bf16.msra.mxu1 %v9644_v31  ;;  %v2704_v31 = vrot.slane %v2702_v56, 2  ;;  %v2716_v45 = vor.u32 %v2715_v21, %v2712_v18 }
 0x3a3   :  { %4455 = vmatprep.subr.bf16.mxu1 %v9649_v2  ;;  %v2722_v2 = vshll.u32 %v13138_v41, 16  ;;  %v2721_v1 = vrot.slane %v2719_v40, 2 }
 0x3a4   :  { %v2708_v35 = vor.u32 %v2707_v4, %v2704_v31  ;;  %v2747_v31 = vshll.u32 %v12865_v14, 16 }
 0x3a5   :  { %4322 = vmatmul.mubr.bf16.gmra.mrb[48].mxu1 %v17367_v39  ;;  %v2724_v39 = vrot.slane %v2722_v2, 3 }
 0x3a6   :  { %4364 = vmatprep.mubr.bf16.mxu1 %v2683_v15  ;;  %v9669_v15 = vld [vmem:[%s16866_s6 + $0x440] ss:$8 sps:$4 sm:$0xff]   ;;  %v2717_v17 = vsel %vm2666_vm6, %v2708_v35, %v2716_v45  ;;  %v2749_v25 = vrot.slane %v2747_v31, 3 }
 0x3a7   :  { %v2725_v57 = vor.u32 %v2724_v39, %v2721_v1 }
 0x3ad   :  { %4365 = vmatmul.mubr.bf16.vlgmr.msra.gmra.mrb[16].mxu1 %v2632_v51  ;;  %v2636_v51 = vrot.slane %v13126_v37, 2  ;;  %v2639_v37 = vrot.slane %v13138_v41, 2  ;;  %v2887_v41 = vunpack.c.l.b16 %v2733_v7 }
 0x3ae   :  { %4456 = vmatpush1.bf16.msra.mxu1 %v9647_v54  ;;  %4374 = vmatprep.mubr.bf16.mxu1 %v8392_v50  ;;  %v17372_v54 = vld [vmem:[#allocation30_spill] sm:$0xff]  ;;  %v2734_v50 = vsel %vm2666_vm6, %v2725_v57, %v2733_v7 }
 0x3af   :  { %4457 = vmatprep.subr.bf16.mxu1 %v9656_v23  ;;  %v8365_v16 = vcombine.low %v17372_v54, %v2180_v6  ;;  %v9682_v23 = vld [vmem:[%s16866_s6 + $0x464] ss:$8 sps:$4 sm:$0xff]   ;;  %v8403_v19 = vcombine.low %v2716_v45, %v2734_v50  ;;  %v2192_v57 = vld [vmem:[#allocation2 + $0x74] sm:$0x3] }
 0x3b1   :  { %v2637_v53 = vrot.slane %v8365_v16, 2 }
 0x3b2   :  { %4458 = vmatpush1.bf16.msra.mxu1 %v9654_v44  ;;  %v2185_v44 = vld [vmem:[#allocation2 + $0x54] sm:$0xc] }
 0x3b3   :  { %4459 = vmatprep.subr.bf16.mxu1 %v9661_v48  ;;  %v9686_v48 = vld [vmem:[%s16866_s6 + $0x474] ss:$8 sps:$4 sm:$0xff]   ;;  %v2638_v32 = vsel %vm2629_vm8, %v2636_v51, %v2637_v53  ;;  %v8368_v56 = vcombine.low %v2185_v44, %v12862_v61  ;;  %v2744_v61 = vshrl.u32 %v12865_v14, 16 }
 0x3b5   :  { %4375 = vmatmul.mubr.bf16.gmra.mrb[20].mxu1 %v8391_v20  ;;  %v2880_v20 = vunpack.c.h.b16 %v2734_v50  ;;  %v2736_v49 = vshrl.u32 %v8368_v56, 16  ;;  %v2739_v11 = vshll.u32 %v8368_v56, 16  ;;  %v2746_v21 = vrot.slane %v2744_v61, 2 }
 0x3b6   :  { %4384 = vmatprep.mubr.bf16.mxu1 %v3110_v58  ;;  %4460 = vmatpush1.bf16.msra.mxu1 %v9659_v33  ;;  %v2641_v33 = vsel %vm2629_vm8, %v2639_v37, %v2640_v12  ;;  %v2642_v54 = vrot.slane %v8368_v56, 2  ;;  %v17377_v37 = vld [vmem:[#allocation36_spill] sm:$0xff] }
 0x3b7   :  { %4461 = vmatprep.subr.bf16.mxu1 %v9667_v52  ;;  %v8370_v52 = vcombine.low %v2189_v28, %v12875_v3  ;;  %v8402_v58 = vcombine.low %v2637_v53, %v2641_v33  ;;  %v3135_v4 = vpack.c.b16 %v2887_v41, %v2880_v20  ;;  %v2738_v40 = vrot.slane %v2736_v49, 2 }
 0x3b8   :  { %v2741_v2 = vrot.slane %v2739_v11, 3  ;;  %v2879_v18 = vunpack.c.h.b16 %v2641_v33  ;;  %v2764_v3 = vshll.u32 %v12878_v29, 16  ;;  %v2750_v14 = vor.u32 %v2749_v25, %v2746_v21 }
 0x3b9   :  { %v2753_v30 = vshrl.u32 %v8370_v52, 16 }
 0x3ba   :  { %4462 = vmatpush1.bf16.msra.mxu1 %v9665_v63  ;;  %v2756_v63 = vshll.u32 %v8370_v52, 16  ;;  %v2742_v62 = vor.u32 %v2741_v2, %v2738_v40  ;;  %v2766_v45 = vrot.slane %v2764_v3, 3 }
 0x3bb   :  { %4463 = vmatprep.subr.bf16.mxu1 %v9671_v10  ;;  %v2886_v10 = vunpack.c.l.b16 %v2640_v12  ;;  %v2755_v35 = vrot.slane %v2753_v30, 2 }
 0x3bc   :  { %v2758_v1 = vrot.slane %v2756_v63, 3  ;;  %v2751_v6 = vsel %vm2666_vm6, %v2742_v62, %v2750_v14 }
 0x3bd   :  { %4385 = vmatmul.mubr.bf16.gmra.mrb[24].mxu1 %v3109_v22  ;;  %v3134_v39 = vpack.c.b16 %v2886_v10, %v2879_v18  ;;  %v2763_v22 = vrot.slane %v2761_v26, 2 }
 0x3be   :  { %4394 = vmatprep.mubr.bf16.mxu1 %v2717_v17  ;;  %4464 = vmatpush1.bf16.msra.mxu1 %v9669_v15  ;;  %v2188_v15 = vld [vmem:[#allocation2 + $0x60] sm:$0x3]  ;;  %v2759_v13 = vor.u32 %v2758_v1, %v2755_v35 }
 0x3bf   :  { %4465 = vmatprep.subr.bf16.mxu1 %v9676_v34  ;;  %v8369_v34 = vcombine.low %v17374_v55, %v2188_v15  ;;  %v2767_v17 = vor.u32 %v2766_v45, %v2763_v22 }
 0x3c1   :  { %v2768_v29 = vsel %vm2666_vm6, %v2759_v13, %v2767_v17  ;;  %v2643_v16 = vrot.slane %v8369_v34, 2  ;;  %v2929_v46 = vunpack.c.l.b16 %v2767_v17  ;;  %vm17399_vm6 = vmmov %vm17385_vm0 }
 0x3c2   :  { %4466 = vmatpush1.bf16.msra.mxu1 %v9674_v9  ;;  %v8371_v9 = vcombine.low %v12853_v43, %v2192_v57  ;;  %v8414_v0 = vcombine.low %v2750_v14, %v2768_v29  ;;  %v2922_v53 = vunpack.c.h.b16 %v2768_v29  ;;  %v17375_v43 = vmov 0  }
 0x3c3   :  { %4467 = vmatprep.subr.bf16.mxu1 %v9682_v23  ;;  %v2644_v7 = vsel %vm2629_vm8, %v2642_v54, %v2643_v16  ;;  %v2645_v23 = vrot.slane %v8370_v52, 2 }
 0x3c4   :  { %v2646_v51 = vrot.slane %v8371_v9, 2  ;;  %v3160_v44 = vpack.c.b16 %v2929_v46, %v2922_v53 }
 0x3c5   :  { %4395 = vmatmul.mubr.bf16.gmra.mrb[28].mxu1 %v2638_v32 }
 0x3c6   :  { %4404 = vmatprep.mubr.bf16.mxu1 %v8403_v19  ;;  %4468 = vmatpush1.bf16.msra.mxu1 %v9680_v60  ;;  %v2647_v50 = vsel %vm2629_vm8, %v2645_v23, %v2646_v51  ;;  %v17376_v19 = vld [vmem:[#allocation35_spill] sm:$0xff]  ;;  %vm17400_vm8 = vmmov %vm17385_vm0 }
 0x3c7   :  { %4469 = vmatprep.subr.bf16.mxu1 %v9686_v48  ;;  %v8413_v42 = vcombine.low %v2643_v16, %v2647_v50  ;;  %v2921_v60 = vunpack.c.h.b16 %v2647_v50  ;;  %v2928_v48 = vunpack.c.l.b16 %v2646_v51 }
 0x3c9   :  { %v3159_v32 = vpack.c.b16 %v2928_v48, %v2921_v60 }
 0x3ca   :  { %4470 = vmatpush1.bf16.msra.mxu1 %v9684_v5 }
 0x3cd   :  { %4405 = vmatmul.mubr.bf16.gmra.mrb[32].mxu1 %v8402_v58 }
 0x3ce   :  { %4414 = vmatprep.mubr.bf16.mxu1 %v3135_v4 }
 0x3d5   :  { %4415 = vmatmul.mubr.bf16.gmra.mrb[36].mxu1 %v3134_v39 }
 0x3d6   :  { %4424 = vmatprep.mubr.bf16.mxu1 %v2751_v6 }
 0x3dd   :  { %4425 = vmatmul.mubr.bf16.gmra.mrb[40].mxu1 %v2644_v7 }
 0x3de   :  { %4434 = vmatprep.mubr.bf16.mxu1 %v8414_v0 }
 0x3e5   :  { %4435 = vmatmul.mubr.bf16.gmra.mrb[44].mxu1 %v8413_v42 }
 0x3e6   :  { %4444 = vmatprep.mubr.bf16.mxu1 %v3160_v44 }
 0x3ed   :  { %4445 = vmatmul.mubr.bf16.gmra.mrb[48].mxu1 %v3159_v32 }
 0x3ee   :  { %4487 = vmatprep.mubr.bf16.mxu1 %v17375_v43 }
 0x3f5   :  { %4488 = vmatmul.mubr.bf16.vlgmr.msra.gmra.mrb[16].mxu1 %v17376_v19 }
 0x3f6   :  { %4497 = vmatprep.mubr.bf16.mxu1 %v17375_v43 }
 0x3fd   :  { %4498 = vmatmul.mubr.bf16.gmra.mrb[20].mxu1 %v12884_v36  ;;  %v3077_v36 = vlaneseq }
 0x3fe   :  { %4507 = vmatprep.mubr.bf16.mxu1 %v17375_v43 }
 0x405   :  { %4508 = vmatmul.mubr.bf16.gmra.mrb[24].mxu1 %v12898_v38  ;;  %v3078_v38 = vshrl.u32 %v3077_v36, 7 }
 0x406   :  { %4517 = vmatprep.mubr.bf16.mxu1 %v17375_v43 }
 0x407   :  { %v13217_v56 = vsub.s32 0, %v3078_v38 }
 0x409   :  { %17378 = vst [vmem:[#allocation38_spill] sm:$0xff] %v13217_v56 }
 0x40d   :  { %4518 = vmatmul.mubr.bf16.gmra.mrb[28].mxu1 %v17377_v37 }
 0x40e   :  { %4527 = vmatprep.mubr.bf16.mxu1 %v17375_v43 }
 0x415   :  { %4528 = vmatmul.mubr.bf16.gmra.mrb[32].mxu1 %v12900_v47  ;;  %v3075_v47 = vld [vmem:[%s16869_s7] sm:$0x3] }
 0x416   :  { %4537 = vmatprep.mubr.bf16.mxu1 %v17375_v43 }
 0x41d   :  { %4538 = vmatmul.mubr.bf16.gmra.mrb[36].mxu1 %v12907_v24  ;;  %v13222_v24 = vsub.s32 1, %v3078_v38 }
 0x41e   :  { %4547 = vmatprep.mubr.bf16.mxu1 %v17375_v43 }
 0x41f   :  { %17379 = vst [vmem:[#allocation39_spill] sm:$0xff] %v13222_v24  ;;  %v13228_v12 = vrot.slane %v3075_v47, %v13222_v24 }
 0x425   :  { %4548 = vmatmul.mubr.bf16.gmra.mrb[40].mxu1 %v12904_v8  ;;  %v13225_v8 = vrot.slane %v3075_v47, %v13217_v56 }
 0x426   :  { %4557 = vmatprep.mubr.bf16.mxu1 %v17375_v43 }
 0x42d   :  { %4558 = vmatmul.mubr.bf16.gmra.mrb[44].mxu1 %v12919_v27 }
 0x42e   :  { %4567 = vmatprep.mubr.bf16.mxu1 %v17375_v43 }
 0x435   :  { %4568 = vmatmul.mubr.bf16.gmra.mrb[48].mxu1 %v12921_v59 }
 0x4c8   :  { %v4489_v27 = vpop.f32.mrb[16].mxu1 }
 0x4c9   :  { %v13231_v28 = vadd.f32 %v4489_v27, %v13225_v8  ;;  %v4491_v59 = vpop.f32.mrb[17].mxu1 }
 0x4ca   :  { %v13234_v5 = vadd.f32 %v4491_v59, %v13228_v12  ;;  %v4493_v33 = vpop.f32.mrb[18].mxu1 }
 0x4cb   :  { %v13237_v20 = vadd.f32 %v4493_v33, %v13225_v8  ;;  %v4495_v49 = vpop.f32.mrb[19].mxu1  ;;  %v4639_v52 = vrot.slane %v13231_v28, 6  ;;  %v4579_v21 = vsel %vm4578_vm13, %v13231_v28, 0.0 }
 0x4cc   :  { %v13240_v11 = vadd.f32 %v4495_v49, %v13228_v12  ;;  %v4642_v58 = vrot.slane %v13234_v5, 6  ;;  %v4596_v26 = vsel %vm4578_vm13, %v13234_v5, 0.0 }
 0x4cd   :  { %v4640_v41 = vrot.slane %v13237_v20, 6  ;;  %v4723_v3 = vrot.slane %v13237_v20, 4 }
 0x4ce   :  { %v4643_v61 = vrot.slane %v13240_v11, 6  ;;  %v4724_v35 = vrot.slane %v13240_v11, 4 }
 0x4cf   :  { %v4641_v31 = vsel %vm17380_vm4, %v4639_v52, %v4640_v41  ;;  %v4747_v6 = vsel %vm4578_vm13, %v4723_v3, 0.0  ;;  %vm17401_vm4 = vmmov %vm17385_vm0 }
 0x4d0   :  { %v4644_v4 = vsel %vm17381_vm3, %v4642_v58, %v4643_v61  ;;  %v4499_v40 = vpop.f32.mrb[20].mxu1  ;;  %v4687_v45 = vsel %vm4578_vm13, %v4641_v31, 0.0  ;;  %v4764_v57 = vsel %vm4578_vm13, %v4724_v35, 0.0  ;;  %vm17402_vm3 = vmmov %vm17385_vm0 }
 0x4d1   :  { %v4501_v2 = vpop.f32.mrb[21].mxu1  ;;  %v13260_v10 = vadd.f32 %v4499_v40, %v13225_v8  ;;  %v4704_v17 = vsel %vm4578_vm13, %v4644_v4, 0.0 }
 0x4d2   :  { %v4503_v30 = vpop.f32.mrb[22].mxu1  ;;  %v13266_v1 = vadd.f32 %v4501_v2, %v13228_v12 }
 0x4d3   :  { %v13249_v63 = vadd.f32 %v4503_v30, %v13225_v8  ;;  %v4505_v18 = vpop.f32.mrb[23].mxu1  ;;  %v4795_v13 = vrot.slane %v13260_v10, 2 }
 0x4d4   :  { %v13254_v25 = vadd.f32 %v4505_v18, %v13228_v12  ;;  %17382 = vst [vmem:[#allocation40_spill] sm:$0xff] %v13266_v1  ;;  %v4796_v54 = vrot.slane %v13266_v1, 2 }
 0x4d5   :  { %v4580_v62 = vsel %vm4578_vm13, %v13249_v63, 0.0  ;;  %v4645_v9 = vrot.slane %v13249_v63, 6  ;;  %v4819_v44 = vsel %vm4578_vm13, %v4795_v13, 0.0 }
 0x4d6   :  { %v4581_v39 = vadd.f32 %v4580_v62, %v4579_v21  ;;  %v4597_v14 = vsel %vm4578_vm13, %v13254_v25, 0.0  ;;  %v4648_v50 = vrot.slane %v13254_v25, 6  ;;  %v4836_v31 = vsel %vm4578_vm13, %v4796_v54, 0.0 }
 0x4d7   :  { %v4598_v15 = vadd.f32 %v4597_v14, %v4596_v26 }
 0x4d8   :  { %v4509_v22 = vpop.f32.mrb[24].mxu1 }
 0x4d9   :  { %v13274_v55 = vadd.f32 %v4509_v22, %v13225_v8  ;;  %v4511_v34 = vpop.f32.mrb[25].mxu1 }
 0x4da   :  { %v13280_v29 = vadd.f32 %v4511_v34, %v13228_v12  ;;  %v4513_v16 = vpop.f32.mrb[26].mxu1 }
 0x4db   :  { %v4646_v7 = vrot.slane %v13274_v55, 6  ;;  %v4725_v0 = vrot.slane %v13274_v55, 4  ;;  %v13286_v23 = vadd.f32 %v4513_v16, %v13225_v8  ;;  %v4515_v51 = vpop.f32.mrb[27].mxu1 }
 0x4dc   :  { %v4649_v53 = vrot.slane %v13280_v29, 6  ;;  %v4726_v46 = vrot.slane %v13280_v29, 4  ;;  %v13292_v42 = vadd.f32 %v4515_v51, %v13228_v12 }
 0x4dd   :  { %v4647_v60 = vsel %vm17384_vm9, %v4645_v9, %v4646_v7  ;;  %v4748_v48 = vsel %vm4578_vm13, %v4725_v0, 0.0  ;;  %v4797_v32 = vrot.slane %v13286_v23, 2  ;;  %vm17403_vm9 = vmmov %vm17385_vm0 }
 0x4de   :  { %17383 = vst [vmem:[#allocation41_spill] sm:$0xff] %v13292_v42  ;;  %v4688_v43 = vsel %vm4578_vm13, %v4647_v60, 0.0  ;;  %v4749_v19 = vadd.f32 %v4748_v48, %v4747_v6  ;;  %v4650_v37 = vsel %vm17385_vm0, %v4648_v50, %v4649_v53  ;;  %v4765_v36 = vsel %vm4578_vm13, %v4726_v46, 0.0 }
 0x4df   :  { %v4689_v38 = vadd.f32 %v4688_v43, %v4687_v45  ;;  %v4705_v47 = vsel %vm4578_vm13, %v4650_v37, 0.0  ;;  %v4766_v27 = vadd.f32 %v4765_v36, %v4764_v57  ;;  %v4820_v59 = vsel %vm4578_vm13, %v4797_v32, 0.0 }
 0x4e0   :  { %v4706_v33 = vadd.f32 %v4705_v47, %v4704_v17  ;;  %v4821_v49 = vadd.f32 %v4820_v59, %v4819_v44  ;;  %v4798_v52 = vrot.slane %v13292_v42, 2  ;;  %v4519_v41 = vpop.f32.mrb[28].mxu1 }
 0x4e1   :  { %v13305_v58 = vadd.f32 %v4519_v41, %v13225_v8  ;;  %v4521_v61 = vpop.f32.mrb[29].mxu1 }
 0x4e2   :  { %v4837_v4 = vsel %vm4578_vm13, %v4798_v52, 0.0  ;;  %v13310_v40 = vadd.f32 %v4521_v61, %v13228_v12  ;;  %v4523_v2 = vpop.f32.mrb[30].mxu1 }
 0x4e3   :  { %v4838_v30 = vadd.f32 %v4837_v4, %v4836_v31  ;;  %v4582_v18 = vsel %vm4578_vm13, %v13305_v58, 0.0  ;;  %v13315_v21 = vadd.f32 %v4523_v2, %v13225_v8  ;;  %v4525_v26 = vpop.f32.mrb[31].mxu1  ;;  %v4651_v14 = vrot.slane %v13305_v58, 6 }
 0x4e4   :  { %v4583_v3 = vadd.f32 %v4582_v18, %v4581_v39  ;;  %v4599_v62 = vsel %vm4578_vm13, %v13310_v40, 0.0  ;;  %v13320_v35 = vadd.f32 %v4525_v26, %v13228_v12  ;;  %v4654_v13 = vrot.slane %v13310_v40, 6 }
 0x4e5   :  { %v4600_v22 = vadd.f32 %v4599_v62, %v4598_v15  ;;  %v4652_v45 = vrot.slane %v13315_v21, 6  ;;  %v4727_v6 = vrot.slane %v13315_v21, 4 }
 0x4e6   :  { %v4655_v34 = vrot.slane %v13320_v35, 6  ;;  %v4728_v17 = vrot.slane %v13320_v35, 4 }
 0x4e7   :  { %v4653_v39 = vsel %vm17386_vm5, %v4651_v14, %v4652_v45  ;;  %v4750_v57 = vsel %vm4578_vm13, %v4727_v6, 0.0  ;;  %vm17405_vm5 = vmmov %vm17385_vm0 }
 0x4e8   :  { %v4690_v54 = vsel %vm4578_vm13, %v4653_v39, 0.0  ;;  %v4751_v16 = vadd.f32 %v4750_v57, %v4749_v19  ;;  %v4656_v9 = vsel %vm17387_vm15, %v4654_v13, %v4655_v34  ;;  %v4767_v15 = vsel %vm4578_vm13, %v4728_v17, 0.0  ;;  %v4529_v7 = vpop.f32.mrb[32].mxu1  ;;  %vm17406_vm15 = vmmov %vm17385_vm0 }
 0x4e9   :  { %v4691_v0 = vadd.f32 %v4690_v54, %v4689_v38  ;;  %v4707_v51 = vsel %vm4578_vm13, %v4656_v9, 0.0  ;;  %v4768_v50 = vadd.f32 %v4767_v15, %v4766_v27  ;;  %v13335_v53 = vadd.f32 %v4529_v7, %v13225_v8  ;;  %v4531_v46 = vpop.f32.mrb[33].mxu1 }
 0x4ea   :  { %v4708_v44 = vadd.f32 %v4707_v51, %v4706_v33  ;;  %v13338_v60 = vadd.f32 %v4531_v46, %v13228_v12  ;;  %v4533_v48 = vpop.f32.mrb[34].mxu1 }
 0x4eb   :  { %v4799_v32 = vrot.slane %v13335_v53, 2  ;;  %v13342_v43 = vadd.f32 %v4533_v48, %v13225_v8  ;;  %v4535_v19 = vpop.f32.mrb[35].mxu1 }
 0x4ec   :  { %17388 = vst [vmem:[#allocation42_spill] sm:$0xff] %v13338_v60  ;;  %v4800_v37 = vrot.slane %v13338_v60, 2  ;;  %v13346_v36 = vadd.f32 %v4535_v19, %v13228_v12 }
 0x4ed   :  { %v4822_v38 = vsel %vm4578_vm13, %v4799_v32, 0.0  ;;  %v4584_v47 = vsel %vm4578_vm13, %v13342_v43, 0.0  ;;  %v4657_v62 = vrot.slane %v13342_v43, 6 }
 0x4ee   :  { %v4823_v27 = vadd.f32 %v4822_v38, %v4821_v49  ;;  %v4839_v59 = vsel %vm4578_vm13, %v4800_v37, 0.0  ;;  %v4585_v33 = vadd.f32 %v4584_v47, %v4583_v3  ;;  %v4601_v52 = vsel %vm4578_vm13, %v13346_v36, 0.0 }
 0x4ef   :  { %v4840_v41 = vadd.f32 %v4839_v59, %v4838_v30  ;;  %v4602_v61 = vadd.f32 %v4601_v52, %v4600_v22  ;;  %v4660_v22 = vrot.slane %v13346_v36, 6 }
 0x4f0   :  { %v4539_v31 = vpop.f32.mrb[36].mxu1 }
 0x4f1   :  { %v13355_v4 = vadd.f32 %v4539_v31, %v13225_v8  ;;  %v4541_v2 = vpop.f32.mrb[37].mxu1 }
 0x4f2   :  { %v13358_v18 = vadd.f32 %v4541_v2, %v13228_v12  ;;  %v4543_v26 = vpop.f32.mrb[38].mxu1 }
 0x4f3   :  { %v4658_v49 = vrot.slane %v13355_v4, 6  ;;  %v4729_v3 = vrot.slane %v13355_v4, 4  ;;  %v13364_v14 = vadd.f32 %v4543_v26, %v13225_v8  ;;  %v4545_v30 = vpop.f32.mrb[39].mxu1 }
 0x4f4   :  { %v4661_v45 = vrot.slane %v13358_v18, 6  ;;  %v4730_v6 = vrot.slane %v13358_v18, 4  ;;  %v13370_v13 = vadd.f32 %v4545_v30, %v13228_v12 }
 0x4f5   :  { %v4659_v34 = vsel %vm17390_vm1, %v4657_v62, %v4658_v49  ;;  %v4752_v17 = vsel %vm4578_vm13, %v4729_v3, 0.0  ;;  %v4801_v39 = vrot.slane %v13364_v14, 2  ;;  %vm17407_vm1 = vmmov %vm17385_vm0 }
 0x4f6   :  { %17389 = vst [vmem:[#allocation43_spill] sm:$0xff] %v13370_v13  ;;  %v4692_v57 = vsel %vm4578_vm13, %v4659_v34, 0.0  ;;  %v4753_v54 = vadd.f32 %v4752_v17, %v4751_v16  ;;  %v4662_v9 = vsel %vm17391_vm2, %v4660_v22, %v4661_v45  ;;  %v4769_v15 = vsel %vm4578_vm13, %v4730_v6, 0.0  ;;  %vm17408_vm2 = vmmov %vm17385_vm0 }
 0x4f7   :  { %v4693_v7 = vadd.f32 %v4692_v57, %v4691_v0  ;;  %v4709_v51 = vsel %vm4578_vm13, %v4662_v9, 0.0  ;;  %v4770_v46 = vadd.f32 %v4769_v15, %v4768_v50  ;;  %v4824_v48 = vsel %vm4578_vm13, %v4801_v39, 0.0 }
 0x4f8   :  { %v4710_v32 = vadd.f32 %v4709_v51, %v4708_v44  ;;  %v4825_v19 = vadd.f32 %v4824_v48, %v4823_v27  ;;  %v4802_v37 = vrot.slane %v13370_v13, 2  ;;  %v4549_v38 = vpop.f32.mrb[40].mxu1 }
 0x4f9   :  { %v13382_v47 = vadd.f32 %v4549_v38, %v13225_v8  ;;  %v4551_v59 = vpop.f32.mrb[41].mxu1 }
 0x4fa   :  { %v4841_v16 = vsel %vm4578_vm13, %v4802_v37, 0.0  ;;  %v13386_v52 = vadd.f32 %v4551_v59, %v13228_v12  ;;  %v4553_v0 = vpop.f32.mrb[42].mxu1 }
 0x4fb   :  { %v4842_v31 = vadd.f32 %v4841_v16, %v4840_v41  ;;  %v4586_v50 = vsel %vm4578_vm13, %v13382_v47, 0.0  ;;  %v13391_v44 = vadd.f32 %v4553_v0, %v13225_v8  ;;  %v4555_v27 = vpop.f32.mrb[43].mxu1  ;;  %v4663_v49 = vrot.slane %v13382_v47, 6 }
 0x4fc   :  { %v4587_v2 = vadd.f32 %v4586_v50, %v4585_v33  ;;  %v4603_v26 = vsel %vm4578_vm13, %v13386_v52, 0.0  ;;  %v13396_v62 = vadd.f32 %v4555_v27, %v13228_v12  ;;  %v4666_v22 = vrot.slane %v13386_v52, 6 }
 0x4fd   :  { %v4604_v3 = vadd.f32 %v4603_v26, %v4602_v61  ;;  %v4664_v30 = vrot.slane %v13391_v44, 6  ;;  %v4731_v41 = vrot.slane %v13391_v44, 4 }
 0x4fe   :  { %v4667_v45 = vrot.slane %v13396_v62, 6  ;;  %v4732_v6 = vrot.slane %v13396_v62, 4 }
 0x4ff   :  { %v4665_v33 = vsel %vm17392_vm10, %v4663_v49, %v4664_v30  ;;  %v4754_v34 = vsel %vm4578_vm13, %v4731_v41, 0.0  ;;  %vm17409_vm10 = vmmov %vm17385_vm0 }
 0x500   :  { %v4694_v17 = vsel %vm4578_vm13, %v4665_v33, 0.0  ;;  %v4755_v39 = vadd.f32 %v4754_v34, %v4753_v54  ;;  %v4668_v57 = vsel %vm17393_vm11, %v4666_v22, %v4667_v45  ;;  %v4771_v61 = vsel %vm4578_vm13, %v4732_v6, 0.0  ;;  %v4559_v9 = vpop.f32.mrb[44].mxu1  ;;  %vm17410_vm11 = vmmov %vm17385_vm0 }
 0x501   :  { %v4695_v15 = vadd.f32 %v4694_v17, %v4693_v7  ;;  %v4711_v51 = vsel %vm4578_vm13, %v4668_v57, 0.0  ;;  %v4772_v48 = vadd.f32 %v4771_v61, %v4770_v46  ;;  %v13411_v37 = vadd.f32 %v4559_v9, %v13225_v8  ;;  %v4561_v38 = vpop.f32.mrb[45].mxu1 }
 0x502   :  { %v4712_v59 = vadd.f32 %v4711_v51, %v4710_v32  ;;  %v13414_v16 = vadd.f32 %v4561_v38, %v13228_v12  ;;  %v4563_v0 = vpop.f32.mrb[46].mxu1 }
 0x503   :  { %v4803_v54 = vrot.slane %v13411_v37, 2  ;;  %v13418_v50 = vadd.f32 %v4563_v0, %v13225_v8  ;;  %v4565_v27 = vpop.f32.mrb[47].mxu1 }
 0x504   :  { %17394 = vst [vmem:[#allocation44_spill] sm:$0xff] %v13414_v16  ;;  %v4804_v7 = vrot.slane %v13414_v16, 2  ;;  %v13422_v26 = vadd.f32 %v4565_v27, %v13228_v12 }
 0x505   :  { %v4826_v46 = vsel %vm4578_vm13, %v4803_v54, 0.0  ;;  %v4588_v32 = vsel %vm4578_vm13, %v13418_v50, 0.0  ;;  %v4669_v51 = vrot.slane %v13418_v50, 6 }
 0x506   :  { %v4827_v49 = vadd.f32 %v4826_v46, %v4825_v19  ;;  %v4843_v30 = vsel %vm4578_vm13, %v4804_v7, 0.0  ;;  %v4589_v41 = vadd.f32 %v4588_v32, %v4587_v2  ;;  %v4605_v22 = vsel %vm4578_vm13, %v13422_v26, 0.0 }
 0x507   :  { %v4844_v45 = vadd.f32 %v4843_v30, %v4842_v31  ;;  %v4606_v6 = vadd.f32 %v4605_v22, %v4604_v3  ;;  %v4672_v27 = vrot.slane %v13422_v26, 6 }
 0x508   :  { %v4590_v33 = vrot.slane %v4589_v41, 4  ;;  %v4569_v34 = vpop.f32.mrb[48].mxu1 }
 0x509   :  { %v4607_v17 = vrot.slane %v4606_v6, 4  ;;  %v13431_v57 = vadd.f32 %v4569_v34, %v13225_v8  ;;  %v4571_v61 = vpop.f32.mrb[49].mxu1 }
 0x50a   :  { %v4591_v9 = vadd.f32 %v4590_v33, %v4589_v41  ;;  %v13435_v19 = vadd.f32 %v4571_v61, %v13228_v12  ;;  %v4573_v38 = vpop.f32.mrb[50].mxu1 }
 0x50b   :  { %v4608_v2 = vadd.f32 %v4607_v17, %v4606_v6  ;;  %v4670_v0 = vrot.slane %v13431_v57, 6  ;;  %v4733_v31 = vrot.slane %v13431_v57, 4  ;;  %v13440_v3 = vadd.f32 %v4573_v38, %v13225_v8  ;;  %v4575_v54 = vpop.f32.mrb[51].mxu1 }
 0x50c   :  { %17395 = vst [vmem:[#allocation45_spill] sm:$0xff] %v13435_v19  ;;  %v4673_v7 = vrot.slane %v13435_v19, 6  ;;  %v4734_v46 = vrot.slane %v13435_v19, 4  ;;  %v13449_v22 = vadd.f32 %v4575_v54, %v13228_v12  ;;  %v4592_v6 = vrot.slane %v4591_v9, 2 }
 0x50d   :  { %v4671_v32 = vsel %vm17396_vm12, %v4669_v51, %v4670_v0  ;;  %v4756_v30 = vsel %vm4578_vm13, %v4733_v31, 0.0  ;;  %v4805_v41 = vrot.slane %v13440_v3, 2  ;;  %v4609_v17 = vrot.slane %v4608_v2, 2 }
 0x50e   :  { %17397 = vst [vmem:[#allocation46_spill] sm:$0xff] %v13449_v22  ;;  %v4696_v8 = vsel %vm4578_vm13, %v4671_v32, 0.0  ;;  %v4757_v33 = vadd.f32 %v4756_v30, %v4755_v39  ;;  %v4674_v34 = vsel %vm17398_vm14, %v4672_v27, %v4673_v7  ;;  %v4773_v24 = vsel %vm4578_vm13, %v4734_v46, 0.0 }
 0x50f   :  { %v4697_v61 = vadd.f32 %v4696_v8, %v4695_v15  ;;  %v4713_v38 = vsel %vm4578_vm13, %v4674_v34, 0.0  ;;  %v4774_v31 = vadd.f32 %v4773_v24, %v4772_v48  ;;  %v4828_v16 = vsel %vm4578_vm13, %v4805_v41, 0.0 }
 0x510   :  { %v4758_v51 = vrot.slane %v4757_v33, 4  ;;  %v4714_v0 = vadd.f32 %v4713_v38, %v4712_v59  ;;  %v4806_v12 = vrot.slane %v13449_v22, 2  ;;  %v4593_v54 = vadd.f32 %v4592_v6, %v4591_v9 }
 0x511   :  { %v4698_v56 = vrot.slane %v4697_v61, 4  ;;  %v4775_v39 = vrot.slane %v4774_v31, 4  ;;  %v4610_v30 = vadd.f32 %v4609_v17, %v4608_v2  ;;  %v4829_v7 = vadd.f32 %v4828_v16, %v4827_v49 }
 0x512   :  { %v4759_v13 = vadd.f32 %v4758_v51, %v4757_v33  ;;  %v4715_v32 = vrot.slane %v4714_v0, 4  ;;  %v4845_v15 = vsel %vm4578_vm13, %v4806_v12, 0.0  ;;  %v4594_v22 = vrot.slane %v4593_v54, 1 }
 0x513   :  { %v4699_v27 = vadd.f32 %v4698_v56, %v4697_v61  ;;  %v4776_v46 = vadd.f32 %v4775_v39, %v4774_v31  ;;  %v4846_v60 = vadd.f32 %v4845_v15, %v4844_v45  ;;  %v4830_v24 = vrot.slane %v4829_v7, 4 }
 0x514   :  { %v4760_v8 = vrot.slane %v4759_v13, 2  ;;  %v4716_v34 = vadd.f32 %v4715_v32, %v4714_v0  ;;  %v4611_v33 = vrot.slane %v4610_v30, 1  ;;  %v4595_v45 = vadd.f32 %v4594_v22, %v4593_v54 }
 0x515   :  { %v4700_v59 = vrot.slane %v4699_v27, 2  ;;  %v4777_v41 = vrot.slane %v4776_v46, 2  ;;  %v4847_v42 = vrot.slane %v4846_v60, 4  ;;  %v4831_v6 = vadd.f32 %v4830_v24, %v4829_v7 }
 0x516   :  { %v4761_v48 = vadd.f32 %v4760_v8, %v4759_v13  ;;  %v4717_v38 = vrot.slane %v4716_v34, 2  ;;  %v4612_v13 = vadd.f32 %v4611_v33, %v4610_v30 }
 0x517   :  { %v4701_v9 = vadd.f32 %v4700_v59, %v4699_v27  ;;  %v4778_v2 = vadd.f32 %v4777_v41, %v4776_v46  ;;  %v4848_v56 = vadd.f32 %v4847_v42, %v4846_v60  ;;  %v4832_v17 = vrot.slane %v4831_v6, 2 }
 0x518   :  { %v4718_v51 = vadd.f32 %v4717_v38, %v4716_v34  ;;  %v4762_v49 = vrot.slane %v4761_v48, 1 }
 0x519   :  { %v4702_v16 = vrot.slane %v4701_v9, 1  ;;  %v4779_v0 = vrot.slane %v4778_v2, 1  ;;  %v4849_v31 = vrot.slane %v4848_v56, 2  ;;  %v4833_v32 = vadd.f32 %v4832_v17, %v4831_v6 }
 0x51a   :  { %v4719_v61 = vrot.slane %v4718_v51, 1  ;;  %v4763_v8 = vadd.f32 %v4762_v49, %v4761_v48 }
 0x51b   :  { %v4703_v12 = vadd.f32 %v4702_v16, %v4701_v9  ;;  %v4850_v15 = vadd.f32 %v4849_v31, %v4848_v56  ;;  %v4834_v27 = vrot.slane %v4833_v32, 1  ;;  %v4780_v7 = vadd.f32 %v4779_v0, %v4778_v2  ;;  %v9693_v2 = vld [vmem:[%s16870_s10 + $0x4] ss:$8 sps:$4 sm:$0xff]  }
 0x51c   :  { %v4720_v39 = vadd.f32 %v4719_v61, %v4718_v51  ;;  %6553 = vmatprep.subr.bf16.mxu0 %v9693_v2  ;;  %7132 = vmatprep.subr.bf16.mxu1 %v9693_v2 }
 0x51d   :  { %v4721_v1 = vadd.f32 %v4703_v12, %v4595_v45  ;;  %v4851_v34 = vrot.slane %v4850_v15, 1  ;;  %v4835_v42 = vadd.f32 %v4834_v27, %v4833_v32 }
 0x51e   :  { %v4722_v59 = vadd.f32 %v4720_v39, %v4612_v13 }
 0x51f   :  { %v4781_v46 = vadd.f32 %v4763_v8, %v4721_v1  ;;  %v4852_v24 = vadd.f32 %v4851_v34, %v4850_v15  ;;  %v9696_v8 = vld [vmem:[%s16870_s10 + $0x14] ss:$8 sps:$4 sm:$0xff]  }
 0x520   :  { %v4782_v60 = vadd.f32 %v4780_v7, %v4722_v59 }
 0x521   :  { %v4853_v38 = vadd.f32 %v4835_v42, %v4781_v46  ;;  %v9698_v46 = vld [vmem:[%s16870_s10 + $0x10] ss:$8 sps:$4 sm:$0xff]  }
 0x522   :  { %v4854_v41 = vadd.f32 %v4852_v24, %v4782_v60 }
 0x523   :  { %v13458_v19 = vmul.f32 0.010416667, %v4853_v38 }
 0x524   :  { %v13460_v22 = vmul.f32 0.010416667, %v4854_v41 }
 0x525   :  { %v13464_v54 = vsub.f32 %v13231_v28, %v13458_v19  ;;  %v13468_v30 = vsub.f32 %v13249_v63, %v13458_v19  ;;  %v13472_v1 = vsub.f32 %v13305_v58, %v13458_v19  ;;  %v13476_v48 = vsub.f32 %v13342_v43, %v13458_v19 }
 0x526   :  { %v13480_v9 = vsub.f32 %v13382_v47, %v13458_v19  ;;  %v13484_v28 = vsub.f32 %v13418_v50, %v13458_v19  ;;  %v13488_v63 = vsub.f32 %v13237_v20, %v13458_v19  ;;  %v13492_v58 = vsub.f32 %v13274_v55, %v13458_v19 }
 0x527   :  { %v4870_v43 = vmul.f32 %v13464_v54, %v13464_v54  ;;  %v4872_v6 = vmul.f32 %v13468_v30, %v13468_v30  ;;  %v4874_v47 = vmul.f32 %v13472_v1, %v13472_v1  ;;  %v4876_v50 = vmul.f32 %v13476_v48, %v13476_v48 }
 0x528   :  { %v4878_v20 = vmul.f32 %v13480_v9, %v13480_v9  ;;  %v4880_v33 = vmul.f32 %v13484_v28, %v13484_v28  ;;  %v13508_v55 = vsub.f32 %v13315_v21, %v13458_v19  ;;  %v13512_v51 = vsub.f32 %v13355_v4, %v13458_v19  ;;  %v9695_v21 = vld [vmem:[%s16870_s10] ss:$8 sps:$4 sm:$0xff]  }
 0x529   :  { %v4882_v56 = vsel %vm4578_vm13, %v4870_v43, 0.0  ;;  %v4883_v16 = vsel %vm4578_vm13, %v4872_v6, 0.0  ;;  %v4885_v49 = vsel %vm4578_vm13, %v4874_v47, 0.0  ;;  %v4887_v17 = vsel %vm4578_vm13, %v4876_v50, 0.0  ;;  %6554 = vmatpush1.bf16.msra.mxu0 %v9695_v21  ;;  %7133 = vmatpush1.bf16.msra.mxu1 %v9695_v21 }
 0x52a   :  { %v4884_v61 = vadd.f32 %v4883_v16, %v4882_v56  ;;  %v4889_v4 = vsel %vm4578_vm13, %v4878_v20, 0.0  ;;  %v4891_v0 = vsel %vm4578_vm13, %v4880_v33, 0.0  ;;  %v13528_v31 = vsub.f32 %v13391_v44, %v13458_v19  ;;  %6555 = vmatprep.subr.bf16.mxu0 %v9696_v8  ;;  %7134 = vmatprep.subr.bf16.mxu1 %v9696_v8  ;;  %v9699_v56 = vld [vmem:[%s16870_s10 + $0x24] ss:$8 sps:$4 sm:$0xff]  }
 0x52b   :  { %v13532_v45 = vsub.f32 %v13431_v57, %v13458_v19  ;;  %v13536_v12 = vmul.f32 %v13488_v63, %v13488_v63  ;;  %v13540_v32 = vmul.f32 %v13492_v58, %v13492_v58  ;;  %v13544_v13 = vmul.f32 %v13508_v55, %v13508_v55 }
 0x52c   :  { %v4886_v44 = vadd.f32 %v4885_v49, %v4884_v61  ;;  %v13548_v39 = vmul.f32 %v13512_v51, %v13512_v51  ;;  %v13552_v57 = vmul.f32 %v13528_v31, %v13528_v31  ;;  %v4966_v15 = vrot.slane %v4870_v43, 6 }
 0x52d   :  { %v13559_v27 = vmul.f32 %v13532_v45, %v13532_v45  ;;  %v4967_v7 = vrot.slane %v13536_v12, 6  ;;  %v4972_v59 = vrot.slane %v4872_v6, 6  ;;  %v4973_v34 = vrot.slane %v13540_v32, 6  ;;  %6556 = vmatpush1.bf16.msra.mxu0 %v9698_v46  ;;  %7135 = vmatpush1.bf16.msra.mxu1 %v9698_v46 }
 0x52e   :  { %v4888_v42 = vadd.f32 %v4887_v17, %v4886_v44  ;;  %v4978_v60 = vrot.slane %v4874_v47, 6  ;;  %v4979_v24 = vrot.slane %v13544_v13, 6  ;;  %v4984_v38 = vrot.slane %v4876_v50, 6  ;;  %v9701_v47 = vld [vmem:[%s16870_s10 + $0x20] ss:$8 sps:$4 sm:$0xff]   ;;  %6557 = vmatprep.subr.bf16.mxu0 %v9699_v56  ;;  %7136 = vmatprep.subr.bf16.mxu1 %v9699_v56 }
 0x52f   :  { %v4968_v41 = vsel %vm17399_vm6, %v4966_v15, %v4967_v7  ;;  %v4974_v43 = vsel %vm17400_vm8, %v4972_v59, %v4973_v34  ;;  %v4985_v2 = vrot.slane %v13548_v39, 6  ;;  %v4990_v6 = vrot.slane %v4878_v20, 6  ;;  %v9702_v20 = vld [vmem:[%s16870_s10 + $0x34] ss:$8 sps:$4 sm:$0xff]  }
 0x530   :  { %v4890_v16 = vadd.f32 %v4889_v4, %v4888_v42  ;;  %v4980_v50 = vsel %vm17401_vm4, %v4978_v60, %v4979_v24  ;;  %v4991_v49 = vrot.slane %v13552_v57, 6  ;;  %v4996_v17 = vrot.slane %v4880_v33, 6  ;;  %v9704_v60 = vld [vmem:[%s16870_s10 + $0x30] ss:$8 sps:$4 sm:$0xff]  }
 0x531   :  { %v4986_v21 = vsel %vm17402_vm3, %v4984_v38, %v4985_v2  ;;  %v4997_v61 = vrot.slane %v13559_v27, 6  ;;  %v5014_v44 = vsel %vm4578_vm13, %v4968_v41, 0.0  ;;  %v5015_v15 = vsel %vm4578_vm13, %v4974_v43, 0.0  ;;  %6558 = vmatpush1.bf16.msra.mxu0 %v9701_v47  ;;  %7137 = vmatpush1.bf16.msra.mxu1 %v9701_v47  ;;  %v9705_v43 = vld [vmem:[%s16870_s10 + $0x44] ss:$8 sps:$4 sm:$0xff]  }
 0x532   :  { %v4892_v4 = vadd.f32 %v4891_v0, %v4890_v16  ;;  %v4992_v8 = vsel %vm17403_vm9, %v4990_v6, %v4991_v49  ;;  %v5016_v7 = vadd.f32 %v5015_v15, %v5014_v44  ;;  %v5017_v33 = vsel %vm4578_vm13, %v4980_v50, 0.0  ;;  %6559 = vmatprep.subr.bf16.mxu0 %v9702_v20  ;;  %7138 = vmatprep.subr.bf16.mxu1 %v9702_v20  ;;  %v9708_v44 = vld [vmem:[%s16870_s10 + $0x54] ss:$8 sps:$4 sm:$0xff]  }
 0x533   :  { %v4998_v59 = vsel %vm17385_vm0, %v4996_v17, %v4997_v61  ;;  %v5019_v34 = vsel %vm4578_vm13, %v4986_v21, 0.0  ;;  %v5021_v46 = vsel %vm4578_vm13, %v4992_v8, 0.0  ;;  %v5050_v42 = vrot.slane %v13536_v12, 4 }
 0x534   :  { %v4893_v24 = vrot.slane %v4892_v4, 4  ;;  %v5018_v0 = vadd.f32 %v5017_v33, %v5016_v7  ;;  %v5023_v38 = vsel %vm4578_vm13, %v4998_v59, 0.0  ;;  %v5052_v41 = vrot.slane %v13540_v32, 4 }
 0x535   :  { %v5054_v2 = vrot.slane %v13544_v13, 4  ;;  %v5056_v12 = vrot.slane %v13548_v39, 4  ;;  %v5058_v6 = vrot.slane %v13552_v57, 4  ;;  %v5060_v56 = vrot.slane %v13559_v27, 4  ;;  %6560 = vmatpush1.bf16.msra.mxu0 %v9704_v60  ;;  %v9707_v39 = vld [vmem:[%s16870_s10 + $0x40] ss:$8 sps:$4 sm:$0xff]   ;;  %7139 = vmatpush1.bf16.msra.mxu1 %v9704_v60 }
 0x536   :  { %v4894_v16 = vadd.f32 %v4893_v24, %v4892_v4  ;;  %v5020_v50 = vadd.f32 %v5019_v34, %v5018_v0  ;;  %v5074_v49 = vsel %vm4578_vm13, %v5050_v42, 0.0  ;;  %v5075_v32 = vsel %vm4578_vm13, %v5052_v41, 0.0  ;;  %6561 = vmatprep.subr.bf16.mxu0 %v9705_v43  ;;  %7140 = vmatprep.subr.bf16.mxu1 %v9705_v43  ;;  %v9711_v24 = vld [vmem:[%s16870_s10 + $0x64] ss:$8 sps:$4 sm:$0xff]  }
 0x537   :  { %v5076_v47 = vadd.f32 %v5075_v32, %v5074_v49  ;;  %v5077_v17 = vsel %vm4578_vm13, %v5054_v2, 0.0  ;;  %v5079_v21 = vsel %vm4578_vm13, %v5056_v12, 0.0  ;;  %v5081_v13 = vsel %vm4578_vm13, %v5058_v6, 0.0 }
 0x538   :  { %v4895_v57 = vrot.slane %v4894_v16, 2  ;;  %v5022_v27 = vadd.f32 %v5021_v46, %v5020_v50  ;;  %v5083_v20 = vsel %vm4578_vm13, %v5060_v56, 0.0  ;;  %v13614_v61 = vsub.f32 %v13260_v10, %v13458_v19 }
 0x539   :  { %v5078_v15 = vadd.f32 %v5077_v17, %v5076_v47  ;;  %v13621_v4 = vsub.f32 %v13286_v23, %v13458_v19  ;;  %v13625_v8 = vsub.f32 %v13335_v53, %v13458_v19  ;;  %v13629_v7 = vsub.f32 %v13364_v14, %v13458_v19  ;;  %6562 = vmatpush1.bf16.msra.mxu0 %v9707_v39 }
 0x53a   :  { %v4896_v10 = vadd.f32 %v4895_v57, %v4894_v16  ;;  %v5024_v33 = vadd.f32 %v5023_v38, %v5022_v27  ;;  %v13633_v59 = vsub.f32 %v13411_v37, %v13458_v19  ;;  %v13637_v34 = vsub.f32 %v13440_v3, %v13458_v19  ;;  %v9710_v37 = vld [vmem:[%s16870_s10 + $0x50] ss:$8 sps:$4 sm:$0xff]   ;;  %7141 = vmatpush1.bf16.msra.mxu1 %v9707_v39  ;;  %v9713_v16 = vld [vmem:[%s16870_s10 + $0x60] ss:$8 sps:$4 sm:$0xff]   ;;  %v9714_v57 = vld [vmem:[%s16870_s10 + $0x74] ss:$8 sps:$4 sm:$0xff]  }
 0x53b   :  { %v5080_v23 = vadd.f32 %v5079_v21, %v5078_v15  ;;  %v5122_v53 = vmul.f32 %v13614_v61, %v13614_v61  ;;  %v5124_v46 = vmul.f32 %v13621_v4, %v13621_v4  ;;  %v5126_v14 = vmul.f32 %v13625_v8, %v13625_v8  ;;  %6563 = vmatprep.subr.bf16.mxu0 %v9708_v44 }
 0x53c   :  { %v4897_v42 = vrot.slane %v4896_v10, 1  ;;  %v5025_v60 = vrot.slane %v5024_v33, 4  ;;  %v5128_v19 = vmul.f32 %v13629_v7, %v13629_v7  ;;  %v5130_v3 = vmul.f32 %v13633_v59, %v13633_v59  ;;  %7142 = vmatprep.subr.bf16.mxu1 %v9708_v44 }
 0x53d   :  { %v5082_v0 = vadd.f32 %v5081_v13, %v5080_v23  ;;  %v5132_v38 = vmul.f32 %v13637_v34, %v13637_v34  ;;  %v5146_v41 = vrot.slane %v5122_v53, 2  ;;  %v5148_v43 = vrot.slane %v5124_v46, 2  ;;  %6564 = vmatpush1.bf16.msra.mxu0 %v9710_v37  ;;  %v9716_v46 = vld [vmem:[%s16870_s10 + $0x70] ss:$8 sps:$4 sm:$0xff]  }
 0x53e   :  { %v4898_v2 = vadd.f32 %v4897_v42, %v4896_v10  ;;  %v5026_v12 = vadd.f32 %v5025_v60, %v5024_v33  ;;  %v5150_v6 = vrot.slane %v5126_v14, 2  ;;  %v5152_v56 = vrot.slane %v5128_v19, 2  ;;  %7143 = vmatpush1.bf16.msra.mxu1 %v9710_v37  ;;  %6565 = vmatprep.subr.bf16.mxu0 %v9711_v24  ;;  %v9717_v14 = vld [vmem:[%s16870_s10 + $0x84] ss:$8 sps:$4 sm:$0xff]  }
 0x53f   :  { %v5084_v50 = vadd.f32 %v5083_v20, %v5082_v0  ;;  %v5154_v49 = vrot.slane %v5130_v3, 2  ;;  %v5156_v32 = vrot.slane %v5132_v38, 2  ;;  %v5170_v47 = vsel %vm4578_vm13, %v5146_v41, 0.0  ;;  %7144 = vmatprep.subr.bf16.mxu1 %v9711_v24  ;;  %v9719_v0 = vld [vmem:[%s16870_s10 + $0x80] ss:$8 sps:$4 sm:$0xff]  }
 0x540   :  { %v5027_v17 = vrot.slane %v5026_v12, 2  ;;  %v5171_v21 = vsel %vm4578_vm13, %v5148_v43, 0.0  ;;  %v5173_v13 = vsel %vm4578_vm13, %v5150_v6, 0.0  ;;  %v5175_v39 = vsel %vm4578_vm13, %v5152_v56, 0.0 }
 0x541   :  { %v5085_v27 = vrot.slane %v5084_v50, 4  ;;  %v5172_v20 = vadd.f32 %v5171_v21, %v5170_v47  ;;  %v5177_v44 = vsel %vm4578_vm13, %v5154_v49, 0.0  ;;  %v5179_v15 = vsel %vm4578_vm13, %v5156_v32, 0.0  ;;  %6566 = vmatpush1.bf16.msra.mxu0 %v9713_v16  ;;  %v9720_v49 = vld [vmem:[%s16870_s10 + $0x94] ss:$8 sps:$4 sm:$0xff]  }
 0x542   :  { %v5028_v10 = vadd.f32 %v5027_v17, %v5026_v12  ;;  %v13671_v33 = vsub.f32 %v13234_v5, %v13460_v22  ;;  %v13675_v23 = vsub.f32 %v13254_v25, %v13460_v22  ;;  %v13679_v53 = vsub.f32 %v13310_v40, %v13460_v22  ;;  %7145 = vmatpush1.bf16.msra.mxu1 %v9713_v16 }
 0x543   :  { %v5086_v37 = vadd.f32 %v5085_v27, %v5084_v50  ;;  %v5174_v42 = vadd.f32 %v5173_v13, %v5172_v20  ;;  %v13689_v5 = vsub.f32 %v13346_v36, %v13460_v22  ;;  %v13693_v25 = vsub.f32 %v13386_v52, %v13460_v22  ;;  %6567 = vmatprep.subr.bf16.mxu0 %v9714_v57 }
 0x544   :  { %v5029_v40 = vrot.slane %v5028_v10, 1  ;;  %v13697_v60 = vsub.f32 %v13422_v26, %v13460_v22  ;;  %v13701_v19 = vmul.f32 %v13671_v33, %v13671_v33  ;;  %v13705_v3 = vmul.f32 %v13675_v23, %v13675_v23  ;;  %7146 = vmatprep.subr.bf16.mxu1 %v9714_v57 }
 0x545   :  { %v5087_v36 = vrot.slane %v5086_v37, 2  ;;  %v5176_v24 = vadd.f32 %v5175_v39, %v5174_v42  ;;  %v13709_v52 = vmul.f32 %v13679_v53, %v13679_v53  ;;  %v13713_v26 = vmul.f32 %v13689_v5, %v13689_v5  ;;  %6568 = vmatpush1.bf16.msra.mxu0 %v9716_v46 }
 0x546   :  { %v5030_v38 = vadd.f32 %v5029_v40, %v5028_v10  ;;  %v13720_v41 = vmul.f32 %v13693_v25, %v13693_v25  ;;  %v13724_v43 = vmul.f32 %v13697_v60, %v13697_v60  ;;  %v4899_v12 = vsel %vm4578_vm13, %v13701_v19, 0.0  ;;  %7147 = vmatpush1.bf16.msra.mxu1 %v9716_v46  ;;  %6569 = vmatprep.subr.bf16.mxu0 %v9717_v14 }
 0x547   :  { %v5088_v6 = vadd.f32 %v5087_v36, %v5086_v37  ;;  %v5178_v56 = vadd.f32 %v5177_v44, %v5176_v24  ;;  %v4900_v16 = vsel %vm4578_vm13, %v13705_v3, 0.0  ;;  %v4902_v50 = vsel %vm4578_vm13, %v13709_v52, 0.0  ;;  %7148 = vmatprep.subr.bf16.mxu1 %v9717_v14 }
 0x548   :  { %v5048_v32 = vadd.f32 %v5030_v38, %v4898_v2  ;;  %v4901_v47 = vadd.f32 %v4900_v16, %v4899_v12  ;;  %v4904_v17 = vsel %vm4578_vm13, %v13713_v26, 0.0  ;;  %v4906_v21 = vsel %vm4578_vm13, %v13720_v41, 0.0  ;;  %v9722_v2 = vld [vmem:[%s16870_s10 + $0x90] ss:$8 sps:$4 sm:$0xff]  }
 0x549   :  { %v5089_v13 = vrot.slane %v5088_v6, 1  ;;  %v5180_v39 = vadd.f32 %v5179_v15, %v5178_v56  ;;  %v4908_v57 = vsel %vm4578_vm13, %v13724_v43, 0.0  ;;  %v13743_v27 = vsub.f32 %v13240_v11, %v13460_v22  ;;  %v9723_v11 = vld [vmem:[%s16870_s10 + $0xa4] ss:$8 sps:$4 sm:$0xff]   ;;  %6570 = vmatpush1.bf16.msra.mxu0 %v9719_v0 }
 0x54a   :  { %v4903_v20 = vadd.f32 %v4902_v50, %v4901_v47  ;;  %v13750_v44 = vsub.f32 %v13280_v29, %v13460_v22  ;;  %v13754_v15 = vsub.f32 %v13320_v35, %v13460_v22  ;;  %v13758_v10 = vsub.f32 %v13358_v18, %v13460_v22  ;;  %v17404_v29 = vld [vmem:[#allocation45_spill] sm:$0xff]  ;;  %7149 = vmatpush1.bf16.msra.mxu1 %v9719_v0 }
 0x54b   :  { %v5090_v46 = vadd.f32 %v5089_v13, %v5088_v6  ;;  %v5181_v14 = vrot.slane %v5180_v39, 4  ;;  %v13765_v37 = vsub.f32 %v13396_v62, %v13460_v22  ;;  %v13769_v42 = vsub.f32 %v17404_v29, %v13460_v22  ;;  %6571 = vmatprep.subr.bf16.mxu0 %v9720_v49  ;;  %v9725_v6 = vld [vmem:[%s16870_s10 + $0xa0] ss:$8 sps:$4 sm:$0xff]   ;;  %7150 = vmatprep.subr.bf16.mxu1 %v9720_v49 }
 0x54c   :  { %v4905_v35 = vadd.f32 %v4904_v17, %v4903_v20  ;;  %v13773_v18 = vmul.f32 %v13743_v27, %v13743_v27  ;;  %v13777_v40 = vmul.f32 %v13750_v44, %v13750_v44  ;;  %v13781_v36 = vmul.f32 %v13754_v15, %v13754_v15 }
 0x54d   :  { %v5108_v62 = vadd.f32 %v5090_v46, %v5048_v32  ;;  %v5182_v24 = vadd.f32 %v5181_v14, %v5180_v39  ;;  %v13785_v38 = vmul.f32 %v13758_v10, %v13758_v10  ;;  %v13789_v12 = vmul.f32 %v13765_v37, %v13765_v37  ;;  %v9726_v32 = vld [vmem:[%s16870_s10 + $0xb4] ss:$8 sps:$4 sm:$0xff]   ;;  %6572 = vmatpush1.bf16.msra.mxu0 %v9722_v2 }
 0x54e   :  { %v4907_v56 = vadd.f32 %v4906_v21, %v4905_v35  ;;  %v13796_v16 = vmul.f32 %v13769_v42, %v13769_v42  ;;  %v4969_v0 = vrot.slane %v13701_v19, 6  ;;  %v4970_v50 = vrot.slane %v13773_v18, 6  ;;  %7151 = vmatpush1.bf16.msra.mxu1 %v9722_v2  ;;  %6573 = vmatprep.subr.bf16.mxu0 %v9723_v11  ;;  %v9729_v2 = vld [vmem:[%s16870_s10 + $0xc4] ss:$8 sps:$4 sm:$0xff]  }
 0x54f   :  { %v5183_v47 = vrot.slane %v5182_v24, 2  ;;  %v4975_v17 = vrot.slane %v13705_v3, 6  ;;  %v4976_v13 = vrot.slane %v13777_v40, 6  ;;  %v4981_v21 = vrot.slane %v13709_v52, 6  ;;  %7152 = vmatprep.subr.bf16.mxu1 %v9723_v11  ;;  %v9728_v52 = vld [vmem:[%s16870_s10 + $0xb0] ss:$8 sps:$4 sm:$0xff]  }
 0x550   :  { %v4909_v39 = vadd.f32 %v4908_v57, %v4907_v56  ;;  %v4971_v20 = vsel %vm17405_vm5, %v4969_v0, %v4970_v50  ;;  %v4982_v19 = vrot.slane %v13781_v36, 6  ;;  %v4987_v46 = vrot.slane %v13713_v26, 6 }
 0x551   :  { %v5184_v49 = vadd.f32 %v5183_v47, %v5182_v24  ;;  %v4977_v14 = vsel %vm17406_vm15, %v4975_v17, %v4976_v13  ;;  %v4988_v29 = vrot.slane %v13785_v38, 6  ;;  %v4993_v3 = vrot.slane %v13720_v41, 6  ;;  %6574 = vmatpush1.bf16.msra.mxu0 %v9725_v6 }
 0x552   :  { %v4910_v57 = vrot.slane %v4909_v39, 4  ;;  %v4983_v35 = vsel %vm17407_vm1, %v4981_v21, %v4982_v19  ;;  %v4994_v56 = vrot.slane %v13789_v12, 6  ;;  %v4999_v26 = vrot.slane %v13724_v43, 6  ;;  %7153 = vmatpush1.bf16.msra.mxu1 %v9725_v6  ;;  %6575 = vmatprep.subr.bf16.mxu0 %v9726_v32  ;;  %v9731_v19 = vld [vmem:[%s16870_s10 + $0xc0] ss:$8 sps:$4 sm:$0xff]  }
 0x553   :  { %v5185_v24 = vrot.slane %v5184_v49, 1  ;;  %v4989_v0 = vsel %vm17408_vm2, %v4987_v46, %v4988_v29  ;;  %v5000_v41 = vrot.slane %v13796_v16, 6  ;;  %v5031_v11 = vsel %vm4578_vm13, %v4971_v20, 0.0  ;;  %7154 = vmatprep.subr.bf16.mxu1 %v9726_v32  ;;  %v9732_v32 = vld [vmem:[%s16870_s10 + $0xd4] ss:$8 sps:$4 sm:$0xff]  }
 0x554   :  { %v4911_v50 = vadd.f32 %v4910_v57, %v4909_v39  ;;  %v4995_v47 = vsel %vm17409_vm10, %v4993_v3, %v4994_v56  ;;  %v5032_v17 = vsel %vm4578_vm13, %v4977_v14, 0.0  ;;  %v5034_v20 = vsel %vm4578_vm13, %v4983_v35, 0.0 }
 0x555   :  { %v5186_v43 = vadd.f32 %v5185_v24, %v5184_v49  ;;  %v5001_v13 = vsel %vm17410_vm11, %v4999_v26, %v5000_v41  ;;  %v5033_v21 = vadd.f32 %v5032_v17, %v5031_v11  ;;  %v5051_v39 = vrot.slane %v13773_v18, 4  ;;  %6576 = vmatpush1.bf16.msra.mxu0 %v9728_v52 }
 0x556   :  { %v4912_v46 = vrot.slane %v4911_v50, 2  ;;  %v5053_v14 = vrot.slane %v13777_v40, 4  ;;  %v5055_v6 = vrot.slane %v13781_v36, 4  ;;  %v5036_v49 = vsel %vm4578_vm13, %v4989_v0, 0.0  ;;  %7155 = vmatpush1.bf16.msra.mxu1 %v9728_v52  ;;  %6577 = vmatprep.subr.bf16.mxu0 %v9729_v2  ;;  %v9734_v36 = vld [vmem:[%s16870_s10 + $0xd0] ss:$8 sps:$4 sm:$0xff]  }
 0x557   :  { %v5204_v29 = vadd.f32 %v5186_v43, %v5108_v62  ;;  %v5035_v3 = vadd.f32 %v5034_v20, %v5033_v21  ;;  %v5038_v57 = vsel %vm4578_vm13, %v4995_v47, 0.0  ;;  %v5057_v56 = vrot.slane %v13785_v38, 4  ;;  %7156 = vmatprep.subr.bf16.mxu1 %v9729_v2  ;;  %v17411_v43 = vld [vmem:[#allocation40_spill] sm:$0xff] }
 0x558   :  { %v5091_v35 = vsel %vm4578_vm13, %v5051_v39, 0.0  ;;  %v5092_v40 = vsel %vm4578_vm13, %v5053_v14, 0.0  ;;  %v13845_v26 = vadd.f32 %v4912_v46, %v4911_v50  ;;  %v5040_v24 = vsel %vm4578_vm13, %v5001_v13, 0.0  ;;  %v17412_v50 = vld [vmem:[#allocation41_spill] sm:$0xff]  ;;  %v17413_v46 = vld [vmem:[#allocation42_spill] sm:$0xff]  ;;  %v17414_v39 = vld [vmem:[#allocation43_spill] sm:$0xff] }
 0x559   :  { %v5206_v18 = vmul.f32 0.010416667, %v5204_v29  ;;  %v5037_v62 = vadd.f32 %v5036_v49, %v5035_v3  ;;  %v5059_v0 = vrot.slane %v13789_v12, 4  ;;  %v5093_v38 = vadd.f32 %v5092_v40, %v5091_v35  ;;  %6578 = vmatpush1.bf16.msra.mxu0 %v9731_v19  ;;  %v9735_v12 = vld [vmem:[%s16870_s10 + $0xe4] ss:$8 sps:$4 sm:$0xff]   ;;  %v17416_v49 = vld [vmem:[#allocation46_spill] sm:$0xff] }
 0x55a   :  { %v5061_v11 = vrot.slane %v13796_v16, 4  ;;  %v5094_v47 = vsel %vm4578_vm13, %v5055_v6, 0.0  ;;  %v5096_v2 = vsel %vm4578_vm13, %v5057_v56, 0.0  ;;  %v13854_v21 = vsub.f32 %v17411_v43, %v13460_v22  ;;  %7157 = vmatpush1.bf16.msra.mxu1 %v9731_v19  ;;  %6579 = vmatprep.subr.bf16.mxu0 %v9732_v32  ;;  %v9737_v19 = vld [vmem:[%s16870_s10 + $0xe0] ss:$8 sps:$4 sm:$0xff]  }
 0x55b   :  { %v5208_v52 = vadd.f32 1e-05, %v5206_v18  ;;  %v5039_v41 = vadd.f32 %v5038_v57, %v5037_v62  ;;  %v5095_v17 = vadd.f32 %v5094_v47, %v5093_v38  ;;  %v13858_v13 = vsub.f32 %v17412_v50, %v13460_v22  ;;  %7158 = vmatprep.subr.bf16.mxu1 %v9732_v32  ;;  %v17415_v14 = vld [vmem:[#allocation44_spill] sm:$0xff] }
 0x55c   :  { %v13865_v20 = vsub.f32 %v17413_v46, %v13460_v22  ;;  %v13869_v29 = vsub.f32 %v17414_v39, %v13460_v22  ;;  %v13876_v6 = vsub.f32 %v17415_v14, %v13460_v22  ;;  %v13880_v57 = vsub.f32 %v17416_v49, %v13460_v22  ;;  %v13892_v40 = vld [vmem:[%s16871_s8] sm:$0x3]  ;;  %v17417_v14 = vld [vmem:[#allocation38_spill] sm:$0xff] }
 0x55d   :  { %9983 = vrsqrt.f32 %v5208_v52  ;;  %v5041_v16 = vadd.f32 %v5040_v24, %v5039_v41  ;;  %v5097_v3 = vadd.f32 %v5096_v2, %v5095_v17  ;;  %v5123_v56 = vmul.f32 %v13854_v21, %v13854_v21  ;;  %6580 = vmatpush1.bf16.msra.mxu0 %v9734_v36  ;;  %v13900_v38 = vld [vmem:[%s16872_s9] sm:$0x3] }
 0x55e   :  { %v5098_v62 = vsel %vm4578_vm13, %v5059_v0, 0.0  ;;  %v5125_v32 = vmul.f32 %v13858_v13, %v13858_v13  ;;  %v5127_v35 = vmul.f32 %v13865_v20, %v13865_v20  ;;  %7159 = vmatpush1.bf16.msra.mxu1 %v9734_v36  ;;  %6581 = vmatprep.subr.bf16.mxu0 %v9735_v12  ;;  %v9738_v0 = vld [vmem:[%s16870_s10 + $0xf4] ss:$8 sps:$4 sm:$0xff]   ;;  %v5100_v41 = vsel %vm4578_vm13, %v5061_v11, 0.0  ;;  %v9740_v11 = vld [vmem:[%s16870_s10 + $0xf0] ss:$8 sps:$4 sm:$0xff]  }
 0x55f   :  { %v5042_v18 = vrot.slane %v5041_v16, 4  ;;  %v5099_v22 = vadd.f32 %v5098_v62, %v5097_v3  ;;  %v5147_v24 = vrot.slane %v5123_v56, 2  ;;  %7160 = vmatprep.subr.bf16.mxu1 %v9735_v12  ;;  %v4914_v2 = vrot.slane %v13845_v26, 1  ;;  %v9741_v62 = vld [vmem:[%s16870_s10 + $0x104] ss:$8 sps:$4 sm:$0xff]  }
 0x560   :  { %v5149_v47 = vrot.slane %v5125_v32, 2  ;;  %v5151_v17 = vrot.slane %v5127_v35, 2  ;;  %v5129_v46 = vmul.f32 %v13869_v29, %v13869_v29  ;;  %v5131_v39 = vmul.f32 %v13876_v6, %v13876_v6 }
 0x561   :  { %v5043_v52 = vadd.f32 %v5042_v18, %v5041_v16  ;;  %v5101_v43 = vadd.f32 %v5100_v41, %v5099_v22  ;;  %v5187_v36 = vsel %vm4578_vm13, %v5147_v24, 0.0  ;;  %6582 = vmatpush1.bf16.msra.mxu0 %v9737_v19  ;;  %v13915_v49 = vrot.slane %v13892_v40, %v17417_v14 }
 0x562   :  { %v5188_v3 = vsel %vm4578_vm13, %v5149_v47, 0.0  ;;  %7161 = vmatpush1.bf16.msra.mxu1 %v9737_v19  ;;  %6583 = vmatprep.subr.bf16.mxu0 %v9738_v0  ;;  %v5190_v18 = vsel %vm4578_vm13, %v5151_v17, 0.0  ;;  %v13923_v32 = vrot.slane %v13900_v38, %v17417_v14  ;;  %v4915_v35 = vadd.f32 %v4914_v2, %v13845_v26 }
 0x563   :  { %v5044_v50 = vrot.slane %v5043_v52, 2  ;;  %v5102_v12 = vrot.slane %v5101_v43, 4  ;;  %v5189_v16 = vadd.f32 %v5188_v3, %v5187_v36  ;;  %7162 = vmatprep.subr.bf16.mxu1 %v9738_v0  ;;  %v5133_v19 = vmul.f32 %v13880_v57, %v13880_v57 }
 0x564   :  { %v5153_v47 = vrot.slane %v5129_v46, 2  ;;  %v5155_v17 = vrot.slane %v5131_v39, 2 }
 0x565   :  { %v5045_v56 = vadd.f32 %v5044_v50, %v5043_v52  ;;  %v5191_v22 = vadd.f32 %v5190_v18, %v5189_v16  ;;  %v5103_v52 = vadd.f32 %v5102_v12, %v5101_v43  ;;  %6584 = vmatpush1.bf16.msra.mxu0 %v9740_v11  ;;  %v5157_v39 = vrot.slane %v5133_v19, 2 }
 0x566   :  { %7163 = vmatpush1.bf16.msra.mxu1 %v9740_v11  ;;  %6594 = vmatprep.subr.bf16.mxu0 %v9741_v62  ;;  %v5194_v14 = vsel %vm4578_vm13, %v5155_v17, 0.0 }
 0x567   :  { %v9984_v24 = vpop.eup %9983  ;;  %v5046_v41 = vrot.slane %v5045_v56, 1  ;;  %7173 = vmatprep.subr.bf16.mxu1 %v9741_v62 }
 0x568   :  { %v5212_v0 = vmul.f32 %v9984_v24, %v13464_v54  ;;  %v5214_v36 = vmul.f32 %v9984_v24, %v13488_v63  ;;  %v5216_v50 = vmul.f32 %v9984_v24, %v13614_v61  ;;  %v5218_v3 = vmul.f32 %v9984_v24, %v13468_v30 }
 0x569   :  { %v5220_v26 = vmul.f32 %v9984_v24, %v13492_v58  ;;  %v5222_v2 = vmul.f32 %v9984_v24, %v13621_v4  ;;  %v5224_v16 = vmul.f32 %v9984_v24, %v13472_v1  ;;  %v5226_v43 = vmul.f32 %v9984_v24, %v13508_v55 }
 0x56a   :  { %v5228_v46 = vmul.f32 %v9984_v24, %v13625_v8  ;;  %v5230_v54 = vmul.f32 %v9984_v24, %v13476_v48  ;;  %v5232_v63 = vmul.f32 %v9984_v24, %v13512_v51  ;;  %v5234_v61 = vmul.f32 %v9984_v24, %v13629_v7 }
 0x56b   :  { %v5236_v30 = vmul.f32 %v9984_v24, %v13480_v9  ;;  %v5238_v58 = vmul.f32 %v9984_v24, %v13528_v31  ;;  %v5240_v4 = vmul.f32 %v9984_v24, %v13633_v59  ;;  %v5242_v1 = vmul.f32 %v9984_v24, %v13484_v28 }
 0x56c   :  { %v13945_v55 = vmul.f32 %v9984_v24, %v13532_v45  ;;  %v5246_v8 = vmul.f32 %v9984_v24, %v13637_v34  ;;  %v5264_v48 = vmul.f32 %v13915_v49, %v5216_v50  ;;  %v13950_v51 = vmul.f32 %v13915_v49, %v5222_v2 }
 0x56d   :  { %v13953_v7 = vmul.f32 %v13915_v49, %v5228_v46  ;;  %v13956_v9 = vmul.f32 %v13915_v49, %v5234_v61  ;;  %v5192_v31 = vsel %vm4578_vm13, %v5153_v47, 0.0  ;;  %v13960_v28 = vmul.f32 %v13915_v49, %v5240_v4 }
 0x56e   :  { %v5294_v45 = vmul.f32 %v13915_v49, %v5246_v8  ;;  %v5047_v59 = vadd.f32 %v5046_v41, %v5045_v56  ;;  %v5104_v34 = vrot.slane %v5103_v52, 2  ;;  %v5266_v11 = vmul.f32 %v13915_v49, %v5218_v3 }
 0x56f   :  { %v5193_v12 = vadd.f32 %v5192_v31, %v5191_v22  ;;  %v5260_v18 = vmul.f32 %v13915_v49, %v5212_v0  ;;  %v5262_v47 = vmul.f32 %v13915_v49, %v5214_v36  ;;  %v5268_v50 = vmul.f32 %v13915_v49, %v5220_v26 }
 0x570   :  { %v13967_v62 = vadd.f32 %v13923_v32, %v5294_v45  ;;  %v5049_v19 = vadd.f32 %v5047_v59, %v4915_v35  ;;  %v5105_v24 = vadd.f32 %v5104_v34, %v5103_v52  ;;  %v5196_v56 = vsel %vm4578_vm13, %v5157_v39, 0.0 }
 0x571   :  { %v5195_v2 = vadd.f32 %v5194_v14, %v5193_v12  ;;  %v5272_v22 = vmul.f32 %v13915_v49, %v5224_v16  ;;  %v5274_v17 = vmul.f32 %v13915_v49, %v5226_v43  ;;  %v13975_v0 = vadd.f32 %v13923_v32, %v5260_v18 }
 0x572   :  { %v5106_v46 = vrot.slane %v5105_v24, 1  ;;  %v13978_v35 = vadd.f32 %v13923_v32, %v5262_v47  ;;  %v13981_v52 = vadd.f32 %v13923_v32, %v5266_v11  ;;  %v13984_v26 = vadd.f32 %v13923_v32, %v5268_v50 }
 0x573   :  { %v5197_v41 = vadd.f32 %v5196_v56, %v5195_v2  ;;  %v5278_v4 = vmul.f32 %v13915_v49, %v5230_v54  ;;  %v13988_v43 = vadd.f32 %v13923_v32, %v5272_v22  ;;  %v13991_v8 = vadd.f32 %v13923_v32, %v5274_v17 }
 0x574   :  { %v5107_v3 = vadd.f32 %v5106_v46, %v5105_v24  ;;  %v5344_v39 = vmin.f32 %v13975_v0, 0.0  ;;  %v5346_v31 = vmin.f32 %v13978_v35, 0.0  ;;  %v5350_v45 = vmin.f32 %v13981_v52, 0.0 }
 0x575   :  { %v5198_v36 = vrot.slane %v5197_v41, 4  ;;  %v5352_v34 = vmin.f32 %v13984_v26, 0.0  ;;  %v5280_v11 = vmul.f32 %v13915_v49, %v5232_v63  ;;  %v13999_v54 = vadd.f32 %v13923_v32, %v5278_v4 }
 0x576   :  { %v5109_v61 = vadd.f32 %v5107_v3, %v5049_v19  ;;  %v5356_v14 = vmin.f32 %v13988_v43, 0.0  ;;  %v5358_v18 = vmin.f32 %v13991_v8, 0.0  ;;  %v5380_v19 = vmul.f32 1.442695, %v5344_v39 }
 0x577   :  { %v5199_v16 = vadd.f32 %v5198_v36, %v5197_v41  ;;  %v5384_v24 = vmul.f32 1.442695, %v5346_v31  ;;  %v5392_v47 = vmul.f32 1.442695, %v5350_v45  ;;  %v5396_v50 = vmul.f32 1.442695, %v5352_v34 }
 0x578   :  { %v14004_v2 = vadd.f32 %v13923_v32, %v5264_v48  ;;  %v5284_v56 = vmul.f32 %v13915_v49, %v5236_v30  ;;  %9985 = vpow2.f32 %v5380_v19  ;;  %v5286_v63 = vmul.f32 %v13915_v49, %v5238_v58 }
 0x579   :  { %v5200_v59 = vrot.slane %v5199_v16, 2  ;;  %v5290_v41 = vmul.f32 %v13915_v49, %v5242_v1  ;;  %v5362_v22 = vmin.f32 %v13999_v54, 0.0  ;;  %9987 = vpow2.f32 %v5384_v24 }
 0x57a   :  { %9989 = vpow2.f32 %v5392_v47  ;;  %v5404_v3 = vmul.f32 1.442695, %v5356_v14  ;;  %v5292_v36 = vmul.f32 %v13915_v49, %v13945_v55  ;;  %v14013_v48 = vadd.f32 %v13923_v32, %v5280_v11 }
 0x57b   :  { %v5201_v12 = vadd.f32 %v5200_v59, %v5199_v16  ;;  %9991 = vpow2.f32 %v5396_v50  ;;  %v5408_v4 = vmul.f32 1.442695, %v5358_v18  ;;  %v5378_v30 = vmin.f32 %v13967_v62, 0.0 }
 0x57c   :  { %v14017_v58 = vadd.f32 %v13923_v32, %v5284_v56  ;;  %v14020_v1 = vadd.f32 %v13923_v32, %v5286_v63  ;;  %v14023_v39 = vadd.f32 %v13923_v32, %v5290_v41  ;;  %v5416_v31 = vmul.f32 1.442695, %v5362_v22 }
 0x57d   :  { %v5202_v46 = vrot.slane %v5201_v12, 1  ;;  %9993 = vpow2.f32 %v5404_v3  ;;  %v14026_v49 = vadd.f32 %v13923_v32, %v5292_v36  ;;  %v5364_v55 = vmin.f32 %v14013_v48, 0.0 }
 0x57e   :  { %9995 = vpow2.f32 %v5408_v4  ;;  %v5448_v59 = vmul.f32 1.442695, %v5378_v30  ;;  %v5368_v34 = vmin.f32 %v14017_v58, 0.0  ;;  %v5370_v11 = vmin.f32 %v14020_v1, 0.0 }
 0x57f   :  { %v5203_v17 = vadd.f32 %v5202_v46, %v5201_v12  ;;  %v5374_v12 = vmin.f32 %v14023_v39, 0.0  ;;  %9997 = vpow2.f32 %v5416_v31  ;;  %v14034_v14 = vadd.f32 %v13923_v32, %v13950_v51 }
 0x580   :  { %v14038_v19 = vadd.f32 %v13923_v32, %v13953_v7  ;;  %v14042_v24 = vadd.f32 %v13923_v32, %v13956_v9  ;;  %v14046_v47 = vadd.f32 %v13923_v32, %v13960_v28  ;;  %v5376_v46 = vmin.f32 %v14026_v49, 0.0 }
 0x581   :  { %v5205_v16 = vadd.f32 %v5203_v17, %v5109_v61  ;;  %v5420_v56 = vmul.f32 1.442695, %v5364_v55  ;;  %v5428_v41 = vmul.f32 1.442695, %v5368_v34  ;;  %v5432_v3 = vmul.f32 1.442695, %v5370_v11 }
 0x582   :  { %v9986_v18 = vpop.eup %9985  ;;  %17418 = vst [vmem:[#allocation47_spill] sm:$0xff] %v14046_v47  ;;  %v5440_v36 = vmul.f32 1.442695, %v5374_v12  ;;  %v5444_v9 = vmul.f32 1.442695, %v5376_v46  ;;  %vm5524_vm13 = vcmp.gt.f32.partialorder %v13975_v0, 0.0 }
 0x583   :  { %v5207_v45 = vmul.f32 0.010416667, %v5205_v16  ;;  %v9988_v50 = vpop.eup %9987  ;;  %v8561_v51 = vadd.f32 -1.0, %v9986_v18  ;;  %vm5526_vm12 = vcmp.gt.f32.partialorder %v13978_v35, 0.0  ;;  %vm5530_vm14 = vcmp.gt.f32.partialorder %v13981_v52, 0.0 }
 0x584   :  { %v9990_v63 = vpop.eup %9989  ;;  %v8563_v22 = vadd.f32 -1.0, %v9988_v50  ;;  %vm5532_vm6 = vcmp.gt.f32.partialorder %v13984_v26, 0.0  ;;  %vm5536_vm8 = vcmp.gt.f32.partialorder %v13988_v43, 0.0  ;;  %vm5538_vm4 = vcmp.gt.f32.partialorder %v13991_v8, 0.0 }
 0x585   :  { %v5209_v61 = vadd.f32 1e-05, %v5207_v45  ;;  %v9992_v17 = vpop.eup %9991  ;;  %v5488_v7 = vmul.f32 1.6732632, %v8561_v51  ;;  %v8567_v4 = vadd.f32 -1.0, %v9990_v63  ;;  %v17419_v45 = vld [vmem:[#allocation39_spill] sm:$0xff] }
 0x586   :  { %v8569_v32 = vadd.f32 -1.0, %v9992_v17  ;;  %v5490_v28 = vmul.f32 1.6732632, %v8563_v22  ;;  %v14053_v55 = vrot.slane %v13892_v40, %v17419_v45  ;;  %vm5542_vm3 = vcmp.gt.f32.partialorder %v13999_v54, 0.0 }
 0x587   :  { %9999 = vrsqrt.f32 %v5209_v61  ;;  %v9994_v30 = vpop.eup %9993  ;;  %v5560_v31 = vsel %vm5524_vm13, %v13975_v0, %v5488_v7  ;;  %v5494_v11 = vmul.f32 1.6732632, %v8567_v4  ;;  %vm5544_vm9 = vcmp.gt.f32.partialorder %v14013_v48, 0.0 }
 0x588   :  { %10001 = vpow2.f32 %v5448_v59  ;;  %v9996_v16 = vpop.eup %9995  ;;  %v14057_v59 = vrot.slane %v13900_v38, %v17419_v45  ;;  %v8573_v34 = vadd.f32 -1.0, %v9994_v30  ;;  %v5496_v0 = vmul.f32 1.6732632, %v8569_v32 }
 0x589   :  { %10003 = vpow2.f32 %v5420_v56  ;;  %v9998_v61 = vpop.eup %9997  ;;  %v8575_v18 = vadd.f32 -1.0, %v9996_v16  ;;  %v5562_v50 = vsel %vm5526_vm12, %v13978_v35, %v5490_v28  ;;  %v14062_v40 = vmul.f32 1.050701, %v5560_v31 }
 0x58a   :  { %10005 = vpow2.f32 %v5428_v41  ;;  %v14084_v17 = vadd.f32 -1.0, %v9998_v61  ;;  %vm5548_vm0 = vcmp.gt.f32.partialorder %v14017_v58, 0.0  ;;  %vm5550_vm5 = vcmp.gt.f32.partialorder %v14020_v1, 0.0 }
 0x58b   :  { %10007 = vpow2.f32 %v5432_v3  ;;  %vm5554_vm15 = vcmp.gt.f32.partialorder %v14023_v39, 0.0  ;;  %vm5556_vm1 = vcmp.gt.f32.partialorder %v14026_v49, 0.0 }
 0x58c   :  { %10009 = vpow2.f32 %v5440_v36  ;;  %v5506_v47 = vmul.f32 1.6732632, %v14084_v17 }
 0x58d   :  { %10011 = vpow2.f32 %v5444_v9 }
 0x591   :  { %v10000_v12 = vpop.eup %9999 }
 0x592   :  { %v14065_v46 = vmul.f32 %v10000_v12, %v13854_v21  ;;  %v14068_v38 = vmul.f32 %v10000_v12, %v13858_v13  ;;  %v14071_v56 = vmul.f32 %v10000_v12, %v13865_v20  ;;  %v14074_v51 = vmul.f32 %v10000_v12, %v13869_v29  ;;  %v14089_v29 = vpop.eup %10001 }
 0x593   :  { %v14077_v63 = vmul.f32 %v10000_v12, %v13876_v6  ;;  %v5247_v41 = vmul.f32 %v10000_v12, %v13880_v57  ;;  %v5213_v35 = vmul.f32 %v10000_v12, %v13671_v33  ;;  %v5215_v22 = vmul.f32 %v10000_v12, %v13743_v27  ;;  %v10004_v27 = vpop.eup %10003 }
 0x594   :  { %v5219_v21 = vmul.f32 %v10000_v12, %v13675_v23  ;;  %v5221_v13 = vmul.f32 %v10000_v12, %v13750_v44  ;;  %v14086_v20 = vmul.f32 1.6732632, %v8573_v34  ;;  %v5225_v57 = vmul.f32 %v10000_v12, %v13679_v53  ;;  %v10006_v9 = vpop.eup %10005 }
 0x595   :  { %v5295_v6 = vmul.f32 %v14053_v55, %v5247_v41  ;;  %v5227_v33 = vmul.f32 %v10000_v12, %v13754_v15  ;;  %v5566_v23 = vsel %vm5530_vm14, %v13981_v52, %v5494_v11  ;;  %v5231_v44 = vmul.f32 %v10000_v12, %v13689_v5  ;;  %v14107_v52 = vpop.eup %10007 }
 0x596   :  { %v5233_v3 = vmul.f32 %v10000_v12, %v13758_v10  ;;  %v5237_v7 = vmul.f32 %v10000_v12, %v13693_v25  ;;  %v5239_v36 = vmul.f32 %v10000_v12, %v13765_v37  ;;  %v5243_v53 = vmul.f32 %v10000_v12, %v13697_v60  ;;  %v14113_v32 = vpop.eup %10009 }
 0x597   :  { %v14102_v4 = vadd.f32 %v14057_v59, %v5295_v6  ;;  %v5245_v15 = vmul.f32 %v10000_v12, %v13769_v42  ;;  %v5261_v30 = vmul.f32 %v14053_v55, %v5213_v35  ;;  %v5263_v5 = vmul.f32 %v14053_v55, %v5215_v22  ;;  %v14121_v31 = vpop.eup %10011 }
 0x598   :  { %v5267_v10 = vmul.f32 %v14053_v55, %v5219_v21  ;;  %v5269_v25 = vmul.f32 %v14053_v55, %v5221_v13  ;;  %v5273_v37 = vmul.f32 %v14053_v55, %v5225_v57  ;;  %v5275_v28 = vmul.f32 %v14053_v55, %v5227_v33 }
 0x599   :  { %v5279_v60 = vmul.f32 %v14053_v55, %v5231_v44  ;;  %v14117_v16 = vadd.f32 -1.0, %v10004_v27  ;;  %v14119_v42 = vmul.f32 1.050701, %v5562_v50  ;;  %v5379_v45 = vmin.f32 %v14102_v4, 0.0 }
 0x59a   :  { %v5281_v61 = vmul.f32 %v14053_v55, %v5233_v3  ;;  %v5285_v34 = vmul.f32 %v14053_v55, %v5237_v7  ;;  %v5502_v11 = vmul.f32 1.6732632, %v8575_v18  ;;  %v5287_v12 = vmul.f32 %v14053_v55, %v5239_v36 }
 0x59b   :  { %v5291_v41 = vmul.f32 %v14053_v55, %v5243_v53  ;;  %v14129_v35 = vadd.f32 %v14057_v59, %v5261_v30  ;;  %v14132_v22 = vadd.f32 %v14057_v59, %v5263_v5  ;;  %v14136_v50 = vadd.f32 %v14057_v59, %v5267_v10 }
 0x59c   :  { %v14139_v21 = vadd.f32 %v14057_v59, %v5269_v25  ;;  %v14142_v18 = vadd.f32 %v14057_v59, %v5273_v37  ;;  %v14145_v13 = vadd.f32 %v14057_v59, %v5275_v28  ;;  %v5293_v6 = vmul.f32 %v14053_v55, %v5245_v15 }
 0x59d   :  { %v14149_v57 = vadd.f32 %v14057_v59, %v5279_v60  ;;  %v14152_v33 = vadd.f32 %v14057_v59, %v5281_v61  ;;  %v5568_v27 = vsel %vm5532_vm6, %v13984_v26, %v5496_v0  ;;  %v5450_v44 = vmul.f32 1.442695, %v5379_v45 }
 0x59e   :  { %v14158_v3 = vadd.f32 %v14057_v59, %v5285_v34  ;;  %v5345_v7 = vmin.f32 %v14129_v35, 0.0  ;;  %v14162_v36 = vmul.f32 1.050701, %v5566_v23  ;;  %v5347_v53 = vmin.f32 %v14132_v22, 0.0 }
 0x59f   :  { %v5351_v15 = vmin.f32 %v14136_v50, 0.0  ;;  %v5353_v30 = vmin.f32 %v14139_v21, 0.0  ;;  %v5357_v5 = vmin.f32 %v14142_v18, 0.0  ;;  %v14170_v26 = vadd.f32 %v14057_v59, %v5287_v12 }
 0x5a0   :  { %v14173_v0 = vadd.f32 %v14057_v59, %v5291_v41  ;;  %v5359_v10 = vmin.f32 %v14145_v13, 0.0  ;;  %v8585_v23 = vadd.f32 -1.0, %v10006_v9  ;;  %v14177_v25 = vadd.f32 %v14057_v59, %v5293_v6 }
 0x5a1   :  { %v5363_v37 = vmin.f32 %v14149_v57, 0.0  ;;  %v5365_v28 = vmin.f32 %v14152_v33, 0.0  ;;  %v5382_v60 = vmul.f32 1.442695, %v5345_v7  ;;  %10013 = vpow2.f32 %v5450_v44 }
 0x5a2   :  { %v5386_v45 = vmul.f32 1.442695, %v5347_v53  ;;  %v5394_v61 = vmul.f32 1.442695, %v5351_v15  ;;  %v5398_v34 = vmul.f32 1.442695, %v5353_v30  ;;  %v5572_v44 = vsel %vm5536_vm8, %v13988_v43, %v14086_v20 }
 0x5a3   :  { %v5369_v12 = vmin.f32 %v14158_v3, 0.0  ;;  %10015 = vpow2.f32 %v5382_v60  ;;  %v5406_v41 = vmul.f32 1.442695, %v5357_v5  ;;  %v5371_v9 = vmin.f32 %v14170_v26, 0.0 }
 0x5a4   :  { %10017 = vpow2.f32 %v5386_v45  ;;  %v5410_v6 = vmul.f32 1.442695, %v5359_v10  ;;  %v5375_v7 = vmin.f32 %v14173_v0, 0.0  ;;  %v5377_v53 = vmin.f32 %v14177_v25, 0.0 }
 0x5a5   :  { %10019 = vpow2.f32 %v5394_v61  ;;  %v5418_v15 = vmul.f32 1.442695, %v5363_v37  ;;  %v5422_v17 = vmul.f32 1.442695, %v5365_v28  ;;  %v8587_v30 = vadd.f32 -1.0, %v14107_v52 }
 0x5a6   :  { %10021 = vpow2.f32 %v5398_v34  ;;  %v5604_v5 = vmul.f32 1.050701, %v5568_v27  ;;  %v5430_v10 = vmul.f32 1.442695, %v5369_v12  ;;  %v5508_v43 = vmul.f32 1.6732632, %v14117_v16 }
 0x5a7   :  { %10023 = vpow2.f32 %v5406_v41  ;;  %v5574_v20 = vsel %vm5538_vm4, %v13991_v8, %v5502_v11  ;;  %v5434_v37 = vmul.f32 1.442695, %v5371_v9  ;;  %v5578_v60 = vsel %vm5542_vm3, %v13999_v54, %v5506_v47 }
 0x5a8   :  { %10025 = vpow2.f32 %v5410_v6  ;;  %v14203_v28 = vmul.f32 1.050701, %v5572_v44  ;;  %v5442_v52 = vmul.f32 1.442695, %v5375_v7  ;;  %v5446_v45 = vmul.f32 1.442695, %v5377_v53 }
 0x5a9   :  { %10027 = vpow2.f32 %v5418_v15  ;;  %vm5525_vm2 = vcmp.gt.f32.partialorder %v14129_v35, 0.0  ;;  %vm5527_vm10 = vcmp.gt.f32.partialorder %v14132_v22, 0.0  ;;  %v8591_v16 = vadd.f32 -1.0, %v14113_v32 }
 0x5aa   :  { %10029 = vpow2.f32 %v5422_v17  ;;  %v8593_v8 = vadd.f32 -1.0, %v14121_v31  ;;  %vm5531_vm11 = vcmp.gt.f32.partialorder %v14136_v50, 0.0  ;;  %v5512_v11 = vmul.f32 1.6732632, %v8585_v23 }
 0x5ab   :  { %10031 = vpow2.f32 %v5430_v10  ;;  %v5514_v27 = vmul.f32 1.6732632, %v8587_v30  ;;  %v14210_v54 = vpop.eup %10013  ;;  %vm5533_vm13 = vcmp.gt.f32.partialorder %v14139_v21, 0.0  ;;  %v5518_v47 = vmul.f32 1.6732632, %v8591_v16 }
 0x5ac   :  { %10033 = vpow2.f32 %v5434_v37  ;;  %v5520_v61 = vmul.f32 1.6732632, %v8593_v8  ;;  %vm5537_vm12 = vcmp.gt.f32.partialorder %v14142_v18, 0.0  ;;  %v5580_v32 = vsel %vm5544_vm9, %v14013_v48, %v5508_v43 }
 0x5ad   :  { %v10016_v34 = vpop.eup %10015  ;;  %10035 = vpow2.f32 %v5442_v52  ;;  %v5584_v31 = vsel %vm5548_vm0, %v14017_v58, %v5512_v11  ;;  %vm5539_vm14 = vcmp.gt.f32.partialorder %v14145_v13, 0.0  ;;  %v5586_v41 = vsel %vm5550_vm5, %v14020_v1, %v5514_v27 }
 0x5ae   :  { %v10018_v23 = vpop.eup %10017  ;;  %10037 = vpow2.f32 %v5446_v45  ;;  %v8562_v12 = vadd.f32 -1.0, %v10016_v34  ;;  %v14227_v9 = vsel %vm5554_vm15, %v14023_v39, %v5518_v47  ;;  %vm5543_vm6 = vcmp.gt.f32.partialorder %v14149_v57, 0.0 }
 0x5af   :  { %v10020_v6 = vpop.eup %10019  ;;  %v8564_v48 = vadd.f32 -1.0, %v10018_v23  ;;  %v14233_v58 = vsel %vm5556_vm1, %v14026_v49, %v5520_v61  ;;  %v14235_v44 = vmul.f32 1.050701, %v5574_v20  ;;  %v14237_v7 = vmul.f32 1.050701, %v5578_v60 }
 0x5b0   :  { %v10022_v53 = vpop.eup %10021  ;;  %v8568_v1 = vadd.f32 -1.0, %v10020_v6  ;;  %v5489_v15 = vmul.f32 1.6732632, %v8562_v12  ;;  %vm5545_vm8 = vcmp.gt.f32.partialorder %v14152_v33, 0.0  ;;  %v14240_v39 = vmul.f32 1.050701, %v5580_v32 }
 0x5b1   :  { %v14244_v17 = vpack.c.bf16 %v14119_v42, %v14062_v40  ;;  %v10024_v30 = vpop.eup %10023  ;;  %v8570_v10 = vadd.f32 -1.0, %v10022_v53  ;;  %v5491_v43 = vmul.f32 1.6732632, %v8564_v48  ;;  %vm5549_vm4 = vcmp.gt.f32.partialorder %v14158_v3, 0.0 }
 0x5b2   :  { %v14247_v49 = vmul.f32 1.050701, %v5584_v31  ;;  %v14250_v20 = vpack.c.bf16 %v5604_v5, %v14162_v36  ;;  %v10026_v37 = vpop.eup %10025  ;;  %v8574_v60 = vadd.f32 -1.0, %v10024_v30  ;;  %v5495_v52 = vmul.f32 1.6732632, %v8568_v1 }
 0x5b3   :  { %vm5551_vm3 = vcmp.gt.f32.partialorder %v14170_v26, 0.0  ;;  %v5561_v40 = vsel %vm5525_vm2, %v14129_v35, %v5489_v15  ;;  %v14256_v42 = vmul.f32 1.050701, %v5586_v41  ;;  %v10028_v45 = vpop.eup %10027  ;;  %v8576_v16 = vadd.f32 -1.0, %v10026_v37 }
 0x5b4   :  { %v5497_v8 = vmul.f32 1.6732632, %v8570_v10  ;;  %vm5555_vm9 = vcmp.gt.f32.partialorder %v14173_v0, 0.0  ;;  %v5563_v36 = vsel %vm5527_vm10, %v14132_v22, %v5491_v43  ;;  %v5597_v5 = vmul.f32 1.050701, %v5561_v40  ;;  %v10030_v11 = vpop.eup %10029 }
 0x5b5   :  { %v8580_v27 = vadd.f32 -1.0, %v10028_v45  ;;  %v5501_v47 = vmul.f32 1.6732632, %v8574_v60  ;;  %vm5557_vm0 = vcmp.gt.f32.partialorder %v14177_v25, 0.0  ;;  %v5567_v35 = vsel %vm5531_vm11, %v14136_v50, %v5495_v52  ;;  %v10032_v34 = vpop.eup %10031 }
 0x5b6   :  { %v5599_v61 = vmul.f32 1.050701, %v5563_v36  ;;  %v8582_v32 = vadd.f32 -1.0, %v10030_v11  ;;  %v5503_v31 = vmul.f32 1.6732632, %v8576_v16  ;;  %v5569_v23 = vsel %vm5533_vm13, %v14139_v21, %v5497_v8  ;;  %v10034_v22 = vpop.eup %10033 }
 0x5b7   :  { %v5603_v12 = vmul.f32 1.050701, %v5567_v35  ;;  %v8586_v41 = vadd.f32 -1.0, %v10032_v34  ;;  %v5507_v6 = vmul.f32 1.6732632, %v8580_v27  ;;  %v5573_v48 = vsel %vm5537_vm12, %v14142_v18, %v5501_v47  ;;  %v10036_v1 = vpop.eup %10035 }
 0x5b8   :  { %v5605_v53 = vmul.f32 1.050701, %v5569_v23  ;;  %v8588_v15 = vadd.f32 -1.0, %v10034_v22  ;;  %v5509_v50 = vmul.f32 1.6732632, %v8582_v32  ;;  %v5575_v30 = vsel %vm5539_vm14, %v14145_v13, %v5503_v31  ;;  %v10038_v43 = vpop.eup %10037 }
 0x5b9   :  { %v5609_v10 = vmul.f32 1.050701, %v5573_v48  ;;  %v8592_v37 = vadd.f32 -1.0, %v10036_v1  ;;  %v5513_v21 = vmul.f32 1.6732632, %v8586_v41  ;;  %v5579_v60 = vsel %vm5543_vm6, %v14149_v57, %v5507_v6 }
 0x5ba   :  { %v5611_v52 = vmul.f32 1.050701, %v5575_v30  ;;  %v8594_v40 = vadd.f32 -1.0, %v10038_v43  ;;  %v5515_v45 = vmul.f32 1.6732632, %v8588_v15  ;;  %v5581_v18 = vsel %vm5545_vm8, %v14152_v33, %v5509_v50 }
 0x5bb   :  { %v5615_v16 = vmul.f32 1.050701, %v5579_v60  ;;  %v5519_v8 = vmul.f32 1.6732632, %v8592_v37  ;;  %v5585_v13 = vsel %vm5549_vm4, %v14158_v3, %v5513_v21  ;;  %v5617_v36 = vmul.f32 1.050701, %v5581_v18 }
 0x5bc   :  { %v5633_v11 = vpack.c.bf16 %v5599_v61, %v5597_v5  ;;  %v5521_v27 = vmul.f32 1.6732632, %v8594_v40  ;;  %v5587_v57 = vsel %vm5551_vm3, %v14170_v26, %v5515_v45  ;;  %v5621_v47 = vmul.f32 1.050701, %v5585_v13 }
 0x5bd   :  { %v5637_v35 = vpack.c.bf16 %v5605_v53, %v5603_v12  ;;  %vm5690_vm5 = vcmask 1044484   ;;  %v5591_v33 = vsel %vm5555_vm9, %v14173_v0, %v5519_v8  ;;  %v5623_v34 = vmul.f32 1.050701, %v5587_v57 }
 0x5be   :  { %v5641_v32 = vpack.c.bf16 %v5611_v52, %v5609_v10  ;;  %v5645_v31 = vpack.c.bf16 %v5617_v36, %v5615_v16  ;;  %v5593_v3 = vsel %vm5557_vm0, %v14177_v25, %v5521_v27  ;;  %v5627_v5 = vmul.f32 1.050701, %v5591_v33 }
 0x5bf   :  { %v14293_v61 = vunpack.c.l.b16 %v5633_v11  ;;  %v14295_v23 = vunpack.c.l.b16 %v5637_v35  ;;  %vm5693_vm15 = vcmask 1045509   ;;  %v5629_v26 = vmul.f32 1.050701, %v5593_v3 }
 0x5c0   :  { %v5649_v12 = vpack.c.bf16 %v5623_v34, %v5621_v47  ;;  %v14297_v22 = vunpack.c.l.b16 %v5641_v32  ;;  %v14299_v41 = vunpack.c.l.b16 %v5645_v31  ;;  %v5626_v6 = vmul.f32 1.050701, %v14227_v9 }
 0x5c1   :  { %v17017_v0 = vrot.slane %v14295_v23, 7  ;;  %v5628_v48 = vmul.f32 1.050701, %v14233_v58  ;;  %v14306_v25 = vpack.c.bf16 %v14235_v44, %v14203_v28  ;;  %v5653_v53 = vpack.c.bf16 %v5629_v26, %v5627_v5 }
 0x5c2   :  { %v14308_v1 = vunpack.c.l.b16 %v5649_v12  ;;  %v17012_v15 = vrot.slane %v14297_v22, 6  ;;  %v17011_v50 = vrot.slane %v14299_v41, 5  ;;  %vm6720_vm1 = vcmask 1046534  }
 0x5c3   :  { %vm17420_vm2 = vcmask 1041409   ;;  %v14318_v9 = vpack.c.bf16 %v14240_v39, %v14237_v7  ;;  %v14322_v28 = vpack.c.bf16 %v14256_v42, %v14247_v49  ;;  %v14324_v58 = vpack.c.bf16 %v5628_v48, %v5626_v6 }
 0x5c4   :  { %v5696_v30 = vsel %vm17420_vm2, %v17017_v0, %v14293_v61  ;;  %v14326_v44 = vunpack.c.l.b16 %v5653_v53  ;;  %vm17421_vm10 = vcmask 1042434   ;;  %v17005_v43 = vrot.slane %v14308_v1, 4  ;;  %vm17423_vm12 = vmmov %vm17420_vm2 }
 0x5c5   :  { %v5698_v10 = vsel %vm17421_vm10, %v17012_v15, %v5696_v30  ;;  %v14333_v37 = vunpack.c.l.b16 %v14244_v17  ;;  %vm17422_vm11 = vcmask 1043459   ;;  %v14339_v39 = vunpack.c.l.b16 %v14250_v20  ;;  %vm17424_vm14 = vmmov %vm17421_vm10 }
 0x5c6   :  { %v5700_v7 = vsel %vm17422_vm11, %v17011_v50, %v5698_v10  ;;  %v14342_v49 = vunpack.c.l.b16 %v14306_v25  ;;  %v14345_v42 = vunpack.c.l.b16 %v14318_v9  ;;  %vm6722_vm13 = vcmask 1047559   ;;  %vm17426_vm6 = vmmov %vm17422_vm11 }
 0x5c7   :  { %v5702_v21 = vsel %vm5690_vm5, %v17005_v43, %v5700_v7  ;;  %v17004_v60 = vrot.slane %v14326_v44, 3  ;;  %v14352_v52 = vunpack.c.l.b16 %v14322_v28  ;;  %v14355_v40 = vunpack.c.l.b16 %v14324_v58  ;;  %vm17427_vm8 = vmmov %vm17420_vm2 }
 0x5c8   :  { %v17003_v45 = vrot.slane %v14339_v39, 7  ;;  %v16997_v18 = vrot.slane %v14342_v49, 6  ;;  %v16994_v16 = vrot.slane %v14345_v42, 5  ;;  %v14360_v8 = vunpack.c.h.b16 %v5633_v11  ;;  %vm17428_vm4 = vmmov %vm17420_vm2 }
 0x5c9   :  { %v5704_v13 = vsel %vm5693_vm15, %v17004_v60, %v5702_v21  ;;  %v16990_v36 = vrot.slane %v14352_v52, 4  ;;  %v16986_v27 = vrot.slane %v14355_v40, 3  ;;  %v14367_v57 = vunpack.c.h.b16 %v5637_v35  ;;  %v14406_v21 = vld [vmem:[%s16870_s10 + $0x100] ss:$8 sps:$4 sm:$0xff]   ;;  %vm17429_vm3 = vmmov %vm17421_vm10 }
 0x5ca   :  { %v5706_v47 = vpack.c.b16 %v5704_v13, %v5704_v13  ;;  %v5682_v33 = vsel %vm17423_vm12, %v17003_v45, %v14333_v37  ;;  %v14373_v34 = vunpack.c.h.b16 %v5641_v32  ;;  %v14375_v11 = vunpack.c.h.b16 %v5645_v31  ;;  %vm17430_vm9 = vmmov %vm17426_vm6 }
 0x5cb   :  { %v5685_v3 = vsel %vm17424_vm14, %v16997_v18, %v5682_v33  ;;  %v14380_v5 = vunpack.c.h.b16 %v5649_v12  ;;  %v14382_v26 = vunpack.c.h.b16 %v5653_v53  ;;  %v16984_v35 = vrot.slane %v14367_v57, 7  ;;  %vm17438_vm10 = vmmov %vm17420_vm2 }
 0x5cc   :  { %6585 = vmatprep.mubr.bf16.mxu0 %v5706_v47  ;;  %v5688_v6 = vsel %vm17426_vm6, %v16994_v16, %v5685_v3  ;;  %v16985_v32 = vrot.slane %v14373_v34, 6  ;;  %v16989_v31 = vrot.slane %v14375_v11, 5  ;;  %v16998_v48 = vrot.slane %v14293_v61, 1  ;;  %v14492_v16 = vld [vmem:[%s16870_s10 + $0x120] ss:$8 sps:$4 sm:$0xff]   ;;  %vm17441_vm14 = vmmov %vm17420_vm2 }
 0x5cd   :  { %17425 = vst [vmem:[#allocation48_spill] sm:$0xff] %v14382_v26  ;;  %v5691_v12 = vsel %vm5690_vm5, %v16990_v36, %v5688_v6  ;;  %v6990_v53 = vsel %vm5693_vm15, %v16984_v35, %v14360_v8  ;;  %v16988_v30 = vrot.slane %v14380_v5, 4  ;;  %v16987_v10 = vrot.slane %v14382_v26, 3  ;;  %v14428_v35 = vld [vmem:[%s16870_s10 + $0x114] ss:$8 sps:$4 sm:$0xff]   ;;  %vm17442_vm6 = vmmov %vm17429_vm3 }
 0x5ce   :  { %v5694_v7 = vsel %vm5693_vm15, %v16986_v27, %v5691_v12  ;;  %v6992_v13 = vsel %vm6720_vm1, %v16985_v32, %v6990_v53  ;;  %v5720_v47 = vsel %vm17427_vm8, %v14295_v23, %v16998_v48  ;;  %v16996_v33 = vrot.slane %v14297_v22, 7  ;;  %v14511_v48 = vld [vmem:[%s16870_s10 + $0x134] ss:$8 sps:$4 sm:$0xff]   ;;  %vm17443_vm8 = vmmov %vm17420_vm2 }
 0x5cf   :  { %v5705_v3 = vpack.c.b16 %v5694_v7, %v5694_v7  ;;  %v6994_v6 = vsel %vm6722_vm13, %v16989_v31, %v6992_v13  ;;  %v7000_v12 = vsel %vm17428_vm4, %v16987_v10, %v16988_v30  ;;  %v16993_v53 = vrot.slane %v14299_v41, 6  ;;  %vm17444_vm4 = vmmov %vm17430_vm9 }
 0x5d0   :  { %v7002_v32 = vpack.c.b16 %v6994_v6, %v6994_v6  ;;  %v7004_v27 = vpack.c.b16 %v7000_v12, %v7000_v12  ;;  %v5722_v7 = vsel %vm17429_vm3, %v16996_v33, %v5720_v47  ;;  %v16991_v13 = vrot.slane %v14308_v1, 5 }
 0x5d1   :  { %6586 = vmatmul.mubr.bf16.vlgmr.msra.gmra.mrb[32].mxu0 %v5705_v3  ;;  %v5724_v10 = vsel %vm17430_vm9, %v16993_v53, %v5722_v7  ;;  %v16992_v30 = vrot.slane %v14326_v44, 4  ;;  %v14439_v31 = vunpack.c.h.b16 %v14244_v17  ;;  %v14442_v36 = vunpack.c.h.b16 %v14250_v20  ;;  %v14454_v7 = vld [vmem:[%s16870_s10 + $0x110] ss:$8 sps:$4 sm:$0xff]   ;;  %vm17445_vm9 = vmmov %vm17442_vm6 }
 0x5d2   :  { %6595 = vmatpush1.bf16.msra.mxu0 %v14406_v21  ;;  %v7103_v6 = vrot.slane %v7002_v32, 6  ;;  %v7104_v12 = vrot.slane %v7004_v27, 6  ;;  %v5726_v47 = vsel %vm5690_vm5, %v16991_v13, %v5724_v10  ;;  %v14449_v3 = vunpack.c.h.b16 %v14306_v25  ;;  %v14472_v25 = vld [vmem:[%s16870_s10 + $0x124] ss:$8 sps:$4 sm:$0xff]  }
 0x5d3   :  { %17431 = vst [vmem:[#allocation3_spill] sm:$0xff] %v14439_v31  ;;  %17432 = vst [vmem:[#allocation20_spill] sm:$0xff] %v14442_v36  ;;  %v5728_v17 = vsel %vm5693_vm15, %v16992_v30, %v5726_v47  ;;  %v14460_v20 = vunpack.c.h.b16 %v14318_v9  ;;  %v14463_v27 = vunpack.c.h.b16 %v14322_v28  ;;  %v14466_v32 = vunpack.c.h.b16 %v14324_v58  ;;  %6596 = vmatprep.subr.bf16.mxu0 %v14428_v35 }
 0x5d4   :  { %17433 = vst [vmem:[#allocation4_spill] sm:$0xff] %v14449_v3  ;;  %vm17437_vm0 = vcmask 1041408   ;;  %v5730_v13 = vpack.c.b16 %v5728_v17, %v5728_v17  ;;  %v16995_v47 = vrot.slane %v14442_v36, 7  ;;  %v16999_v9 = vrot.slane %v14449_v3, 6 }
 0x5d5   :  { %17434 = vst [vmem:[#allocation5_spill] sm:$0xff] %v14460_v20  ;;  %17435 = vst [vmem:[#allocation6_spill] sm:$0xff] %v14463_v27  ;;  %v7105_v10 = vsel %vm17437_vm0, %v7103_v6, %v7104_v12  ;;  %v17010_v28 = vrot.slane %v14460_v20, 5  ;;  %v17001_v58 = vrot.slane %v14463_v27, 4  ;;  %v17000_v30 = vrot.slane %v14466_v32, 3 }
 0x5d6   :  { %17436 = vst [vmem:[#allocation7_spill] sm:$0xff] %v14466_v32  ;;  %7164 = vmatprep.mubr.bf16.mxu1 %v7105_v10  ;;  %v17002_v53 = vrot.slane %v14360_v8, 1  ;;  %6626 = vmatprep.mubr.bf16.mxu0 %v5730_v13  ;;  %v6984_v6 = vsel %vm5693_vm15, %v16995_v47, %v14439_v31  ;;  %v17009_v12 = vrot.slane %v14373_v34, 7  ;;  %v17006_v17 = vrot.slane %v14375_v11, 6  ;;  %vm17439_vm11 = vmmov %vm17437_vm0 }
 0x5d7   :  { %v17008_v10 = vrot.slane %v14380_v5, 5  ;;  %6597 = vmatpush1.bf16.msra.mxu0 %v14454_v7  ;;  %v6986_v13 = vsel %vm6720_vm1, %v16999_v9, %v6984_v6  ;;  %v6997_v47 = vsel %vm17420_vm2, %v17000_v30, %v17001_v58  ;;  %v17007_v18 = vrot.slane %v14382_v26, 4  ;;  %vm17440_vm12 = vmmov %vm17437_vm0 }
 0x5d8   :  { %v7012_v33 = vsel %vm5693_vm15, %v14367_v57, %v17002_v53  ;;  %6598 = vmatprep.subr.bf16.mxu0 %v14472_v25  ;;  %v6988_v6 = vsel %vm6722_vm13, %v17010_v28, %v6986_v13  ;;  %v7003_v9 = vpack.c.b16 %v6997_v47, %v6997_v47  ;;  %v8595_v60 = vadd.f32 -1.0, %v14089_v29  ;;  %vm17446_vm2 = vmmov %vm17444_vm4 }
 0x5d9   :  { %v7014_v30 = vsel %vm6720_vm1, %v17009_v12, %v7012_v33  ;;  %v7001_v58 = vpack.c.b16 %v6988_v6, %v6988_v6  ;;  %v7022_v45 = vsel %vm17438_vm10, %v17007_v18, %v17008_v10  ;;  %v14532_v33 = vld [vmem:[%s16870_s10 + $0x130] ss:$8 sps:$4 sm:$0xff]   ;;  %v14538_v18 = vld [vmem:[%s16870_s10 + $0x144] ss:$8 sps:$4 sm:$0xff]   ;;  %v5744_v29 = vrot.slane %v14293_v61, 6 }
 0x5da   :  { %v7016_v53 = vsel %vm6722_vm13, %v17006_v17, %v7014_v30  ;;  %v7026_v13 = vpack.c.b16 %v7022_v45, %v7022_v45  ;;  %v7101_v6 = vrot.slane %v7003_v9, 6  ;;  %v5745_v10 = vrot.slane %v14295_v23, 5 }
 0x5db   :  { %v7024_v43 = vpack.c.b16 %v7016_v53, %v7016_v53  ;;  %6599 = vmatpush1.bf16.msra.mxu0 %v14492_v16  ;;  %v7100_v47 = vrot.slane %v7001_v58, 6  ;;  %v17016_v53 = vrot.slane %v14333_v37, 1  ;;  %v5747_v58 = vrot.slane %v14297_v22, 4 }
 0x5dc   :  { %6600 = vmatprep.subr.bf16.mxu0 %v14511_v48  ;;  %v7110_v17 = vrot.slane %v7026_v13, 6  ;;  %v5522_v9 = vmul.f32 1.6732632, %v8595_v60  ;;  %v14550_v13 = vld [vmem:[%s16870_s10 + $0x140] ss:$8 sps:$4 sm:$0xff]   ;;  %v5348_v12 = vmin.f32 %v14004_v2, 0.0 }
 0x5dd   :  { %v7109_v30 = vrot.slane %v7024_v43, 6  ;;  %v7102_v45 = vsel %vm17439_vm11, %v7100_v47, %v7101_v6  ;;  %v5265_v47 = vmul.f32 %v14053_v55, %v14065_v46  ;;  %v5271_v6 = vmul.f32 %v14053_v55, %v14068_v38  ;;  %v14561_v60 = vld [vmem:[%s16870_s10 + $0x154] ss:$8 sps:$4 sm:$0xff]   ;;  %vm17448_vm11 = vmmov %vm17443_vm8 }
 0x5de   :  { %7165 = vmatmul.mubr.bf16.vlgmr.msra.gmra.mrb[52].mxu1 %v7102_v45  ;;  %v8596_v45 = vadd.f32 -1.0, %v14210_v54  ;;  %v17013_v46 = vrot.slane %v14342_v49, 7  ;;  %vm5558_vm3 = vcmp.gt.f32.partialorder %v13967_v62, 0.0  ;;  %vm5559_vm0 = vcmp.gt.f32.partialorder %v14102_v4, 0.0 }
 0x5df   :  { %v7111_v43 = vsel %vm17440_vm12, %v7109_v30, %v7110_v17  ;;  %6601 = vmatpush1.bf16.msra.mxu0 %v14532_v33  ;;  %7174 = vmatpush1.bf16.msra.mxu1 %v14406_v21  ;;  %v5746_v17 = vsel %vm17441_vm14, %v5745_v10, %v5744_v29  ;;  %v5749_v30 = vrot.slane %v14299_v41, 3  ;;  %v5751_v21 = vrot.slane %v14308_v1, 2  ;;  %v14584_v29 = vld [vmem:[%s16870_s10 + $0x150] ss:$8 sps:$4 sm:$0xff]   ;;  %vm17449_vm12 = vmmov %vm17442_vm6 }
 0x5e0   :  { %7205 = vmatprep.mubr.bf16.mxu1 %v7111_v43  ;;  %7175 = vmatprep.subr.bf16.mxu1 %v14428_v35  ;;  %v5748_v38 = vsel %vm17442_vm6, %v5747_v58, %v5746_v17  ;;  %v5289_v43 = vmul.f32 %v14053_v55, %v14077_v63  ;;  %v5710_v10 = vsel %vm17443_vm8, %v14339_v39, %v17016_v53  ;;  %v5753_v35 = vrot.slane %v14326_v44, 1  ;;  %vm17450_vm14 = vmmov %vm17446_vm2 }
 0x5e1   :  { %6602 = vmatprep.subr.bf16.mxu0 %v14538_v18  ;;  %v5750_v54 = vsel %vm17444_vm4, %v5749_v30, %v5748_v38  ;;  %v5277_v58 = vmul.f32 %v14053_v55, %v14071_v56  ;;  %v5283_v17 = vmul.f32 %v14053_v55, %v14074_v51  ;;  %v5594_v30 = vsel %vm5558_vm3, %v13967_v62, %v5522_v9  ;;  %v14597_v38 = vld [vmem:[%s16870_s10 + $0x164] ss:$8 sps:$4 sm:$0xff]   ;;  %v14612_v51 = vld [vmem:[%s16870_s10 + $0x160] ss:$8 sps:$4 sm:$0xff]  }
 0x5e2   :  { %v5752_v63 = vsel %vm5690_vm5, %v5751_v21, %v5750_v54  ;;  %v5523_v21 = vmul.f32 1.6732632, %v8596_v45  ;;  %v5712_v55 = vsel %vm17445_vm9, %v17013_v46, %v5710_v10  ;;  %v14607_v62 = vadd.f32 %v14057_v59, %v5265_v47  ;;  %v14650_v46 = vld [vmem:[%s16870_s10 + $0x170] ss:$8 sps:$4 sm:$0xff]  }
 0x5e3   :  { %6603 = vmatpush1.bf16.msra.mxu0 %v14550_v13  ;;  %7176 = vmatpush1.bf16.msra.mxu1 %v14454_v7  ;;  %v14600_v28 = vsel %vm5693_vm15, %v5753_v35, %v5752_v63  ;;  %v5388_v56 = vmul.f32 1.442695, %v5348_v12  ;;  %v14615_v7 = vadd.f32 %v14057_v59, %v5271_v6  ;;  %v14618_v9 = vadd.f32 %v14057_v59, %v5277_v58  ;;  %v14635_v6 = vld [vmem:[%s16870_s10 + $0x174] ss:$8 sps:$4 sm:$0xff]  }
 0x5e4   :  { %6604 = vmatprep.subr.bf16.mxu0 %v14561_v60  ;;  %7177 = vmatprep.subr.bf16.mxu1 %v14472_v25  ;;  %v14621_v25 = vadd.f32 %v14057_v59, %v5283_v17  ;;  %v14624_v45 = vadd.f32 %v14057_v59, %v5289_v43  ;;  %v5630_v47 = vmul.f32 1.050701, %v5594_v30  ;;  %v17015_v12 = vrot.slane %v14345_v42, 6 }
 0x5e5   :  { %v5349_v10 = vmin.f32 %v14607_v62, 0.0  ;;  %v5355_v59 = vmin.f32 %v14615_v7, 0.0  ;;  %v5361_v43 = vmin.f32 %v14618_v9, 0.0  ;;  %v5595_v63 = vsel %vm5559_vm0, %v14102_v4, %v5523_v21  ;;  %vm17452_vm0 = vmmov %vm17446_vm2 }
 0x5e6   :  { %v5367_v54 = vmin.f32 %v14621_v25, 0.0  ;;  %v5373_v35 = vmin.f32 %v14624_v45, 0.0  ;;  %10039 = vpow2.f32 %v5388_v56  ;;  %v5654_v15 = vpack.c.bf16 %v5630_v47, %v5630_v47 }
 0x5e7   :  { %6605 = vmatpush1.bf16.msra.mxu0 %v14584_v29  ;;  %7178 = vmatpush1.bf16.msra.mxu1 %v14492_v16  ;;  %v5714_v16 = vsel %vm17446_vm2, %v17015_v12, %v5712_v55  ;;  %v5390_v58 = vmul.f32 1.442695, %v5349_v10  ;;  %v5402_v17 = vmul.f32 1.442695, %v5355_v59  ;;  %v5414_v30 = vmul.f32 1.442695, %v5361_v43 }
 0x5e8   :  { %6606 = vmatprep.subr.bf16.mxu0 %v14597_v38  ;;  %7179 = vmatprep.subr.bf16.mxu1 %v14511_v48  ;;  %v5426_v50 = vmul.f32 1.442695, %v5367_v54  ;;  %v17014_v4 = vrot.slane %v14352_v52, 5  ;;  %v5438_v48 = vmul.f32 1.442695, %v5373_v35  ;;  %v5354_v56 = vmin.f32 %v14034_v14, 0.0 }
 0x5e9   :  { %10041 = vpow2.f32 %v5390_v58  ;;  %v5631_v21 = vmul.f32 1.050701, %v5595_v63  ;;  %v14658_v55 = vld [vmem:[%s16870_s10 + $0x184] ss:$8 sps:$4 sm:$0xff]   ;;  %v5360_v10 = vmin.f32 %v14038_v19, 0.0  ;;  %v17021_v59 = vrot.slane %v14355_v40, 4 }
 0x5ea   :  { %10043 = vpow2.f32 %v5402_v17  ;;  %v5716_v47 = vsel %vm5690_vm5, %v17014_v4, %v5714_v16  ;;  %v5770_v43 = vrot.slane %v14293_v61, 7  ;;  %v17447_v54 = vld [vmem:[#allocation47_spill] sm:$0xff]  ;;  %v14670_v63 = vunpack.c.l.b16 %v5654_v15 }
 0x5eb   :  { %6607 = vmatpush1.bf16.msra.mxu0 %v14612_v51  ;;  %7180 = vmatpush1.bf16.msra.mxu1 %v14532_v33  ;;  %10045 = vpow2.f32 %v5414_v30  ;;  %v5366_v33 = vmin.f32 %v14042_v24, 0.0  ;;  %v5372_v35 = vmin.f32 %v17447_v54, 0.0  ;;  %v5771_v16 = vrot.slane %v14295_v23, 6  ;;  %v14685_v15 = vld [vmem:[%s16870_s10 + $0x194] ss:$8 sps:$4 sm:$0xff]  }
 0x5ec   :  { %6608 = vmatprep.subr.bf16.mxu0 %v14635_v6  ;;  %7181 = vmatprep.subr.bf16.mxu1 %v14538_v18  ;;  %10047 = vpow2.f32 %v5426_v50  ;;  %v14676_v18 = vld [vmem:[%s16870_s10 + $0x180] ss:$8 sps:$4 sm:$0xff]   ;;  %v5773_v58 = vrot.slane %v14297_v22, 5  ;;  %v5655_v17 = vpack.c.bf16 %v5631_v21, %v5631_v21  ;;  %v14690_v50 = vsel %vm5693_vm15, %v17021_v59, %v5716_v47  ;;  %v14703_v47 = vld [vmem:[%s16870_s10 + $0x190] ss:$8 sps:$4 sm:$0xff]  }
 0x5ed   :  { %10049 = vpow2.f32 %v5438_v48  ;;  %v17020_v30 = vrot.slane %v14439_v31, 1  ;;  %vm5528_vm10 = vcmp.gt.f32.partialorder %v14004_v2, 0.0  ;;  %v5775_v48 = vrot.slane %v14299_v41, 4 }
 0x5ee   :  { %v5400_v21 = vmul.f32 1.442695, %v5354_v56  ;;  %v5412_v4 = vmul.f32 1.442695, %v5360_v10  ;;  %v5777_v53 = vrot.slane %v14308_v1, 3  ;;  %v5779_v56 = vrot.slane %v14326_v44, 2 }
 0x5ef   :  { %6609 = vmatpush1.bf16.msra.mxu0 %v14650_v46  ;;  %7182 = vmatpush1.bf16.msra.mxu1 %v14550_v13  ;;  %v5772_v13 = vsel %vm17448_vm11, %v5771_v16, %v5770_v43  ;;  %v5424_v0 = vmul.f32 1.442695, %v5366_v33  ;;  %v5436_v26 = vmul.f32 1.442695, %v5372_v35  ;;  %v14714_v33 = vld [vmem:[%s16870_s10 + $0x1a4] ss:$8 sps:$4 sm:$0xff]   ;;  %v14720_v35 = vsel %vm5693_vm15, %v14442_v36, %v17020_v30 }
 0x5f0   :  { %6610 = vmatprep.subr.bf16.mxu0 %v14658_v55  ;;  %7183 = vmatprep.subr.bf16.mxu1 %v14561_v60  ;;  %v5774_v12 = vsel %vm17449_vm12, %v5773_v58, %v5772_v13  ;;  %10051 = vpow2.f32 %v5400_v21  ;;  %v10040_v10 = vpop.eup %10039  ;;  %v14733_v30 = vld [vmem:[%s16870_s10 + $0x1a0] ss:$8 sps:$4 sm:$0xff]   ;;  %vm5529_vm6 = vcmp.gt.f32.partialorder %v14607_v62, 0.0  ;;  %vm5535_vm8 = vcmp.gt.f32.partialorder %v14615_v7, 0.0 }
 0x5f1   :  { %v5776_v43 = vsel %vm17450_vm14, %v5775_v48, %v5774_v12  ;;  %10053 = vpow2.f32 %v5412_v4  ;;  %v8565_v48 = vadd.f32 -1.0, %v10040_v10  ;;  %vm5541_vm4 = vcmp.gt.f32.partialorder %v14618_v9, 0.0 }
 0x5f2   :  { %v5778_v16 = vsel %vm5690_vm5, %v5777_v53, %v5776_v43  ;;  %10055 = vpow2.f32 %v5424_v0  ;;  %vm5547_vm3 = vcmp.gt.f32.partialorder %v14621_v25, 0.0  ;;  %vm5553_vm9 = vcmp.gt.f32.partialorder %v14624_v45, 0.0 }
 0x5f3   :  { %6611 = vmatpush1.bf16.msra.mxu0 %v14676_v18  ;;  %7184 = vmatpush1.bf16.msra.mxu1 %v14584_v29  ;;  %v10042_v58 = vpop.eup %10041  ;;  %v14725_v29 = vunpack.c.l.b16 %v5655_v17  ;;  %v14728_v13 = vsel %vm5693_vm15, %v5779_v56, %v5778_v16  ;;  %10057 = vpow2.f32 %v5436_v26  ;;  %v5492_v0 = vmul.f32 1.6732632, %v8565_v48  ;;  %v14745_v17 = vld [vmem:[%s16870_s10 + $0x1b4] ss:$8 sps:$4 sm:$0xff]  }
 0x5f4   :  { %6612 = vmatprep.subr.bf16.mxu0 %v14685_v15  ;;  %7185 = vmatprep.subr.bf16.mxu1 %v14597_v38  ;;  %v10044_v21 = vpop.eup %10043  ;;  %v8566_v59 = vadd.f32 -1.0, %v10042_v58  ;;  %v17451_v56 = vrot.slane %v14295_v23, 7  ;;  %vm5534_vm2 = vcmp.gt.f32.partialorder %v14034_v14, 0.0  ;;  %vm5546_vm11 = vcmp.gt.f32.partialorder %v14042_v24, 0.0 }
 0x5f5   :  { %v10046_v53 = vpop.eup %10045  ;;  %v8572_v38 = vadd.f32 -1.0, %v10044_v21  ;;  %v5564_v21 = vsel %vm5528_vm10, %v14004_v2, %v5492_v0  ;;  %vm5540_vm10 = vcmp.gt.f32.partialorder %v14038_v19, 0.0  ;;  %vm5552_vm12 = vcmp.gt.f32.partialorder %v17447_v54, 0.0 }
 0x5f6   :  { %v10048_v4 = vpop.eup %10047  ;;  %v8578_v26 = vadd.f32 -1.0, %v10046_v53  ;;  %v5493_v43 = vmul.f32 1.6732632, %v8566_v59  ;;  %v14752_v10 = vsel %vm17452_vm0, %v17451_v56, %v14293_v61  ;;  %v14767_v53 = vld [vmem:[%s16870_s10 + $0x1c4] ss:$8 sps:$4 sm:$0xff]   ;;  %vm17454_vm14 = vcmask 1041409  }
 0x5f7   :  { %6613 = vmatpush1.bf16.msra.mxu0 %v14703_v47  ;;  %7186 = vmatpush1.bf16.msra.mxu1 %v14612_v51  ;;  %v10050_v16 = vpop.eup %10049  ;;  %v14758_v51 = vld [vmem:[%s16870_s10 + $0x1b0] ss:$8 sps:$4 sm:$0xff]   ;;  %v8584_v58 = vadd.f32 -1.0, %v10048_v4  ;;  %v5499_v48 = vmul.f32 1.6732632, %v8572_v38 }
 0x5f8   :  { %6614 = vmatprep.subr.bf16.mxu0 %v14714_v33  ;;  %7187 = vmatprep.subr.bf16.mxu1 %v14635_v6  ;;  %v8590_v56 = vadd.f32 -1.0, %v10050_v16  ;;  %v5505_v6 = vmul.f32 1.6732632, %v8578_v26  ;;  %v5565_v60 = vsel %vm5529_vm6, %v14607_v62, %v5493_v43  ;;  %v14773_v38 = vmul.f32 1.050701, %v5564_v21 }
 0x5f9   :  { %v5511_v4 = vmul.f32 1.6732632, %v8584_v58  ;;  %v5571_v2 = vsel %vm5535_vm8, %v14615_v7, %v5499_v48  ;;  %v5601_v0 = vmul.f32 1.050701, %v5565_v60  ;;  %vm17455_vm6 = vcmask 1041408   ;;  %vm17458_vm8 = vmmov %vm17454_vm14 }
 0x5fa   :  { %v5517_v62 = vmul.f32 1.6732632, %v8590_v56  ;;  %v5577_v43 = vsel %vm5541_vm4, %v14618_v9, %v5505_v6  ;;  %v5607_v16 = vmul.f32 1.050701, %v5571_v2  ;;  %v10052_v60 = vpop.eup %10051  ;;  %v5634_v21 = vpack.c.bf16 %v14773_v38, %v14773_v38  ;;  %vm17460_vm4 = vmmov %vm17458_vm8 }
 0x5fb   :  { %6615 = vmatpush1.bf16.msra.mxu0 %v14733_v30  ;;  %7188 = vmatpush1.bf16.msra.mxu1 %v14650_v46  ;;  %v5583_v58 = vsel %vm5547_vm3, %v14621_v25, %v5511_v4  ;;  %v5613_v46 = vmul.f32 1.050701, %v5577_v43  ;;  %v5635_v48 = vpack.c.bf16 %v5601_v0, %v5601_v0  ;;  %v10054_v56 = vpop.eup %10053  ;;  %v8571_v7 = vadd.f32 -1.0, %v10052_v60  ;;  %v14802_v25 = vld [vmem:[%s16870_s10 + $0x1c0] ss:$8 sps:$4 sm:$0xff]   ;;  %vm17464_vm3 = vmmov %vm17460_vm4 }
 0x5fc   :  { %6616 = vmatprep.subr.bf16.mxu0 %v14745_v17  ;;  %7189 = vmatprep.subr.bf16.mxu1 %v14658_v55  ;;  %v5589_v9 = vsel %vm5553_vm9, %v14624_v45, %v5517_v62  ;;  %v5619_v6 = vmul.f32 1.050701, %v5583_v58  ;;  %v5639_v2 = vpack.c.bf16 %v5607_v16, %v5607_v16  ;;  %v10056_v26 = vpop.eup %10055  ;;  %v8577_v38 = vadd.f32 -1.0, %v10054_v56  ;;  %v14811_v45 = vld [vmem:[%s16870_s10 + $0x1d4] ss:$8 sps:$4 sm:$0xff]   ;;  %vm17466_vm9 = vmmov %vm17455_vm6 }
 0x5fd   :  { %v5625_v55 = vmul.f32 1.050701, %v5589_v9  ;;  %v5643_v4 = vpack.c.bf16 %v5613_v46, %v5613_v46  ;;  %v14804_v0 = vunpack.c.l.b16 %v5635_v48  ;;  %v10058_v43 = vpop.eup %10057  ;;  %v8583_v60 = vadd.f32 -1.0, %v10056_v26  ;;  %v14826_v26 = vld [vmem:[%s16870_s10 + $0x1d0] ss:$8 sps:$4 sm:$0xff]   ;;  %vm17467_vm0 = vmmov %vm17455_vm6 }
 0x5fe   :  { %v5647_v62 = vpack.c.bf16 %v5619_v6, %v5619_v6  ;;  %v14813_v16 = vunpack.c.l.b16 %v5639_v2  ;;  %v5498_v58 = vmul.f32 1.6732632, %v8571_v7  ;;  %v5504_v59 = vmul.f32 1.6732632, %v8577_v38 }
 0x5ff   :  { %6617 = vmatpush1.bf16.msra.mxu0 %v14758_v51  ;;  %7190 = vmatpush1.bf16.msra.mxu1 %v14676_v18  ;;  %v5651_v46 = vpack.c.bf16 %v5625_v55, %v5625_v55  ;;  %v14816_v48 = vunpack.c.l.b16 %v5643_v4  ;;  %v17038_v56 = vrot.slane %v14804_v0, 6  ;;  %v8589_v18 = vadd.f32 -1.0, %v10058_v43  ;;  %v14839_v55 = vld [vmem:[%s16870_s10 + $0x1e4] ss:$8 sps:$4 sm:$0xff]  }
 0x600   :  { %6618 = vmatprep.subr.bf16.mxu0 %v14767_v53  ;;  %7191 = vmatprep.subr.bf16.mxu1 %v14685_v15  ;;  %v14819_v9 = vunpack.c.l.b16 %v5647_v62  ;;  %v17027_v12 = vrot.slane %v14813_v16, 5  ;;  %v5510_v36 = vmul.f32 1.6732632, %v8583_v60  ;;  %v5570_v2 = vsel %vm5534_vm2, %v14034_v14, %v5498_v58  ;;  %vm17469_vm2 = vmmov %vm17464_vm3 }
 0x601   :  { %v14828_v15 = vunpack.c.l.b16 %v5651_v46  ;;  %v17026_v7 = vrot.slane %v14816_v48, 4  ;;  %v5516_v6 = vmul.f32 1.6732632, %v8589_v18  ;;  %v5576_v14 = vsel %vm5540_vm10, %v14038_v19, %v5504_v59 }
 0x602   :  { %v7060_v4 = vsel %vm5693_vm15, %v17027_v12, %v17038_v56  ;;  %v17025_v38 = vrot.slane %v14819_v9, 3  ;;  %v5606_v58 = vmul.f32 1.050701, %v5570_v2  ;;  %v5612_v59 = vmul.f32 1.050701, %v5576_v14 }
 0x603   :  { %6619 = vmatpush1.bf16.msra.mxu0 %v14802_v25  ;;  %7192 = vmatpush1.bf16.msra.mxu1 %v14703_v47  ;;  %v5582_v47 = vsel %vm5546_vm11, %v14042_v24, %v5510_v36  ;;  %v7062_v43 = vsel %vm6720_vm1, %v17026_v7, %v7060_v4  ;;  %v17024_v62 = vrot.slane %v14828_v15, 2  ;;  %v5588_v60 = vsel %vm5552_vm12, %v17447_v54, %v5516_v6  ;;  %v14868_v36 = vld [vmem:[%s16870_s10 + $0x1e0] ss:$8 sps:$4 sm:$0xff]   ;;  %v14882_v4 = vld [vmem:[%s16870_s10 + $0x1f4] ss:$8 sps:$4 sm:$0xff]   ;;  %vm17475_vm11 = vmmov %vm17467_vm0 }
 0x604   :  { %6620 = vmatprep.subr.bf16.mxu0 %v14811_v45  ;;  %7193 = vmatprep.subr.bf16.mxu1 %v14714_v33  ;;  %v7064_v19 = vsel %vm6722_vm13, %v17025_v38, %v7062_v43  ;;  %v5618_v46 = vmul.f32 1.050701, %v5582_v47  ;;  %v5624_v24 = vmul.f32 1.050701, %v5588_v60  ;;  %v17453_v33 = vrot.slane %v14725_v29, 1  ;;  %vm17479_vm12 = vmmov %vm17467_vm0 }
 0x605   :  { %v7072_v18 = vpack.c.b16 %v7064_v19, %v7064_v19  ;;  %v5638_v6 = vpack.c.bf16 %v5606_v58, %v5606_v58  ;;  %v14875_v2 = vunpack.c.l.b16 %v5634_v21  ;;  %v5642_v47 = vpack.c.bf16 %v5612_v59, %v5612_v59  ;;  %v14898_v59 = vld [vmem:[%s16870_s10 + $0x1f0] ss:$8 sps:$4 sm:$0xff]  }
 0x606   :  { %v7070_v54 = vsel %vm17454_vm14, %v17453_v33, %v17024_v62  ;;  %v5646_v43 = vpack.c.bf16 %v5618_v46, %v5618_v46  ;;  %v17029_v60 = vrot.slane %v14804_v0, 7  ;;  %v5650_v58 = vpack.c.bf16 %v5624_v24, %v5624_v24  ;;  %vm17489_vm14 = vmmov %vm17469_vm2 }
 0x607   :  { %6621 = vmatpush1.bf16.msra.mxu0 %v14826_v26  ;;  %7194 = vmatpush1.bf16.msra.mxu1 %v14733_v30  ;;  %v7074_v14 = vpack.c.b16 %v7070_v54, %v7070_v54  ;;  %v7115_v19 = vrot.slane %v7072_v18, 6  ;;  %v14886_v21 = vunpack.c.l.b16 %v5638_v6  ;;  %v17037_v30 = vrot.slane %v14875_v2, 6  ;;  %v14910_v18 = vld [vmem:[%s16870_s10 + $0x204] ss:$8 sps:$4 sm:$0xff]  }
 0x608   :  { %6622 = vmatprep.subr.bf16.mxu0 %v14839_v55  ;;  %7195 = vmatprep.subr.bf16.mxu1 %v14745_v17  ;;  %v14889_v62 = vunpack.c.l.b16 %v5642_v47  ;;  %v14891_v38 = vunpack.c.l.b16 %v5646_v43  ;;  %v17028_v7 = vrot.slane %v14813_v16, 6  ;;  %v14900_v17 = vunpack.c.l.b16 %v5650_v58 }
 0x609   :  { %v7116_v33 = vrot.slane %v7074_v14, 6  ;;  %v17030_v46 = vrot.slane %v14886_v21, 5  ;;  %v17032_v24 = vrot.slane %v14816_v48, 5  ;;  %v17031_v54 = vrot.slane %v14819_v9, 4 }
 0x60a   :  { %v17033_v14 = vrot.slane %v14889_v62, 4  ;;  %v17034_v47 = vrot.slane %v14891_v38, 3  ;;  %v17456_v12 = vrot.slane %v14449_v3, 7  ;;  %vm17472_vm10 = vcmask 1043459   ;;  %v15163_v3 = vld [vmem:[%s16870_s10 + $0x290] ss:$8 sps:$4 sm:$0xff]  }
 0x60b   :  { %6623 = vmatpush1.bf16.msra.mxu0 %v14868_v36  ;;  %7196 = vmatpush1.bf16.msra.mxu1 %v14758_v51  ;;  %v14913_v6 = vsel %vm17455_vm6, %v7115_v19, %v7116_v33  ;;  %v7084_v51 = vsel %vm5693_vm15, %v17028_v7, %v17029_v60  ;;  %v7053_v43 = vsel %vm5693_vm15, %v17030_v46, %v17037_v30  ;;  %v17035_v19 = vrot.slane %v14900_v17, 2 }
 0x60c   :  { %6624 = vmatprep.subr.bf16.mxu0 %v14882_v4  ;;  %7197 = vmatprep.subr.bf16.mxu1 %v14767_v53  ;;  %v7086_v58 = vsel %vm6720_vm1, %v17032_v24, %v7084_v51  ;;  %v17036_v33 = vrot.slane %v14828_v15, 3  ;;  %v7008_v7 = vsel %vm6720_vm1, %v17456_v12, %v14720_v35  ;;  %v7055_v60 = vsel %vm6720_vm1, %v17033_v14, %v7053_v43  ;;  %v14948_v51 = vld [vmem:[%s16870_s10 + $0x200] ss:$8 sps:$4 sm:$0xff]  }
 0x60d   :  { %v7088_v46 = vsel %vm6722_vm13, %v17031_v54, %v7086_v58  ;;  %v7057_v35 = vsel %vm6722_vm13, %v17034_v47, %v7055_v60  ;;  %v17457_v12 = vrot.slane %v14670_v63, 1  ;;  %v17459_v58 = vrot.slane %v14725_v29, 2  ;;  %v14969_v60 = vld [vmem:[%s16870_s10 + $0x214] ss:$8 sps:$4 sm:$0xff]  }
 0x60e   :  { %v7096_v24 = vpack.c.b16 %v7088_v46, %v7088_v46  ;;  %v7071_v47 = vpack.c.b16 %v7057_v35, %v7057_v35  ;;  %v17039_v46 = vrot.slane %v14460_v20, 6  ;;  %v17461_v30 = vpack.c.b16 %v14690_v50, %v14690_v50 }
 0x60f   :  { %6625 = vmatpush1.bf16.msra.mxu0 %v14898_v59  ;;  %v7067_v43 = vsel %vm17458_vm8, %v17457_v12, %v17035_v19  ;;  %v7094_v54 = vsel %vm17460_vm4, %v17459_v58, %v17036_v33  ;;  %7198 = vmatpush1.bf16.msra.mxu1 %v14802_v25  ;;  %v5756_v58 = vpack.c.b16 %v14600_v28, %v14600_v28  ;;  %v17045_v33 = vrot.slane %v14875_v2, 7  ;;  %v14986_v28 = vld [vmem:[%s16870_s10 + $0x210] ss:$8 sps:$4 sm:$0xff]   ;;  %vm17493_vm8 = vmmov %vm17472_vm10 }
 0x610   :  { %6635 = vmatprep.subr.bf16.mxu0 %v14910_v18  ;;  %v7073_v12 = vpack.c.b16 %v7067_v43, %v7067_v43  ;;  %v7098_v19 = vpack.c.b16 %v7094_v54, %v7094_v54  ;;  %7199 = vmatprep.subr.bf16.mxu1 %v14811_v45  ;;  %v7121_v25 = vrot.slane %v7096_v24, 6  ;;  %v7112_v56 = vrot.slane %v7071_v47, 6  ;;  %vm17498_vm4 = vmmov %vm17469_vm2 }
 0x611   :  { %v7010_v45 = vsel %vm6722_vm13, %v17039_v46, %v7008_v7  ;;  %v17044_v24 = vrot.slane %v14886_v21, 6  ;;  %v17043_v50 = vrot.slane %v14889_v62, 5  ;;  %v17463_v54 = vrot.slane %v14466_v32, 4  ;;  %v15000_v7 = vld [vmem:[%s16870_s10 + $0x224] ss:$8 sps:$4 sm:$0xff]  }
 0x612   :  { %6627 = vmatmul.mubr.bf16.vlgmr.msra.gmra.mrb[32].mxu0 %v17461_v30  ;;  %v7113_v14 = vrot.slane %v7073_v12, 6  ;;  %v7122_v53 = vrot.slane %v7098_v19, 6  ;;  %v17462_v30 = vrot.slane %v14463_v27, 5  ;;  %17465 = vst [vmem:[#allocation8_spill] sm:$0xff] %v15000_v7  ;;  %v17042_v43 = vrot.slane %v14891_v38, 4 }
 0x613   :  { %6636 = vmatpush1.bf16.msra.mxu0 %v14948_v51  ;;  %6667 = vmatprep.mubr.bf16.mxu0 %v5756_v58  ;;  %v17041_v12 = vrot.slane %v14900_v17, 3  ;;  %v17040_v58 = vrot.slane %v14670_v63, 2  ;;  %v17487_v32 = vrot.slane %v14816_v48, 4  ;;  %v17488_v27 = vrot.slane %v14819_v9, 3 }
 0x614   :  { %7200 = vmatpush1.bf16.msra.mxu1 %v14826_v26  ;;  %v7019_v47 = vsel %vm17464_vm3, %v17463_v54, %v17462_v30  ;;  %6637 = vmatprep.subr.bf16.mxu0 %v14969_v60  ;;  %v15003_v19 = vsel %vm17466_vm9, %v7112_v56, %v7113_v14  ;;  %v15006_v35 = vsel %vm17467_vm0, %v7121_v25, %v7122_v53  ;;  %v17490_v31 = vrot.slane %v14828_v15, 2  ;;  %vm17505_vm9 = vmmov %vm17469_vm2 }
 0x615   :  { %7201 = vmatprep.subr.bf16.mxu1 %v14839_v55  ;;  %v7077_v26 = vsel %vm5693_vm15, %v17044_v24, %v17045_v33  ;;  %v7023_v30 = vpack.c.b16 %v7010_v45, %v7010_v45  ;;  %v15024_v55 = vld [vmem:[%s16870_s10 + $0x220] ss:$8 sps:$4 sm:$0xff]   ;;  %v7091_v53 = vsel %vm17469_vm2, %v17040_v58, %v17041_v12  ;;  %v7025_v25 = vpack.c.b16 %v7019_v47, %v7019_v47  ;;  %v15039_v45 = vld [vmem:[%s16870_s10 + $0x234] ss:$8 sps:$4 sm:$0xff]   ;;  %v15050_v47 = vld [vmem:[%s16870_s10 + $0x230] ss:$8 sps:$4 sm:$0xff]  }
 0x616   :  { %v7079_v56 = vsel %vm6720_vm1, %v17043_v50, %v7077_v26  ;;  %17468 = vst [vmem:[#allocation9_spill] sm:$0xff] %v15024_v55  ;;  %17470 = vst [vmem:[#allocation10_spill] sm:$0xff] %v15039_v45  ;;  %v7097_v26 = vpack.c.b16 %v7091_v53, %v7091_v53  ;;  %v17485_v50 = vrot.slane %v14804_v0, 6  ;;  %v17486_v24 = vrot.slane %v14813_v16, 5 }
 0x617   :  { %6638 = vmatpush1.bf16.msra.mxu0 %v14986_v28  ;;  %v7081_v14 = vsel %vm6722_vm13, %v17042_v43, %v7079_v56  ;;  %v17471_v56 = vrot.slane %v14333_v37, 1  ;;  %v7106_v58 = vrot.slane %v7023_v30, 6  ;;  %17473 = vst [vmem:[#allocation11_spill] sm:$0xff] %v15050_v47  ;;  %v7107_v43 = vrot.slane %v7025_v25, 6  ;;  %vm17507_vm0 = vmmov %vm17493_vm8 }
 0x618   :  { %7202 = vmatpush1.bf16.msra.mxu1 %v14868_v36  ;;  %6639 = vmatprep.subr.bf16.mxu0 %v15000_v7  ;;  %v7095_v54 = vpack.c.b16 %v7081_v14, %v7081_v14  ;;  %v7119_v36 = vrot.slane %v7097_v26, 6  ;;  %v17474_v14 = vrot.slane %v14342_v49, 7  ;;  %v7321_v33 = vsel %vm6722_vm13, %v17486_v24, %v17485_v50 }
 0x619   :  { %7203 = vmatprep.subr.bf16.mxu1 %v14882_v4  ;;  %v6731_v46 = vsel %vm17472_vm10, %v14339_v39, %v17471_v56  ;;  %v15067_v56 = vld [vmem:[%s16870_s10 + $0x244] ss:$8 sps:$4 sm:$0xff]   ;;  %v7325_v20 = vsel %vm17489_vm14, %v17488_v27, %v17487_v32  ;;  %vm17491_vm6 = vcmask 1042434   ;;  %v17492_v32 = vrot.slane %v14725_v29, 1  ;;  %vm17511_vm10 = vmmov %vm17507_vm0 }
 0x61a   :  { %v7118_v12 = vrot.slane %v7095_v54, 6  ;;  %v6732_v53 = vsel %vm5690_vm5, %v17474_v14, %v6731_v46  ;;  %v17476_v54 = vrot.slane %v14345_v42, 6  ;;  %17477 = vst [vmem:[#allocation12_spill] sm:$0xff] %v15067_v56  ;;  %v17478_v46 = vrot.slane %v14352_v52, 5  ;;  %v15173_v27 = vld [vmem:[%s16870_s10 + $0x2a4] ss:$8 sps:$4 sm:$0xff]   ;;  %vm17500_vm3 = vmmov %vm17491_vm6 }
 0x61b   :  { %6640 = vmatpush1.bf16.msra.mxu0 %v15024_v55  ;;  %v7108_v14 = vsel %vm17479_vm12, %v7106_v58, %v7107_v43  ;;  %v15089_v43 = vld [vmem:[%s16870_s10 + $0x254] ss:$8 sps:$4 sm:$0xff]   ;;  %v15097_v58 = vld [vmem:[%s16870_s10 + $0x250] ss:$8 sps:$4 sm:$0xff]   ;;  %v17494_v50 = vrot.slane %v14875_v2, 6  ;;  %vm17509_vm2 = vmmov %vm17500_vm3 }
 0x61c   :  { %7204 = vmatpush1.bf16.msra.mxu1 %v14898_v59  ;;  %6641 = vmatprep.subr.bf16.mxu0 %v15039_v45  ;;  %v15058_v30 = vsel %vm17475_vm11, %v7118_v12, %v7119_v36  ;;  %v6733_v26 = vsel %vm5693_vm15, %v17476_v54, %v6732_v53  ;;  %v17480_v12 = vrot.slane %v14355_v40, 4  ;;  %v15082_v53 = vld [vmem:[%s16870_s10 + $0x240] ss:$8 sps:$4 sm:$0xff]   ;;  %17482 = vst [vmem:[#allocation15_spill] sm:$0xff] %v15089_v43  ;;  %17483 = vst [vmem:[#allocation18_spill] sm:$0xff] %v15097_v58 }
 0x61d   :  { %7214 = vmatprep.subr.bf16.mxu1 %v14910_v18  ;;  %v6734_v25 = vsel %vm6720_vm1, %v17478_v46, %v6733_v26  ;;  %17481 = vst [vmem:[#allocation13_spill] sm:$0xff] %v15082_v53  ;;  %v15111_v54 = vld [vmem:[%s16870_s10 + $0x260] ss:$8 sps:$4 sm:$0xff]   ;;  %v15118_v26 = vld [vmem:[%s16870_s10 + $0x274] ss:$8 sps:$4 sm:$0xff]   ;;  %vm17517_vm11 = vmmov %vm17498_vm4 }
 0x61e   :  { %v15076_v36 = vsel %vm6722_vm13, %v17480_v12, %v6734_v25  ;;  %v15125_v46 = vld [vmem:[%s16870_s10 + $0x270] ss:$8 sps:$4 sm:$0xff]   ;;  %v15132_v25 = vld [vmem:[%s16870_s10 + $0x284] ss:$8 sps:$4 sm:$0xff]   ;;  %v15146_v12 = vld [vmem:[%s16870_s10 + $0x294] ss:$8 sps:$4 sm:$0xff]  }
 0x61f   :  { %7206 = vmatmul.mubr.bf16.vlgmr.msra.gmra.mrb[52].mxu1 %v7108_v14  ;;  %6642 = vmatpush1.bf16.msra.mxu0 %v15050_v47  ;;  %v15139_v14 = vld [vmem:[%s16870_s10 + $0x280] ss:$8 sps:$4 sm:$0xff]   ;;  %vm17519_vm12 = vmmov %vm17509_vm2 }
 0x620   :  { %7215 = vmatpush1.bf16.msra.mxu1 %v14948_v51  ;;  %7246 = vmatprep.mubr.bf16.mxu1 %v14913_v6  ;;  %v15104_v6 = vld [vmem:[%s16870_s10 + $0x264] ss:$8 sps:$4 sm:$0xff]   ;;  %vm17522_vm14 = vmmov %vm17507_vm0 }
 0x621   :  { %7216 = vmatprep.subr.bf16.mxu1 %v14969_v60  ;;  %6643 = vmatprep.subr.bf16.mxu0 %v15067_v56  ;;  %17484 = vst [vmem:[#allocation16_spill] sm:$0xff] %v15104_v6 }
 0x623   :  { %6644 = vmatpush1.bf16.msra.mxu0 %v15082_v53 }
 0x624   :  { %7217 = vmatpush1.bf16.msra.mxu1 %v14986_v28  ;;  %6645 = vmatprep.subr.bf16.mxu0 %v15089_v43 }
 0x625   :  { %7218 = vmatprep.subr.bf16.mxu1 %v15000_v7  ;;  %v17502_v7 = vrot.slane %v14813_v16, 6 }
 0x627   :  { %6646 = vmatpush1.bf16.msra.mxu0 %v15097_v58 }
 0x628   :  { %7219 = vmatpush1.bf16.msra.mxu1 %v15024_v55  ;;  %6647 = vmatprep.subr.bf16.mxu0 %v15104_v6 }
 0x629   :  { %7220 = vmatprep.subr.bf16.mxu1 %v15039_v45  ;;  %v17499_v45 = vrot.slane %v14900_v17, 2 }
 0x62b   :  { %6648 = vmatpush1.bf16.msra.mxu0 %v15111_v54 }
 0x62c   :  { %7221 = vmatpush1.bf16.msra.mxu1 %v15050_v47  ;;  %6649 = vmatprep.subr.bf16.mxu0 %v15118_v26 }
 0x62d   :  { %7222 = vmatprep.subr.bf16.mxu1 %v15067_v56  ;;  %v17495_v56 = vrot.slane %v14886_v21, 5 }
 0x62f   :  { %6650 = vmatpush1.bf16.msra.mxu0 %v15125_v46 }
 0x630   :  { %7223 = vmatpush1.bf16.msra.mxu1 %v15082_v53  ;;  %6651 = vmatprep.subr.bf16.mxu0 %v15132_v25  ;;  %v7329_v53 = vpack.c.b16 %v7321_v33, %v7321_v33  ;;  %v17496_v33 = vrot.slane %v14889_v62, 4 }
 0x631   :  { %7224 = vmatprep.subr.bf16.mxu1 %v15089_v43  ;;  %v7326_v43 = vsel %vm17491_vm6, %v17490_v31, %v7325_v20  ;;  %v7320_v31 = vsel %vm6722_vm13, %v17495_v56, %v17494_v50  ;;  %v17503_v50 = vrot.slane %v14816_v48, 5  ;;  %vm17524_vm6 = vmmov %vm17498_vm4 }
 0x632   :  { %v7327_v24 = vsel %vm17493_vm8, %v17492_v32, %v7326_v43  ;;  %v7328_v43 = vpack.c.b16 %v7320_v31, %v7320_v31  ;;  %v17501_v32 = vrot.slane %v14804_v0, 7  ;;  %v17506_v0 = vrot.slane %v14670_v63, 1  ;;  %vm17526_vm8 = vmmov %vm17509_vm2 }
 0x633   :  { %6652 = vmatpush1.bf16.msra.mxu0 %v15139_v14  ;;  %v7331_v20 = vpack.c.b16 %v7327_v24, %v7327_v24  ;;  %v17504_v24 = vrot.slane %v14819_v9, 4  ;;  %v15219_v9 = vld [vmem:[%s16870_s10 + $0x2b4] ss:$8 sps:$4 sm:$0xff]  }
 0x634   :  { %7225 = vmatpush1.bf16.msra.mxu1 %v15097_v58  ;;  %6653 = vmatprep.subr.bf16.mxu0 %v15146_v12  ;;  %v17497_v58 = vrot.slane %v14891_v38, 3  ;;  %v7333_v56 = vsel %vm6722_vm13, %v17502_v7, %v17501_v32  ;;  %v17508_v7 = vrot.slane %v14828_v15, 3  ;;  %v17514_v32 = vrot.slane %v14886_v21, 6 }
 0x635   :  { %7226 = vmatprep.subr.bf16.mxu1 %v15104_v6  ;;  %v7337_v6 = vsel %vm17505_vm9, %v17504_v24, %v17503_v50  ;;  %v7356_v24 = vrot.slane %v7328_v43, 7  ;;  %v17518_v21 = vrot.slane %v14900_v17, 3  ;;  %v5733_v17 = vrot.slane %v14333_v37, 6  ;;  %vm17550_vm9 = vmmov %vm17509_vm2 }
 0x636   :  { %v7322_v47 = vsel %vm17498_vm4, %v17497_v58, %v17496_v33  ;;  %v15206_v58 = vld [vmem:[%s16870_s10 + $0x2a0] ss:$8 sps:$4 sm:$0xff]   ;;  %v7338_v48 = vsel %vm17509_vm2, %v17508_v7, %v7337_v6  ;;  %v17513_v33 = vrot.slane %v14875_v2, 7  ;;  %vm17527_vm4 = vmmov %vm17507_vm0 }
 0x637   :  { %v7323_v55 = vsel %vm17500_vm3, %v17499_v45, %v7322_v47  ;;  %6654 = vmatpush1.bf16.msra.mxu0 %v15163_v3  ;;  %v7359_v45 = vrot.slane %v7329_v53, 7  ;;  %v7360_v47 = vrot.slane %v7331_v20, 7  ;;  %v17510_v53 = vrot.slane %v14725_v29, 2  ;;  %vm17548_vm3 = vmmov %vm17524_vm6 }
 0x638   :  { %v7324_v16 = vsel %vm17507_vm0, %v17506_v0, %v7323_v55  ;;  %7227 = vmatpush1.bf16.msra.mxu1 %v15111_v54  ;;  %6655 = vmatprep.subr.bf16.mxu0 %v15173_v27  ;;  %v7341_v55 = vpack.c.b16 %v7333_v56, %v7333_v56  ;;  %v7332_v50 = vsel %vm6722_vm13, %v17514_v32, %v17513_v33  ;;  %v17516_v29 = vrot.slane %v14891_v38, 4  ;;  %v15242_v56 = vld [vmem:[%s16870_s10 + $0x2b0] ss:$8 sps:$4 sm:$0xff]   ;;  %v15252_v38 = vld [vmem:[%s16870_s10 + $0x2c4] ss:$8 sps:$4 sm:$0xff]   ;;  %vm17575_vm2 = vmmov %vm17507_vm0 }
 0x639   :  { %v7330_v31 = vpack.c.b16 %v7324_v16, %v7324_v16  ;;  %v7339_v20 = vsel %vm17511_vm10, %v17510_v53, %v7338_v48  ;;  %7228 = vmatprep.subr.bf16.mxu1 %v15118_v26  ;;  %v15226_v15 = vsel %vm1474_vm7, %v7359_v45, %v7360_v47  ;;  %v17515_v16 = vrot.slane %v14889_v62, 5  ;;  %v15277_v32 = vld [vmem:[%s16870_s10 + $0x2d4] ss:$8 sps:$4 sm:$0xff]   ;;  %vm17577_vm10 = vmmov %vm17507_vm0 }
 0x63a   :  { %17512 = vst [vmem:[#allocation19_spill] sm:$0xff] %v15226_v15  ;;  %v7343_v6 = vpack.c.b16 %v7339_v20, %v7339_v20  ;;  %v7365_v2 = vrot.slane %v7341_v55, 7  ;;  %v7340_v47 = vpack.c.b16 %v7332_v50, %v7332_v50  ;;  %v17521_v48 = vrot.slane %v14670_v63, 2  ;;  %v15461_v15 = vld [vmem:[%s16870_s10 + $0x394] ss:$8 sps:$4 sm:$0xff]  }
 0x63b   :  { %v7357_v0 = vrot.slane %v7330_v31, 7  ;;  %v7334_v7 = vsel %vm17517_vm11, %v17516_v29, %v17515_v16  ;;  %6656 = vmatpush1.bf16.msra.mxu0 %v15206_v58  ;;  %v5734_v53 = vrot.slane %v14339_v39, 5  ;;  %v5736_v50 = vrot.slane %v14342_v49, 4  ;;  %v15289_v16 = vld [vmem:[%s16870_s10 + $0x2d0] ss:$8 sps:$4 sm:$0xff]   ;;  %17545 = vst [vmem:[#allocation40_spill] sm:$0xff] %v15461_v15  ;;  %vm17609_vm11 = vmmov %vm17507_vm0 }
 0x63c   :  { %v7366_v45 = vrot.slane %v7343_v6, 7  ;;  %v7335_v43 = vsel %vm17519_vm12, %v17518_v21, %v7334_v7  ;;  %7229 = vmatpush1.bf16.msra.mxu1 %v15125_v46  ;;  %6657 = vmatprep.subr.bf16.mxu0 %v15219_v9  ;;  %v15270_v6 = vld [vmem:[%s16870_s10 + $0x2c0] ss:$8 sps:$4 sm:$0xff]   ;;  %v7362_v63 = vrot.slane %v7340_v47, 7  ;;  %v15296_v29 = vld [vmem:[%s16870_s10 + $0x2e4] ss:$8 sps:$4 sm:$0xff]   ;;  %vm17629_vm12 = vmmov %vm17507_vm0 }
 0x63d   :  { %v15255_v62 = vsel %vm1474_vm7, %v7356_v24, %v7357_v0  ;;  %v7336_v31 = vsel %vm17522_vm14, %v17521_v48, %v7335_v43  ;;  %7230 = vmatprep.subr.bf16.mxu1 %v15132_v25  ;;  %v5735_v24 = vsel %vm17524_vm6, %v5734_v53, %v5733_v17  ;;  %v15313_v43 = vld [vmem:[%s16870_s10 + $0x2f4] ss:$8 sps:$4 sm:$0xff]   ;;  %v5740_v47 = vrot.slane %v14352_v52, 2  ;;  %v15330_v53 = vld [vmem:[%s16870_s10 + $0x304] ss:$8 sps:$4 sm:$0xff]   ;;  %vm17630_vm14 = vmmov %vm17507_vm0 }
 0x63e   :  { %17520 = vst [vmem:[#allocation22_spill] sm:$0xff] %v15255_v62  ;;  %v15264_v20 = vsel %vm1474_vm7, %v7365_v2, %v7366_v45  ;;  %v7342_v55 = vpack.c.b16 %v7336_v31, %v7336_v31  ;;  %v5737_v7 = vsel %vm17526_vm8, %v5736_v50, %v5735_v24  ;;  %v5738_v2 = vrot.slane %v14345_v42, 3  ;;  %v15305_v45 = vld [vmem:[%s16870_s10 + $0x2e0] ss:$8 sps:$4 sm:$0xff]   ;;  %v15322_v31 = vld [vmem:[%s16870_s10 + $0x2f0] ss:$8 sps:$4 sm:$0xff]   ;;  %vm17653_vm6 = vmmov %vm17507_vm0 }
 0x63f   :  { %17523 = vst [vmem:[#allocation37_spill] sm:$0xff] %v15264_v20  ;;  %6658 = vmatpush1.bf16.msra.mxu0 %v15242_v56  ;;  %v5742_v17 = vrot.slane %v14355_v40, 1  ;;  %v15345_v50 = vld [vmem:[%s16870_s10 + $0x314] ss:$8 sps:$4 sm:$0xff]   ;;  %v5782_v24 = vpack.c.b16 %v14728_v13, %v14728_v13  ;;  %v15368_v13 = vld [vmem:[%s16870_s10 + $0x320] ss:$8 sps:$4 sm:$0xff]   ;;  %vm17657_vm8 = vmmov %vm17548_vm3 }
 0x640   :  { %v7363_v33 = vrot.slane %v7342_v55, 7  ;;  %7231 = vmatpush1.bf16.msra.mxu1 %v15139_v14  ;;  %6659 = vmatprep.subr.bf16.mxu0 %v15252_v38  ;;  %v5739_v21 = vsel %vm17527_vm4, %v5738_v2, %v5737_v7  ;;  %17529 = vst [vmem:[#allocation17_spill] sm:$0xff] %v15345_v50  ;;  %v15354_v7 = vld [vmem:[%s16870_s10 + $0x310] ss:$8 sps:$4 sm:$0xff]   ;;  %v15361_v2 = vld [vmem:[%s16870_s10 + $0x324] ss:$8 sps:$4 sm:$0xff]   ;;  %vm17659_vm4 = vmmov %vm17550_vm9 }
 0x641   :  { %7232 = vmatprep.subr.bf16.mxu1 %v15146_v12  ;;  %v5741_v48 = vsel %vm5690_vm5, %v5740_v47, %v5739_v21  ;;  %17530 = vst [vmem:[#allocation23_spill] sm:$0xff] %v15354_v7  ;;  %17531 = vst [vmem:[#allocation25_spill] sm:$0xff] %v15361_v2  ;;  %v15375_v21 = vld [vmem:[%s16870_s10 + $0x334] ss:$8 sps:$4 sm:$0xff]   ;;  %v15382_v47 = vld [vmem:[%s16870_s10 + $0x330] ss:$8 sps:$4 sm:$0xff]  }
 0x642   :  { %v15283_v0 = vsel %vm1474_vm7, %v7362_v63, %v7363_v33  ;;  %v5743_v55 = vsel %vm5693_vm15, %v5742_v17, %v5741_v48  ;;  %v15338_v63 = vld [vmem:[%s16870_s10 + $0x300] ss:$8 sps:$4 sm:$0xff]   ;;  %17532 = vst [vmem:[#allocation24_spill] sm:$0xff] %v15368_v13  ;;  %17533 = vst [vmem:[#allocation26_spill] sm:$0xff] %v15375_v21  ;;  %v15390_v48 = vld [vmem:[%s16870_s10 + $0x344] ss:$8 sps:$4 sm:$0xff]  }
 0x643   :  { %17525 = vst [vmem:[#allocation14_spill] sm:$0xff] %v15283_v0  ;;  %6660 = vmatpush1.bf16.msra.mxu0 %v15270_v6  ;;  %17528 = vst [vmem:[#allocation21_spill] sm:$0xff] %v15338_v63  ;;  %v5755_v33 = vpack.c.b16 %v5743_v55, %v5743_v55  ;;  %v15397_v17 = vld [vmem:[%s16870_s10 + $0x340] ss:$8 sps:$4 sm:$0xff]   ;;  %v15404_v55 = vld [vmem:[%s16870_s10 + $0x354] ss:$8 sps:$4 sm:$0xff]  }
 0x644   :  { %7233 = vmatpush1.bf16.msra.mxu1 %v15163_v3  ;;  %6661 = vmatprep.subr.bf16.mxu0 %v15277_v32  ;;  %17534 = vst [vmem:[#allocation27_spill] sm:$0xff] %v15382_v47  ;;  %17535 = vst [vmem:[#allocation28_spill] sm:$0xff] %v15390_v48  ;;  %v15440_v0 = vld [vmem:[%s16870_s10 + $0x370] ss:$8 sps:$4 sm:$0xff]   ;;  %v15447_v20 = vld [vmem:[%s16870_s10 + $0x384] ss:$8 sps:$4 sm:$0xff]  }
 0x645   :  { %7234 = vmatprep.subr.bf16.mxu1 %v15173_v27  ;;  %17536 = vst [vmem:[#allocation29_spill] sm:$0xff] %v15397_v17  ;;  %17537 = vst [vmem:[#allocation31_spill] sm:$0xff] %v15404_v55  ;;  %v15454_v62 = vld [vmem:[%s16870_s10 + $0x380] ss:$8 sps:$4 sm:$0xff]  }
 0x646   :  { %17542 = vst [vmem:[#allocation35_spill] sm:$0xff] %v15440_v0  ;;  %17543 = vst [vmem:[#allocation36_spill] sm:$0xff] %v15447_v20 }
 0x647   :  { %6662 = vmatpush1.bf16.msra.mxu0 %v15289_v16  ;;  %17544 = vst [vmem:[#allocation45_spill] sm:$0xff] %v15454_v62 }
 0x648   :  { %7235 = vmatpush1.bf16.msra.mxu1 %v15206_v58  ;;  %6663 = vmatprep.subr.bf16.mxu0 %v15296_v29 }
 0x649   :  { %7236 = vmatprep.subr.bf16.mxu1 %v15219_v9 }
 0x64b   :  { %6664 = vmatpush1.bf16.msra.mxu0 %v15305_v45 }
 0x64c   :  { %7237 = vmatpush1.bf16.msra.mxu1 %v15242_v56  ;;  %6665 = vmatprep.subr.bf16.mxu0 %v15313_v43 }
 0x64d   :  { %7238 = vmatprep.subr.bf16.mxu1 %v15252_v38 }
 0x64f   :  { %6666 = vmatpush1.bf16.msra.mxu0 %v15322_v31 }
 0x650   :  { %7239 = vmatpush1.bf16.msra.mxu1 %v15270_v6  ;;  %6676 = vmatprep.subr.bf16.mxu0 %v15330_v53 }
 0x651   :  { %7240 = vmatprep.subr.bf16.mxu1 %v15277_v32 }
 0x652   :  { %6668 = vmatmul.mubr.bf16.vlgmr.msra.gmra.mrb[32].mxu0 %v5755_v33  ;;  %v15426_v33 = vld [vmem:[%s16870_s10 + $0x360] ss:$8 sps:$4 sm:$0xff]  }
 0x653   :  { %6677 = vmatpush1.bf16.msra.mxu0 %v15338_v63  ;;  %6708 = vmatprep.mubr.bf16.mxu0 %v5782_v24  ;;  %17540 = vst [vmem:[#allocation32_spill] sm:$0xff] %v15426_v33  ;;  %v15433_v24 = vld [vmem:[%s16870_s10 + $0x374] ss:$8 sps:$4 sm:$0xff]  }
 0x654   :  { %7241 = vmatpush1.bf16.msra.mxu1 %v15289_v16  ;;  %6678 = vmatprep.subr.bf16.mxu0 %v15345_v50  ;;  %17541 = vst [vmem:[#allocation34_spill] sm:$0xff] %v15433_v24 }
 0x655   :  { %7242 = vmatprep.subr.bf16.mxu1 %v15296_v29 }
 0x657   :  { %6679 = vmatpush1.bf16.msra.mxu0 %v15354_v7 }
 0x658   :  { %7243 = vmatpush1.bf16.msra.mxu1 %v15305_v45  ;;  %6680 = vmatprep.subr.bf16.mxu0 %v15361_v2 }
 0x659   :  { %7244 = vmatprep.subr.bf16.mxu1 %v15313_v43 }
 0x65b   :  { %6681 = vmatpush1.bf16.msra.mxu0 %v15368_v13 }
 0x65c   :  { %7245 = vmatpush1.bf16.msra.mxu1 %v15322_v31  ;;  %6682 = vmatprep.subr.bf16.mxu0 %v15375_v21 }
 0x65d   :  { %7255 = vmatprep.subr.bf16.mxu1 %v15330_v53 }
 0x65f   :  { %7247 = vmatmul.mubr.bf16.vlgmr.msra.gmra.mrb[52].mxu1 %v15003_v19  ;;  %6683 = vmatpush1.bf16.msra.mxu0 %v15382_v47  ;;  %v15412_v19 = vld [vmem:[%s16870_s10 + $0x350] ss:$8 sps:$4 sm:$0xff]  }
 0x660   :  { %7256 = vmatpush1.bf16.msra.mxu1 %v15338_v63  ;;  %7287 = vmatprep.mubr.bf16.mxu1 %v15006_v35  ;;  %17538 = vst [vmem:[#allocation33_spill] sm:$0xff] %v15412_v19  ;;  %v15419_v35 = vld [vmem:[%s16870_s10 + $0x364] ss:$8 sps:$4 sm:$0xff]   ;;  %v17552_v63 = vrot.slane %v14308_v1, 4 }
 0x661   :  { %7257 = vmatprep.subr.bf16.mxu1 %v15345_v50  ;;  %6684 = vmatprep.subr.bf16.mxu0 %v15390_v48  ;;  %17539 = vst [vmem:[#allocation30_spill] sm:$0xff] %v15419_v35 }
 0x663   :  { %6685 = vmatpush1.bf16.msra.mxu0 %v15397_v17 }
 0x664   :  { %7258 = vmatpush1.bf16.msra.mxu1 %v15354_v7  ;;  %6686 = vmatprep.subr.bf16.mxu0 %v15404_v55 }
 0x665   :  { %7259 = vmatprep.subr.bf16.mxu1 %v15361_v2  ;;  %v17549_v2 = vrot.slane %v14297_v22, 6 }
 0x667   :  { %6687 = vmatpush1.bf16.msra.mxu0 %v15412_v19  ;;  %v6725_v7 = vsel %vm5690_vm5, %v17549_v2, %v14752_v10  ;;  %v17551_v10 = vrot.slane %v14299_v41, 5 }
 0x668   :  { %7260 = vmatpush1.bf16.msra.mxu1 %v15368_v13  ;;  %6688 = vmatprep.subr.bf16.mxu0 %v15419_v35 }
 0x669   :  { %7261 = vmatprep.subr.bf16.mxu1 %v15375_v21  ;;  %v15512_v21 = vld [vmem:[%s16870_s10 + $0x3c0] ss:$8 sps:$4 sm:$0xff]   ;;  %v6726_v2 = vsel %vm5693_vm15, %v17551_v10, %v6725_v7  ;;  %v15562_v7 = vld [vmem:[%s16870_s10 + $0x3f4] ss:$8 sps:$4 sm:$0xff]  }
 0x66b   :  { %6689 = vmatpush1.bf16.msra.mxu0 %v15426_v33 }
 0x66c   :  { %7262 = vmatpush1.bf16.msra.mxu1 %v15382_v47  ;;  %6690 = vmatprep.subr.bf16.mxu0 %v15433_v24  ;;  %v5760_v47 = vrot.slane %v14339_v39, 6 }
 0x66d   :  { %7263 = vmatprep.subr.bf16.mxu1 %v15390_v48  ;;  %v15468_v48 = vld [vmem:[%s16870_s10 + $0x390] ss:$8 sps:$4 sm:$0xff]  }
 0x66e   :  { %17546 = vst [vmem:[#allocation41_spill] sm:$0xff] %v15468_v48 }
 0x66f   :  { %6691 = vmatpush1.bf16.msra.mxu0 %v15440_v0 }
 0x670   :  { %7264 = vmatpush1.bf16.msra.mxu1 %v15397_v17  ;;  %6692 = vmatprep.subr.bf16.mxu0 %v15447_v20  ;;  %v15475_v17 = vld [vmem:[%s16870_s10 + $0x3a4] ss:$8 sps:$4 sm:$0xff]  }
 0x671   :  { %7265 = vmatprep.subr.bf16.mxu1 %v15404_v55  ;;  %v15482_v55 = vld [vmem:[%s16870_s10 + $0x3a0] ss:$8 sps:$4 sm:$0xff]  }
 0x673   :  { %6693 = vmatpush1.bf16.msra.mxu0 %v15454_v62 }
 0x674   :  { %7266 = vmatpush1.bf16.msra.mxu1 %v15412_v19  ;;  %6694 = vmatprep.subr.bf16.mxu0 %v15461_v15  ;;  %v15489_v19 = vld [vmem:[%s16870_s10 + $0x3b4] ss:$8 sps:$4 sm:$0xff]  }
 0x675   :  { %7267 = vmatprep.subr.bf16.mxu1 %v15419_v35  ;;  %v15496_v35 = vld [vmem:[%s16870_s10 + $0x3b0] ss:$8 sps:$4 sm:$0xff]  }
 0x676   :  { %17547 = vst [vmem:[#allocation42_spill] sm:$0xff] %v15496_v35 }
 0x677   :  { %6695 = vmatpush1.bf16.msra.mxu0 %v15468_v48 }
 0x678   :  { %7268 = vmatpush1.bf16.msra.mxu1 %v15426_v33  ;;  %6696 = vmatprep.subr.bf16.mxu0 %v15475_v17  ;;  %v15503_v33 = vld [vmem:[%s16870_s10 + $0x3c4] ss:$8 sps:$4 sm:$0xff]  }
 0x679   :  { %7269 = vmatprep.subr.bf16.mxu1 %v15433_v24  ;;  %v5759_v24 = vrot.slane %v14333_v37, 7 }
 0x67b   :  { %6697 = vmatpush1.bf16.msra.mxu0 %v15482_v55  ;;  %v5761_v13 = vsel %vm17548_vm3, %v5760_v47, %v5759_v24  ;;  %v15539_v47 = vld [vmem:[%s16870_s10 + $0x3e4] ss:$8 sps:$4 sm:$0xff]  }
 0x67c   :  { %7270 = vmatpush1.bf16.msra.mxu1 %v15440_v0  ;;  %6698 = vmatprep.subr.bf16.mxu0 %v15489_v19  ;;  %v15519_v0 = vld [vmem:[%s16870_s10 + $0x3d4] ss:$8 sps:$4 sm:$0xff]  }
 0x67d   :  { %7271 = vmatprep.subr.bf16.mxu1 %v15447_v20  ;;  %v5762_v20 = vrot.slane %v14342_v49, 5 }
 0x67f   :  { %6699 = vmatpush1.bf16.msra.mxu0 %v15496_v35  ;;  %v5763_v24 = vsel %vm17550_vm9, %v5762_v20, %v5761_v13  ;;  %v6727_v20 = vsel %vm6720_vm1, %v17552_v63, %v6726_v2  ;;  %v5766_v13 = vrot.slane %v14352_v52, 3  ;;  %v15574_v63 = vld [vmem:[%s16870_s10 + $0x3f0] ss:$8 sps:$4 sm:$0xff]   ;;  %v5768_v2 = vrot.slane %v14355_v40, 2 }
 0x680   :  { %7272 = vmatpush1.bf16.msra.mxu1 %v15454_v62  ;;  %6700 = vmatprep.subr.bf16.mxu0 %v15503_v33  ;;  %v15532_v62 = vld [vmem:[%s16870_s10 + $0x3d0] ss:$8 sps:$4 sm:$0xff]  }
 0x681   :  { %7273 = vmatprep.subr.bf16.mxu1 %v15461_v15  ;;  %v5764_v15 = vrot.slane %v14345_v42, 4 }
 0x683   :  { %6701 = vmatpush1.bf16.msra.mxu0 %v15512_v21  ;;  %v5765_v50 = vsel %vm17507_vm0, %v5764_v15, %v5763_v24  ;;  %v17553_v15 = vrot.slane %v14326_v44, 3 }
 0x684   :  { %7274 = vmatpush1.bf16.msra.mxu1 %v15468_v48  ;;  %6702 = vmatprep.subr.bf16.mxu0 %v15519_v0  ;;  %v15551_v48 = vld [vmem:[%s16870_s10 + $0x3e0] ss:$8 sps:$4 sm:$0xff]   ;;  %v5767_v10 = vsel %vm5690_vm5, %v5766_v13, %v5765_v50 }
 0x685   :  { %7275 = vmatprep.subr.bf16.mxu1 %v15475_v17  ;;  %v6728_v24 = vsel %vm6722_vm13, %v17553_v15, %v6727_v20  ;;  %v5769_v50 = vsel %vm5693_vm15, %v5768_v2, %v5767_v10  ;;  %v15586_v15 = vld [vmem:[%s16870_s10 + $0x4] ss:$8 sps:$4 sm:$0xff]   ;;  %v15593_v10 = vld [vmem:[%s16870_s10] ss:$8 sps:$4 sm:$0xff]   ;;  %v15607_v2 = vld [vmem:[%s16870_s10 + $0x10] ss:$8 sps:$4 sm:$0xff]  }
 0x686   :  { %v6730_v13 = vpack.c.b16 %v6728_v24, %v6728_v24  ;;  %v5781_v20 = vpack.c.b16 %v5769_v50, %v5769_v50  ;;  %v15600_v24 = vld [vmem:[%s16870_s10 + $0x14] ss:$8 sps:$4 sm:$0xff]   ;;  %17554 = vst [vmem:[#allocation43_spill] sm:$0xff] %v15607_v2  ;;  %v15621_v50 = vld [vmem:[%s16870_s10 + $0x20] ss:$8 sps:$4 sm:$0xff]  }
 0x687   :  { %6703 = vmatpush1.bf16.msra.mxu0 %v15532_v62  ;;  %17556 = vst [vmem:[#allocation46_spill] sm:$0xff] %v15621_v50 }
 0x688   :  { %7276 = vmatpush1.bf16.msra.mxu1 %v15482_v55  ;;  %6704 = vmatprep.subr.bf16.mxu0 %v15539_v47 }
 0x689   :  { %7277 = vmatprep.subr.bf16.mxu1 %v15489_v19 }
 0x68b   :  { %6705 = vmatpush1.bf16.msra.mxu0 %v15551_v48 }
 0x68c   :  { %7278 = vmatpush1.bf16.msra.mxu1 %v15496_v35  ;;  %6706 = vmatprep.subr.bf16.mxu0 %v15562_v7  ;;  %v6804_v35 = vrot.slane %v6730_v13, 1  ;;  %v15628_v13 = vld [vmem:[%s16870_s10 + $0x34] ss:$8 sps:$4 sm:$0xff]  }
 0x68d   :  { %7279 = vmatprep.subr.bf16.mxu1 %v15503_v33  ;;  %17557 = vst [vmem:[#allocation38_spill] sm:$0xff] %v15628_v13 }
 0x68f   :  { %6707 = vmatpush1.bf16.msra.mxu0 %v15574_v63 }
 0x690   :  { %7280 = vmatpush1.bf16.msra.mxu1 %v15512_v21  ;;  %6819 = vmatprep.subr.bf16.mxu0 %v15586_v15 }
 0x691   :  { %7281 = vmatprep.subr.bf16.mxu1 %v15519_v0 }
 0x692   :  { %6709 = vmatmul.mubr.bf16.vlgmr.msra.gmra.mrb[32].mxu0 %v5781_v20  ;;  %v15635_v20 = vld [vmem:[%s16870_s10 + $0x30] ss:$8 sps:$4 sm:$0xff]  }
 0x693   :  { %6820 = vmatpush1.bf16.msra.mxu0 %v15593_v10  ;;  %6851 = vmatprep.mubr.bf16.mxu0 %v6804_v35  ;;  %v15614_v35 = vld [vmem:[%s16870_s10 + $0x24] ss:$8 sps:$4 sm:$0xff]   ;;  %17558 = vst [vmem:[#allocation39_spill] sm:$0xff] %v15635_v20 }
 0x694   :  { %7282 = vmatpush1.bf16.msra.mxu1 %v15532_v62  ;;  %6821 = vmatprep.subr.bf16.mxu0 %v15600_v24  ;;  %17555 = vst [vmem:[#allocation44_spill] sm:$0xff] %v15614_v35 }
 0x695   :  { %7283 = vmatprep.subr.bf16.mxu1 %v15539_v47 }
 0x697   :  { %6822 = vmatpush1.bf16.msra.mxu0 %v15607_v2 }
 0x698   :  { %7284 = vmatpush1.bf16.msra.mxu1 %v15551_v48  ;;  %6823 = vmatprep.subr.bf16.mxu0 %v15614_v35 }
 0x699   :  { %7285 = vmatprep.subr.bf16.mxu1 %v15562_v7 }
 0x69b   :  { %6824 = vmatpush1.bf16.msra.mxu0 %v15621_v50  ;;  %v15641_v50 = vld [vmem:[%s16870_s10 + $0x44] ss:$8 sps:$4 sm:$0xff]  }
 0x69c   :  { %7286 = vmatpush1.bf16.msra.mxu1 %v15574_v63  ;;  %6825 = vmatprep.subr.bf16.mxu0 %v15628_v13  ;;  %17559 = vst [vmem:[#allocation47_spill] sm:$0xff] %v15641_v50  ;;  %v15647_v13 = vld [vmem:[%s16870_s10 + $0x40] ss:$8 sps:$4 sm:$0xff]  }
 0x69d   :  { %17560 = vst [vmem:[#allocation49_spill] sm:$0xff] %v15647_v13 }
 0x69f   :  { %7288 = vmatmul.mubr.bf16.vlgmr.msra.gmra.mrb[52].mxu1 %v15058_v30  ;;  %6826 = vmatpush1.bf16.msra.mxu0 %v15635_v20  ;;  %v15653_v30 = vld [vmem:[%s16870_s10 + $0x54] ss:$8 sps:$4 sm:$0xff]   ;;  %v15659_v20 = vld [vmem:[%s16870_s10 + $0x50] ss:$8 sps:$4 sm:$0xff]  }
 0x6a0   :  { %6827 = vmatprep.subr.bf16.mxu0 %v15641_v50  ;;  %17561 = vst [vmem:[#allocation50_spill] sm:$0xff] %v15653_v30  ;;  %17562 = vst [vmem:[#allocation51_spill] sm:$0xff] %v15659_v20  ;;  %v15665_v50 = vld [vmem:[%s16870_s10 + $0x64] ss:$8 sps:$4 sm:$0xff]  }
 0x6a1   :  { %17563 = vst [vmem:[#allocation52_spill] sm:$0xff] %v15665_v50 }
 0x6a3   :  { %6828 = vmatpush1.bf16.msra.mxu0 %v15647_v13  ;;  %v15671_v13 = vld [vmem:[%s16870_s10 + $0x60] ss:$8 sps:$4 sm:$0xff]  }
 0x6a4   :  { %6829 = vmatprep.subr.bf16.mxu0 %v15653_v30  ;;  %17564 = vst [vmem:[#allocation53_spill] sm:$0xff] %v15671_v13  ;;  %v15677_v30 = vld [vmem:[%s16870_s10 + $0x74] ss:$8 sps:$4 sm:$0xff]  }
 0x6a5   :  { %17565 = vst [vmem:[#allocation54_spill] sm:$0xff] %v15677_v30 }
 0x6a7   :  { %6830 = vmatpush1.bf16.msra.mxu0 %v15659_v20  ;;  %v15683_v20 = vld [vmem:[%s16870_s10 + $0x70] ss:$8 sps:$4 sm:$0xff]  }
 0x6a8   :  { %6831 = vmatprep.subr.bf16.mxu0 %v15665_v50  ;;  %17566 = vst [vmem:[#allocation55_spill] sm:$0xff] %v15683_v20  ;;  %v15689_v50 = vld [vmem:[%s16870_s10 + $0x84] ss:$8 sps:$4 sm:$0xff]  }
 0x6a9   :  { %17567 = vst [vmem:[#allocation56_spill] sm:$0xff] %v15689_v50 }
 0x6ab   :  { %6832 = vmatpush1.bf16.msra.mxu0 %v15671_v13  ;;  %v15695_v13 = vld [vmem:[%s16870_s10 + $0x80] ss:$8 sps:$4 sm:$0xff]  }
 0x6ac   :  { %6833 = vmatprep.subr.bf16.mxu0 %v15677_v30  ;;  %17568 = vst [vmem:[#allocation57_spill] sm:$0xff] %v15695_v13  ;;  %v15701_v30 = vld [vmem:[%s16870_s10 + $0x94] ss:$8 sps:$4 sm:$0xff]  }
 0x6ad   :  { %17569 = vst [vmem:[#allocation58_spill] sm:$0xff] %v15701_v30 }
 0x6af   :  { %6834 = vmatpush1.bf16.msra.mxu0 %v15683_v20  ;;  %v15707_v20 = vld [vmem:[%s16870_s10 + $0x90] ss:$8 sps:$4 sm:$0xff]  }
 0x6b0   :  { %6835 = vmatprep.subr.bf16.mxu0 %v15689_v50  ;;  %17570 = vst [vmem:[#allocation59_spill] sm:$0xff] %v15707_v20  ;;  %v15713_v50 = vld [vmem:[%s16870_s10 + $0xa4] ss:$8 sps:$4 sm:$0xff]  }
 0x6b1   :  { %17571 = vst [vmem:[#allocation60_spill] sm:$0xff] %v15713_v50 }
 0x6b3   :  { %6836 = vmatpush1.bf16.msra.mxu0 %v15695_v13  ;;  %v15719_v13 = vld [vmem:[%s16870_s10 + $0xa0] ss:$8 sps:$4 sm:$0xff]  }
 0x6b4   :  { %6837 = vmatprep.subr.bf16.mxu0 %v15701_v30  ;;  %17572 = vst [vmem:[#allocation61_spill] sm:$0xff] %v15719_v13  ;;  %v15725_v30 = vld [vmem:[%s16870_s10 + $0xb4] ss:$8 sps:$4 sm:$0xff]  }
 0x6b5   :  { %17573 = vst [vmem:[#allocation62_spill] sm:$0xff] %v15725_v30 }
 0x6b7   :  { %6838 = vmatpush1.bf16.msra.mxu0 %v15707_v20  ;;  %v17574_v20 = vrot.slane %v14339_v39, 7 }
 0x6b8   :  { %6839 = vmatprep.subr.bf16.mxu0 %v15713_v50  ;;  %v17576_v50 = vrot.slane %v14293_v61, 1 }
 0x6b9   :  { %v6717_v35 = vsel %vm17575_vm2, %v17574_v20, %v14333_v37  ;;  %v17579_v37 = vrot.slane %v14342_v49, 6  ;;  %v17581_v20 = vrot.slane %v14345_v42, 5  ;;  %v15766_v49 = vld [vmem:[%s16870_s10 + $0xd4] ss:$8 sps:$4 sm:$0xff]   ;;  %v15778_v42 = vld [vmem:[%s16870_s10 + $0xd0] ss:$8 sps:$4 sm:$0xff]   ;;  %vm17697_vm2 = vmmov %vm17507_vm0 }
 0x6ba   :  { %v6736_v2 = vsel %vm17577_vm10, %v14295_v23, %v17576_v50  ;;  %v17580_v23 = vrot.slane %v14297_v22, 7  ;;  %v15757_v50 = vld [vmem:[%s16870_s10 + $0xc0] ss:$8 sps:$4 sm:$0xff]   ;;  %v17582_v22 = vrot.slane %v14299_v41, 6  ;;  %17584 = vst [vmem:[#allocation64_spill] sm:$0xff] %v15778_v42 }
 0x6bb   :  { %6840 = vmatpush1.bf16.msra.mxu0 %v15719_v13  ;;  %v15739_v13 = vld [vmem:[%s16870_s10 + $0xb0] ss:$8 sps:$4 sm:$0xff]   ;;  %v6718_v61 = vsel %vm5690_vm5, %v17579_v37, %v6717_v35  ;;  %v17583_v35 = vrot.slane %v14352_v52, 4  ;;  %v15787_v41 = vld [vmem:[%s16870_s10 + $0xe4] ss:$8 sps:$4 sm:$0xff]  }
 0x6bc   :  { %6841 = vmatprep.subr.bf16.mxu0 %v15725_v30  ;;  %17578 = vst [vmem:[#allocation63_spill] sm:$0xff] %v15739_v13  ;;  %v15745_v30 = vld [vmem:[%s16870_s10 + $0xc4] ss:$8 sps:$4 sm:$0xff]   ;;  %v6737_v39 = vsel %vm5690_vm5, %v17580_v23, %v6736_v2  ;;  %17586 = vst [vmem:[#allocation65_spill] sm:$0xff] %v15787_v41 }
 0x6bd   :  { %v6738_v2 = vsel %vm5693_vm15, %v17582_v22, %v6737_v39  ;;  %v7559_v52 = vld [vmem:[%s16873_s12 + $0x80] sm:$0xff]  ;;  %v17587_v39 = vrot.slane %v14355_v40, 3  ;;  %v7561_v40 = vld [vmem:[%s16873_s12 + $0x90] sm:$0xff] }
 0x6bf   :  { %6842 = vmatpush1.bf16.msra.mxu0 %v15739_v13  ;;  %v6719_v13 = vsel %vm5693_vm15, %v17581_v20, %v6718_v61  ;;  %v17585_v61 = vrot.slane %v14308_v1, 5  ;;  %v7543_v1 = vld [vmem:[%s16873_s12] sm:$0xff] }
 0x6c0   :  { %6843 = vmatprep.subr.bf16.mxu0 %v15745_v30  ;;  %v6721_v37 = vsel %vm6720_vm1, %v17583_v35, %v6719_v13  ;;  %v7560_v13 = vld [vmem:[%s16873_s12 + $0x88] sm:$0xff]  ;;  %v17588_v35 = vrot.slane %v14326_v44, 4  ;;  %v7545_v44 = vld [vmem:[%s16873_s12 + $0x10] sm:$0xff] }
 0x6c1   :  { %v6739_v23 = vsel %vm6720_vm1, %v17585_v61, %v6738_v2  ;;  %v6723_v20 = vsel %vm6722_vm13, %v17587_v39, %v6721_v37  ;;  %v9001_v22 = vpack.c.bf16 %v7560_v13, %v7559_v52  ;;  %v7544_v2 = vld [vmem:[%s16873_s12 + $0x8] sm:$0xff]  ;;  %v7562_v37 = vld [vmem:[%s16873_s12 + $0x98] sm:$0xff] }
 0x6c2   :  { %v6740_v61 = vsel %vm6722_vm13, %v17588_v35, %v6739_v23  ;;  %v15826_v23 = vld [vmem:[%s16870_s10 + $0xf4] ss:$8 sps:$4 sm:$0xff]   ;;  %v6729_v52 = vpack.c.b16 %v6723_v20, %v6723_v20  ;;  %v9005_v13 = vpack.c.bf16 %v7562_v37, %v7561_v40  ;;  %v7563_v20 = vld [vmem:[%s16873_s12 + $0xa0] sm:$0xff] }
 0x6c3   :  { %6844 = vmatpush1.bf16.msra.mxu0 %v15757_v50  ;;  %9002 = vmatprep.subr.bf16.mxu1 %v9001_v22  ;;  %v6742_v39 = vpack.c.b16 %v6740_v61, %v6740_v61  ;;  %v7547_v35 = vld [vmem:[%s16873_s12 + $0x20] sm:$0xff] }
 0x6c4   :  { %6845 = vmatprep.subr.bf16.mxu0 %v15766_v49  ;;  %v6803_v61 = vrot.slane %v6729_v52, 1  ;;  %v15850_v40 = vld [vmem:[%s16870_s10 + $0x104] ss:$8 sps:$4 sm:$0xff]   ;;  %v15859_v52 = vld [vmem:[%s16870_s10 + $0x100] ss:$8 sps:$4 sm:$0xff]  }
 0x6c7   :  { %6846 = vmatpush1.bf16.msra.mxu0 %v15778_v42  ;;  %v15811_v42 = vld [vmem:[%s16870_s10 + $0xe0] ss:$8 sps:$4 sm:$0xff]  }
 0x6c8   :  { %6847 = vmatprep.subr.bf16.mxu0 %v15787_v41  ;;  %v9003_v41 = vpack.c.bf16 %v7544_v2, %v7543_v1  ;;  %v7546_v1 = vld [vmem:[%s16873_s12 + $0x18] sm:$0xff] }
 0x6c9   :  { %v9007_v22 = vpack.c.bf16 %v7546_v1, %v7545_v44  ;;  %v15835_v2 = vld [vmem:[%s16870_s10 + $0xf0] ss:$8 sps:$4 sm:$0xff]   ;;  %v7548_v44 = vld [vmem:[%s16873_s12 + $0x28] sm:$0xff] }
 0x6ca   :  { %9004 = vmatpush3.bf16.msra.mxu1 %v9003_v41  ;;  %v7564_v41 = vld [vmem:[%s16873_s12 + $0xa8] sm:$0xff]  ;;  %v9011_v1 = vpack.c.bf16 %v7548_v44, %v7547_v35  ;;  %v15883_v44 = vld [vmem:[%s16870_s10 + $0x110] ss:$8 sps:$4 sm:$0xff]  }
 0x6cb   :  { %6848 = vmatpush1.bf16.msra.mxu0 %v15811_v42  ;;  %9006 = vmatprep.subr.bf16.mxu1 %v9005_v13  ;;  %v9009_v37 = vpack.c.bf16 %v7564_v41, %v7563_v20  ;;  %v6806_v13 = vrot.slane %v6742_v39, 1  ;;  %v7566_v20 = vld [vmem:[%s16873_s12 + $0xb8] sm:$0xff]  ;;  %v7549_v39 = vld [vmem:[%s16873_s12 + $0x30] sm:$0xff]  ;;  %17590 = vst [vmem:[#allocation67_spill] sm:$0xff] %v15883_v44 }
 0x6cc   :  { %6849 = vmatprep.subr.bf16.mxu0 %v15826_v23  ;;  %v15874_v41 = vld [vmem:[%s16870_s10 + $0x114] ss:$8 sps:$4 sm:$0xff]  }
 0x6cd   :  { %17589 = vst [vmem:[#allocation66_spill] sm:$0xff] %v15874_v41 }
 0x6ce   :  { %9008 = vmatpush3.bf16.msra.mxu1 %v9007_v22  ;;  %v7565_v22 = vld [vmem:[%s16873_s12 + $0xb0] sm:$0xff] }
 0x6cf   :  { %6850 = vmatpush1.bf16.msra.mxu0 %v15835_v2  ;;  %9010 = vmatprep.subr.bf16.mxu1 %v9009_v37  ;;  %v9013_v35 = vpack.c.bf16 %v7566_v20, %v7565_v22  ;;  %v7551_v22 = vld [vmem:[%s16873_s12 + $0x40] sm:$0xff] }
 0x6d0   :  { %6860 = vmatprep.subr.bf16.mxu0 %v15850_v40  ;;  %v15898_v20 = vld [vmem:[%s16870_s10 + $0x124] ss:$8 sps:$4 sm:$0xff]  }
 0x6d1   :  { %17591 = vst [vmem:[#allocation68_spill] sm:$0xff] %v15898_v20 }
 0x6d2   :  { %6852 = vmatmul.mubr.bf16.vlgmr.msra.gmra.mrb[36].mxu0 %v6803_v61  ;;  %9012 = vmatpush3.bf16.msra.mxu1 %v9011_v1  ;;  %v7550_v61 = vld [vmem:[%s16873_s12 + $0x38] sm:$0xff]  ;;  %v7568_v1 = vld [vmem:[%s16873_s12 + $0xc8] sm:$0xff] }
 0x6d3   :  { %6861 = vmatpush1.bf16.msra.mxu0 %v15859_v52  ;;  %6892 = vmatprep.mubr.bf16.mxu0 %v6806_v13  ;;  %v9015_v37 = vpack.c.bf16 %v7550_v61, %v7549_v39  ;;  %v7567_v13 = vld [vmem:[%s16873_s12 + $0xc0] sm:$0xff] }
 0x6d4   :  { %6862 = vmatprep.subr.bf16.mxu0 %v15874_v41  ;;  %9014 = vmatprep.subr.bf16.mxu1 %v9013_v35  ;;  %v9017_v39 = vpack.c.bf16 %v7568_v1, %v7567_v13  ;;  %v7552_v35 = vld [vmem:[%s16873_s12 + $0x48] sm:$0xff]  ;;  %v7569_v41 = vld [vmem:[%s16873_s12 + $0xd0] sm:$0xff] }
 0x6d5   :  { %v9019_v61 = vpack.c.bf16 %v7552_v35, %v7551_v22  ;;  %v7553_v13 = vld [vmem:[%s16873_s12 + $0x50] sm:$0xff] }
 0x6d6   :  { %9016 = vmatpush3.bf16.msra.mxu1 %v9015_v37  ;;  %v7570_v37 = vld [vmem:[%s16873_s12 + $0xd8] sm:$0xff] }
 0x6d7   :  { %6863 = vmatpush1.bf16.msra.mxu0 %v15883_v44  ;;  %9018 = vmatprep.subr.bf16.mxu1 %v9017_v39  ;;  %v15907_v44 = vld [vmem:[%s16870_s10 + $0x120] ss:$8 sps:$4 sm:$0xff]   ;;  %v15922_v1 = vld [vmem:[%s16870_s10 + $0x134] ss:$8 sps:$4 sm:$0xff]   ;;  %v9021_v22 = vpack.c.bf16 %v7570_v37, %v7569_v41  ;;  %v15946_v37 = vld [vmem:[%s16870_s10 + $0x144] ss:$8 sps:$4 sm:$0xff]  }
 0x6d8   :  { %6864 = vmatprep.subr.bf16.mxu0 %v15898_v20  ;;  %17592 = vst [vmem:[#allocation69_spill] sm:$0xff] %v15907_v44  ;;  %17593 = vst [vmem:[#allocation70_spill] sm:$0xff] %v15922_v1  ;;  %v7554_v39 = vld [vmem:[%s16873_s12 + $0x58] sm:$0xff]  ;;  %v7571_v20 = vld [vmem:[%s16873_s12 + $0xe0] sm:$0xff] }
 0x6d9   :  { %v9023_v35 = vpack.c.bf16 %v7554_v39, %v7553_v13  ;;  %v7572_v41 = vld [vmem:[%s16873_s12 + $0xe8] sm:$0xff] }
 0x6da   :  { %9020 = vmatpush3.bf16.msra.mxu1 %v9019_v61  ;;  %v7555_v61 = vld [vmem:[%s16873_s12 + $0x60] sm:$0xff]  ;;  %v9025_v13 = vpack.c.bf16 %v7572_v41, %v7571_v20  ;;  %v7574_v20 = vld [vmem:[%s16873_s12 + $0xf8] sm:$0xff] }
 0x6db   :  { %6865 = vmatpush1.bf16.msra.mxu0 %v15907_v44  ;;  %9022 = vmatprep.subr.bf16.mxu1 %v9021_v22  ;;  %v15931_v44 = vld [vmem:[%s16870_s10 + $0x130] ss:$8 sps:$4 sm:$0xff]   ;;  %v7556_v22 = vld [vmem:[%s16873_s12 + $0x68] sm:$0xff] }
 0x6dc   :  { %6866 = vmatprep.subr.bf16.mxu0 %v15922_v1  ;;  %17594 = vst [vmem:[#allocation71_spill] sm:$0xff] %v15931_v44  ;;  %v9027_v39 = vpack.c.bf16 %v7556_v22, %v7555_v61  ;;  %v7573_v1 = vld [vmem:[%s16873_s12 + $0xf0] sm:$0xff] }
 0x6dd   :  { %v9029_v41 = vpack.c.bf16 %v7574_v20, %v7573_v1  ;;  %v7557_v61 = vld [vmem:[%s16873_s12 + $0x70] sm:$0xff]  ;;  %v15985_v1 = vld [vmem:[%s16870_s10 + $0x164] ss:$8 sps:$4 sm:$0xff]  }
 0x6de   :  { %9024 = vmatpush3.bf16.msra.mxu1 %v9023_v35  ;;  %v15967_v35 = vld [vmem:[%s16870_s10 + $0x154] ss:$8 sps:$4 sm:$0xff]   ;;  %17598 = vst [vmem:[#allocation75_spill] sm:$0xff] %v15985_v1 }
 0x6df   :  { %6867 = vmatpush1.bf16.msra.mxu0 %v15931_v44  ;;  %9026 = vmatprep.subr.bf16.mxu1 %v9025_v13  ;;  %v15955_v44 = vld [vmem:[%s16870_s10 + $0x140] ss:$8 sps:$4 sm:$0xff]   ;;  %17596 = vst [vmem:[#allocation73_spill] sm:$0xff] %v15967_v35  ;;  %v7558_v13 = vld [vmem:[%s16873_s12 + $0x78] sm:$0xff] }
 0x6e0   :  { %6868 = vmatprep.subr.bf16.mxu0 %v15946_v37  ;;  %17595 = vst [vmem:[#allocation72_spill] sm:$0xff] %v15955_v44  ;;  %v9031_v22 = vpack.c.bf16 %v7558_v13, %v7557_v61  ;;  %v15997_v20 = vld [vmem:[%s16870_s10 + $0x174] ss:$8 sps:$4 sm:$0xff]   ;;  %v16009_v61 = vld [vmem:[%s16870_s10 + $0x184] ss:$8 sps:$4 sm:$0xff]  }
 0x6e1   :  { %17600 = vst [vmem:[#allocation77_spill] sm:$0xff] %v15997_v20  ;;  %17602 = vst [vmem:[#allocation79_spill] sm:$0xff] %v16009_v61  ;;  %v16015_v13 = vld [vmem:[%s16870_s10 + $0x180] ss:$8 sps:$4 sm:$0xff]  }
 0x6e2   :  { %9028 = vmatpush3.bf16.msra.mxu1 %v9027_v39  ;;  %v15991_v39 = vld [vmem:[%s16870_s10 + $0x160] ss:$8 sps:$4 sm:$0xff]   ;;  %17603 = vst [vmem:[#allocation80_spill] sm:$0xff] %v16015_v13 }
 0x6e3   :  { %6869 = vmatpush1.bf16.msra.mxu0 %v15955_v44  ;;  %9030 = vmatprep.subr.bf16.mxu1 %v9029_v41  ;;  %v15979_v44 = vld [vmem:[%s16870_s10 + $0x150] ss:$8 sps:$4 sm:$0xff]   ;;  %17599 = vst [vmem:[#allocation76_spill] sm:$0xff] %v15991_v39 }
 0x6e4   :  { %6870 = vmatprep.subr.bf16.mxu0 %v15967_v35  ;;  %17597 = vst [vmem:[#allocation74_spill] sm:$0xff] %v15979_v44  ;;  %v16003_v41 = vld [vmem:[%s16870_s10 + $0x170] ss:$8 sps:$4 sm:$0xff]   ;;  %v16098_v35 = vld [vmem:[%s16870_s10 + $0x1e0] ss:$8 sps:$4 sm:$0xff]  }
 0x6e5   :  { %17601 = vst [vmem:[#allocation78_spill] sm:$0xff] %v16003_v41 }
 0x6e6   :  { %9032 = vmatpush3.bf16.msra.mxu1 %v9031_v22  ;;  %v16021_v22 = vld [vmem:[%s16870_s10 + $0x194] ss:$8 sps:$4 sm:$0xff]  }
 0x6e7   :  { %6871 = vmatpush1.bf16.msra.mxu0 %v15979_v44  ;;  %17604 = vst [vmem:[#allocation81_spill] sm:$0xff] %v16021_v22  ;;  %v6771_v44 = vrot.slane %v14375_v11, 3 }
 0x6e8   :  { %6872 = vmatprep.subr.bf16.mxu0 %v15985_v1  ;;  %v16055_v1 = vld [vmem:[%s16870_s10 + $0x1b0] ss:$8 sps:$4 sm:$0xff]  }
 0x6e9   :  { %17610 = vst [vmem:[#allocation86_spill] sm:$0xff] %v16055_v1 }
 0x6eb   :  { %6873 = vmatpush1.bf16.msra.mxu0 %v15991_v39 }
 0x6ec   :  { %6874 = vmatprep.subr.bf16.mxu0 %v15997_v20  ;;  %v6767_v20 = vrot.slane %v14367_v57, 5 }
 0x6ef   :  { %6875 = vmatpush1.bf16.msra.mxu0 %v16003_v41  ;;  %v16027_v41 = vld [vmem:[%s16870_s10 + $0x190] ss:$8 sps:$4 sm:$0xff]  }
 0x6f0   :  { %6876 = vmatprep.subr.bf16.mxu0 %v16009_v61  ;;  %17605 = vst [vmem:[#allocation82_spill] sm:$0xff] %v16027_v41  ;;  %v16033_v61 = vld [vmem:[%s16870_s10 + $0x1a4] ss:$8 sps:$4 sm:$0xff]  }
 0x6f1   :  { %17606 = vst [vmem:[#allocation83_spill] sm:$0xff] %v16033_v61 }
 0x6f3   :  { %6877 = vmatpush1.bf16.msra.mxu0 %v16015_v13  ;;  %v6766_v13 = vrot.slane %v14360_v8, 6 }
 0x6f4   :  { %6878 = vmatprep.subr.bf16.mxu0 %v16021_v22  ;;  %v16041_v22 = vld [vmem:[%s16870_s10 + $0x1a0] ss:$8 sps:$4 sm:$0xff]  }
 0x6f5   :  { %17607 = vst [vmem:[#allocation84_spill] sm:$0xff] %v16041_v22  ;;  %v6768_v39 = vsel %vm17609_vm11, %v6767_v20, %v6766_v13  ;;  %v16069_v20 = vld [vmem:[%s16870_s10 + $0x1c0] ss:$8 sps:$4 sm:$0xff]   ;;  %v16075_v13 = vld [vmem:[%s16870_s10 + $0x1d4] ss:$8 sps:$4 sm:$0xff]  }
 0x6f6   :  { %17612 = vst [vmem:[#allocation88_spill] sm:$0xff] %v16069_v20  ;;  %17613 = vst [vmem:[#allocation89_spill] sm:$0xff] %v16075_v13 }
 0x6f7   :  { %6879 = vmatpush1.bf16.msra.mxu0 %v16027_v41  ;;  %v16047_v41 = vld [vmem:[%s16870_s10 + $0x1b4] ss:$8 sps:$4 sm:$0xff]  }
 0x6f8   :  { %6880 = vmatprep.subr.bf16.mxu0 %v16033_v61  ;;  %17608 = vst [vmem:[#allocation85_spill] sm:$0xff] %v16047_v41  ;;  %v6769_v61 = vrot.slane %v14373_v34, 4 }
 0x6fb   :  { %6881 = vmatpush1.bf16.msra.mxu0 %v16041_v22  ;;  %v16061_v22 = vld [vmem:[%s16870_s10 + $0x1c4] ss:$8 sps:$4 sm:$0xff]  }
 0x6fc   :  { %6882 = vmatprep.subr.bf16.mxu0 %v16047_v41  ;;  %17611 = vst [vmem:[#allocation87_spill] sm:$0xff] %v16061_v22  ;;  %v6770_v41 = vsel %vm5690_vm5, %v6769_v61, %v6768_v39  ;;  %v6773_v39 = vrot.slane %v14380_v5, 2  ;;  %v16083_v61 = vld [vmem:[%s16870_s10 + $0x1d0] ss:$8 sps:$4 sm:$0xff]  }
 0x6fd   :  { %17614 = vst [vmem:[#allocation90_spill] sm:$0xff] %v16083_v61 }
 0x6ff   :  { %6883 = vmatpush1.bf16.msra.mxu0 %v16055_v1  ;;  %v16090_v1 = vld [vmem:[%s16870_s10 + $0x1e4] ss:$8 sps:$4 sm:$0xff]  }
 0x700   :  { %6884 = vmatprep.subr.bf16.mxu0 %v16061_v22  ;;  %v6772_v22 = vsel %vm5693_vm15, %v6771_v44, %v6770_v41  ;;  %17615 = vst [vmem:[#allocation91_spill] sm:$0xff] %v16090_v1 }
 0x703   :  { %6885 = vmatpush1.bf16.msra.mxu0 %v16069_v20  ;;  %v6774_v20 = vsel %vm6720_vm1, %v6773_v39, %v6772_v22  ;;  %v6741_v22 = vpack.c.b16 %v15076_v36, %v15076_v36  ;;  %v17619_v36 = vld [vmem:[#allocation10_spill] sm:$0xff] }
 0x704   :  { %6886 = vmatprep.subr.bf16.mxu0 %v16075_v13  ;;  %v17616_v13 = vld [vmem:[#allocation48_spill] sm:$0xff] }
 0x705   :  { %v6775_v44 = vrot.slane %v17616_v13, 1 }
 0x707   :  { %6887 = vmatpush1.bf16.msra.mxu0 %v16083_v61  ;;  %v6776_v41 = vsel %vm6722_vm13, %v6775_v44, %v6774_v20  ;;  %v17617_v20 = vld [vmem:[#allocation8_spill] sm:$0xff]  ;;  %v17620_v44 = vld [vmem:[#allocation11_spill] sm:$0xff] }
 0x708   :  { %6888 = vmatprep.subr.bf16.mxu0 %v16090_v1  ;;  %v6778_v39 = vpack.c.b16 %v6776_v41, %v6776_v41  ;;  %v6805_v1 = vrot.slane %v6741_v22, 1  ;;  %v17627_v41 = vld [vmem:[#allocation20_spill] sm:$0xff] }
 0x709   :  { %v6756_v22 = vrot.slane %v17627_v41, 5 }
 0x70a   :  { %v6808_v61 = vrot.slane %v6778_v39, 1  ;;  %v17631_v39 = vld [vmem:[#allocation5_spill] sm:$0xff] }
 0x70b   :  { %6889 = vmatpush1.bf16.msra.mxu0 %v16098_v35 }
 0x70c   :  { %6890 = vmatprep.subr.bf16.mxu0 %v14882_v4  ;;  %v17618_v4 = vld [vmem:[#allocation9_spill] sm:$0xff] }
 0x70f   :  { %6891 = vmatpush1.bf16.msra.mxu0 %v14898_v59  ;;  %v17621_v59 = vld [vmem:[#allocation12_spill] sm:$0xff] }
 0x710   :  { %6901 = vmatprep.subr.bf16.mxu0 %v14910_v18  ;;  %v17622_v18 = vld [vmem:[#allocation13_spill] sm:$0xff] }
 0x712   :  { %6893 = vmatmul.mubr.bf16.vlgmr.msra.gmra.mrb[36].mxu0 %v6805_v1  ;;  %v17623_v1 = vld [vmem:[#allocation15_spill] sm:$0xff] }
 0x713   :  { %6902 = vmatpush1.bf16.msra.mxu0 %v14948_v51  ;;  %6933 = vmatprep.mubr.bf16.mxu0 %v6808_v61  ;;  %v17624_v51 = vld [vmem:[#allocation18_spill] sm:$0xff]  ;;  %v17625_v61 = vld [vmem:[#allocation16_spill] sm:$0xff] }
 0x714   :  { %6903 = vmatprep.subr.bf16.mxu0 %v14969_v60  ;;  %v17626_v60 = vld [vmem:[#allocation3_spill] sm:$0xff] }
 0x717   :  { %6904 = vmatpush1.bf16.msra.mxu0 %v14986_v28  ;;  %v6755_v28 = vrot.slane %v17626_v60, 6 }
 0x718   :  { %6905 = vmatprep.subr.bf16.mxu0 %v17617_v20  ;;  %v6760_v20 = vrot.slane %v17631_v39, 3 }
 0x71b   :  { %6906 = vmatpush1.bf16.msra.mxu0 %v17618_v4 }
 0x71c   :  { %6907 = vmatprep.subr.bf16.mxu0 %v17619_v36  ;;  %v17632_v36 = vld [vmem:[#allocation6_spill] sm:$0xff] }
 0x71f   :  { %6908 = vmatpush1.bf16.msra.mxu0 %v17620_v44  ;;  %v6762_v44 = vrot.slane %v17632_v36, 2 }
 0x720   :  { %6909 = vmatprep.subr.bf16.mxu0 %v17621_v59 }
 0x723   :  { %6910 = vmatpush1.bf16.msra.mxu0 %v17622_v18  ;;  %v17633_v18 = vld [vmem:[#allocation7_spill] sm:$0xff] }
 0x724   :  { %6911 = vmatprep.subr.bf16.mxu0 %v17623_v1  ;;  %v6764_v1 = vrot.slane %v17633_v18, 1 }
 0x727   :  { %6912 = vmatpush1.bf16.msra.mxu0 %v17624_v51 }
 0x728   :  { %6913 = vmatprep.subr.bf16.mxu0 %v17625_v61 }
 0x72b   :  { %6914 = vmatpush1.bf16.msra.mxu0 %v15111_v54  ;;  %v6790_v54 = vrot.slane %v14360_v8, 7 }
 0x72c   :  { %6915 = vmatprep.subr.bf16.mxu0 %v15118_v26  ;;  %v6791_v26 = vrot.slane %v14367_v57, 6 }
 0x72f   :  { %6916 = vmatpush1.bf16.msra.mxu0 %v15125_v46  ;;  %v17628_v46 = vld [vmem:[#allocation4_spill] sm:$0xff] }
 0x730   :  { %6917 = vmatprep.subr.bf16.mxu0 %v15132_v25  ;;  %v6758_v25 = vrot.slane %v17628_v46, 4 }
 0x733   :  { %6918 = vmatpush1.bf16.msra.mxu0 %v15139_v14  ;;  %v6757_v14 = vsel %vm17629_vm12, %v6756_v22, %v6755_v28  ;;  %vm17731_vm12 = vmmov %vm17507_vm0 }
 0x734   :  { %6919 = vmatprep.subr.bf16.mxu0 %v15146_v12  ;;  %v6792_v12 = vsel %vm17630_vm14, %v6791_v26, %v6790_v54  ;;  %v17635_v26 = vld [vmem:[#allocation17_spill] sm:$0xff]  ;;  %vm8033_vm14 = vcmask 259072  }
 0x737   :  { %6920 = vmatpush1.bf16.msra.mxu0 %v15163_v3  ;;  %v6793_v3 = vrot.slane %v14373_v34, 5 }
 0x738   :  { %6921 = vmatprep.subr.bf16.mxu0 %v15173_v27  ;;  %v6759_v27 = vsel %vm5690_vm5, %v6758_v25, %v6757_v14  ;;  %v17636_v25 = vld [vmem:[#allocation23_spill] sm:$0xff]  ;;  %v17637_v14 = vld [vmem:[#allocation25_spill] sm:$0xff] }
 0x739   :  { %v6761_v4 = vsel %vm5693_vm15, %v6760_v20, %v6759_v27 }
 0x73a   :  { %v6763_v59 = vsel %vm6720_vm1, %v6762_v44, %v6761_v4  ;;  %v17645_v44 = vld [vmem:[#allocation30_spill] sm:$0xff] }
 0x73b   :  { %6922 = vmatpush1.bf16.msra.mxu0 %v15206_v58  ;;  %v6794_v58 = vsel %vm5690_vm5, %v6793_v3, %v6792_v12  ;;  %v17640_v3 = vld [vmem:[#allocation27_spill] sm:$0xff] }
 0x73c   :  { %6923 = vmatprep.subr.bf16.mxu0 %v15219_v9  ;;  %v6795_v9 = vrot.slane %v14375_v11, 4  ;;  %v17643_v12 = vld [vmem:[#allocation31_spill] sm:$0xff] }
 0x73f   :  { %6924 = vmatpush1.bf16.msra.mxu0 %v15242_v56  ;;  %v6796_v56 = vsel %vm5693_vm15, %v6795_v9, %v6794_v58  ;;  %v17644_v9 = vld [vmem:[#allocation33_spill] sm:$0xff] }
 0x740   :  { %6925 = vmatprep.subr.bf16.mxu0 %v15252_v38  ;;  %v6797_v38 = vrot.slane %v14380_v5, 3 }
 0x742   :  { %v6798_v51 = vsel %vm6720_vm1, %v6797_v38, %v6796_v56  ;;  %v17646_v56 = vld [vmem:[#allocation32_spill] sm:$0xff]  ;;  %v17647_v38 = vld [vmem:[#allocation34_spill] sm:$0xff] }
 0x743   :  { %6926 = vmatpush1.bf16.msra.mxu0 %v15270_v6  ;;  %v6799_v6 = vrot.slane %v17616_v13, 2 }
 0x744   :  { %6927 = vmatprep.subr.bf16.mxu0 %v15277_v32  ;;  %v6765_v32 = vsel %vm6722_vm13, %v6764_v1, %v6763_v59  ;;  %v17648_v59 = vld [vmem:[#allocation35_spill] sm:$0xff]  ;;  %v17649_v1 = vld [vmem:[#allocation36_spill] sm:$0xff] }
 0x745   :  { %v6800_v61 = vsel %vm6722_vm13, %v6799_v6, %v6798_v51  ;;  %v6777_v28 = vpack.c.b16 %v6765_v32, %v6765_v32  ;;  %v17650_v32 = vld [vmem:[#allocation45_spill] sm:$0xff] }
 0x746   :  { %v6802_v22 = vpack.c.b16 %v6800_v61, %v6800_v61 }
 0x747   :  { %6928 = vmatpush1.bf16.msra.mxu0 %v15289_v16  ;;  %v6807_v16 = vrot.slane %v6777_v28, 1  ;;  %v17651_v28 = vld [vmem:[#allocation40_spill] sm:$0xff] }
 0x748   :  { %6929 = vmatprep.subr.bf16.mxu0 %v15296_v29  ;;  %v6810_v54 = vrot.slane %v6802_v22, 1  ;;  %v17634_v29 = vld [vmem:[#allocation21_spill] sm:$0xff] }
 0x74b   :  { %6930 = vmatpush1.bf16.msra.mxu0 %v15305_v45  ;;  %v17638_v45 = vld [vmem:[#allocation24_spill] sm:$0xff] }
 0x74c   :  { %6931 = vmatprep.subr.bf16.mxu0 %v15313_v43  ;;  %v17639_v43 = vld [vmem:[#allocation26_spill] sm:$0xff] }
 0x74f   :  { %6932 = vmatpush1.bf16.msra.mxu0 %v15322_v31  ;;  %v17641_v31 = vld [vmem:[#allocation28_spill] sm:$0xff] }
 0x750   :  { %6942 = vmatprep.subr.bf16.mxu0 %v15330_v53  ;;  %v17642_v53 = vld [vmem:[#allocation29_spill] sm:$0xff] }
 0x752   :  { %6934 = vmatmul.mubr.bf16.vlgmr.msra.gmra.mrb[36].mxu0 %v6807_v16  ;;  %v17652_v16 = vld [vmem:[#allocation41_spill] sm:$0xff] }
 0x753   :  { %6943 = vmatpush1.bf16.msra.mxu0 %v17634_v29  ;;  %6974 = vmatprep.mubr.bf16.mxu0 %v6810_v54  ;;  %v6779_v54 = vrot.slane %v17626_v60, 7  ;;  %v6780_v29 = vrot.slane %v17627_v41, 6 }
 0x754   :  { %6944 = vmatprep.subr.bf16.mxu0 %v17635_v26  ;;  %v6782_v26 = vrot.slane %v17628_v46, 5 }
 0x757   :  { %6945 = vmatpush1.bf16.msra.mxu0 %v17636_v25  ;;  %v6781_v25 = vsel %vm17653_vm6, %v6780_v29, %v6779_v54  ;;  %v17675_v54 = vld [vmem:[#allocation55_spill] sm:$0xff]  ;;  %v17676_v29 = vld [vmem:[#allocation56_spill] sm:$0xff]  ;;  %vm8069_vm6 = vcmask 261120  }
 0x758   :  { %6946 = vmatprep.subr.bf16.mxu0 %v17637_v14  ;;  %v17654_v14 = vld [vmem:[#allocation42_spill] sm:$0xff] }
 0x75b   :  { %6947 = vmatpush1.bf16.msra.mxu0 %v17638_v45  ;;  %v6783_v45 = vsel %vm5690_vm5, %v6782_v26, %v6781_v25  ;;  %vm17661_vm5 = vmmov %vm17507_vm0  ;;  %v17677_v26 = vld [vmem:[#allocation57_spill] sm:$0xff]  ;;  %v17678_v25 = vld [vmem:[#allocation58_spill] sm:$0xff] }
 0x75c   :  { %6948 = vmatprep.subr.bf16.mxu0 %v17639_v43  ;;  %v17655_v43 = vrot.slane %v14373_v34, 6 }
 0x75f   :  { %6949 = vmatpush1.bf16.msra.mxu0 %v17640_v3  ;;  %v17656_v3 = vrot.slane %v14375_v11, 5 }
 0x760   :  { %6950 = vmatprep.subr.bf16.mxu0 %v17641_v31  ;;  %v6786_v31 = vrot.slane %v17632_v36, 3 }
 0x763   :  { %6951 = vmatpush1.bf16.msra.mxu0 %v17642_v53 }
 0x764   :  { %6952 = vmatprep.subr.bf16.mxu0 %v17643_v12 }
 0x765   :  { %v6710_v27 = vpop.f32.mrb[32].mxu0 }
 0x766   :  { %v6712_v20 = vpop.f32.mrb[33].mxu0 }
 0x767   :  { %v6714_v58 = vpop.f32.mrb[34].mxu0  ;;  %6953 = vmatpush1.bf16.msra.mxu0 %v17644_v9  ;;  %7735 = vmatprep.mubr.f32.mxu1 %v6712_v20  ;;  %v17660_v20 = vrot.slane %v17616_v13, 3 }
 0x768   :  { %v6715_v4 = vpop.f32.mrb[35].mxu0  ;;  %7736 = vmatmul.mubr.f32.vlgmr.msra.gmra.mrb[56].mxu1 %v6710_v27  ;;  %6954 = vmatprep.subr.bf16.mxu0 %v17645_v44  ;;  %v6788_v27 = vrot.slane %v17633_v18, 2  ;;  %v17662_v58 = vrot.slane %v14367_v57, 7 }
 0x76a   :  { %v7297_v9 = vsel %vm6722_vm13, %v17662_v58, %v14360_v8  ;;  %v17695_v58 = vld [vmem:[#allocation64_spill] sm:$0xff] }
 0x76b   :  { %6955 = vmatpush1.bf16.msra.mxu0 %v17646_v56  ;;  %v7305_v44 = vpack.c.b16 %v7297_v9, %v7297_v9  ;;  %v7591_v9 = vld [vmem:[%s16873_s12 + $0x180] sm:$0xff] }
 0x76c   :  { %6956 = vmatprep.subr.bf16.mxu0 %v17647_v38 }
 0x76f   :  { %6957 = vmatpush1.bf16.msra.mxu0 %v17648_v59 }
 0x770   :  { %6958 = vmatprep.subr.bf16.mxu0 %v17649_v1  ;;  %v17665_v1 = vld [vmem:[#allocation46_spill] sm:$0xff] }
 0x772   :  { %v16176_v51 = vpop.f32.mrb[52].mxu1 }
 0x773   :  { %v16178_v6 = vpop.f32.mrb[53].mxu1  ;;  %6959 = vmatpush1.bf16.msra.mxu0 %v17650_v32  ;;  %v17666_v32 = vld [vmem:[#allocation38_spill] sm:$0xff] }
 0x774   :  { %v7293_v61 = vpop.f32.mrb[54].mxu1  ;;  %6960 = vmatprep.subr.bf16.mxu0 %v17651_v28  ;;  %v17670_v28 = vld [vmem:[#allocation50_spill] sm:$0xff] }
 0x775   :  { %v7294_v22 = vpop.f32.mrb[55].mxu1  ;;  %v17669_v61 = vld [vmem:[#allocation49_spill] sm:$0xff] }
 0x776   :  { %v17672_v22 = vld [vmem:[#allocation52_spill] sm:$0xff] }
 0x777   :  { %6961 = vmatpush1.bf16.msra.mxu0 %v17652_v16  ;;  %v17674_v16 = vld [vmem:[#allocation54_spill] sm:$0xff] }
 0x778   :  { %6962 = vmatprep.subr.bf16.mxu0 %v15475_v17  ;;  %v6784_v17 = vrot.slane %v17631_v39, 4 }
 0x77b   :  { %6963 = vmatpush1.bf16.msra.mxu0 %v15482_v55  ;;  %v7301_v55 = vsel %vm17657_vm8, %v17656_v3, %v17655_v43  ;;  %v17682_v43 = vld [vmem:[#allocation62_spill] sm:$0xff]  ;;  %v17683_v3 = vld [vmem:[#allocation63_spill] sm:$0xff]  ;;  %vm8143_vm8 = vcmask 37888  }
 0x77c   :  { %6964 = vmatprep.subr.bf16.mxu0 %v15489_v19  ;;  %v6785_v19 = vsel %vm5693_vm15, %v6784_v17, %v6783_v45  ;;  %v17680_v45 = vld [vmem:[#allocation60_spill] sm:$0xff]  ;;  %v17681_v17 = vld [vmem:[#allocation61_spill] sm:$0xff]  ;;  %vm17686_vm15 = vmmov %vm17548_vm3 }
 0x77d   :  { %v6787_v12 = vsel %vm6720_vm1, %v6786_v31, %v6785_v19  ;;  %v17685_v19 = vrot.slane %v17631_v39, 5  ;;  %vm17689_vm1 = vmmov %vm17548_vm3 }
 0x77e   :  { %vm17691_vm3 = vmmov %vm17659_vm4 }
 0x77f   :  { %6965 = vmatpush1.bf16.msra.mxu0 %v17654_v14  ;;  %v17679_v14 = vld [vmem:[#allocation59_spill] sm:$0xff]  ;;  %vm17693_vm9 = vmmov %vm17691_vm3 }
 0x780   :  { %6966 = vmatprep.subr.bf16.mxu0 %v15503_v33  ;;  %v17658_v33 = vrot.slane %v14380_v5, 4  ;;  %vm17725_vm10 = vmmov %vm17689_vm1 }
 0x781   :  { %vm17728_vm11 = vmmov %vm17691_vm3 }
 0x782   :  { %v7302_v53 = vsel %vm17659_vm4, %v17658_v33, %v7301_v55  ;;  %v17684_v55 = vrot.slane %v17628_v46, 6  ;;  %v17687_v33 = vrot.slane %v14373_v34, 7 }
 0x783   :  { %6967 = vmatpush1.bf16.msra.mxu0 %v15512_v21  ;;  %v7303_v21 = vsel %vm17661_vm5, %v17660_v20, %v7302_v53  ;;  %v17688_v53 = vrot.slane %v14375_v11, 6  ;;  %v17696_v11 = vrot.slane %v17616_v13, 4 }
 0x784   :  { %6968 = vmatprep.subr.bf16.mxu0 %v15519_v0  ;;  %v6789_v0 = vsel %vm6722_vm13, %v6788_v27, %v6787_v12  ;;  %v7307_v4 = vpack.c.b16 %v7303_v21, %v7303_v21  ;;  %v7298_v31 = vsel %vm17686_vm15, %v17685_v19, %v17684_v55  ;;  %v17690_v27 = vrot.slane %v17632_v36, 4  ;;  %v17702_v19 = vld [vmem:[#allocation67_spill] sm:$0xff] }
 0x785   :  { %v7313_v12 = vsel %vm17689_vm1, %v17688_v53, %v17687_v33  ;;  %v7600_v33 = vld [vmem:[%s16873_s12 + $0x1c8] sm:$0xff]  ;;  %v7583_v53 = vld [vmem:[%s16873_s12 + $0x140] sm:$0xff] }
 0x786   :  { %v7348_v56 = vrot.slane %v7307_v4, 7  ;;  %v7299_v20 = vsel %vm17691_vm3, %v17690_v27, %v7298_v31  ;;  %v17698_v4 = vld [vmem:[#allocation65_spill] sm:$0xff]  ;;  %v7599_v31 = vld [vmem:[%s16873_s12 + $0x1c0] sm:$0xff] }
 0x787   :  { %6969 = vmatpush1.bf16.msra.mxu0 %v15532_v62  ;;  %v6801_v62 = vpack.c.b16 %v6789_v0, %v6789_v0  ;;  %v17694_v0 = vrot.slane %v17633_v18, 3  ;;  %v9049_v27 = vpack.c.bf16 %v7600_v33, %v7599_v31  ;;  %v17732_v33 = vld [vmem:[#allocation90_spill] sm:$0xff] }
 0x788   :  { %6970 = vmatprep.subr.bf16.mxu0 %v15539_v47  ;;  %v7347_v47 = vrot.slane %v7305_v44, 7 }
 0x789   :  { %v6809_v38 = vrot.slane %v6801_v62, 1  ;;  %v7300_v34 = vsel %vm17507_vm0, %v17694_v0, %v7299_v20  ;;  %v17699_v62 = vrot.slane %v17627_v41, 7  ;;  %v7584_v20 = vld [vmem:[%s16873_s12 + $0x148] sm:$0xff]  ;;  %v7601_v0 = vld [vmem:[%s16873_s12 + $0x1d0] sm:$0xff] }
 0x78a   :  { %v7349_v59 = vsel %vm1474_vm7, %v7347_v47, %v7348_v56  ;;  %v7576_v56 = vld [vmem:[%s16873_s12 + $0x108] sm:$0xff]  ;;  %v17700_v47 = vrot.slane %v14360_v8, 1  ;;  %v7577_v8 = vld [vmem:[%s16873_s12 + $0x110] sm:$0xff] }
 0x78b   :  { %6971 = vmatpush1.bf16.msra.mxu0 %v15551_v48  ;;  %v17663_v48 = vld [vmem:[#allocation43_spill] sm:$0xff]  ;;  %v7296_v13 = vsel %vm6722_vm13, %v17699_v62, %v17626_v60  ;;  %v7604_v62 = vld [vmem:[%s16873_s12 + $0x1e8] sm:$0xff] }
 0x78c   :  { %6972 = vmatprep.subr.bf16.mxu0 %v15562_v7  ;;  %v17664_v7 = vld [vmem:[#allocation44_spill] sm:$0xff] }
 0x78f   :  { %6973 = vmatpush1.bf16.msra.mxu0 %v15574_v63  ;;  %v17667_v63 = vld [vmem:[#allocation39_spill] sm:$0xff] }
 0x790   :  { %7376 = vmatprep.subr.bf16.mxu0 %v15586_v15  ;;  %v17668_v15 = vld [vmem:[#allocation47_spill] sm:$0xff] }
 0x792   :  { %6975 = vmatmul.mubr.bf16.vlgmr.msra.gmra.mrb[36].mxu0 %v6809_v38  ;;  %v7306_v38 = vpack.c.b16 %v7300_v34, %v7300_v34  ;;  %v7602_v34 = vld [vmem:[%s16873_s12 + $0x1d8] sm:$0xff] }
 0x793   :  { %7377 = vmatpush1.bf16.msra.mxu0 %v15593_v10  ;;  %7408 = vmatprep.mubr.bf16.mxu0 %v7349_v59  ;;  %v17671_v10 = vld [vmem:[#allocation51_spill] sm:$0xff]  ;;  %v7309_v59 = vsel %vm6722_vm13, %v14367_v57, %v17700_v47  ;;  %v17707_v47 = vld [vmem:[#allocation72_spill] sm:$0xff] }
 0x794   :  { %7378 = vmatprep.subr.bf16.mxu0 %v15600_v24  ;;  %v17673_v24 = vld [vmem:[#allocation53_spill] sm:$0xff]  ;;  %v7317_v57 = vpack.c.b16 %v7309_v59, %v7309_v59  ;;  %v7605_v59 = vld [vmem:[%s16873_s12 + $0x1f0] sm:$0xff] }
 0x797   :  { %7379 = vmatpush1.bf16.msra.mxu0 %v17663_v48 }
 0x798   :  { %7380 = vmatprep.subr.bf16.mxu0 %v17664_v7 }
 0x79b   :  { %7381 = vmatpush1.bf16.msra.mxu0 %v17665_v1  ;;  %v7304_v1 = vpack.c.b16 %v7296_v13, %v7296_v13  ;;  %v7587_v13 = vld [vmem:[%s16873_s12 + $0x160] sm:$0xff] }
 0x79c   :  { %7382 = vmatprep.subr.bf16.mxu0 %v17666_v32  ;;  %v7593_v32 = vld [vmem:[%s16873_s12 + $0x190] sm:$0xff] }
 0x79f   :  { %7383 = vmatpush1.bf16.msra.mxu0 %v17667_v63  ;;  %v7594_v63 = vld [vmem:[%s16873_s12 + $0x198] sm:$0xff] }
 0x7a0   :  { %7384 = vmatprep.subr.bf16.mxu0 %v17668_v15  ;;  %v9037_v15 = vpack.c.bf16 %v7594_v63, %v7593_v32  ;;  %v7590_v32 = vld [vmem:[%s16873_s12 + $0x178] sm:$0xff] }
 0x7a3   :  { %7385 = vmatpush1.bf16.msra.mxu0 %v17669_v61  ;;  %v7345_v61 = vrot.slane %v7306_v38, 7 }
 0x7a4   :  { %7386 = vmatprep.subr.bf16.mxu0 %v17670_v28 }
 0x7a7   :  { %7387 = vmatpush1.bf16.msra.mxu0 %v17671_v10 }
 0x7a8   :  { %7388 = vmatprep.subr.bf16.mxu0 %v17672_v22  ;;  %v7344_v22 = vrot.slane %v7304_v1, 7 }
 0x7ab   :  { %7389 = vmatpush1.bf16.msra.mxu0 %v17673_v24  ;;  %v7595_v24 = vld [vmem:[%s16873_s12 + $0x1a0] sm:$0xff] }
 0x7ac   :  { %7390 = vmatprep.subr.bf16.mxu0 %v17674_v16  ;;  %v7579_v16 = vld [vmem:[%s16873_s12 + $0x120] sm:$0xff] }
 0x7af   :  { %7391 = vmatpush1.bf16.msra.mxu0 %v17675_v54  ;;  %v7353_v54 = vrot.slane %v7317_v57, 7  ;;  %v7623_v57 = vld [vmem:[%s16873_s12 + $0x280] sm:$0xff] }
 0x7b0   :  { %7392 = vmatprep.subr.bf16.mxu0 %v17676_v29 }
 0x7b3   :  { %7393 = vmatpush1.bf16.msra.mxu0 %v17677_v26  ;;  %v7346_v26 = vsel %vm1474_vm7, %v7344_v22, %v7345_v61  ;;  %v17713_v22 = vld [vmem:[#allocation78_spill] sm:$0xff] }
 0x7b4   :  { %7394 = vmatprep.subr.bf16.mxu0 %v17678_v25 }
 0x7b7   :  { %7395 = vmatpush1.bf16.msra.mxu0 %v17679_v14 }
 0x7b8   :  { %7396 = vmatprep.subr.bf16.mxu0 %v17680_v45  ;;  %v7598_v45 = vld [vmem:[%s16873_s12 + $0x1b8] sm:$0xff] }
 0x7bb   :  { %7397 = vmatpush1.bf16.msra.mxu0 %v17681_v17  ;;  %v7581_v17 = vld [vmem:[%s16873_s12 + $0x130] sm:$0xff] }
 0x7bc   :  { %7398 = vmatprep.subr.bf16.mxu0 %v17682_v43  ;;  %v17701_v43 = vld [vmem:[#allocation66_spill] sm:$0xff] }
 0x7bf   :  { %7399 = vmatpush1.bf16.msra.mxu0 %v17683_v3 }
 0x7c0   :  { %7400 = vmatprep.subr.bf16.mxu0 %v15745_v30  ;;  %v17692_v30 = vrot.slane %v14380_v5, 5  ;;  %v7592_v5 = vld [vmem:[%s16873_s12 + $0x188] sm:$0xff] }
 0x7c1   :  { %v9033_v44 = vpack.c.bf16 %v7592_v5, %v7591_v9  ;;  %v7586_v9 = vld [vmem:[%s16873_s12 + $0x158] sm:$0xff] }
 0x7c2   :  { %v7314_v21 = vsel %vm17693_vm9, %v17692_v30, %v7313_v12  ;;  %v17703_v12 = vld [vmem:[#allocation68_spill] sm:$0xff]  ;;  %v9051_v30 = vpack.c.bf16 %v7584_v20, %v7583_v53  ;;  %v17733_v53 = vld [vmem:[#allocation91_spill] sm:$0xff] }
 0x7c3   :  { %7401 = vmatpush1.bf16.msra.mxu0 %v15757_v50  ;;  %v7315_v50 = vsel %vm17697_vm2, %v17696_v11, %v7314_v21  ;;  %9034 = vmatprep.subr.bf16.mxu1 %v9033_v44  ;;  %v17704_v21 = vld [vmem:[#allocation69_spill] sm:$0xff]  ;;  %v17705_v11 = vld [vmem:[#allocation70_spill] sm:$0xff] }
 0x7c4   :  { %7402 = vmatprep.subr.bf16.mxu0 %v15766_v49  ;;  %v7575_v49 = vld [vmem:[%s16873_s12 + $0x100] sm:$0xff]  ;;  %v7319_v7 = vpack.c.b16 %v7315_v50, %v7315_v50  ;;  %v9053_v50 = vpack.c.bf16 %v7602_v34, %v7601_v0  ;;  %v10131_v20 = vld [vmem:[%s16870_s10 + $0x1f0] ss:$8 sps:$4 sm:$0xff]   ;;  %v10134_v0 = vld [vmem:[%s16870_s10 + $0x214] ss:$8 sps:$4 sm:$0xff]  }
 0x7c5   :  { %v9035_v48 = vpack.c.bf16 %v7576_v56, %v7575_v49  ;;  %v17706_v49 = vld [vmem:[#allocation71_spill] sm:$0xff]  ;;  %v7588_v56 = vld [vmem:[%s16873_s12 + $0x168] sm:$0xff] }
 0x7c6   :  { %v7354_v10 = vrot.slane %v7319_v7, 7  ;;  %v9059_v38 = vpack.c.bf16 %v7588_v56, %v7587_v13  ;;  %v17708_v7 = vld [vmem:[#allocation73_spill] sm:$0xff]  ;;  %v10135_v34 = vld [vmem:[%s16870_s10 + $0x210] ss:$8 sps:$4 sm:$0xff]   ;;  %v10146_v56 = vld [vmem:[%s16870_s10 + $0x274] ss:$8 sps:$4 sm:$0xff]  }
 0x7c7   :  { %7403 = vmatpush1.bf16.msra.mxu0 %v17695_v58  ;;  %9036 = vmatpush3.bf16.msra.mxu1 %v9035_v48  ;;  %v7585_v58 = vld [vmem:[%s16873_s12 + $0x150] sm:$0xff]  ;;  %v7606_v48 = vld [vmem:[%s16873_s12 + $0x1f8] sm:$0xff]  ;;  %v10144_v13 = vld [vmem:[%s16870_s10 + $0x264] ss:$8 sps:$4 sm:$0xff]  }
 0x7c8   :  { %7404 = vmatprep.subr.bf16.mxu0 %v17698_v4  ;;  %9038 = vmatprep.subr.bf16.mxu1 %v9037_v15  ;;  %v7355_v14 = vsel %vm1474_vm7, %v7353_v54, %v7354_v10  ;;  %v9055_v5 = vpack.c.bf16 %v7586_v9, %v7585_v58  ;;  %v7603_v4 = vld [vmem:[%s16873_s12 + $0x1e0] sm:$0xff]  ;;  %v9061_v1 = vpack.c.bf16 %v7606_v48, %v7605_v59  ;;  %v7624_v15 = vld [vmem:[%s16873_s12 + $0x288] sm:$0xff]  ;;  %v17717_v54 = vld [vmem:[#allocation82_spill] sm:$0xff] }
 0x7c9   :  { %v9057_v44 = vpack.c.bf16 %v7604_v62, %v7603_v4  ;;  %v9065_v61 = vpack.c.bf16 %v7624_v15, %v7623_v57  ;;  %v17712_v10 = vld [vmem:[#allocation77_spill] sm:$0xff]  ;;  %v10139_v9 = vld [vmem:[%s16870_s10 + $0x230] ss:$8 sps:$4 sm:$0xff]   ;;  %v10142_v4 = vld [vmem:[%s16870_s10 + $0x254] ss:$8 sps:$4 sm:$0xff]  }
 0x7ca   :  { %v10136_v58 = vld [vmem:[%s16870_s10 + $0x224] ss:$8 sps:$4 sm:$0xff]   ;;  %v10143_v62 = vld [vmem:[%s16870_s10 + $0x250] ss:$8 sps:$4 sm:$0xff]   ;;  %v10149_v59 = vld [vmem:[%s16870_s10 + $0x280] ss:$8 sps:$4 sm:$0xff]  }
 0x7cb   :  { %7405 = vmatpush1.bf16.msra.mxu0 %v15811_v42  ;;  %v7578_v42 = vld [vmem:[%s16873_s12 + $0x118] sm:$0xff] }
 0x7cc   :  { %7406 = vmatprep.subr.bf16.mxu0 %v15826_v23  ;;  %v9039_v28 = vpack.c.bf16 %v7578_v42, %v7577_v8  ;;  %v7596_v23 = vld [vmem:[%s16873_s12 + $0x1a8] sm:$0xff]  ;;  %v17709_v8 = vld [vmem:[#allocation74_spill] sm:$0xff]  ;;  %v17710_v42 = vld [vmem:[#allocation75_spill] sm:$0xff] }
 0x7cd   :  { %v9041_v29 = vpack.c.bf16 %v7596_v23, %v7595_v24  ;;  %v17714_v24 = vld [vmem:[#allocation79_spill] sm:$0xff]  ;;  %v17715_v23 = vld [vmem:[#allocation80_spill] sm:$0xff] }
 0x7ce   :  { %9040 = vmatpush3.bf16.msra.mxu1 %v9039_v28  ;;  %v17711_v28 = vld [vmem:[#allocation76_spill] sm:$0xff]  ;;  %v10150_v48 = vld [vmem:[%s16870_s10 + $0x294] ss:$8 sps:$4 sm:$0xff]   ;;  %v10155_v15 = vld [vmem:[%s16870_s10 + $0x2b0] ss:$8 sps:$4 sm:$0xff]  }
 0x7cf   :  { %7407 = vmatpush1.bf16.msra.mxu0 %v15835_v2  ;;  %v7580_v2 = vld [vmem:[%s16873_s12 + $0x128] sm:$0xff]  ;;  %9042 = vmatprep.subr.bf16.mxu1 %v9041_v29  ;;  %v17718_v29 = vld [vmem:[#allocation83_spill] sm:$0xff] }
 0x7d0   :  { %7417 = vmatprep.subr.bf16.mxu0 %v15850_v40  ;;  %v9043_v25 = vpack.c.bf16 %v7580_v2, %v7579_v16  ;;  %v7597_v40 = vld [vmem:[%s16873_s12 + $0x1b0] sm:$0xff]  ;;  %v17716_v16 = vld [vmem:[#allocation81_spill] sm:$0xff]  ;;  %v17719_v2 = vld [vmem:[#allocation84_spill] sm:$0xff] }
 0x7d1   :  { %v9045_v3 = vpack.c.bf16 %v7598_v45, %v7597_v40  ;;  %v17723_v40 = vrot.slane %v17628_v46, 7  ;;  %v17724_v45 = vrot.slane %v17631_v39, 6  ;;  %v17734_v46 = vrot.slane %v17626_v60, 1  ;;  %v10132_v60 = vld [vmem:[%s16870_s10 + $0x204] ss:$8 sps:$4 sm:$0xff]  }
 0x7d2   :  { %7409 = vmatmul.mubr.bf16.vlgmr.msra.gmra.mrb[40].mxu0 %v7346_v26  ;;  %9044 = vmatpush3.bf16.msra.mxu1 %v9043_v25  ;;  %v17720_v26 = vld [vmem:[#allocation85_spill] sm:$0xff]  ;;  %v17721_v25 = vld [vmem:[#allocation86_spill] sm:$0xff] }
 0x7d3   :  { %7418 = vmatpush1.bf16.msra.mxu0 %v15859_v52  ;;  %7449 = vmatprep.mubr.bf16.mxu0 %v7355_v14  ;;  %v7582_v52 = vld [vmem:[%s16873_s12 + $0x138] sm:$0xff]  ;;  %v7308_v39 = vsel %vm6722_vm13, %v17627_v41, %v17734_v46  ;;  %v10133_v41 = vld [vmem:[%s16870_s10 + $0x200] ss:$8 sps:$4 sm:$0xff]   ;;  %vm7951_vm13 = vcmask 130048  }
 0x7d4   :  { %7419 = vmatprep.subr.bf16.mxu0 %v17701_v43  ;;  %v9047_v55 = vpack.c.bf16 %v7582_v52, %v7581_v17  ;;  %9046 = vmatprep.subr.bf16.mxu1 %v9045_v3  ;;  %v17722_v14 = vld [vmem:[#allocation87_spill] sm:$0xff]  ;;  %v7310_v17 = vsel %vm17725_vm10, %v17724_v45, %v17723_v40  ;;  %v17726_v43 = vld [vmem:[#allocation88_spill] sm:$0xff]  ;;  %v17727_v3 = vrot.slane %v17632_v36, 5  ;;  %v7316_v36 = vpack.c.b16 %v7308_v39, %v7308_v39 }
 0x7d5   :  { %v10168_v40 = vld [vmem:[%s16870_s10 + $0x324] ss:$8 sps:$4 sm:$0xff]   ;;  %v10169_v45 = vld [vmem:[%s16870_s10 + $0x320] ss:$8 sps:$4 sm:$0xff]  }
 0x7d6   :  { %9048 = vmatpush3.bf16.msra.mxu1 %v9047_v55  ;;  %v7311_v52 = vsel %vm17728_vm11, %v17727_v3, %v7310_v17  ;;  %v17729_v55 = vld [vmem:[#allocation89_spill] sm:$0xff]  ;;  %v10170_v17 = vld [vmem:[%s16870_s10 + $0x334] ss:$8 sps:$4 sm:$0xff]  }
 0x7d7   :  { %7420 = vmatpush1.bf16.msra.mxu0 %v17702_v19  ;;  %9050 = vmatprep.subr.bf16.mxu1 %v9049_v27  ;;  %v17730_v19 = vrot.slane %v17633_v18, 4  ;;  %v10130_v27 = vld [vmem:[%s16870_s10 + $0x1f4] ss:$8 sps:$4 sm:$0xff]   ;;  %v10172_v3 = vld [vmem:[%s16870_s10 + $0x344] ss:$8 sps:$4 sm:$0xff]  }
 0x7d8   :  { %7421 = vmatprep.subr.bf16.mxu0 %v17703_v12 }
 0x7d9   :  { %v7312_v31 = vsel %vm17731_vm12, %v17730_v19, %v7311_v52  ;;  %v7607_v52 = vld [vmem:[%s16873_s12 + $0x200] sm:$0xff] }
 0x7da   :  { %9052 = vmatpush3.bf16.msra.mxu1 %v9051_v30  ;;  %v7318_v12 = vpack.c.b16 %v7312_v31, %v7312_v31  ;;  %v7350_v30 = vrot.slane %v7316_v36, 7  ;;  %v10173_v19 = vld [vmem:[%s16870_s10 + $0x340] ss:$8 sps:$4 sm:$0xff]   ;;  %v7625_v31 = vld [vmem:[%s16873_s12 + $0x290] sm:$0xff] }
 0x7db   :  { %7422 = vmatpush1.bf16.msra.mxu0 %v17704_v21  ;;  %9054 = vmatprep.subr.bf16.mxu1 %v9053_v50  ;;  %v17735_v21 = vld [vmem:[#allocation19_spill] sm:$0xff] }
 0x7dc   :  { %7423 = vmatprep.subr.bf16.mxu0 %v17705_v11  ;;  %v7351_v18 = vrot.slane %v7318_v12, 7  ;;  %v10137_v11 = vld [vmem:[%s16870_s10 + $0x220] ss:$8 sps:$4 sm:$0xff]   ;;  %v10138_v50 = vld [vmem:[%s16870_s10 + $0x234] ss:$8 sps:$4 sm:$0xff]  }
 0x7de   :  { %9056 = vmatpush3.bf16.msra.mxu1 %v9055_v5  ;;  %v10140_v5 = vld [vmem:[%s16870_s10 + $0x244] ss:$8 sps:$4 sm:$0xff]  }
 0x7df   :  { %7424 = vmatpush1.bf16.msra.mxu0 %v17706_v49  ;;  %9058 = vmatprep.subr.bf16.mxu1 %v9057_v44  ;;  %v10141_v49 = vld [vmem:[%s16870_s10 + $0x240] ss:$8 sps:$4 sm:$0xff]  }
 0x7e0   :  { %7425 = vmatprep.subr.bf16.mxu0 %v15946_v37  ;;  %v7589_v37 = vld [vmem:[%s16873_s12 + $0x170] sm:$0xff]  ;;  %v10145_v44 = vld [vmem:[%s16870_s10 + $0x260] ss:$8 sps:$4 sm:$0xff]  }
 0x7e1   :  { %v9063_v63 = vpack.c.bf16 %v7590_v32, %v7589_v37  ;;  %v10151_v37 = vld [vmem:[%s16870_s10 + $0x290] ss:$8 sps:$4 sm:$0xff]  }
 0x7e2   :  { %9060 = vmatpush3.bf16.msra.mxu1 %v9059_v38  ;;  %v10147_v38 = vld [vmem:[%s16870_s10 + $0x270] ss:$8 sps:$4 sm:$0xff]  }
 0x7e3   :  { %7426 = vmatpush1.bf16.msra.mxu0 %v17707_v47  ;;  %9062 = vmatprep.subr.bf16.mxu1 %v9061_v1  ;;  %v10148_v47 = vld [vmem:[%s16870_s10 + $0x284] ss:$8 sps:$4 sm:$0xff]   ;;  %v10153_v1 = vld [vmem:[%s16870_s10 + $0x2a0] ss:$8 sps:$4 sm:$0xff]  }
 0x7e4   :  { %7427 = vmatprep.subr.bf16.mxu0 %v17708_v7  ;;  %v10152_v7 = vld [vmem:[%s16870_s10 + $0x2a4] ss:$8 sps:$4 sm:$0xff]  }
 0x7e6   :  { %9064 = vmatpush3.bf16.msra.mxu1 %v9063_v63 }
 0x7e7   :  { %7428 = vmatpush1.bf16.msra.mxu0 %v17709_v8  ;;  %9066 = vmatprep.subr.bf16.mxu1 %v9065_v61  ;;  %v10154_v8 = vld [vmem:[%s16870_s10 + $0x2b4] ss:$8 sps:$4 sm:$0xff]   ;;  %v10157_v61 = vld [vmem:[%s16870_s10 + $0x2c0] ss:$8 sps:$4 sm:$0xff]  }
 0x7e8   :  { %7429 = vmatprep.subr.bf16.mxu0 %v17710_v42  ;;  %v10156_v42 = vld [vmem:[%s16870_s10 + $0x2c4] ss:$8 sps:$4 sm:$0xff]  }
 0x7eb   :  { %7430 = vmatpush1.bf16.msra.mxu0 %v17711_v28  ;;  %v10158_v28 = vld [vmem:[%s16870_s10 + $0x2d4] ss:$8 sps:$4 sm:$0xff]  }
 0x7ec   :  { %7431 = vmatprep.subr.bf16.mxu0 %v17712_v10  ;;  %v10159_v10 = vld [vmem:[%s16870_s10 + $0x2d0] ss:$8 sps:$4 sm:$0xff]  }
 0x7ef   :  { %7432 = vmatpush1.bf16.msra.mxu0 %v17713_v22  ;;  %v10160_v22 = vld [vmem:[%s16870_s10 + $0x2e4] ss:$8 sps:$4 sm:$0xff]  }
 0x7f0   :  { %7433 = vmatprep.subr.bf16.mxu0 %v17714_v24  ;;  %v10161_v24 = vld [vmem:[%s16870_s10 + $0x2e0] ss:$8 sps:$4 sm:$0xff]  }
 0x7f3   :  { %7434 = vmatpush1.bf16.msra.mxu0 %v17715_v23  ;;  %v10162_v23 = vld [vmem:[%s16870_s10 + $0x2f4] ss:$8 sps:$4 sm:$0xff]  }
 0x7f4   :  { %7435 = vmatprep.subr.bf16.mxu0 %v17716_v16  ;;  %v10163_v16 = vld [vmem:[%s16870_s10 + $0x2f0] ss:$8 sps:$4 sm:$0xff]  }
 0x7f7   :  { %7436 = vmatpush1.bf16.msra.mxu0 %v17717_v54  ;;  %v10164_v54 = vld [vmem:[%s16870_s10 + $0x304] ss:$8 sps:$4 sm:$0xff]  }
 0x7f8   :  { %7437 = vmatprep.subr.bf16.mxu0 %v17718_v29  ;;  %v17736_v29 = vld [vmem:[#allocation22_spill] sm:$0xff] }
 0x7fb   :  { %7438 = vmatpush1.bf16.msra.mxu0 %v17719_v2  ;;  %v10165_v2 = vld [vmem:[%s16870_s10 + $0x300] ss:$8 sps:$4 sm:$0xff]  }
 0x7fc   :  { %7439 = vmatprep.subr.bf16.mxu0 %v17720_v26  ;;  %v17737_v26 = vld [vmem:[#allocation37_spill] sm:$0xff] }
 0x7ff   :  { %7440 = vmatpush1.bf16.msra.mxu0 %v17721_v25  ;;  %v10166_v25 = vld [vmem:[%s16870_s10 + $0x314] ss:$8 sps:$4 sm:$0xff]  }
 0x800   :  { %7441 = vmatprep.subr.bf16.mxu0 %v17722_v14  ;;  %v10167_v14 = vld [vmem:[%s16870_s10 + $0x310] ss:$8 sps:$4 sm:$0xff]  }
 0x803   :  { %7442 = vmatpush1.bf16.msra.mxu0 %v17726_v43  ;;  %v10171_v43 = vld [vmem:[%s16870_s10 + $0x330] ss:$8 sps:$4 sm:$0xff]  }
 0x804   :  { %7443 = vmatprep.subr.bf16.mxu0 %v17729_v55  ;;  %v7608_v55 = vld [vmem:[%s16873_s12 + $0x208] sm:$0xff] }
 0x805   :  { %v9067_v39 = vpack.c.bf16 %v7608_v55, %v7607_v52  ;;  %v10187_v52 = vld [vmem:[%s16870_s10 + $0x3b0] ss:$8 sps:$4 sm:$0xff]   ;;  %v10188_v55 = vld [vmem:[%s16870_s10 + $0x3c4] ss:$8 sps:$4 sm:$0xff]  }
 0x807   :  { %7444 = vmatpush1.bf16.msra.mxu0 %v17732_v33  ;;  %v7626_v33 = vld [vmem:[%s16873_s12 + $0x298] sm:$0xff] }
 0x808   :  { %7445 = vmatprep.subr.bf16.mxu0 %v17733_v53  ;;  %v10174_v53 = vld [vmem:[%s16870_s10 + $0x354] ss:$8 sps:$4 sm:$0xff]   ;;  %v9069_v36 = vpack.c.bf16 %v7626_v33, %v7625_v31  ;;  %v10189_v31 = vld [vmem:[%s16870_s10 + $0x3c0] ss:$8 sps:$4 sm:$0xff]  }
 0x809   :  { %v10190_v33 = vld [vmem:[%s16870_s10 + $0x3d4] ss:$8 sps:$4 sm:$0xff]  }
 0x80b   :  { %7446 = vmatpush1.bf16.msra.mxu0 %v16098_v35  ;;  %v7352_v35 = vsel %vm1474_vm7, %v7350_v30, %v7351_v18  ;;  %v7610_v18 = vld [vmem:[%s16873_s12 + $0x218] sm:$0xff]  ;;  %vm10198_vm7 = vmmov 0  }
 0x80c   :  { %7447 = vmatprep.subr.bf16.mxu0 %v10130_v27  ;;  %v7609_v27 = vld [vmem:[%s16873_s12 + $0x210] sm:$0xff] }
 0x80d   :  { %v10175_v30 = vld [vmem:[%s16870_s10 + $0x350] ss:$8 sps:$4 sm:$0xff]  }
 0x80f   :  { %7448 = vmatpush1.bf16.msra.mxu0 %v10131_v20 }
 0x810   :  { %7458 = vmatprep.subr.bf16.mxu0 %v10132_v60  ;;  %v7627_v60 = vld [vmem:[%s16873_s12 + $0x2a0] sm:$0xff] }
 0x812   :  { %7450 = vmatmul.mubr.bf16.vlgmr.msra.gmra.mrb[40].mxu0 %v7352_v35  ;;  %v7628_v35 = vld [vmem:[%s16873_s12 + $0x2a8] sm:$0xff] }
 0x813   :  { %7459 = vmatpush1.bf16.msra.mxu0 %v10133_v41  ;;  %7490 = vmatprep.mubr.bf16.mxu0 %v17735_v21  ;;  %v10176_v21 = vld [vmem:[%s16870_s10 + $0x364] ss:$8 sps:$4 sm:$0xff]  }
 0x814   :  { %7460 = vmatprep.subr.bf16.mxu0 %v10134_v0  ;;  %v9071_v0 = vpack.c.bf16 %v7610_v18, %v7609_v27  ;;  %v7655_v27 = vld [vmem:[%s16873_s12 + $0x380] sm:$0xff]  ;;  %v7656_v18 = vld [vmem:[%s16873_s12 + $0x388] sm:$0xff] }
 0x817   :  { %7461 = vmatpush1.bf16.msra.mxu0 %v10135_v34  ;;  %v9073_v34 = vpack.c.bf16 %v7628_v35, %v7627_v60  ;;  %v7640_v60 = vld [vmem:[%s16873_s12 + $0x308] sm:$0xff]  ;;  %v7657_v35 = vld [vmem:[%s16873_s12 + $0x390] sm:$0xff] }
 0x818   :  { %7462 = vmatprep.subr.bf16.mxu0 %v10136_v58  ;;  %v7611_v58 = vld [vmem:[%s16873_s12 + $0x220] sm:$0xff] }
 0x81b   :  { %7463 = vmatpush1.bf16.msra.mxu0 %v10137_v11  ;;  %v7612_v11 = vld [vmem:[%s16873_s12 + $0x228] sm:$0xff] }
 0x81c   :  { %7464 = vmatprep.subr.bf16.mxu0 %v10138_v50  ;;  %v10177_v50 = vld [vmem:[%s16870_s10 + $0x360] ss:$8 sps:$4 sm:$0xff]  }
 0x81f   :  { %7465 = vmatpush1.bf16.msra.mxu0 %v10139_v9  ;;  %v7630_v9 = vld [vmem:[%s16873_s12 + $0x2b8] sm:$0xff] }
 0x820   :  { %7466 = vmatprep.subr.bf16.mxu0 %v10140_v5  ;;  %v10178_v5 = vld [vmem:[%s16870_s10 + $0x374] ss:$8 sps:$4 sm:$0xff]  }
 0x823   :  { %7467 = vmatpush1.bf16.msra.mxu0 %v10141_v49  ;;  %v9075_v49 = vpack.c.bf16 %v7612_v11, %v7611_v58  ;;  %v7642_v58 = vld [vmem:[%s16873_s12 + $0x318] sm:$0xff]  ;;  %v7659_v11 = vld [vmem:[%s16873_s12 + $0x3a0] sm:$0xff] }
 0x824   :  { %7468 = vmatprep.subr.bf16.mxu0 %v10142_v4 }
 0x827   :  { %7469 = vmatpush1.bf16.msra.mxu0 %v10143_v62  ;;  %v7613_v62 = vld [vmem:[%s16873_s12 + $0x230] sm:$0xff] }
 0x828   :  { %7470 = vmatprep.subr.bf16.mxu0 %v10144_v13  ;;  %v7614_v13 = vld [vmem:[%s16873_s12 + $0x238] sm:$0xff] }
 0x82b   :  { %7471 = vmatpush1.bf16.msra.mxu0 %v10145_v44  ;;  %v10179_v44 = vld [vmem:[%s16870_s10 + $0x370] ss:$8 sps:$4 sm:$0xff]  }
 0x82c   :  { %7472 = vmatprep.subr.bf16.mxu0 %v10146_v56  ;;  %v7631_v56 = vld [vmem:[%s16873_s12 + $0x2c0] sm:$0xff] }
 0x82f   :  { %7473 = vmatpush1.bf16.msra.mxu0 %v10147_v38  ;;  %v7632_v38 = vld [vmem:[%s16873_s12 + $0x2c8] sm:$0xff] }
 0x830   :  { %7474 = vmatprep.subr.bf16.mxu0 %v10148_v47  ;;  %v10180_v47 = vld [vmem:[%s16870_s10 + $0x384] ss:$8 sps:$4 sm:$0xff]  }
 0x833   :  { %7475 = vmatpush1.bf16.msra.mxu0 %v10149_v59  ;;  %v9079_v59 = vpack.c.bf16 %v7614_v13, %v7613_v62  ;;  %v7662_v62 = vld [vmem:[%s16873_s12 + $0x3b8] sm:$0xff] }
 0x834   :  { %7476 = vmatprep.subr.bf16.mxu0 %v10150_v48  ;;  %v9081_v48 = vpack.c.bf16 %v7632_v38, %v7631_v56  ;;  %v7645_v56 = vld [vmem:[%s16873_s12 + $0x330] sm:$0xff]  ;;  %v7646_v38 = vld [vmem:[%s16873_s12 + $0x338] sm:$0xff] }
 0x837   :  { %7477 = vmatpush1.bf16.msra.mxu0 %v10151_v37  ;;  %v7615_v37 = vld [vmem:[%s16873_s12 + $0x240] sm:$0xff] }
 0x838   :  { %7478 = vmatprep.subr.bf16.mxu0 %v10152_v7  ;;  %v7616_v7 = vld [vmem:[%s16873_s12 + $0x248] sm:$0xff] }
 0x83b   :  { %7479 = vmatpush1.bf16.msra.mxu0 %v10153_v1  ;;  %v8813_v32 = vpop.f32.mrb[56].mxu1  ;;  %v10181_v1 = vld [vmem:[%s16870_s10 + $0x380] ss:$8 sps:$4 sm:$0xff]  }
 0x83c   :  { %v8814_v63 = vpop.f32.mrb[57].mxu1  ;;  %7480 = vmatprep.subr.bf16.mxu0 %v10154_v8  ;;  %v10182_v8 = vld [vmem:[%s16870_s10 + $0x394] ss:$8 sps:$4 sm:$0xff]  }
 0x83d   :  { %v16510_v57 = vadd.f32 %v8814_v63, %v8813_v32  ;;  %v7633_v32 = vld [vmem:[%s16873_s12 + $0x2d0] sm:$0xff]  ;;  %v7634_v63 = vld [vmem:[%s16873_s12 + $0x2d8] sm:$0xff] }
 0x83f   :  { %7481 = vmatpush1.bf16.msra.mxu0 %v10155_v15  ;;  %v9083_v15 = vpack.c.bf16 %v7616_v7, %v7615_v37  ;;  %v7647_v7 = vld [vmem:[%s16873_s12 + $0x340] sm:$0xff] }
 0x840   :  { %7482 = vmatprep.subr.bf16.mxu0 %v10156_v42  ;;  %v9085_v42 = vpack.c.bf16 %v7634_v63, %v7633_v32  ;;  %v7665_v63 = vld [vmem:[%s16873_s12 + $0x3d0] sm:$0xff] }
 0x843   :  { %7483 = vmatpush1.bf16.msra.mxu0 %v10157_v61  ;;  %v7617_v61 = vld [vmem:[%s16873_s12 + $0x250] sm:$0xff] }
 0x844   :  { %7484 = vmatprep.subr.bf16.mxu0 %v10158_v28  ;;  %v7618_v28 = vld [vmem:[%s16873_s12 + $0x258] sm:$0xff] }
 0x847   :  { %7485 = vmatpush1.bf16.msra.mxu0 %v10159_v10  ;;  %v10183_v10 = vld [vmem:[%s16870_s10 + $0x390] ss:$8 sps:$4 sm:$0xff]  }
 0x848   :  { %7486 = vmatprep.subr.bf16.mxu0 %v10160_v22  ;;  %v7635_v22 = vld [vmem:[%s16873_s12 + $0x2e0] sm:$0xff] }
 0x84b   :  { %7487 = vmatpush1.bf16.msra.mxu0 %v10161_v24  ;;  %v7636_v24 = vld [vmem:[%s16873_s12 + $0x2e8] sm:$0xff] }
 0x84c   :  { %7488 = vmatprep.subr.bf16.mxu0 %v10162_v23  ;;  %v10184_v23 = vld [vmem:[%s16870_s10 + $0x3a4] ss:$8 sps:$4 sm:$0xff]  }
 0x84f   :  { %7489 = vmatpush1.bf16.msra.mxu0 %v10163_v16  ;;  %v9087_v16 = vpack.c.bf16 %v7618_v28, %v7617_v61  ;;  %v7650_v61 = vld [vmem:[%s16873_s12 + $0x358] sm:$0xff]  ;;  %v7667_v28 = vld [vmem:[%s16873_s12 + $0x3e0] sm:$0xff] }
 0x850   :  { %7499 = vmatprep.subr.bf16.mxu0 %v10164_v54  ;;  %v9089_v54 = vpack.c.bf16 %v7636_v24, %v7635_v22 }
 0x852   :  { %7491 = vmatmul.mubr.bf16.vlgmr.msra.gmra.mrb[40].mxu0 %v17736_v29  ;;  %v7619_v29 = vld [vmem:[%s16873_s12 + $0x260] sm:$0xff] }
 0x853   :  { %7500 = vmatpush1.bf16.msra.mxu0 %v10165_v2  ;;  %7531 = vmatprep.mubr.bf16.mxu0 %v17737_v26  ;;  %v7620_v2 = vld [vmem:[%s16873_s12 + $0x268] sm:$0xff] }
 0x854   :  { %7501 = vmatprep.subr.bf16.mxu0 %v10166_v25  ;;  %v10185_v26 = vld [vmem:[%s16870_s10 + $0x3a0] ss:$8 sps:$4 sm:$0xff]   ;;  %v7637_v25 = vld [vmem:[%s16873_s12 + $0x2f0] sm:$0xff] }
 0x857   :  { %7502 = vmatpush1.bf16.msra.mxu0 %v10167_v14  ;;  %v7638_v14 = vld [vmem:[%s16873_s12 + $0x2f8] sm:$0xff] }
 0x858   :  { %7503 = vmatprep.subr.bf16.mxu0 %v10168_v40  ;;  %v10186_v40 = vld [vmem:[%s16870_s10 + $0x3b4] ss:$8 sps:$4 sm:$0xff]  }
 0x85b   :  { %7504 = vmatpush1.bf16.msra.mxu0 %v10169_v45  ;;  %v9091_v45 = vpack.c.bf16 %v7620_v2, %v7619_v29  ;;  %v7670_v29 = vld [vmem:[%s16873_s12 + $0x3f8] sm:$0xff] }
 0x85c   :  { %7505 = vmatprep.subr.bf16.mxu0 %v10170_v17  ;;  %v9093_v17 = vpack.c.bf16 %v7638_v14, %v7637_v25  ;;  %v7653_v25 = vld [vmem:[%s16873_s12 + $0x370] sm:$0xff]  ;;  %v7654_v14 = vld [vmem:[%s16873_s12 + $0x378] sm:$0xff] }
 0x85f   :  { %7506 = vmatpush1.bf16.msra.mxu0 %v10171_v43  ;;  %v7621_v43 = vld [vmem:[%s16873_s12 + $0x270] sm:$0xff] }
 0x860   :  { %7507 = vmatprep.subr.bf16.mxu0 %v10172_v3  ;;  %v7622_v3 = vld [vmem:[%s16873_s12 + $0x278] sm:$0xff] }
 0x863   :  { %7508 = vmatpush1.bf16.msra.mxu0 %v10173_v19  ;;  %v9095_v19 = vpack.c.bf16 %v7622_v3, %v7621_v43 }
 0x864   :  { %7509 = vmatprep.subr.bf16.mxu0 %v10174_v53  ;;  %v10191_v53 = vld [vmem:[%s16870_s10 + $0x3d0] ss:$8 sps:$4 sm:$0xff]  }
 0x865   :  { %v6976_v46 = vpop.f32.mrb[36].mxu0 }
 0x866   :  { %v6978_v12 = vpop.f32.mrb[37].mxu0 }
 0x867   :  { %v6980_v20 = vpop.f32.mrb[38].mxu0  ;;  %7510 = vmatpush1.bf16.msra.mxu0 %v10175_v30  ;;  %7805 = vmatprep.mubr.f32.mxu1 %v6978_v12  ;;  %v10194_v12 = vld [vmem:[%s16870_s10 + $0x3f4] ss:$8 sps:$4 sm:$0xff]   ;;  %v9097_v30 = vpack.c.bf16 %v7656_v18, %v7655_v27  ;;  %v7540_v18 = vld [vmem:[%s16875_s1] sm:$0x3f] }
 0x868   :  { %v6981_v41 = vpop.f32.mrb[39].mxu0  ;;  %7806 = vmatmul.mubr.f32.vlgmr.msra.gmra.mrb[58].mxu1 %v6976_v46  ;;  %7511 = vmatprep.subr.bf16.mxu0 %v10176_v21  ;;  %v10192_v46 = vld [vmem:[%s16870_s10 + $0x3e4] ss:$8 sps:$4 sm:$0xff]  }
 0x869   :  { %9068 = vmatpush3.bf16.msra.mxu1 %v9067_v39  ;;  %7875 = vmatprep.mubr.f32.mxu1 %v16178_v6  ;;  %v7629_v6 = vld [vmem:[%s16873_s12 + $0x2b0] sm:$0xff]  ;;  %v10193_v39 = vld [vmem:[%s16870_s10 + $0x3e0] ss:$8 sps:$4 sm:$0xff]   ;;  %v7658_v41 = vld [vmem:[%s16873_s12 + $0x398] sm:$0xff] }
 0x86a   :  { %9070 = vmatprep.subr.bf16.mxu1 %v9069_v36  ;;  %v9077_v4 = vpack.c.bf16 %v7630_v9, %v7629_v6  ;;  %v10195_v36 = vld [vmem:[%s16870_s10 + $0x3f0] ss:$8 sps:$4 sm:$0xff]   ;;  %v7639_v20 = vld [vmem:[%s16873_s12 + $0x300] sm:$0xff] }
 0x86b   :  { %7512 = vmatpush1.bf16.msra.mxu0 %v10177_v50  ;;  %v9099_v21 = vpack.c.bf16 %v7640_v60, %v7639_v20  ;;  %v7660_v50 = vld [vmem:[%s16873_s12 + $0x3a8] sm:$0xff] }
 0x86c   :  { %7513 = vmatprep.subr.bf16.mxu0 %v10178_v5  ;;  %v9105_v9 = vpack.c.bf16 %v7660_v50, %v7659_v11  ;;  %v7643_v5 = vld [vmem:[%s16873_s12 + $0x320] sm:$0xff] }
 0x86d   :  { %9072 = vmatpush3.bf16.msra.mxu1 %v9071_v0  ;;  %v9101_v0 = vpack.c.bf16 %v7658_v41, %v7657_v35 }
 0x86e   :  { %9074 = vmatprep.subr.bf16.mxu1 %v9073_v34  ;;  %v7641_v34 = vld [vmem:[%s16873_s12 + $0x310] sm:$0xff] }
 0x86f   :  { %7514 = vmatpush1.bf16.msra.mxu0 %v10179_v44  ;;  %v9103_v6 = vpack.c.bf16 %v7642_v58, %v7641_v34 }
 0x870   :  { %7515 = vmatprep.subr.bf16.mxu0 %v10180_v47  ;;  %v7663_v47 = vld [vmem:[%s16873_s12 + $0x3c0] sm:$0xff] }
 0x871   :  { %9076 = vmatpush3.bf16.msra.mxu1 %v9075_v49  ;;  %v7644_v49 = vld [vmem:[%s16873_s12 + $0x328] sm:$0xff] }
 0x872   :  { %9078 = vmatprep.subr.bf16.mxu1 %v9077_v4  ;;  %v7661_v4 = vld [vmem:[%s16873_s12 + $0x3b0] sm:$0xff]  ;;  %v9107_v13 = vpack.c.bf16 %v7644_v49, %v7643_v5 }
 0x873   :  { %7516 = vmatpush1.bf16.msra.mxu0 %v10181_v1  ;;  %v9109_v44 = vpack.c.bf16 %v7662_v62, %v7661_v4  ;;  %v7648_v1 = vld [vmem:[%s16873_s12 + $0x348] sm:$0xff]  ;;  %v8065_v4 = vld [vmem:[%s16877_s16] sm:$0xff] }
 0x874   :  { %7517 = vmatprep.subr.bf16.mxu0 %v10182_v8  ;;  %v9115_v32 = vpack.c.bf16 %v7648_v1, %v7647_v7  ;;  %v7666_v8 = vld [vmem:[%s16873_s12 + $0x3d8] sm:$0xff]  ;;  %v8066_v62 = vld [vmem:[%s16877_s16 + $0x8] sm:$0xff]  ;;  %v8727_v7 = vld [vmem:[%s16878_s14] ss:$0 sm:$0xff] }
 0x875   :  { %9080 = vmatpush3.bf16.msra.mxu1 %v9079_v59  ;;  %v7664_v59 = vld [vmem:[%s16873_s12 + $0x3c8] sm:$0xff] }
 0x876   :  { %9082 = vmatprep.subr.bf16.mxu1 %v9081_v48  ;;  %v9111_v48 = vpack.c.bf16 %v7646_v38, %v7645_v56  ;;  %v9113_v37 = vpack.c.bf16 %v7664_v59, %v7663_v47  ;;  %v8068_v56 = vld [vmem:[%s16877_s16 + $0x18] sm:$0xff] }
 0x877   :  { %7518 = vmatpush1.bf16.msra.mxu0 %v10183_v10  ;;  %v7668_v10 = vld [vmem:[%s16873_s12 + $0x3e8] sm:$0xff] }
 0x878   :  { %7519 = vmatprep.subr.bf16.mxu0 %v10184_v23  ;;  %v9121_v24 = vpack.c.bf16 %v7668_v10, %v7667_v28  ;;  %v7651_v23 = vld [vmem:[%s16873_s12 + $0x360] sm:$0xff] }
 0x879   :  { %9084 = vmatpush3.bf16.msra.mxu1 %v9083_v15  ;;  %v7649_v15 = vld [vmem:[%s16873_s12 + $0x350] sm:$0xff] }
 0x87a   :  { %9086 = vmatprep.subr.bf16.mxu1 %v9085_v42  ;;  %v9117_v42 = vpack.c.bf16 %v7666_v8, %v7665_v63  ;;  %v9119_v22 = vpack.c.bf16 %v7650_v61, %v7649_v15 }
 0x87b   :  { %7520 = vmatpush1.bf16.msra.mxu0 %v10185_v26 }
 0x87c   :  { %7521 = vmatprep.subr.bf16.mxu0 %v10186_v40  ;;  %v9127_v40 = vpack.c.bf16 %v7654_v14, %v7653_v25 }
 0x87d   :  { %9088 = vmatpush3.bf16.msra.mxu1 %v9087_v16  ;;  %v7652_v16 = vld [vmem:[%s16873_s12 + $0x368] sm:$0xff] }
 0x87e   :  { %9090 = vmatprep.subr.bf16.mxu1 %v9089_v54  ;;  %v7669_v54 = vld [vmem:[%s16873_s12 + $0x3f0] sm:$0xff]  ;;  %v9123_v2 = vpack.c.bf16 %v7652_v16, %v7651_v23 }
 0x87f   :  { %7522 = vmatpush1.bf16.msra.mxu0 %v10187_v52  ;;  %v9125_v26 = vpack.c.bf16 %v7670_v29, %v7669_v54 }
 0x880   :  { %7523 = vmatprep.subr.bf16.mxu0 %v10188_v55 }
 0x881   :  { %9092 = vmatpush3.bf16.msra.mxu1 %v9091_v45  ;;  %v10197_v45 = vmov 0.0|0.0  }
 0x882   :  { %9094 = vmatprep.subr.bf16.mxu1 %v9093_v17 }
 0x883   :  { %7524 = vmatpush1.bf16.msra.mxu0 %v10189_v31 }
 0x884   :  { %7525 = vmatprep.subr.bf16.mxu0 %v10190_v33 }
 0x885   :  { %9096 = vmatpush3.bf16.msra.mxu1 %v9095_v19 }
 0x886   :  { %9098 = vmatprep.subr.bf16.mxu1 %v9097_v30 }
 0x887   :  { %7526 = vmatpush1.bf16.msra.mxu0 %v10191_v53  ;;  %v7541_v53 = vld [vmem:[%s16874_s11] sm:$0xff] }
 0x888   :  { %7876 = vmatmul.mubr.f32.vlgmr.msra.gmra.mrb[60].mxu1 %v16176_v51  ;;  %7527 = vmatprep.subr.bf16.mxu0 %v10192_v46  ;;  %v17738_v51 = vld [vmem:[#allocation14_spill] sm:$0xff]  ;;  %v7542_v46 = vld [vmem:[%s16874_s11 + $0x8] sm:$0xff] }
 0x889   :  { %9100 = vmatpush3.bf16.msra.mxu1 %v9099_v21 }
 0x88a   :  { %9102 = vmatprep.subr.bf16.mxu1 %v9101_v0  ;;  %v8726_v0 = vld [vmem:[%s16876_s13] ss:$0 sm:$0xff] }
 0x88b   :  { %7528 = vmatpush1.bf16.msra.mxu0 %v10193_v39 }
 0x88c   :  { %7529 = vmatprep.subr.bf16.mxu0 %v10194_v12  ;;  %v9130_v12 = vpack.c.bf16 %v7542_v46, %v7541_v53 }
 0x88d   :  { %9104 = vmatpush3.bf16.msra.mxu1 %v9103_v6 }
 0x88e   :  { %9106 = vmatprep.subr.bf16.mxu1 %v9105_v9 }
 0x88f   :  { %7530 = vmatpush1.bf16.msra.mxu0 %v10195_v36 }
 0x891   :  { %9108 = vmatpush3.bf16.msra.mxu1 %v9107_v13  ;;  %v8067_v13 = vld [vmem:[%s16877_s16 + $0x10] sm:$0xff] }
 0x892   :  { %7532 = vmatmul.mubr.bf16.vlgmr.msra.gmra.mrb[40].mxu0 %v17738_v51  ;;  %9110 = vmatprep.subr.bf16.mxu1 %v9109_v44  ;;  %v9133_v44 = vpack.c.bf16 %v8066_v62, %v8065_v4  ;;  %v9136_v38 = vpack.c.bf16 %v8068_v56, %v8067_v13 }
 0x895   :  { %9112 = vmatpush3.bf16.msra.mxu1 %v9111_v48 }
 0x896   :  { %9114 = vmatprep.subr.bf16.mxu1 %v9113_v37 }
 0x899   :  { %9116 = vmatpush3.bf16.msra.mxu1 %v9115_v32  ;;  %v8728_v32 = vld [vmem:[%s16879_s15] ss:$0 sm:$0xff] }
 0x89a   :  { %9118 = vmatprep.subr.bf16.mxu1 %v9117_v42 }
 0x89d   :  { %9120 = vmatpush3.bf16.msra.mxu1 %v9119_v22 }
 0x89e   :  { %9122 = vmatprep.subr.bf16.mxu1 %v9121_v24 }
 0x8a1   :  { %9124 = vmatpush3.bf16.msra.mxu1 %v9123_v2 }
 0x8a2   :  { %9126 = vmatprep.subr.bf16.mxu1 %v9125_v26 }
 0x8a5   :  { %9128 = vmatpush3.bf16.msra.mxu1 %v9127_v40 }
 0x8a6   :  { %9129 = vmatprep.subr.bf16.mxu1 %v10197_v45 }
 0x93b   :  { %v8848_v17 = vpop.f32.mrb[58].mxu1 }
 0x93c   :  { %v8849_v43 = vpop.f32.mrb[59].mxu1 }
 0x93d   :  { %v8850_v3 = vadd.f32 %v8849_v43, %v8848_v17 }
 0x93f   :  { %v7808_v52 = vadd.f32 %v8850_v3, %v16510_v57  ;;  %v10199_v57 = vmov 0.0  }
 0x95b   :  { %v8883_v55 = vpop.f32.mrb[60].mxu1 }
 0x95c   :  { %v8884_v19 = vpop.f32.mrb[61].mxu1 }
 0x95d   :  { %v8885_v31 = vadd.f32 %v8884_v19, %v8883_v55 }
 0x95f   :  { %v7878_v33 = vadd.f32 %v8885_v31, %v7808_v52 }
 0x965   :  { %v7533_v39 = vpop.f32.mrb[40].mxu0 }
 0x966   :  { %v7535_v36 = vpop.f32.mrb[41].mxu0 }
 0x967   :  { %v7537_v51 = vpop.f32.mrb[42].mxu0  ;;  %7945 = vmatprep.mubr.f32.mxu1 %v7535_v36 }
 0x968   :  { %v7538_v27 = vpop.f32.mrb[43].mxu0  ;;  %7946 = vmatmul.mubr.f32.vlgmr.msra.gmra.mrb[62].mxu1 %v7533_v39 }
 0x969   :  { %9131 = vmatpush3.bf16.msra.mxu1 %v9130_v12  ;;  %8987 = vmatprep.mubr.msk.f32.mxu1 %vm10198_vm7, %v10199_v57 }
 0x96a   :  { %9132 = vmatprep.subr.bf16.mxu1 %v10197_v45 }
 0x96c   :  { %8988 = vmatmul.mubr.msk.f32.vlgmr.msra.gmra.mrb[64].mxu1 %vm7951_vm13, %v7540_v18 }
 0x96d   :  { %8998 = vmatprep.mubr.msk.f32.mxu1 %vm10198_vm7, %v10199_v57  ;;  %9134 = vmatpush3.bf16.msra.mxu1 %v9133_v44 }
 0x96e   :  { %9135 = vmatprep.subr.bf16.mxu1 %v10197_v45 }
 0x971   :  { %9137 = vmatpush3.bf16.msra.mxu1 %v9136_v38 }
 0xa3b   :  { %v8918_v20 = vpop.f32.mrb[62].mxu1 }
 0xa3c   :  { %v8919_v30 = vpop.f32.mrb[63].mxu1 }
 0xa3d   :  { %v8920_v60 = vadd.f32 %v8919_v30, %v8918_v20 }
 0xa3f   :  { %v7948_v35 = vadd.f32 %v8920_v60, %v7878_v33  ;;  %v8021_v41 = vpop.f32.mrb[64].mxu1 }
 0xa40   :  { %v8989_v21 = vpop.f32.mrb[65].mxu1 }
 0xa41   :  { %v8022_v34 = vadd.f32 %v8021_v41, %v7948_v35 }
 0xa43   :  { %v8032_v58 = vadd.f32 %v8726_v0, %v8022_v34 }
 0xa45   :  { %v8034_v11 = vsel %vm8033_vm14, %v8032_v58, 0.0 }
 0xa46   :  { %8035 = vadd.xlane.f32.xlu0 %v8034_v11 }
 0xad3   :  { %v8036_v50 = vpop.xlane.xlu0 %8035 }
 0xad4   :  { %v8038_v6 = vmul.f32 0.03125, %v8036_v50 }
 0xad6   :  { %v8039_v9 = vsub.f32 %v8032_v58, %v8038_v6 }
 0xad8   :  { %v8040_v5 = vmul.f32 %v8039_v9, %v8039_v9 }
 0xada   :  { %v8041_v49 = vsel %vm8033_vm14, %v8040_v5, 0.0 }
 0xadb   :  { %8042 = vadd.xlane.f32.xlu0 %v8041_v49 }
 0xb68   :  { %v8043_v47 = vpop.xlane.xlu0 %8042 }
 0xb69   :  { %v8044_v59 = vmul.f32 0.03125, %v8043_v47 }
 0xb6b   :  { %v8045_v48 = vadd.f32 1e-05, %v8044_v59 }
 0xb6d   :  { %10059 = vrsqrt.f32 %v8045_v48 }
 0xb77   :  { %v10060_v37 = vpop.eup %10059 }
 0xb78   :  { %v8047_v1 = vmul.f32 %v10060_v37, %v8039_v9 }
 0xb7a   :  { %v8055_v63 = vmul.f32 %v8727_v7, %v8047_v1 }
 0xb7c   :  { %v8063_v8 = vadd.f32 %v8728_v32, %v8055_v63 }
 0xb7e   :  { %v8064_v15 = vmax.f32 %v8063_v8, 0.0 }
 0xb80   :  { %8999 = vmatmul.mubr.msk.f32.vlgmr.msra.gmra.mrb[66].mxu1 %vm8069_vm6, %v8064_v15 }
 0xc53   :  { %v8139_v42 = vpop.f32.mrb[66].mxu1 }
 0xc54   :  { %v9000_v61 = vpop.f32.mrb[67].mxu1  ;;  %v8144_v28 = vsel %vm8143_vm8, %v8139_v42, -inf }
 0xc55   :  { %8145 = vmax.xlane.f32.xlu1 %v8144_v28 }
 0xce2   :  { %v8146_v10 = vpop.xlane.xlu1 %8145 }
 0xce3   :  { %v8147_v22 = vsub.f32 %v8139_v42, %v8146_v10 }
 0xce5   :  { %v8148_v24 = vmul.f32 1.442695, %v8147_v22 }
 0xce7   :  { %10061 = vpow2.f32 %v8148_v24 }
 0xcf1   :  { %v10062_v23 = vpop.eup %10061 }
 0xcf2   :  { %v8150_v16 = vsel %vm8143_vm8, %v10062_v23, 0.0 }
 0xcf3   :  { %8151 = vadd.xlane.f32.xlu1 %v8150_v16 }
 0xd80   :  { %v8152_v54 = vpop.xlane.xlu1 %8151 }
 0xd81   :  { %10063 = vlog2.f32 %v8152_v54 }
 0xd8b   :  { %v10064_v29 = vpop.eup %10063 }
 0xd8c   :  { %v8154_v2 = vmul.f32 0.6931472, %v10064_v29 }
 0xd8e   :  { %v8155_v26 = vadd.f32 %v8154_v2, %v8146_v10 }
 0xd90   :  { %v8156_v25 = vsub.f32 %v8139_v42, %v8155_v26 }
 0xd92   :  { %8157 = vst.msk [vmem:[%s16880_s17] sm:$0x3f] %vm8143_vm8, %v8156_v25 }

</bundles_post_ra>
